<compile_context>
chip_gen: v7x
topology: tpu7x:2x2x1
jax: 0.10.0
libtpu: 0.0.40
codegen_flags: <defaults>
</compile_context>

<pallas_src>
import functools
import math

import jax
import jax.numpy as jnp
import numpy as np
from jax.experimental import pallas as pl
from jax.experimental.pallas import tpu as pltpu

_BN_EPS = 1e-5
_LN_EPS = 1e-5


def _bf16(x):
    return x.astype(jnp.bfloat16)


# ---------------------------------------------------------------------------
# CNN stage: fused Conv2d(3x3, pad=1) + eval BatchNorm2d + ReLU
# ---------------------------------------------------------------------------

def _conv3x3_kernel(x_ref, w_ref, b_ref, o_ref, *, H, W):
    """x_ref: (1, H+2, W+2, Cin) padded block; w_ref: (9, Cin, Cout) with BN
    scale folded in; b_ref: (1, Cout); o_ref: (1, H*W, Cout).
    In-kernel im2col: 9 shifted window loads accumulated via 9 small matmuls."""
    Cin = x_ref.shape[3]
    Cout = o_ref.shape[2]
    acc = jnp.zeros((H * W, Cout), jnp.float32)
    for ky in range(3):
        for kx in range(3):
            xs = x_ref[0, ky:ky + H, kx:kx + W, :].reshape(H * W, Cin)
            acc = acc + jnp.dot(xs, w_ref[ky * 3 + kx],
                                preferred_element_type=jnp.float32)
    o_ref[0] = jnp.maximum(acc + b_ref[...], 0.0)


def conv2d_3x3_bn_relu(x, w, b, gamma, beta):
    """x: (B, H, W, Cin) channels-last; w: torch layout (Cout, Cin, 3, 3)."""
    B, H, W, Cin = x.shape
    Cout = w.shape[0]
    s = gamma / jnp.sqrt(1.0 + _BN_EPS)          # running stats: mean=0, var=1
    bias = (b * s + beta).reshape(1, Cout)
    wt = jnp.transpose(w, (2, 3, 1, 0)).reshape(9, Cin, Cout) * s.reshape(1, 1, Cout)
    xp = jnp.pad(x, ((0, 0), (1, 1), (1, 1), (0, 0)))
    y = pl.pallas_call(
        functools.partial(_conv3x3_kernel, H=H, W=W),
        out_shape=jax.ShapeDtypeStruct((B, H * W, Cout), jnp.float32),
        grid=(B,),
        in_specs=[
            pl.BlockSpec((1, H + 2, W + 2, Cin), lambda bb: (bb, 0, 0, 0)),
            pl.BlockSpec((9, Cin, Cout), lambda bb: (0, 0, 0)),
            pl.BlockSpec((1, Cout), lambda bb: (0, 0)),
        ],
        out_specs=pl.BlockSpec((1, H * W, Cout), lambda bb: (bb, 0, 0)),
        compiler_params=pltpu.CompilerParams(dimension_semantics=("parallel",)),
    )(xp, wt, bias)
    return y.reshape(B, H, W, Cout)


def maxpool_freq(x, p):
    B, H, W, C = x.shape
    return x.reshape(B, H, W // p, p, C).max(axis=3)


# ---------------------------------------------------------------------------
# Patch embedding (Conv1d) + eval BatchNorm1d + positional encoding, fused
# ---------------------------------------------------------------------------

def positional_encoding(T, E):
    pos = np.arange(T, dtype=np.float32)[:, None]
    div = np.exp(np.arange(0, E, 2, dtype=np.float32) * (-math.log(10000.0) / E))
    pe = np.zeros((T, E), dtype=np.float32)
    pe[:, 0::2] = np.sin(pos * div)
    pe[:, 1::2] = np.cos(pos * div)
    return jnp.asarray(pe)


def _patch_kernel(x_ref, w_ref, b_ref, pe_ref, o_ref):
    o_ref[...] = (jnp.dot(_bf16(x_ref[...]), w_ref[...],
                          preferred_element_type=jnp.float32)
                  + b_ref[...] + pe_ref[...])


def patch_embed_posenc(x, w, b, gamma, beta, patch_size, stride, padding):
    """x: (B, T, Din); w: torch (E, Din, ks). Returns (B, Tp, E)."""
    B, T, Din = x.shape
    E = w.shape[0]
    xp = jnp.pad(x, ((0, 0), (padding, padding), (0, 0)))
    Tp = (T + 2 * padding - patch_size) // stride + 1
    cols = [xp[:, k:k + stride * (Tp - 1) + 1:stride, :] for k in range(patch_size)]
    xcol = jnp.stack(cols, axis=2).reshape(B * Tp, patch_size * Din)
    s = gamma / jnp.sqrt(1.0 + _BN_EPS)
    wmat = _bf16(jnp.transpose(w, (2, 1, 0)).reshape(patch_size * Din, E) * s[None, :])
    bias = (b * s + beta).reshape(1, E)
    pe = jnp.tile(positional_encoding(Tp, E), (B, 1))
    y = pl.pallas_call(
        _patch_kernel,
        out_shape=jax.ShapeDtypeStruct((B * Tp, E), jnp.float32),
        grid=(1,),
        in_specs=[
            pl.BlockSpec((B * Tp, patch_size * Din), lambda i: (0, 0)),
            pl.BlockSpec((patch_size * Din, E), lambda i: (0, 0)),
            pl.BlockSpec((1, E), lambda i: (0, 0)),
            pl.BlockSpec((B * Tp, E), lambda i: (0, 0)),
        ],
        out_specs=pl.BlockSpec((B * Tp, E), lambda i: (0, 0)),
    )(xcol, wmat, bias, pe)
    return y.reshape(B, Tp, E)


# ---------------------------------------------------------------------------
# Fully fused post-norm TransformerEncoderLayer (eval mode, relu FFN)
# ---------------------------------------------------------------------------

def _ln(y, g, b, eps):
    mu = jnp.mean(y, axis=-1, keepdims=True)
    yc = y - mu
    var = jnp.mean(yc * yc, axis=-1, keepdims=True)
    return yc * jax.lax.rsqrt(var + eps) * g + b


def _tf_layer_kernel(x_ref, wqkv_ref, bqkv_ref, wo_ref, bo_ref,
                     g1_ref, s1_ref, wf1_ref, bf1_ref, wf2_ref, bf2_ref,
                     g2_ref, s2_ref, o_ref, *, num_heads):
    x = x_ref[0]                                     # (T, E)
    T, E = x.shape
    Dh = E // num_heads
    scale = 1.0 / math.sqrt(Dh)

    # fused QKV projection (N = 3E), bf16 MXU operands, f32 accumulation
    qkv = jnp.dot(_bf16(x), wqkv_ref[...],
                  preferred_element_type=jnp.float32) + bqkv_ref[...]     # (T, 3E)
    q = qkv[:, 0:E]
    k = qkv[:, E:2 * E]
    v = qkv[:, 2 * E:3 * E]

    wo = wo_ref[...]                                 # (E, E) f32
    attn = jnp.zeros((T, E), jnp.float32)
    for h in range(num_heads):
        qh = q[:, h * Dh:(h + 1) * Dh] * scale
        kh = k[:, h * Dh:(h + 1) * Dh]
        vh = v[:, h * Dh:(h + 1) * Dh]
        s = jax.lax.dot_general(qh, kh, (((1,), (1,)), ((), ())),
                                preferred_element_type=jnp.float32)       # (T, T)
        s = s - jnp.max(s, axis=-1, keepdims=True)
        p = jnp.exp(s)
        p = p * pl.reciprocal(jnp.sum(p, axis=-1, keepdims=True), approx=True)
        oh = jnp.dot(p, vh, preferred_element_type=jnp.float32)           # (T, Dh)
        # fold the head-concat directly into the output projection
        attn = attn + jnp.dot(oh, wo[h * Dh:(h + 1) * Dh, :],
                              preferred_element_type=jnp.float32)
    attn = attn + bo_ref[...]

    y = _ln(x + attn, g1_ref[...], s1_ref[...], _LN_EPS)
    hdn = jnp.maximum(jnp.dot(_bf16(y), wf1_ref[...],
                              preferred_element_type=jnp.float32) + bf1_ref[...],
                      0.0)
    f = jnp.dot(_bf16(hdn), wf2_ref[...],
                preferred_element_type=jnp.float32) + bf2_ref[...]
    o_ref[0] = _ln(y + f, g2_ref[...], s2_ref[...], _LN_EPS)


def transformer_layer(x, p, num_heads):
    B, T, E = x.shape
    wqkv = _bf16(p["w_qkv"].T)                 # (E, 3E)
    bqkv = p["b_qkv"].reshape(1, 3 * E)
    wo = p["w_out"].T                          # (E, E), kept f32 (row-sliced per head)
    bo = p["b_out"].reshape(1, E)
    wf1 = _bf16(p["w_ff1"].T)                  # (E, Hf)
    bf1 = p["b_ff1"].reshape(1, -1)
    wf2 = _bf16(p["w_ff2"].T)                  # (Hf, E)
    bf2 = p["b_ff2"].reshape(1, E)
    g1 = p["ln1_g"].reshape(1, E)
    s1 = p["ln1_b"].reshape(1, E)
    g2 = p["ln2_g"].reshape(1, E)
    s2 = p["ln2_b"].reshape(1, E)
    Hf = wf1.shape[1]
    return pl.pallas_call(
        functools.partial(_tf_layer_kernel, num_heads=num_heads),
        out_shape=jax.ShapeDtypeStruct((B, T, E), jnp.float32),
        grid=(B,),
        in_specs=[
            pl.BlockSpec((1, T, E), lambda b: (b, 0, 0)),
            pl.BlockSpec((E, 3 * E), lambda b: (0, 0)),
            pl.BlockSpec((1, 3 * E), lambda b: (0, 0)),
            pl.BlockSpec((E, E), lambda b: (0, 0)),
            pl.BlockSpec((1, E), lambda b: (0, 0)),
            pl.BlockSpec((1, E), lambda b: (0, 0)),
            pl.BlockSpec((1, E), lambda b: (0, 0)),
            pl.BlockSpec((E, Hf), lambda b: (0, 0)),
            pl.BlockSpec((1, Hf), lambda b: (0, 0)),
            pl.BlockSpec((Hf, E), lambda b: (0, 0)),
            pl.BlockSpec((1, E), lambda b: (0, 0)),
            pl.BlockSpec((1, E), lambda b: (0, 0)),
            pl.BlockSpec((1, E), lambda b: (0, 0)),
        ],
        out_specs=pl.BlockSpec((1, T, E), lambda b: (b, 0, 0)),
        compiler_params=pltpu.CompilerParams(dimension_semantics=("parallel",)),
    )(x, wqkv, bqkv, wo, bo, g1, s1, wf1, bf1, wf2, bf2, g2, s2)


# ---------------------------------------------------------------------------
# Fully fused HybridTCNBlock
# ---------------------------------------------------------------------------

def _tcn_kernel(x_ref, wdw_ref, wpw_ref, w1_ref, b1_ref, w2_ref, b2_ref, o_ref,
                *, dilations, dmax, T):
    """One block for one batch element: dilated depthwise convs, alpha-weighted
    pointwise convs (alpha folded into the weights), eval-BN folded into
    ConvFFN fc1, GELU, fc2, residual — all in one kernel."""
    res = x_ref[0, dmax:dmax + T, :]                 # (T, C) original x
    comb = jnp.zeros(res.shape, jnp.float32)
    for i, d in enumerate(dilations):
        left = x_ref[0, dmax - d:dmax - d + T, :]
        right = x_ref[0, dmax + d:dmax + d + T, :]
        w0 = wdw_ref[3 * i:3 * i + 1, :]
        w1t = wdw_ref[3 * i + 1:3 * i + 2, :]
        w2t = wdw_ref[3 * i + 2:3 * i + 3, :]
        dw = left * w0 + res * w1t + right * w2t     # depthwise dilated conv
        comb = comb + jnp.dot(_bf16(dw), wpw_ref[i],
                              preferred_element_type=jnp.float32)
    # TODO(synk): PyTorch nn.GELU() default is exact erf-GELU; tanh approximation
    # used here for Mosaic-safe lowering (max abs err ~1e-3).
    h = jax.nn.gelu(jnp.dot(_bf16(comb), w1_ref[...],
                            preferred_element_type=jnp.float32) + b1_ref[...],
                    approximate=True)
    f = jnp.dot(_bf16(h), w2_ref[...],
                preferred_element_type=jnp.float32) + b2_ref[...]
    o_ref[0] = f + res


def tcn_block(x, p, dilations):
    B, T, C = x.shape
    nd = len(dilations)
    dmax = int(max(dilations))
    xp = jnp.pad(x, ((0, 0), (dmax, dmax), (0, 0)))
    w_soft = jax.nn.softmax(p["alpha"])
    wdw = jnp.concatenate([p["dw_w"][i].reshape(3, C) for i in range(nd)], axis=0)
    wpw = _bf16(jnp.stack([w_soft[i] * p["pw_w"][i].T for i in range(nd)], axis=0))
    s = p["bn_g"] / jnp.sqrt(1.0 + _BN_EPS)          # running stats: mean=0, var=1
    t = p["bn_b"]
    Hd = p["fc1_w"].shape[0]
    w1 = p["fc1_w"].reshape(Hd, C)
    w1_eff = _bf16((w1 * s[None, :]).T)              # (C, Hd): BN folded into fc1
    b1_eff = (w1 @ t + p["fc1_b"]).reshape(1, Hd)
    w2_eff = _bf16(p["fc2_w"].reshape(C, Hd).T)      # (Hd, C)
    b2 = p["fc2_b"].reshape(1, C)
    return pl.pallas_call(
        functools.partial(_tcn_kernel, dilations=tuple(int(d) for d in dilations),
                          dmax=dmax, T=T),
        out_shape=jax.ShapeDtypeStruct((B, T, C), jnp.float32),
        grid=(B,),
        in_specs=[
            pl.BlockSpec((1, T + 2 * dmax, C), lambda b: (b, 0, 0)),
            pl.BlockSpec((nd * 3, C), lambda b: (0, 0)),
            pl.BlockSpec((nd, C, C), lambda b: (0, 0, 0)),
            pl.BlockSpec((C, Hd), lambda b: (0, 0)),
            pl.BlockSpec((1, Hd), lambda b: (0, 0)),
            pl.BlockSpec((Hd, C), lambda b: (0, 0)),
            pl.BlockSpec((1, C), lambda b: (0, 0)),
        ],
        out_specs=pl.BlockSpec((1, T, C), lambda b: (b, 0, 0)),
        compiler_params=pltpu.CompilerParams(dimension_semantics=("parallel",)),
    )(xp, wdw, wpw, w1_eff, b1_eff, w2_eff, b2)


# ---------------------------------------------------------------------------
# Time-mean + FC head + sigmoid, fused
# ---------------------------------------------------------------------------

def _head_kernel(x_ref, *refs, n_fc):
    o_ref = refs[-1]
    wb = refs[:-1]
    x = x_ref[...]                                   # (B, T, C)
    T = x.shape[1]
    m = x[:, 0, :]
    for tt in range(1, T):
        m = m + x[:, tt, :]
    h = m * (1.0 / T)                                # mean over time
    for i in range(n_fc):
        h = jnp.dot(h, wb[2 * i][...],
                    preferred_element_type=jnp.float32) + wb[2 * i + 1][...]
        if i < n_fc - 1:
            h = jnp.maximum(h, 0.0)
        else:
            h = jax.nn.sigmoid(h)
    o_ref[...] = h


def output_head(x, fcs):
    B, T, C = x.shape
    args = [x]
    in_specs = [pl.BlockSpec((B, T, C), lambda i: (0, 0, 0))]
    for (w, b) in fcs:
        wt = w.T
        bt = b.reshape(1, -1)
        args += [wt, bt]
        in_specs += [pl.BlockSpec(wt.shape, lambda i: (0, 0)),
                     pl.BlockSpec(bt.shape, lambda i: (0, 0))]
    out_dim = fcs[-1][0].shape[0]
    return pl.pallas_call(
        functools.partial(_head_kernel, n_fc=len(fcs)),
        out_shape=jax.ShapeDtypeStruct((B, out_dim), jnp.float32),
        grid=(1,),
        in_specs=in_specs,
        out_specs=pl.BlockSpec((B, out_dim), lambda i: (0, 0)),
    )(*args)


# ---------------------------------------------------------------------------
# Full forward pass
# ---------------------------------------------------------------------------

def main_model_forward(x_nchw, params, hp):
    # PyTorch NCHW input (B, Cin, T, F) -> channels-last (B, T, F, Cin)
    x = jnp.transpose(x_nchw, (0, 2, 3, 1)).astype(jnp.float32)
    for i, pool in enumerate(hp["f_pool_size"]):
        cp = params["cnn"][i]
        x = conv2d_3x3_bn_relu(x, cp["w"], cp["b"], cp["gamma"], cp["beta"])
        x = maxpool_freq(x, pool)
        # Dropout2d: identity (eval)

    B, T, F, C = x.shape
    # match torch permute(0,2,1,3) + reshape: feature index = c*F + f
    x = jnp.transpose(x, (0, 1, 3, 2)).reshape(B, T, C * F)

    pp = params["patch"]
    x = patch_embed_posenc(x, pp["w"], pp["b"], pp["gamma"], pp["beta"],
                           hp["patch_size"], hp["stride_size"],
                           hp["patch_size"] // 2)

    for lp in params["tf_layers"]:
        x = transformer_layer(x, lp, num_heads=8)

    for bp, dset in zip(params["tcn"], hp["tcn_dilation_sets"]):
        x = tcn_block(x, bp, dset)

    # mean over time (== torch x.mean(dim=-1) on (B, C, T)) + FC head + sigmoid
    return output_head(x, params["fc"])


# ---------------------------------------------------------------------------
# Deterministic parameter init (shapes follow the PyTorch module __init__)
# ---------------------------------------------------------------------------

def init_params(key, hp):
    E = hp["embed_dim"]
    cf = hp["nb_conv_filters"]
    keys = iter(jax.random.split(key, 256))

    def nrm(shape, s=0.05):
        return (s * jax.random.normal(next(keys), shape)).astype(jnp.float32)

    params = {}

    cnn = []
    cin = hp["input_channels"]
    for _ in hp["f_pool_size"]:
        cnn.append(dict(w=nrm((cf, cin, 3, 3)), b=nrm((cf,)),
                        gamma=1.0 + nrm((cf,)), beta=nrm((cf,))))
        cin = cf
    params["cnn"] = cnn

    freq_red = hp["nb_mels"] // int(np.prod(hp["f_pool_size"]))
    d_cnn = cf * freq_red
    params["patch"] = dict(w=nrm((E, d_cnn, hp["patch_size"])), b=nrm((E,)),
                           gamma=1.0 + nrm((E,)), beta=nrm((E,)))

    tf_layers = []
    for _ in range(2):
        tf_layers.append(dict(
            w_qkv=nrm((3 * E, E)), b_qkv=nrm((3 * E,)),
            w_out=nrm((E, E)), b_out=nrm((E,)),
            ln1_g=1.0 + nrm((E,)), ln1_b=nrm((E,)),
            w_ff1=nrm((512, E)), b_ff1=nrm((512,)),
            w_ff2=nrm((E, 512)), b_ff2=nrm((E,)),
            ln2_g=1.0 + nrm((E,)), ln2_b=nrm((E,)),
        ))
    params["tf_layers"] = tf_layers

    tcn = []
    hidden = E * 4
    for dset in hp["tcn_dilation_sets"]:
        tcn.append(dict(
            dw_w=[jnp.transpose(nrm((E, 1, 3)), (2, 1, 0)) for _ in dset],   # (3,1,E)
            pw_w=[nrm((E, E)) for _ in dset],                                # torch (Cout,Cin)
            alpha=jnp.ones((len(dset),), jnp.float32),
            bn_g=1.0 + nrm((E,)), bn_b=nrm((E,)),
            fc1_w=nrm((hidden, E, 1)), fc1_b=nrm((hidden,)),
            fc2_w=nrm((E, hidden, 1)), fc2_b=nrm((E,)),
        ))
    params["tcn"] = tcn

    fcs = []
    in_dim = E
    for d in hp["fc_dims"]:
        fcs.append((nrm((d, in_dim)), nrm((d,))))
        in_dim = d
    fcs.append((nrm((2, in_dim)), nrm((2,))))
    params["fc"] = fcs
    return params


if __name__ == "__main__":
    hp = dict(
        input_channels=4,
        nb_mels=16,
        nb_conv_filters=8,
        dropout=0.1,
        f_pool_size=[2, 2],
        patch_size=4,
        stride_size=2,
        embed_dim=64,
        tcn_dilation_sets=[[1, 2], [2, 4]],
        fc_dims=[32, 16],
    )
    key = jax.random.PRNGKey(0)
    kp, kx = jax.random.split(key)
    params = init_params(kp, hp)

    # input: (B, input_channels, time, nb_mels) -- NCHW like the PyTorch module
    x = jax.random.normal(kx, (2, hp["input_channels"], 16, hp["nb_mels"]), jnp.float32)

    fwd = jax.jit(functools.partial(main_model_forward, hp=hp))
    out = jax.block_until_ready(fwd(x, params))

    assert out.shape == (2, 2), out.shape
    assert bool(jnp.all(jnp.isfinite(out)))
    assert bool(jnp.all((out >= 0.0) & (out <= 1.0)))
    print("KERNEL_OK")
</pallas_src>

<mosaic_0001>
module attributes {stable_mosaic.version = 11 : i64} {
  func.func @_conv3x3_kernel(%arg0: i32, %arg1: memref<1x18x18x4xf32, #tpu.memory_space<vmem>>, %arg2: memref<9x4x8xf32, #tpu.memory_space<vmem>>, %arg3: memref<1x8xf32, #tpu.memory_space<vmem>>, %arg4: memref<1x256x8xf32, #tpu.memory_space<vmem>>) attributes {dimension_semantics = [#tpu.dimension_semantics<parallel>], iteration_bounds = array<i64: 2>, scalar_prefetch = 0 : i64, scratch_operands = 0 : i64, tpu.core_type = #tpu.core_type<tc>, window_params = [{transform_indices = @transform_0, window_bounds = array<i64: 1, 18, 18, 4>}, {pipeline_mode = #tpu.pipeline_mode<synchronous>, transform_indices = @transform_1, window_bounds = array<i64: 9, 4, 8>}, {pipeline_mode = #tpu.pipeline_mode<synchronous>, transform_indices = @transform_2, window_bounds = array<i64: 1, 8>}, {transform_indices = @transform_3, window_bounds = array<i64: 1, 256, 8>}]} {
    %cst = arith.constant 0.000000e+00 : f32
    %0 = vector.broadcast %cst : f32 to vector<256x8xf32>
    %c0 = arith.constant 0 : index
    %c0_0 = arith.constant 0 : index
    %c0_1 = arith.constant 0 : index
    %c0_2 = arith.constant 0 : index
    %1 = vector.load %arg1[%c0, %c0_0, %c0_1, %c0_2] : memref<1x18x18x4xf32, #tpu.memory_space<vmem>>, vector<1x16x16x4xf32>
    %2 = vector.shape_cast %1 : vector<1x16x16x4xf32> to vector<16x16x4xf32>
    %3 = vector.shape_cast %2 : vector<16x16x4xf32> to vector<256x4xf32>
    %c0_3 = arith.constant 0 : index
    %c0_4 = arith.constant 0 : index
    %c0_5 = arith.constant 0 : index
    %4 = vector.load %arg2[%c0_3, %c0_4, %c0_5] : memref<9x4x8xf32, #tpu.memory_space<vmem>>, vector<1x4x8xf32>
    %5 = vector.shape_cast %4 : vector<1x4x8xf32> to vector<4x8xf32>
    %cst_6 = arith.constant dense<0.000000e+00> : vector<256x8xf32>
    %6 = tpu.matmul %3, %5, %cst_6 {dimension_numbers = #tpu.dot_dimension_numbers<[1], [0], [0], [1], [0, 0, 1, 1], [], []>} : vector<256x4xf32>, vector<4x8xf32>, vector<256x8xf32> -> vector<256x8xf32>
    %7 = arith.addf %0, %6 : vector<256x8xf32>
    %c0_7 = arith.constant 0 : index
    %c0_8 = arith.constant 0 : index
    %c1 = arith.constant 1 : index
    %c0_9 = arith.constant 0 : index
    %8 = vector.load %arg1[%c0_7, %c0_8, %c1, %c0_9] : memref<1x18x18x4xf32, #tpu.memory_space<vmem>>, vector<1x16x16x4xf32>
    %9 = vector.shape_cast %8 : vector<1x16x16x4xf32> to vector<16x16x4xf32>
    %10 = vector.shape_cast %9 : vector<16x16x4xf32> to vector<256x4xf32>
    %c1_10 = arith.constant 1 : index
    %c0_11 = arith.constant 0 : index
    %c0_12 = arith.constant 0 : index
    %11 = vector.load %arg2[%c1_10, %c0_11, %c0_12] : memref<9x4x8xf32, #tpu.memory_space<vmem>>, vector<1x4x8xf32>
    %12 = vector.shape_cast %11 : vector<1x4x8xf32> to vector<4x8xf32>
    %cst_13 = arith.constant dense<0.000000e+00> : vector<256x8xf32>
    %13 = tpu.matmul %10, %12, %cst_13 {dimension_numbers = #tpu.dot_dimension_numbers<[1], [0], [0], [1], [0, 0, 1, 1], [], []>} : vector<256x4xf32>, vector<4x8xf32>, vector<256x8xf32> -> vector<256x8xf32>
    %14 = arith.addf %7, %13 : vector<256x8xf32>
    %c0_14 = arith.constant 0 : index
    %c0_15 = arith.constant 0 : index
    %c2 = arith.constant 2 : index
    %c0_16 = arith.constant 0 : index
    %15 = vector.load %arg1[%c0_14, %c0_15, %c2, %c0_16] : memref<1x18x18x4xf32, #tpu.memory_space<vmem>>, vector<1x16x16x4xf32>
    %16 = vector.shape_cast %15 : vector<1x16x16x4xf32> to vector<16x16x4xf32>
    %17 = vector.shape_cast %16 : vector<16x16x4xf32> to vector<256x4xf32>
    %c2_17 = arith.constant 2 : index
    %c0_18 = arith.constant 0 : index
    %c0_19 = arith.constant 0 : index
    %18 = vector.load %arg2[%c2_17, %c0_18, %c0_19] : memref<9x4x8xf32, #tpu.memory_space<vmem>>, vector<1x4x8xf32>
    %19 = vector.shape_cast %18 : vector<1x4x8xf32> to vector<4x8xf32>
    %cst_20 = arith.constant dense<0.000000e+00> : vector<256x8xf32>
    %20 = tpu.matmul %17, %19, %cst_20 {dimension_numbers = #tpu.dot_dimension_numbers<[1], [0], [0], [1], [0, 0, 1, 1], [], []>} : vector<256x4xf32>, vector<4x8xf32>, vector<256x8xf32> -> vector<256x8xf32>
    %21 = arith.addf %14, %20 : vector<256x8xf32>
    %c0_21 = arith.constant 0 : index
    %c1_22 = arith.constant 1 : index
    %c0_23 = arith.constant 0 : index
    %c0_24 = arith.constant 0 : index
    %22 = vector.load %arg1[%c0_21, %c1_22, %c0_23, %c0_24] : memref<1x18x18x4xf32, #tpu.memory_space<vmem>>, vector<1x16x16x4xf32>
    %23 = vector.shape_cast %22 : vector<1x16x16x4xf32> to vector<16x16x4xf32>
    %24 = vector.shape_cast %23 : vector<16x16x4xf32> to vector<256x4xf32>
    %c3 = arith.constant 3 : index
    %c0_25 = arith.constant 0 : index
    %c0_26 = arith.constant 0 : index
    %25 = vector.load %arg2[%c3, %c0_25, %c0_26] : memref<9x4x8xf32, #tpu.memory_space<vmem>>, vector<1x4x8xf32>
    %26 = vector.shape_cast %25 : vector<1x4x8xf32> to vector<4x8xf32>
    %cst_27 = arith.constant dense<0.000000e+00> : vector<256x8xf32>
    %27 = tpu.matmul %24, %26, %cst_27 {dimension_numbers = #tpu.dot_dimension_numbers<[1], [0], [0], [1], [0, 0, 1, 1], [], []>} : vector<256x4xf32>, vector<4x8xf32>, vector<256x8xf32> -> vector<256x8xf32>
    %28 = arith.addf %21, %27 : vector<256x8xf32>
    %c0_28 = arith.constant 0 : index
    %c1_29 = arith.constant 1 : index
    %c1_30 = arith.constant 1 : index
    %c0_31 = arith.constant 0 : index
    %29 = vector.load %arg1[%c0_28, %c1_29, %c1_30, %c0_31] : memref<1x18x18x4xf32, #tpu.memory_space<vmem>>, vector<1x16x16x4xf32>
    %30 = vector.shape_cast %29 : vector<1x16x16x4xf32> to vector<16x16x4xf32>
    %31 = vector.shape_cast %30 : vector<16x16x4xf32> to vector<256x4xf32>
    %c4 = arith.constant 4 : index
    %c0_32 = arith.constant 0 : index
    %c0_33 = arith.constant 0 : index
    %32 = vector.load %arg2[%c4, %c0_32, %c0_33] : memref<9x4x8xf32, #tpu.memory_space<vmem>>, vector<1x4x8xf32>
    %33 = vector.shape_cast %32 : vector<1x4x8xf32> to vector<4x8xf32>
    %cst_34 = arith.constant dense<0.000000e+00> : vector<256x8xf32>
    %34 = tpu.matmul %31, %33, %cst_34 {dimension_numbers = #tpu.dot_dimension_numbers<[1], [0], [0], [1], [0, 0, 1, 1], [], []>} : vector<256x4xf32>, vector<4x8xf32>, vector<256x8xf32> -> vector<256x8xf32>
    %35 = arith.addf %28, %34 : vector<256x8xf32>
    %c0_35 = arith.constant 0 : index
    %c1_36 = arith.constant 1 : index
    %c2_37 = arith.constant 2 : index
    %c0_38 = arith.constant 0 : index
    %36 = vector.load %arg1[%c0_35, %c1_36, %c2_37, %c0_38] : memref<1x18x18x4xf32, #tpu.memory_space<vmem>>, vector<1x16x16x4xf32>
    %37 = vector.shape_cast %36 : vector<1x16x16x4xf32> to vector<16x16x4xf32>
    %38 = vector.shape_cast %37 : vector<16x16x4xf32> to vector<256x4xf32>
    %c5 = arith.constant 5 : index
    %c0_39 = arith.constant 0 : index
    %c0_40 = arith.constant 0 : index
    %39 = vector.load %arg2[%c5, %c0_39, %c0_40] : memref<9x4x8xf32, #tpu.memory_space<vmem>>, vector<1x4x8xf32>
    %40 = vector.shape_cast %39 : vector<1x4x8xf32> to vector<4x8xf32>
    %cst_41 = arith.constant dense<0.000000e+00> : vector<256x8xf32>
    %41 = tpu.matmul %38, %40, %cst_41 {dimension_numbers = #tpu.dot_dimension_numbers<[1], [0], [0], [1], [0, 0, 1, 1], [], []>} : vector<256x4xf32>, vector<4x8xf32>, vector<256x8xf32> -> vector<256x8xf32>
    %42 = arith.addf %35, %41 : vector<256x8xf32>
    %c0_42 = arith.constant 0 : index
    %c2_43 = arith.constant 2 : index
    %c0_44 = arith.constant 0 : index
    %c0_45 = arith.constant 0 : index
    %43 = vector.load %arg1[%c0_42, %c2_43, %c0_44, %c0_45] : memref<1x18x18x4xf32, #tpu.memory_space<vmem>>, vector<1x16x16x4xf32>
    %44 = vector.shape_cast %43 : vector<1x16x16x4xf32> to vector<16x16x4xf32>
    %45 = vector.shape_cast %44 : vector<16x16x4xf32> to vector<256x4xf32>
    %c6 = arith.constant 6 : index
    %c0_46 = arith.constant 0 : index
    %c0_47 = arith.constant 0 : index
    %46 = vector.load %arg2[%c6, %c0_46, %c0_47] : memref<9x4x8xf32, #tpu.memory_space<vmem>>, vector<1x4x8xf32>
    %47 = vector.shape_cast %46 : vector<1x4x8xf32> to vector<4x8xf32>
    %cst_48 = arith.constant dense<0.000000e+00> : vector<256x8xf32>
    %48 = tpu.matmul %45, %47, %cst_48 {dimension_numbers = #tpu.dot_dimension_numbers<[1], [0], [0], [1], [0, 0, 1, 1], [], []>} : vector<256x4xf32>, vector<4x8xf32>, vector<256x8xf32> -> vector<256x8xf32>
    %49 = arith.addf %42, %48 : vector<256x8xf32>
    %c0_49 = arith.constant 0 : index
    %c2_50 = arith.constant 2 : index
    %c1_51 = arith.constant 1 : index
    %c0_52 = arith.constant 0 : index
    %50 = vector.load %arg1[%c0_49, %c2_50, %c1_51, %c0_52] : memref<1x18x18x4xf32, #tpu.memory_space<vmem>>, vector<1x16x16x4xf32>
    %51 = vector.shape_cast %50 : vector<1x16x16x4xf32> to vector<16x16x4xf32>
    %52 = vector.shape_cast %51 : vector<16x16x4xf32> to vector<256x4xf32>
    %c7 = arith.constant 7 : index
    %c0_53 = arith.constant 0 : index
    %c0_54 = arith.constant 0 : index
    %53 = vector.load %arg2[%c7, %c0_53, %c0_54] : memref<9x4x8xf32, #tpu.memory_space<vmem>>, vector<1x4x8xf32>
    %54 = vector.shape_cast %53 : vector<1x4x8xf32> to vector<4x8xf32>
    %cst_55 = arith.constant dense<0.000000e+00> : vector<256x8xf32>
    %55 = tpu.matmul %52, %54, %cst_55 {dimension_numbers = #tpu.dot_dimension_numbers<[1], [0], [0], [1], [0, 0, 1, 1], [], []>} : vector<256x4xf32>, vector<4x8xf32>, vector<256x8xf32> -> vector<256x8xf32>
    %56 = arith.addf %49, %55 : vector<256x8xf32>
    %c0_56 = arith.constant 0 : index
    %c2_57 = arith.constant 2 : index
    %c2_58 = arith.constant 2 : index
    %c0_59 = arith.constant 0 : index
    %57 = vector.load %arg1[%c0_56, %c2_57, %c2_58, %c0_59] : memref<1x18x18x4xf32, #tpu.memory_space<vmem>>, vector<1x16x16x4xf32>
    %58 = vector.shape_cast %57 : vector<1x16x16x4xf32> to vector<16x16x4xf32>
    %59 = vector.shape_cast %58 : vector<16x16x4xf32> to vector<256x4xf32>
    %c8 = arith.constant 8 : index
    %c0_60 = arith.constant 0 : index
    %c0_61 = arith.constant 0 : index
    %60 = vector.load %arg2[%c8, %c0_60, %c0_61] : memref<9x4x8xf32, #tpu.memory_space<vmem>>, vector<1x4x8xf32>
    %61 = vector.shape_cast %60 : vector<1x4x8xf32> to vector<4x8xf32>
    %cst_62 = arith.constant dense<0.000000e+00> : vector<256x8xf32>
    %62 = tpu.matmul %59, %61, %cst_62 {dimension_numbers = #tpu.dot_dimension_numbers<[1], [0], [0], [1], [0, 0, 1, 1], [], []>} : vector<256x4xf32>, vector<4x8xf32>, vector<256x8xf32> -> vector<256x8xf32>
    %63 = arith.addf %56, %62 : vector<256x8xf32>
    %c0_63 = arith.constant 0 : index
    %c0_64 = arith.constant 0 : index
    %64 = vector.load %arg3[%c0_63, %c0_64] : memref<1x8xf32, #tpu.memory_space<vmem>>, vector<1x8xf32>
    %65 = vector.broadcast %64 : vector<1x8xf32> to vector<256x8xf32>
    %66 = arith.addf %63, %65 : vector<256x8xf32>
    %cst_65 = arith.constant 0.000000e+00 : f32
    %67 = vector.broadcast %cst_65 : f32 to vector<256x8xf32>
    %68 = arith.maximumf %66, %67 : vector<256x8xf32>
    %c0_66 = arith.constant 0 : index
    %c0_67 = arith.constant 0 : index
    %c0_68 = arith.constant 0 : index
    %69 = vector.load %arg4[%c0_66, %c0_67, %c0_68] : memref<1x256x8xf32, #tpu.memory_space<vmem>>, vector<1x256x8xf32>
    %70 = vector.shape_cast %69 : vector<1x256x8xf32> to vector<256x8xf32>
    %71 = vector.shape_cast %68 : vector<256x8xf32> to vector<1x256x8xf32>
    tpu.vector_store %arg4[%c0_66, %c0_67, %c0_68], %71 {strides = array<i32>} : memref<1x256x8xf32, #tpu.memory_space<vmem>>, vector<1x256x8xf32>,
    return
  }
  func.func @transform_0(%arg0: i32) -> (i32, i32, i32, i32) {
    %c0_i32 = arith.constant 0 : i32
    %c0_i32_0 = arith.constant 0 : i32
    %c0_i32_1 = arith.constant 0 : i32
    %c0_i32_2 = arith.constant 0 : i32
    return %arg0, %c0_i32, %c0_i32_0, %c0_i32_1 : i32, i32, i32, i32
  }
  func.func @transform_1(%arg0: i32) -> (i32, i32, i32) {
    %c0_i32 = arith.constant 0 : i32
    %c0_i32_0 = arith.constant 0 : i32
    %c0_i32_1 = arith.constant 0 : i32
    %c0_i32_2 = arith.constant 0 : i32
    return %c0_i32, %c0_i32_0, %c0_i32_1 : i32, i32, i32
  }
  func.func @transform_2(%arg0: i32) -> (i32, i32) {
    %c0_i32 = arith.constant 0 : i32
    %c0_i32_0 = arith.constant 0 : i32
    %c0_i32_1 = arith.constant 0 : i32
    return %c0_i32, %c0_i32_0 : i32, i32
  }
  func.func @transform_3(%arg0: i32) -> (i32, i32, i32) {
    %c0_i32 = arith.constant 0 : i32
    %c0_i32_0 = arith.constant 0 : i32
    %c0_i32_1 = arith.constant 0 : i32
    return %arg0, %c0_i32, %c0_i32_0 : i32, i32, i32
  }
}

module attributes {stable_mosaic.version = 11 : i64} {
  func.func @_conv3x3_kernel(%arg0: i32, %arg1: memref<1x18x10x8xf32, #tpu.memory_space<vmem>>, %arg2: memref<9x8x8xf32, #tpu.memory_space<vmem>>, %arg3: memref<1x8xf32, #tpu.memory_space<vmem>>, %arg4: memref<1x128x8xf32, #tpu.memory_space<vmem>>) attributes {dimension_semantics = [#tpu.dimension_semantics<parallel>], iteration_bounds = array<i64: 2>, scalar_prefetch = 0 : i64, scratch_operands = 0 : i64, tpu.core_type = #tpu.core_type<tc>, window_params = [{transform_indices = @transform_0, window_bounds = array<i64: 1, 18, 10, 8>}, {pipeline_mode = #tpu.pipeline_mode<synchronous>, transform_indices = @transform_1, window_bounds = array<i64: 9, 8, 8>}, {pipeline_mode = #tpu.pipeline_mode<synchronous>, transform_indices = @transform_2, window_bounds = array<i64: 1, 8>}, {transform_indices = @transform_3, window_bounds = array<i64: 1, 128, 8>}]} {
    %cst = arith.constant 0.000000e+00 : f32
    %0 = vector.broadcast %cst : f32 to vector<128x8xf32>
    %c0 = arith.constant 0 : index
    %c0_0 = arith.constant 0 : index
    %c0_1 = arith.constant 0 : index
    %c0_2 = arith.constant 0 : index
    %1 = vector.load %arg1[%c0, %c0_0, %c0_1, %c0_2] : memref<1x18x10x8xf32, #tpu.memory_space<vmem>>, vector<1x16x8x8xf32>
    %2 = vector.shape_cast %1 : vector<1x16x8x8xf32> to vector<16x8x8xf32>
    %3 = vector.shape_cast %2 : vector<16x8x8xf32> to vector<128x8xf32>
    %c0_3 = arith.constant 0 : index
    %c0_4 = arith.constant 0 : index
    %c0_5 = arith.constant 0 : index
    %4 = vector.load %arg2[%c0_3, %c0_4, %c0_5] : memref<9x8x8xf32, #tpu.memory_space<vmem>>, vector<1x8x8xf32>
    %5 = vector.shape_cast %4 : vector<1x8x8xf32> to vector<8x8xf32>
    %cst_6 = arith.constant dense<0.000000e+00> : vector<128x8xf32>
    %6 = tpu.matmul %3, %5, %cst_6 {dimension_numbers = #tpu.dot_dimension_numbers<[1], [0], [0], [1], [0, 0, 1, 1], [], []>} : vector<128x8xf32>, vector<8x8xf32>, vector<128x8xf32> -> vector<128x8xf32>
    %7 = arith.addf %0, %6 : vector<128x8xf32>
    %c0_7 = arith.constant 0 : index
    %c0_8 = arith.constant 0 : index
    %c1 = arith.constant 1 : index
    %c0_9 = arith.constant 0 : index
    %8 = vector.load %arg1[%c0_7, %c0_8, %c1, %c0_9] : memref<1x18x10x8xf32, #tpu.memory_space<vmem>>, vector<1x16x8x8xf32>
    %9 = vector.shape_cast %8 : vector<1x16x8x8xf32> to vector<16x8x8xf32>
    %10 = vector.shape_cast %9 : vector<16x8x8xf32> to vector<128x8xf32>
    %c1_10 = arith.constant 1 : index
    %c0_11 = arith.constant 0 : index
    %c0_12 = arith.constant 0 : index
    %11 = vector.load %arg2[%c1_10, %c0_11, %c0_12] : memref<9x8x8xf32, #tpu.memory_space<vmem>>, vector<1x8x8xf32>
    %12 = vector.shape_cast %11 : vector<1x8x8xf32> to vector<8x8xf32>
    %cst_13 = arith.constant dense<0.000000e+00> : vector<128x8xf32>
    %13 = tpu.matmul %10, %12, %cst_13 {dimension_numbers = #tpu.dot_dimension_numbers<[1], [0], [0], [1], [0, 0, 1, 1], [], []>} : vector<128x8xf32>, vector<8x8xf32>, vector<128x8xf32> -> vector<128x8xf32>
    %14 = arith.addf %7, %13 : vector<128x8xf32>
    %c0_14 = arith.constant 0 : index
    %c0_15 = arith.constant 0 : index
    %c2 = arith.constant 2 : index
    %c0_16 = arith.constant 0 : index
    %15 = vector.load %arg1[%c0_14, %c0_15, %c2, %c0_16] : memref<1x18x10x8xf32, #tpu.memory_space<vmem>>, vector<1x16x8x8xf32>
    %16 = vector.shape_cast %15 : vector<1x16x8x8xf32> to vector<16x8x8xf32>
    %17 = vector.shape_cast %16 : vector<16x8x8xf32> to vector<128x8xf32>
    %c2_17 = arith.constant 2 : index
    %c0_18 = arith.constant 0 : index
    %c0_19 = arith.constant 0 : index
    %18 = vector.load %arg2[%c2_17, %c0_18, %c0_19] : memref<9x8x8xf32, #tpu.memory_space<vmem>>, vector<1x8x8xf32>
    %19 = vector.shape_cast %18 : vector<1x8x8xf32> to vector<8x8xf32>
    %cst_20 = arith.constant dense<0.000000e+00> : vector<128x8xf32>
    %20 = tpu.matmul %17, %19, %cst_20 {dimension_numbers = #tpu.dot_dimension_numbers<[1], [0], [0], [1], [0, 0, 1, 1], [], []>} : vector<128x8xf32>, vector<8x8xf32>, vector<128x8xf32> -> vector<128x8xf32>
    %21 = arith.addf %14, %20 : vector<128x8xf32>
    %c0_21 = arith.constant 0 : index
    %c1_22 = arith.constant 1 : index
    %c0_23 = arith.constant 0 : index
    %c0_24 = arith.constant 0 : index
    %22 = vector.load %arg1[%c0_21, %c1_22, %c0_23, %c0_24] : memref<1x18x10x8xf32, #tpu.memory_space<vmem>>, vector<1x16x8x8xf32>
    %23 = vector.shape_cast %22 : vector<1x16x8x8xf32> to vector<16x8x8xf32>
    %24 = vector.shape_cast %23 : vector<16x8x8xf32> to vector<128x8xf32>
    %c3 = arith.constant 3 : index
    %c0_25 = arith.constant 0 : index
    %c0_26 = arith.constant 0 : index
    %25 = vector.load %arg2[%c3, %c0_25, %c0_26] : memref<9x8x8xf32, #tpu.memory_space<vmem>>, vector<1x8x8xf32>
    %26 = vector.shape_cast %25 : vector<1x8x8xf32> to vector<8x8xf32>
    %cst_27 = arith.constant dense<0.000000e+00> : vector<128x8xf32>
    %27 = tpu.matmul %24, %26, %cst_27 {dimension_numbers = #tpu.dot_dimension_numbers<[1], [0], [0], [1], [0, 0, 1, 1], [], []>} : vector<128x8xf32>, vector<8x8xf32>, vector<128x8xf32> -> vector<128x8xf32>
    %28 = arith.addf %21, %27 : vector<128x8xf32>
    %c0_28 = arith.constant 0 : index
    %c1_29 = arith.constant 1 : index
    %c1_30 = arith.constant 1 : index
    %c0_31 = arith.constant 0 : index
    %29 = vector.load %arg1[%c0_28, %c1_29, %c1_30, %c0_31] : memref<1x18x10x8xf32, #tpu.memory_space<vmem>>, vector<1x16x8x8xf32>
    %30 = vector.shape_cast %29 : vector<1x16x8x8xf32> to vector<16x8x8xf32>
    %31 = vector.shape_cast %30 : vector<16x8x8xf32> to vector<128x8xf32>
    %c4 = arith.constant 4 : index
    %c0_32 = arith.constant 0 : index
    %c0_33 = arith.constant 0 : index
    %32 = vector.load %arg2[%c4, %c0_32, %c0_33] : memref<9x8x8xf32, #tpu.memory_space<vmem>>, vector<1x8x8xf32>
    %33 = vector.shape_cast %32 : vector<1x8x8xf32> to vector<8x8xf32>
    %cst_34 = arith.constant dense<0.000000e+00> : vector<128x8xf32>
    %34 = tpu.matmul %31, %33, %cst_34 {dimension_numbers = #tpu.dot_dimension_numbers<[1], [0], [0], [1], [0, 0, 1, 1], [], []>} : vector<128x8xf32>, vector<8x8xf32>, vector<128x8xf32> -> vector<128x8xf32>
    %35 = arith.addf %28, %34 : vector<128x8xf32>
    %c0_35 = arith.constant 0 : index
    %c1_36 = arith.constant 1 : index
    %c2_37 = arith.constant 2 : index
    %c0_38 = arith.constant 0 : index
    %36 = vector.load %arg1[%c0_35, %c1_36, %c2_37, %c0_38] : memref<1x18x10x8xf32, #tpu.memory_space<vmem>>, vector<1x16x8x8xf32>
    %37 = vector.shape_cast %36 : vector<1x16x8x8xf32> to vector<16x8x8xf32>
    %38 = vector.shape_cast %37 : vector<16x8x8xf32> to vector<128x8xf32>
    %c5 = arith.constant 5 : index
    %c0_39 = arith.constant 0 : index
    %c0_40 = arith.constant 0 : index
    %39 = vector.load %arg2[%c5, %c0_39, %c0_40] : memref<9x8x8xf32, #tpu.memory_space<vmem>>, vector<1x8x8xf32>
    %40 = vector.shape_cast %39 : vector<1x8x8xf32> to vector<8x8xf32>
    %cst_41 = arith.constant dense<0.000000e+00> : vector<128x8xf32>
    %41 = tpu.matmul %38, %40, %cst_41 {dimension_numbers = #tpu.dot_dimension_numbers<[1], [0], [0], [1], [0, 0, 1, 1], [], []>} : vector<128x8xf32>, vector<8x8xf32>, vector<128x8xf32> -> vector<128x8xf32>
    %42 = arith.addf %35, %41 : vector<128x8xf32>
    %c0_42 = arith.constant 0 : index
    %c2_43 = arith.constant 2 : index
    %c0_44 = arith.constant 0 : index
    %c0_45 = arith.constant 0 : index
    %43 = vector.load %arg1[%c0_42, %c2_43, %c0_44, %c0_45] : memref<1x18x10x8xf32, #tpu.memory_space<vmem>>, vector<1x16x8x8xf32>
    %44 = vector.shape_cast %43 : vector<1x16x8x8xf32> to vector<16x8x8xf32>
    %45 = vector.shape_cast %44 : vector<16x8x8xf32> to vector<128x8xf32>
    %c6 = arith.constant 6 : index
    %c0_46 = arith.constant 0 : index
    %c0_47 = arith.constant 0 : index
    %46 = vector.load %arg2[%c6, %c0_46, %c0_47] : memref<9x8x8xf32, #tpu.memory_space<vmem>>, vector<1x8x8xf32>
    %47 = vector.shape_cast %46 : vector<1x8x8xf32> to vector<8x8xf32>
    %cst_48 = arith.constant dense<0.000000e+00> : vector<128x8xf32>
    %48 = tpu.matmul %45, %47, %cst_48 {dimension_numbers = #tpu.dot_dimension_numbers<[1], [0], [0], [1], [0, 0, 1, 1], [], []>} : vector<128x8xf32>, vector<8x8xf32>, vector<128x8xf32> -> vector<128x8xf32>
    %49 = arith.addf %42, %48 : vector<128x8xf32>
    %c0_49 = arith.constant 0 : index
    %c2_50 = arith.constant 2 : index
    %c1_51 = arith.constant 1 : index
    %c0_52 = arith.constant 0 : index
    %50 = vector.load %arg1[%c0_49, %c2_50, %c1_51, %c0_52] : memref<1x18x10x8xf32, #tpu.memory_space<vmem>>, vector<1x16x8x8xf32>
    %51 = vector.shape_cast %50 : vector<1x16x8x8xf32> to vector<16x8x8xf32>
    %52 = vector.shape_cast %51 : vector<16x8x8xf32> to vector<128x8xf32>
    %c7 = arith.constant 7 : index
    %c0_53 = arith.constant 0 : index
    %c0_54 = arith.constant 0 : index
    %53 = vector.load %arg2[%c7, %c0_53, %c0_54] : memref<9x8x8xf32, #tpu.memory_space<vmem>>, vector<1x8x8xf32>
    %54 = vector.shape_cast %53 : vector<1x8x8xf32> to vector<8x8xf32>
    %cst_55 = arith.constant dense<0.000000e+00> : vector<128x8xf32>
    %55 = tpu.matmul %52, %54, %cst_55 {dimension_numbers = #tpu.dot_dimension_numbers<[1], [0], [0], [1], [0, 0, 1, 1], [], []>} : vector<128x8xf32>, vector<8x8xf32>, vector<128x8xf32> -> vector<128x8xf32>
    %56 = arith.addf %49, %55 : vector<128x8xf32>
    %c0_56 = arith.constant 0 : index
    %c2_57 = arith.constant 2 : index
    %c2_58 = arith.constant 2 : index
    %c0_59 = arith.constant 0 : index
    %57 = vector.load %arg1[%c0_56, %c2_57, %c2_58, %c0_59] : memref<1x18x10x8xf32, #tpu.memory_space<vmem>>, vector<1x16x8x8xf32>
    %58 = vector.shape_cast %57 : vector<1x16x8x8xf32> to vector<16x8x8xf32>
    %59 = vector.shape_cast %58 : vector<16x8x8xf32> to vector<128x8xf32>
    %c8 = arith.constant 8 : index
    %c0_60 = arith.constant 0 : index
    %c0_61 = arith.constant 0 : index
    %60 = vector.load %arg2[%c8, %c0_60, %c0_61] : memref<9x8x8xf32, #tpu.memory_space<vmem>>, vector<1x8x8xf32>
    %61 = vector.shape_cast %60 : vector<1x8x8xf32> to vector<8x8xf32>
    %cst_62 = arith.constant dense<0.000000e+00> : vector<128x8xf32>
    %62 = tpu.matmul %59, %61, %cst_62 {dimension_numbers = #tpu.dot_dimension_numbers<[1], [0], [0], [1], [0, 0, 1, 1], [], []>} : vector<128x8xf32>, vector<8x8xf32>, vector<128x8xf32> -> vector<128x8xf32>
    %63 = arith.addf %56, %62 : vector<128x8xf32>
    %c0_63 = arith.constant 0 : index
    %c0_64 = arith.constant 0 : index
    %64 = vector.load %arg3[%c0_63, %c0_64] : memref<1x8xf32, #tpu.memory_space<vmem>>, vector<1x8xf32>
    %65 = vector.broadcast %64 : vector<1x8xf32> to vector<128x8xf32>
    %66 = arith.addf %63, %65 : vector<128x8xf32>
    %cst_65 = arith.constant 0.000000e+00 : f32
    %67 = vector.broadcast %cst_65 : f32 to vector<128x8xf32>
    %68 = arith.maximumf %66, %67 : vector<128x8xf32>
    %c0_66 = arith.constant 0 : index
    %c0_67 = arith.constant 0 : index
    %c0_68 = arith.constant 0 : index
    %69 = vector.load %arg4[%c0_66, %c0_67, %c0_68] : memref<1x128x8xf32, #tpu.memory_space<vmem>>, vector<1x128x8xf32>
    %70 = vector.shape_cast %69 : vector<1x128x8xf32> to vector<128x8xf32>
    %71 = vector.shape_cast %68 : vector<128x8xf32> to vector<1x128x8xf32>
    tpu.vector_store %arg4[%c0_66, %c0_67, %c0_68], %71 {strides = array<i32>} : memref<1x128x8xf32, #tpu.memory_space<vmem>>, vector<1x128x8xf32>,
    return
  }
  func.func @transform_0(%arg0: i32) -> (i32, i32, i32, i32) {
    %c0_i32 = arith.constant 0 : i32
    %c0_i32_0 = arith.constant 0 : i32
    %c0_i32_1 = arith.constant 0 : i32
    %c0_i32_2 = arith.constant 0 : i32
    return %arg0, %c0_i32, %c0_i32_0, %c0_i32_1 : i32, i32, i32, i32
  }
  func.func @transform_1(%arg0: i32) -> (i32, i32, i32) {
    %c0_i32 = arith.constant 0 : i32
    %c0_i32_0 = arith.constant 0 : i32
    %c0_i32_1 = arith.constant 0 : i32
    %c0_i32_2 = arith.constant 0 : i32
    return %c0_i32, %c0_i32_0, %c0_i32_1 : i32, i32, i32
  }
  func.func @transform_2(%arg0: i32) -> (i32, i32) {
    %c0_i32 = arith.constant 0 : i32
    %c0_i32_0 = arith.constant 0 : i32
    %c0_i32_1 = arith.constant 0 : i32
    return %c0_i32, %c0_i32_0 : i32, i32
  }
  func.func @transform_3(%arg0: i32) -> (i32, i32, i32) {
    %c0_i32 = arith.constant 0 : i32
    %c0_i32_0 = arith.constant 0 : i32
    %c0_i32_1 = arith.constant 0 : i32
    return %arg0, %c0_i32, %c0_i32_0 : i32, i32, i32
  }
}

module attributes {stable_mosaic.version = 11 : i64} {
  func.func @_patch_kernel(%arg0: i32, %arg1: memref<18x128xf32, #tpu.memory_space<vmem>>, %arg2: memref<128x64xbf16, #tpu.memory_space<vmem>>, %arg3: memref<1x64xf32, #tpu.memory_space<vmem>>, %arg4: memref<18x64xf32, #tpu.memory_space<vmem>>, %arg5: memref<18x64xf32, #tpu.memory_space<vmem>>) attributes {dimension_semantics = [#tpu.dimension_semantics<arbitrary>], iteration_bounds = array<i64: 1>, scalar_prefetch = 0 : i64, scratch_operands = 0 : i64, tpu.core_type = #tpu.core_type<tc>, window_params = [{pipeline_mode = #tpu.pipeline_mode<synchronous>, transform_indices = @transform_0, window_bounds = array<i64: 18, 128>}, {pipeline_mode = #tpu.pipeline_mode<synchronous>, transform_indices = @transform_1, window_bounds = array<i64: 128, 64>}, {pipeline_mode = #tpu.pipeline_mode<synchronous>, transform_indices = @transform_2, window_bounds = array<i64: 1, 64>}, {pipeline_mode = #tpu.pipeline_mode<synchronous>, transform_indices = @transform_3, window_bounds = array<i64: 18, 64>}, {pipeline_mode = #tpu.pipeline_mode<synchronous>, transform_indices = @transform_4, window_bounds = array<i64: 18, 64>}]} {
    %c0 = arith.constant 0 : index
    %c0_0 = arith.constant 0 : index
    %0 = vector.load %arg1[%c0, %c0_0] : memref<18x128xf32, #tpu.memory_space<vmem>>, vector<18x128xf32>
    %1 = arith.truncf %0 : vector<18x128xf32> to vector<18x128xbf16>
    %c0_1 = arith.constant 0 : index
    %c0_2 = arith.constant 0 : index
    %2 = vector.load %arg2[%c0_1, %c0_2] : memref<128x64xbf16, #tpu.memory_space<vmem>>, vector<128x64xbf16>
    %cst = arith.constant dense<0.000000e+00> : vector<18x64xf32>
    %3 = tpu.matmul %1, %2, %cst {dimension_numbers = #tpu.dot_dimension_numbers<[1], [0], [0], [1], [0, 0, 1, 1], [], []>} : vector<18x128xbf16>, vector<128x64xbf16>, vector<18x64xf32> -> vector<18x64xf32>
    %c0_3 = arith.constant 0 : index
    %c0_4 = arith.constant 0 : index
    %4 = vector.load %arg3[%c0_3, %c0_4] : memref<1x64xf32, #tpu.memory_space<vmem>>, vector<1x64xf32>
    %5 = vector.broadcast %4 : vector<1x64xf32> to vector<18x64xf32>
    %6 = arith.addf %3, %5 : vector<18x64xf32>
    %c0_5 = arith.constant 0 : index
    %c0_6 = arith.constant 0 : index
    %7 = vector.load %arg4[%c0_5, %c0_6] : memref<18x64xf32, #tpu.memory_space<vmem>>, vector<18x64xf32>
    %8 = arith.addf %6, %7 : vector<18x64xf32>
    %c0_7 = arith.constant 0 : index
    %c0_8 = arith.constant 0 : index
    %9 = vector.load %arg5[%c0_7, %c0_8] : memref<18x64xf32, #tpu.memory_space<vmem>>, vector<18x64xf32>
    tpu.vector_store %arg5[%c0_7, %c0_8], %8 {strides = array<i32>} : memref<18x64xf32, #tpu.memory_space<vmem>>, vector<18x64xf32>,
    return
  }
  func.func @transform_0(%arg0: i32) -> (i32, i32) {
    %c0_i32 = arith.constant 0 : i32
    %c0_i32_0 = arith.constant 0 : i32
    %c0_i32_1 = arith.constant 0 : i32
    return %c0_i32, %c0_i32_0 : i32, i32
  }
  func.func @transform_1(%arg0: i32) -> (i32, i32) {
    %c0_i32 = arith.constant 0 : i32
    %c0_i32_0 = arith.constant 0 : i32
    %c0_i32_1 = arith.constant 0 : i32
    return %c0_i32, %c0_i32_0 : i32, i32
  }
  func.func @transform_2(%arg0: i32) -> (i32, i32) {
    %c0_i32 = arith.constant 0 : i32
    %c0_i32_0 = arith.constant 0 : i32
    %c0_i32_1 = arith.constant 0 : i32
    return %c0_i32, %c0_i32_0 : i32, i32
  }
  func.func @transform_3(%arg0: i32) -> (i32, i32) {
    %c0_i32 = arith.constant 0 : i32
    %c0_i32_0 = arith.constant 0 : i32
    %c0_i32_1 = arith.constant 0 : i32
    return %c0_i32, %c0_i32_0 : i32, i32
  }
  func.func @transform_4(%arg0: i32) -> (i32, i32) {
    %c0_i32 = arith.constant 0 : i32
    %c0_i32_0 = arith.constant 0 : i32
    %c0_i32_1 = arith.constant 0 : i32
    return %c0_i32, %c0_i32_0 : i32, i32
  }
}

module attributes {stable_mosaic.version = 11 : i64} {
  func.func @_tcn_kernel(%arg0: i32, %arg1: memref<1x13x64xf32, #tpu.memory_space<vmem>>, %arg2: memref<6x64xf32, #tpu.memory_space<vmem>>, %arg3: memref<2x64x64xbf16, #tpu.memory_space<vmem>>, %arg4: memref<64x256xbf16, #tpu.memory_space<vmem>>, %arg5: memref<1x256xf32, #tpu.memory_space<vmem>>, %arg6: memref<256x64xbf16, #tpu.memory_space<vmem>>, %arg7: memref<1x64xf32, #tpu.memory_space<vmem>>, %arg8: memref<1x9x64xf32, #tpu.memory_space<vmem>>) attributes {dimension_semantics = [#tpu.dimension_semantics<parallel>], iteration_bounds = array<i64: 2>, scalar_prefetch = 0 : i64, scratch_operands = 0 : i64, tpu.core_type = #tpu.core_type<tc>, window_params = [{transform_indices = @transform_0, window_bounds = array<i64: 1, 13, 64>}, {pipeline_mode = #tpu.pipeline_mode<synchronous>, transform_indices = @transform_1, window_bounds = array<i64: 6, 64>}, {pipeline_mode = #tpu.pipeline_mode<synchronous>, transform_indices = @transform_2, window_bounds = array<i64: 2, 64, 64>}, {pipeline_mode = #tpu.pipeline_mode<synchronous>, transform_indices = @transform_3, window_bounds = array<i64: 64, 256>}, {pipeline_mode = #tpu.pipeline_mode<synchronous>, transform_indices = @transform_4, window_bounds = array<i64: 1, 256>}, {pipeline_mode = #tpu.pipeline_mode<synchronous>, transform_indices = @transform_5, window_bounds = array<i64: 256, 64>}, {pipeline_mode = #tpu.pipeline_mode<synchronous>, transform_indices = @transform_6, window_bounds = array<i64: 1, 64>}, {transform_indices = @transform_7, window_bounds = array<i64: 1, 9, 64>}]} {
    %c0 = arith.constant 0 : index
    %c2 = arith.constant 2 : index
    %c0_0 = arith.constant 0 : index
    %0 = vector.load %arg1[%c0, %c2, %c0_0] : memref<1x13x64xf32, #tpu.memory_space<vmem>>, vector<1x9x64xf32>
    %1 = vector.shape_cast %0 : vector<1x9x64xf32> to vector<9x64xf32>
    %cst = arith.constant 0.000000e+00 : f32
    %2 = vector.broadcast %cst : f32 to vector<9x64xf32>
    %c0_1 = arith.constant 0 : index
    %c1 = arith.constant 1 : index
    %c0_2 = arith.constant 0 : index
    %3 = vector.load %arg1[%c0_1, %c1, %c0_2] : memref<1x13x64xf32, #tpu.memory_space<vmem>>, vector<1x9x64xf32>
    %4 = vector.shape_cast %3 : vector<1x9x64xf32> to vector<9x64xf32>
    %c0_3 = arith.constant 0 : index
    %c3 = arith.constant 3 : index
    %c0_4 = arith.constant 0 : index
    %5 = vector.load %arg1[%c0_3, %c3, %c0_4] : memref<1x13x64xf32, #tpu.memory_space<vmem>>, vector<1x9x64xf32>
    %6 = vector.shape_cast %5 : vector<1x9x64xf32> to vector<9x64xf32>
    %c0_5 = arith.constant 0 : index
    %c0_6 = arith.constant 0 : index
    %7 = vector.load %arg2[%c0_5, %c0_6] : memref<6x64xf32, #tpu.memory_space<vmem>>, vector<1x64xf32>
    %c1_7 = arith.constant 1 : index
    %c0_8 = arith.constant 0 : index
    %8 = vector.load %arg2[%c1_7, %c0_8] : memref<6x64xf32, #tpu.memory_space<vmem>>, vector<1x64xf32>
    %c2_9 = arith.constant 2 : index
    %c0_10 = arith.constant 0 : index
    %9 = vector.load %arg2[%c2_9, %c0_10] : memref<6x64xf32, #tpu.memory_space<vmem>>, vector<1x64xf32>
    %10 = vector.broadcast %7 : vector<1x64xf32> to vector<9x64xf32>
    %11 = arith.mulf %4, %10 : vector<9x64xf32>
    %12 = vector.broadcast %8 : vector<1x64xf32> to vector<9x64xf32>
    %13 = arith.mulf %1, %12 : vector<9x64xf32>
    %14 = arith.addf %11, %13 : vector<9x64xf32>
    %15 = vector.broadcast %9 : vector<1x64xf32> to vector<9x64xf32>
    %16 = arith.mulf %6, %15 : vector<9x64xf32>
    %17 = arith.addf %14, %16 : vector<9x64xf32>
    %18 = arith.truncf %17 : vector<9x64xf32> to vector<9x64xbf16>
    %c0_11 = arith.constant 0 : index
    %c0_12 = arith.constant 0 : index
    %c0_13 = arith.constant 0 : index
    %19 = vector.load %arg3[%c0_11, %c0_12, %c0_13] : memref<2x64x64xbf16, #tpu.memory_space<vmem>>, vector<1x64x64xbf16>
    %20 = vector.shape_cast %19 : vector<1x64x64xbf16> to vector<64x64xbf16>
    %cst_14 = arith.constant dense<0.000000e+00> : vector<9x64xf32>
    %21 = tpu.matmul %18, %20, %cst_14 {dimension_numbers = #tpu.dot_dimension_numbers<[1], [0], [0], [1], [0, 0, 1, 1], [], []>} : vector<9x64xbf16>, vector<64x64xbf16>, vector<9x64xf32> -> vector<9x64xf32>
    %22 = arith.addf %2, %21 : vector<9x64xf32>
    %c0_15 = arith.constant 0 : index
    %c0_16 = arith.constant 0 : index
    %c0_17 = arith.constant 0 : index
    %23 = vector.load %arg1[%c0_15, %c0_16, %c0_17] : memref<1x13x64xf32, #tpu.memory_space<vmem>>, vector<1x9x64xf32>
    %24 = vector.shape_cast %23 : vector<1x9x64xf32> to vector<9x64xf32>
    %c0_18 = arith.constant 0 : index
    %c4 = arith.constant 4 : index
    %c0_19 = arith.constant 0 : index
    %25 = vector.load %arg1[%c0_18, %c4, %c0_19] : memref<1x13x64xf32, #tpu.memory_space<vmem>>, vector<1x9x64xf32>
    %26 = vector.shape_cast %25 : vector<1x9x64xf32> to vector<9x64xf32>
    %c3_20 = arith.constant 3 : index
    %c0_21 = arith.constant 0 : index
    %27 = vector.load %arg2[%c3_20, %c0_21] : memref<6x64xf32, #tpu.memory_space<vmem>>, vector<1x64xf32>
    %c4_22 = arith.constant 4 : index
    %c0_23 = arith.constant 0 : index
    %28 = vector.load %arg2[%c4_22, %c0_23] : memref<6x64xf32, #tpu.memory_space<vmem>>, vector<1x64xf32>
    %c5 = arith.constant 5 : index
    %c0_24 = arith.constant 0 : index
    %29 = vector.load %arg2[%c5, %c0_24] : memref<6x64xf32, #tpu.memory_space<vmem>>, vector<1x64xf32>
    %30 = vector.broadcast %27 : vector<1x64xf32> to vector<9x64xf32>
    %31 = arith.mulf %24, %30 : vector<9x64xf32>
    %32 = vector.broadcast %28 : vector<1x64xf32> to vector<9x64xf32>
    %33 = arith.mulf %1, %32 : vector<9x64xf32>
    %34 = arith.addf %31, %33 : vector<9x64xf32>
    %35 = vector.broadcast %29 : vector<1x64xf32> to vector<9x64xf32>
    %36 = arith.mulf %26, %35 : vector<9x64xf32>
    %37 = arith.addf %34, %36 : vector<9x64xf32>
    %38 = arith.truncf %37 : vector<9x64xf32> to vector<9x64xbf16>
    %c1_25 = arith.constant 1 : index
    %c0_26 = arith.constant 0 : index
    %c0_27 = arith.constant 0 : index
    %39 = vector.load %arg3[%c1_25, %c0_26, %c0_27] : memref<2x64x64xbf16, #tpu.memory_space<vmem>>, vector<1x64x64xbf16>
    %40 = vector.shape_cast %39 : vector<1x64x64xbf16> to vector<64x64xbf16>
    %cst_28 = arith.constant dense<0.000000e+00> : vector<9x64xf32>
    %41 = tpu.matmul %38, %40, %cst_28 {dimension_numbers = #tpu.dot_dimension_numbers<[1], [0], [0], [1], [0, 0, 1, 1], [], []>} : vector<9x64xbf16>, vector<64x64xbf16>, vector<9x64xf32> -> vector<9x64xf32>
    %42 = arith.addf %22, %41 : vector<9x64xf32>
    %43 = arith.truncf %42 : vector<9x64xf32> to vector<9x64xbf16>
    %c0_29 = arith.constant 0 : index
    %c0_30 = arith.constant 0 : index
    %44 = vector.load %arg4[%c0_29, %c0_30] : memref<64x256xbf16, #tpu.memory_space<vmem>>, vector<64x256xbf16>
    %cst_31 = arith.constant dense<0.000000e+00> : vector<9x256xf32>
    %45 = tpu.matmul %43, %44, %cst_31 {dimension_numbers = #tpu.dot_dimension_numbers<[1], [0], [0], [1], [0, 0, 1, 1], [], []>} : vector<9x64xbf16>, vector<64x256xbf16>, vector<9x256xf32> -> vector<9x256xf32>
    %c0_32 = arith.constant 0 : index
    %c0_33 = arith.constant 0 : index
    %46 = vector.load %arg5[%c0_32, %c0_33] : memref<1x256xf32, #tpu.memory_space<vmem>>, vector<1x256xf32>
    %47 = vector.broadcast %46 : vector<1x256xf32> to vector<9x256xf32>
    %48 = arith.addf %45, %47 : vector<9x256xf32>
    %49 = arith.mulf %48, %48 : vector<9x256xf32>
    %50 = arith.mulf %48, %49 : vector<9x256xf32>
    %cst_34 = arith.constant 4.471500e-02 : f32
    %51 = vector.broadcast %cst_34 : f32 to vector<9x256xf32>
    %52 = arith.mulf %51, %50 : vector<9x256xf32>
    %53 = arith.addf %48, %52 : vector<9x256xf32>
    %cst_35 = arith.constant 0.797884583 : f32
    %54 = vector.broadcast %cst_35 : f32 to vector<9x256xf32>
    %55 = arith.mulf %54, %53 : vector<9x256xf32>
    %56 = math.tanh %55 : vector<9x256xf32>
    %cst_36 = arith.constant 1.000000e+00 : f32
    %57 = vector.broadcast %cst_36 : f32 to vector<9x256xf32>
    %58 = arith.addf %57, %56 : vector<9x256xf32>
    %cst_37 = arith.constant 5.000000e-01 : f32
    %59 = vector.broadcast %cst_37 : f32 to vector<9x256xf32>
    %60 = arith.mulf %59, %58 : vector<9x256xf32>
    %61 = arith.mulf %48, %60 : vector<9x256xf32>
    %62 = arith.truncf %61 : vector<9x256xf32> to vector<9x256xbf16>
    %c0_38 = arith.constant 0 : index
    %c0_39 = arith.constant 0 : index
    %63 = vector.load %arg6[%c0_38, %c0_39] : memref<256x64xbf16, #tpu.memory_space<vmem>>, vector<256x64xbf16>
    %cst_40 = arith.constant dense<0.000000e+00> : vector<9x64xf32>
    %64 = tpu.matmul %62, %63, %cst_40 {dimension_numbers = #tpu.dot_dimension_numbers<[1], [0], [0], [1], [0, 0, 1, 1], [], []>} : vector<9x256xbf16>, vector<256x64xbf16>, vector<9x64xf32> -> vector<9x64xf32>
    %c0_41 = arith.constant 0 : index
    %c0_42 = arith.constant 0 : index
    %65 = vector.load %arg7[%c0_41, %c0_42] : memref<1x64xf32, #tpu.memory_space<vmem>>, vector<1x64xf32>
    %66 = vector.broadcast %65 : vector<1x64xf32> to vector<9x64xf32>
    %67 = arith.addf %64, %66 : vector<9x64xf32>
    %68 = arith.addf %67, %1 : vector<9x64xf32>
    %c0_43 = arith.constant 0 : index
    %c0_44 = arith.constant 0 : index
    %c0_45 = arith.constant 0 : index
    %69 = vector.load %arg8[%c0_43, %c0_44, %c0_45] : memref<1x9x64xf32, #tpu.memory_space<vmem>>, vector<1x9x64xf32>
    %70 = vector.shape_cast %69 : vector<1x9x64xf32> to vector<9x64xf32>
    %71 = vector.shape_cast %68 : vector<9x64xf32> to vector<1x9x64xf32>
    tpu.vector_store %arg8[%c0_43, %c0_44, %c0_45], %71 {strides = array<i32>} : memref<1x9x64xf32, #tpu.memory_space<vmem>>, vector<1x9x64xf32>,
    return
  }
  func.func @transform_0(%arg0: i32) -> (i32, i32, i32) {
    %c0_i32 = arith.constant 0 : i32
    %c0_i32_0 = arith.constant 0 : i32
    %c0_i32_1 = arith.constant 0 : i32
    return %arg0, %c0_i32, %c0_i32_0 : i32, i32, i32
  }
  func.func @transform_1(%arg0: i32) -> (i32, i32) {
    %c0_i32 = arith.constant 0 : i32
    %c0_i32_0 = arith.constant 0 : i32
    %c0_i32_1 = arith.constant 0 : i32
    return %c0_i32, %c0_i32_0 : i32, i32
  }
  func.func @transform_2(%arg0: i32) -> (i32, i32, i32) {
    %c0_i32 = arith.constant 0 : i32
    %c0_i32_0 = arith.constant 0 : i32
    %c0_i32_1 = arith.constant 0 : i32
    %c0_i32_2 = arith.constant 0 : i32
    return %c0_i32, %c0_i32_0, %c0_i32_1 : i32, i32, i32
  }
  func.func @transform_3(%arg0: i32) -> (i32, i32) {
    %c0_i32 = arith.constant 0 : i32
    %c0_i32_0 = arith.constant 0 : i32
    %c0_i32_1 = arith.constant 0 : i32
    return %c0_i32, %c0_i32_0 : i32, i32
  }
  func.func @transform_4(%arg0: i32) -> (i32, i32) {
    %c0_i32 = arith.constant 0 : i32
    %c0_i32_0 = arith.constant 0 : i32
    %c0_i32_1 = arith.constant 0 : i32
    return %c0_i32, %c0_i32_0 : i32, i32
  }
  func.func @transform_5(%arg0: i32) -> (i32, i32) {
    %c0_i32 = arith.constant 0 : i32
    %c0_i32_0 = arith.constant 0 : i32
    %c0_i32_1 = arith.constant 0 : i32
    return %c0_i32, %c0_i32_0 : i32, i32
  }
  func.func @transform_6(%arg0: i32) -> (i32, i32) {
    %c0_i32 = arith.constant 0 : i32
    %c0_i32_0 = arith.constant 0 : i32
    %c0_i32_1 = arith.constant 0 : i32
    return %c0_i32, %c0_i32_0 : i32, i32
  }
  func.func @transform_7(%arg0: i32) -> (i32, i32, i32) {
    %c0_i32 = arith.constant 0 : i32
    %c0_i32_0 = arith.constant 0 : i32
    %c0_i32_1 = arith.constant 0 : i32
    return %arg0, %c0_i32, %c0_i32_0 : i32, i32, i32
  }
}

module attributes {stable_mosaic.version = 11 : i64} {
  func.func @_tcn_kernel(%arg0: i32, %arg1: memref<1x17x64xf32, #tpu.memory_space<vmem>>, %arg2: memref<6x64xf32, #tpu.memory_space<vmem>>, %arg3: memref<2x64x64xbf16, #tpu.memory_space<vmem>>, %arg4: memref<64x256xbf16, #tpu.memory_space<vmem>>, %arg5: memref<1x256xf32, #tpu.memory_space<vmem>>, %arg6: memref<256x64xbf16, #tpu.memory_space<vmem>>, %arg7: memref<1x64xf32, #tpu.memory_space<vmem>>, %arg8: memref<1x9x64xf32, #tpu.memory_space<vmem>>) attributes {dimension_semantics = [#tpu.dimension_semantics<parallel>], iteration_bounds = array<i64: 2>, scalar_prefetch = 0 : i64, scratch_operands = 0 : i64, tpu.core_type = #tpu.core_type<tc>, window_params = [{transform_indices = @transform_0, window_bounds = array<i64: 1, 17, 64>}, {pipeline_mode = #tpu.pipeline_mode<synchronous>, transform_indices = @transform_1, window_bounds = array<i64: 6, 64>}, {pipeline_mode = #tpu.pipeline_mode<synchronous>, transform_indices = @transform_2, window_bounds = array<i64: 2, 64, 64>}, {pipeline_mode = #tpu.pipeline_mode<synchronous>, transform_indices = @transform_3, window_bounds = array<i64: 64, 256>}, {pipeline_mode = #tpu.pipeline_mode<synchronous>, transform_indices = @transform_4, window_bounds = array<i64: 1, 256>}, {pipeline_mode = #tpu.pipeline_mode<synchronous>, transform_indices = @transform_5, window_bounds = array<i64: 256, 64>}, {pipeline_mode = #tpu.pipeline_mode<synchronous>, transform_indices = @transform_6, window_bounds = array<i64: 1, 64>}, {transform_indices = @transform_7, window_bounds = array<i64: 1, 9, 64>}]} {
    %c0 = arith.constant 0 : index
    %c4 = arith.constant 4 : index
    %c0_0 = arith.constant 0 : index
    %0 = vector.load %arg1[%c0, %c4, %c0_0] : memref<1x17x64xf32, #tpu.memory_space<vmem>>, vector<1x9x64xf32>
    %1 = vector.shape_cast %0 : vector<1x9x64xf32> to vector<9x64xf32>
    %cst = arith.constant 0.000000e+00 : f32
    %2 = vector.broadcast %cst : f32 to vector<9x64xf32>
    %c0_1 = arith.constant 0 : index
    %c2 = arith.constant 2 : index
    %c0_2 = arith.constant 0 : index
    %3 = vector.load %arg1[%c0_1, %c2, %c0_2] : memref<1x17x64xf32, #tpu.memory_space<vmem>>, vector<1x9x64xf32>
    %4 = vector.shape_cast %3 : vector<1x9x64xf32> to vector<9x64xf32>
    %c0_3 = arith.constant 0 : index
    %c6 = arith.constant 6 : index
    %c0_4 = arith.constant 0 : index
    %5 = vector.load %arg1[%c0_3, %c6, %c0_4] : memref<1x17x64xf32, #tpu.memory_space<vmem>>, vector<1x9x64xf32>
    %6 = vector.shape_cast %5 : vector<1x9x64xf32> to vector<9x64xf32>
    %c0_5 = arith.constant 0 : index
    %c0_6 = arith.constant 0 : index
    %7 = vector.load %arg2[%c0_5, %c0_6] : memref<6x64xf32, #tpu.memory_space<vmem>>, vector<1x64xf32>
    %c1 = arith.constant 1 : index
    %c0_7 = arith.constant 0 : index
    %8 = vector.load %arg2[%c1, %c0_7] : memref<6x64xf32, #tpu.memory_space<vmem>>, vector<1x64xf32>
    %c2_8 = arith.constant 2 : index
    %c0_9 = arith.constant 0 : index
    %9 = vector.load %arg2[%c2_8, %c0_9] : memref<6x64xf32, #tpu.memory_space<vmem>>, vector<1x64xf32>
    %10 = vector.broadcast %7 : vector<1x64xf32> to vector<9x64xf32>
    %11 = arith.mulf %4, %10 : vector<9x64xf32>
    %12 = vector.broadcast %8 : vector<1x64xf32> to vector<9x64xf32>
    %13 = arith.mulf %1, %12 : vector<9x64xf32>
    %14 = arith.addf %11, %13 : vector<9x64xf32>
    %15 = vector.broadcast %9 : vector<1x64xf32> to vector<9x64xf32>
    %16 = arith.mulf %6, %15 : vector<9x64xf32>
    %17 = arith.addf %14, %16 : vector<9x64xf32>
    %18 = arith.truncf %17 : vector<9x64xf32> to vector<9x64xbf16>
    %c0_10 = arith.constant 0 : index
    %c0_11 = arith.constant 0 : index
    %c0_12 = arith.constant 0 : index
    %19 = vector.load %arg3[%c0_10, %c0_11, %c0_12] : memref<2x64x64xbf16, #tpu.memory_space<vmem>>, vector<1x64x64xbf16>
    %20 = vector.shape_cast %19 : vector<1x64x64xbf16> to vector<64x64xbf16>
    %cst_13 = arith.constant dense<0.000000e+00> : vector<9x64xf32>
    %21 = tpu.matmul %18, %20, %cst_13 {dimension_numbers = #tpu.dot_dimension_numbers<[1], [0], [0], [1], [0, 0, 1, 1], [], []>} : vector<9x64xbf16>, vector<64x64xbf16>, vector<9x64xf32> -> vector<9x64xf32>
    %22 = arith.addf %2, %21 : vector<9x64xf32>
    %c0_14 = arith.constant 0 : index
    %c0_15 = arith.constant 0 : index
    %c0_16 = arith.constant 0 : index
    %23 = vector.load %arg1[%c0_14, %c0_15, %c0_16] : memref<1x17x64xf32, #tpu.memory_space<vmem>>, vector<1x9x64xf32>
    %24 = vector.shape_cast %23 : vector<1x9x64xf32> to vector<9x64xf32>
    %c0_17 = arith.constant 0 : index
    %c8 = arith.constant 8 : index
    %c0_18 = arith.constant 0 : index
    %25 = vector.load %arg1[%c0_17, %c8, %c0_18] : memref<1x17x64xf32, #tpu.memory_space<vmem>>, vector<1x9x64xf32>
    %26 = vector.shape_cast %25 : vector<1x9x64xf32> to vector<9x64xf32>
    %c3 = arith.constant 3 : index
    %c0_19 = arith.constant 0 : index
    %27 = vector.load %arg2[%c3, %c0_19] : memref<6x64xf32, #tpu.memory_space<vmem>>, vector<1x64xf32>
    %c4_20 = arith.constant 4 : index
    %c0_21 = arith.constant 0 : index
    %28 = vector.load %arg2[%c4_20, %c0_21] : memref<6x64xf32, #tpu.memory_space<vmem>>, vector<1x64xf32>
    %c5 = arith.constant 5 : index
    %c0_22 = arith.constant 0 : index
    %29 = vector.load %arg2[%c5, %c0_22] : memref<6x64xf32, #tpu.memory_space<vmem>>, vector<1x64xf32>
    %30 = vector.broadcast %27 : vector<1x64xf32> to vector<9x64xf32>
    %31 = arith.mulf %24, %30 : vector<9x64xf32>
    %32 = vector.broadcast %28 : vector<1x64xf32> to vector<9x64xf32>
    %33 = arith.mulf %1, %32 : vector<9x64xf32>
    %34 = arith.addf %31, %33 : vector<9x64xf32>
    %35 = vector.broadcast %29 : vector<1x64xf32> to vector<9x64xf32>
    %36 = arith.mulf %26, %35 : vector<9x64xf32>
    %37 = arith.addf %34, %36 : vector<9x64xf32>
    %38 = arith.truncf %37 : vector<9x64xf32> to vector<9x64xbf16>
    %c1_23 = arith.constant 1 : index
    %c0_24 = arith.constant 0 : index
    %c0_25 = arith.constant 0 : index
    %39 = vector.load %arg3[%c1_23, %c0_24, %c0_25] : memref<2x64x64xbf16, #tpu.memory_space<vmem>>, vector<1x64x64xbf16>
    %40 = vector.shape_cast %39 : vector<1x64x64xbf16> to vector<64x64xbf16>
    %cst_26 = arith.constant dense<0.000000e+00> : vector<9x64xf32>
    %41 = tpu.matmul %38, %40, %cst_26 {dimension_numbers = #tpu.dot_dimension_numbers<[1], [0], [0], [1], [0, 0, 1, 1], [], []>} : vector<9x64xbf16>, vector<64x64xbf16>, vector<9x64xf32> -> vector<9x64xf32>
    %42 = arith.addf %22, %41 : vector<9x64xf32>
    %43 = arith.truncf %42 : vector<9x64xf32> to vector<9x64xbf16>
    %c0_27 = arith.constant 0 : index
    %c0_28 = arith.constant 0 : index
    %44 = vector.load %arg4[%c0_27, %c0_28] : memref<64x256xbf16, #tpu.memory_space<vmem>>, vector<64x256xbf16>
    %cst_29 = arith.constant dense<0.000000e+00> : vector<9x256xf32>
    %45 = tpu.matmul %43, %44, %cst_29 {dimension_numbers = #tpu.dot_dimension_numbers<[1], [0], [0], [1], [0, 0, 1, 1], [], []>} : vector<9x64xbf16>, vector<64x256xbf16>, vector<9x256xf32> -> vector<9x256xf32>
    %c0_30 = arith.constant 0 : index
    %c0_31 = arith.constant 0 : index
    %46 = vector.load %arg5[%c0_30, %c0_31] : memref<1x256xf32, #tpu.memory_space<vmem>>, vector<1x256xf32>
    %47 = vector.broadcast %46 : vector<1x256xf32> to vector<9x256xf32>
    %48 = arith.addf %45, %47 : vector<9x256xf32>
    %49 = arith.mulf %48, %48 : vector<9x256xf32>
    %50 = arith.mulf %48, %49 : vector<9x256xf32>
    %cst_32 = arith.constant 4.471500e-02 : f32
    %51 = vector.broadcast %cst_32 : f32 to vector<9x256xf32>
    %52 = arith.mulf %51, %50 : vector<9x256xf32>
    %53 = arith.addf %48, %52 : vector<9x256xf32>
    %cst_33 = arith.constant 0.797884583 : f32
    %54 = vector.broadcast %cst_33 : f32 to vector<9x256xf32>
    %55 = arith.mulf %54, %53 : vector<9x256xf32>
    %56 = math.tanh %55 : vector<9x256xf32>
    %cst_34 = arith.constant 1.000000e+00 : f32
    %57 = vector.broadcast %cst_34 : f32 to vector<9x256xf32>
    %58 = arith.addf %57, %56 : vector<9x256xf32>
    %cst_35 = arith.constant 5.000000e-01 : f32
    %59 = vector.broadcast %cst_35 : f32 to vector<9x256xf32>
    %60 = arith.mulf %59, %58 : vector<9x256xf32>
    %61 = arith.mulf %48, %60 : vector<9x256xf32>
    %62 = arith.truncf %61 : vector<9x256xf32> to vector<9x256xbf16>
    %c0_36 = arith.constant 0 : index
    %c0_37 = arith.constant 0 : index
    %63 = vector.load %arg6[%c0_36, %c0_37] : memref<256x64xbf16, #tpu.memory_space<vmem>>, vector<256x64xbf16>
    %cst_38 = arith.constant dense<0.000000e+00> : vector<9x64xf32>
    %64 = tpu.matmul %62, %63, %cst_38 {dimension_numbers = #tpu.dot_dimension_numbers<[1], [0], [0], [1], [0, 0, 1, 1], [], []>} : vector<9x256xbf16>, vector<256x64xbf16>, vector<9x64xf32> -> vector<9x64xf32>
    %c0_39 = arith.constant 0 : index
    %c0_40 = arith.constant 0 : index
    %65 = vector.load %arg7[%c0_39, %c0_40] : memref<1x64xf32, #tpu.memory_space<vmem>>, vector<1x64xf32>
    %66 = vector.broadcast %65 : vector<1x64xf32> to vector<9x64xf32>
    %67 = arith.addf %64, %66 : vector<9x64xf32>
    %68 = arith.addf %67, %1 : vector<9x64xf32>
    %c0_41 = arith.constant 0 : index
    %c0_42 = arith.constant 0 : index
    %c0_43 = arith.constant 0 : index
    %69 = vector.load %arg8[%c0_41, %c0_42, %c0_43] : memref<1x9x64xf32, #tpu.memory_space<vmem>>, vector<1x9x64xf32>
    %70 = vector.shape_cast %69 : vector<1x9x64xf32> to vector<9x64xf32>
    %71 = vector.shape_cast %68 : vector<9x64xf32> to vector<1x9x64xf32>
    tpu.vector_store %arg8[%c0_41, %c0_42, %c0_43], %71 {strides = array<i32>} : memref<1x9x64xf32, #tpu.memory_space<vmem>>, vector<1x9x64xf32>,
    return
  }
  func.func @transform_0(%arg0: i32) -> (i32, i32, i32) {
    %c0_i32 = arith.constant 0 : i32
    %c0_i32_0 = arith.constant 0 : i32
    %c0_i32_1 = arith.constant 0 : i32
    return %arg0, %c0_i32, %c0_i32_0 : i32, i32, i32
  }
  func.func @transform_1(%arg0: i32) -> (i32, i32) {
    %c0_i32 = arith.constant 0 : i32
    %c0_i32_0 = arith.constant 0 : i32
    %c0_i32_1 = arith.constant 0 : i32
    return %c0_i32, %c0_i32_0 : i32, i32
  }
  func.func @transform_2(%arg0: i32) -> (i32, i32, i32) {
    %c0_i32 = arith.constant 0 : i32
    %c0_i32_0 = arith.constant 0 : i32
    %c0_i32_1 = arith.constant 0 : i32
    %c0_i32_2 = arith.constant 0 : i32
    return %c0_i32, %c0_i32_0, %c0_i32_1 : i32, i32, i32
  }
  func.func @transform_3(%arg0: i32) -> (i32, i32) {
    %c0_i32 = arith.constant 0 : i32
    %c0_i32_0 = arith.constant 0 : i32
    %c0_i32_1 = arith.constant 0 : i32
    return %c0_i32, %c0_i32_0 : i32, i32
  }
  func.func @transform_4(%arg0: i32) -> (i32, i32) {
    %c0_i32 = arith.constant 0 : i32
    %c0_i32_0 = arith.constant 0 : i32
    %c0_i32_1 = arith.constant 0 : i32
    return %c0_i32, %c0_i32_0 : i32, i32
  }
  func.func @transform_5(%arg0: i32) -> (i32, i32) {
    %c0_i32 = arith.constant 0 : i32
    %c0_i32_0 = arith.constant 0 : i32
    %c0_i32_1 = arith.constant 0 : i32
    return %c0_i32, %c0_i32_0 : i32, i32
  }
  func.func @transform_6(%arg0: i32) -> (i32, i32) {
    %c0_i32 = arith.constant 0 : i32
    %c0_i32_0 = arith.constant 0 : i32
    %c0_i32_1 = arith.constant 0 : i32
    return %c0_i32, %c0_i32_0 : i32, i32
  }
  func.func @transform_7(%arg0: i32) -> (i32, i32, i32) {
    %c0_i32 = arith.constant 0 : i32
    %c0_i32_0 = arith.constant 0 : i32
    %c0_i32_1 = arith.constant 0 : i32
    return %arg0, %c0_i32, %c0_i32_0 : i32, i32, i32
  }
}

module attributes {stable_mosaic.version = 11 : i64} {
  func.func @_tf_layer_kernel(%arg0: i32, %arg1: memref<1x9x64xf32, #tpu.memory_space<vmem>>, %arg2: memref<64x192xbf16, #tpu.memory_space<vmem>>, %arg3: memref<1x192xf32, #tpu.memory_space<vmem>>, %arg4: memref<64x64xf32, #tpu.memory_space<vmem>>, %arg5: memref<1x64xf32, #tpu.memory_space<vmem>>, %arg6: memref<1x64xf32, #tpu.memory_space<vmem>>, %arg7: memref<1x64xf32, #tpu.memory_space<vmem>>, %arg8: memref<64x512xbf16, #tpu.memory_space<vmem>>, %arg9: memref<1x512xf32, #tpu.memory_space<vmem>>, %arg10: memref<512x64xbf16, #tpu.memory_space<vmem>>, %arg11: memref<1x64xf32, #tpu.memory_space<vmem>>, %arg12: memref<1x64xf32, #tpu.memory_space<vmem>>, %arg13: memref<1x64xf32, #tpu.memory_space<vmem>>, %arg14: memref<1x9x64xf32, #tpu.memory_space<vmem>>) attributes {dimension_semantics = [#tpu.dimension_semantics<parallel>], iteration_bounds = array<i64: 2>, scalar_prefetch = 0 : i64, scratch_operands = 0 : i64, tpu.core_type = #tpu.core_type<tc>, window_params = [{transform_indices = @transform_0, window_bounds = array<i64: 1, 9, 64>}, {pipeline_mode = #tpu.pipeline_mode<synchronous>, transform_indices = @transform_1, window_bounds = array<i64: 64, 192>}, {pipeline_mode = #tpu.pipeline_mode<synchronous>, transform_indices = @transform_2, window_bounds = array<i64: 1, 192>}, {pipeline_mode = #tpu.pipeline_mode<synchronous>, transform_indices = @transform_3, window_bounds = array<i64: 64, 64>}, {pipeline_mode = #tpu.pipeline_mode<synchronous>, transform_indices = @transform_4, window_bounds = array<i64: 1, 64>}, {pipeline_mode = #tpu.pipeline_mode<synchronous>, transform_indices = @transform_5, window_bounds = array<i64: 1, 64>}, {pipeline_mode = #tpu.pipeline_mode<synchronous>, transform_indices = @transform_6, window_bounds = array<i64: 1, 64>}, {pipeline_mode = #tpu.pipeline_mode<synchronous>, transform_indices = @transform_7, window_bounds = array<i64: 64, 512>}, {pipeline_mode = #tpu.pipeline_mode<synchronous>, transform_indices = @transform_8, window_bounds = array<i64: 1, 512>}, {pipeline_mode = #tpu.pipeline_mode<synchronous>, transform_indices = @transform_9, window_bounds = array<i64: 512, 64>}, {pipeline_mode = #tpu.pipeline_mode<synchronous>, transform_indices = @transform_10, window_bounds = array<i64: 1, 64>}, {pipeline_mode = #tpu.pipeline_mode<synchronous>, transform_indices = @transform_11, window_bounds = array<i64: 1, 64>}, {pipeline_mode = #tpu.pipeline_mode<synchronous>, transform_indices = @transform_12, window_bounds = array<i64: 1, 64>}, {transform_indices = @transform_13, window_bounds = array<i64: 1, 9, 64>}]} {
    %c0 = arith.constant 0 : index
    %c0_0 = arith.constant 0 : index
    %c0_1 = arith.constant 0 : index
    %0 = vector.load %arg1[%c0, %c0_0, %c0_1] : memref<1x9x64xf32, #tpu.memory_space<vmem>>, vector<1x9x64xf32>
    %1 = vector.shape_cast %0 : vector<1x9x64xf32> to vector<9x64xf32>
    %2 = arith.truncf %1 : vector<9x64xf32> to vector<9x64xbf16>
    %c0_2 = arith.constant 0 : index
    %c0_3 = arith.constant 0 : index
    %3 = vector.load %arg2[%c0_2, %c0_3] : memref<64x192xbf16, #tpu.memory_space<vmem>>, vector<64x192xbf16>
    %cst = arith.constant dense<0.000000e+00> : vector<9x192xf32>
    %4 = tpu.matmul %2, %3, %cst {dimension_numbers = #tpu.dot_dimension_numbers<[1], [0], [0], [1], [0, 0, 1, 1], [], []>} : vector<9x64xbf16>, vector<64x192xbf16>, vector<9x192xf32> -> vector<9x192xf32>
    %c0_4 = arith.constant 0 : index
    %c0_5 = arith.constant 0 : index
    %5 = vector.load %arg3[%c0_4, %c0_5] : memref<1x192xf32, #tpu.memory_space<vmem>>, vector<1x192xf32>
    %6 = vector.broadcast %5 : vector<1x192xf32> to vector<9x192xf32>
    %7 = arith.addf %4, %6 : vector<9x192xf32>
    %8 = vector.extract_strided_slice %7 {offsets = [0, 0], sizes = [9, 64], strides = [1, 1]} : vector<9x192xf32> to vector<9x64xf32>
    %9 = vector.extract_strided_slice %7 {offsets = [0, 64], sizes = [9, 64], strides = [1, 1]} : vector<9x192xf32> to vector<9x64xf32>
    %10 = vector.extract_strided_slice %7 {offsets = [0, 128], sizes = [9, 64], strides = [1, 1]} : vector<9x192xf32> to vector<9x64xf32>
    %c0_6 = arith.constant 0 : index
    %c0_7 = arith.constant 0 : index
    %11 = vector.load %arg4[%c0_6, %c0_7] : memref<64x64xf32, #tpu.memory_space<vmem>>, vector<64x64xf32>
    %cst_8 = arith.constant 0.000000e+00 : f32
    %12 = vector.broadcast %cst_8 : f32 to vector<9x64xf32>
    %13 = vector.extract_strided_slice %8 {offsets = [0, 0], sizes = [9, 8], strides = [1, 1]} : vector<9x64xf32> to vector<9x8xf32>
    %cst_9 = arith.constant 0.353553385 : f32
    %14 = vector.broadcast %cst_9 : f32 to vector<9x8xf32>
    %15 = arith.mulf %13, %14 : vector<9x8xf32>
    %16 = vector.extract_strided_slice %9 {offsets = [0, 0], sizes = [9, 8], strides = [1, 1]} : vector<9x64xf32> to vector<9x8xf32>
    %17 = vector.extract_strided_slice %10 {offsets = [0, 0], sizes = [9, 8], strides = [1, 1]} : vector<9x64xf32> to vector<9x8xf32>
    %cst_10 = arith.constant dense<0.000000e+00> : vector<9x9xf32>
    %18 = tpu.matmul %15, %16, %cst_10 {dimension_numbers = #tpu.dot_dimension_numbers<[1], [1], [0], [0], [0, 0, 1, 0], [], []>} : vector<9x8xf32>, vector<9x8xf32>, vector<9x9xf32> -> vector<9x9xf32>
    %cst_11 = arith.constant dense<0xFF800000> : vector<9xf32>
    %19 = vector.multi_reduction <maximumf>, %18, %cst_11 [1] : vector<9x9xf32> to vector<9xf32>
    %20 = vector.shape_cast %19 : vector<9xf32> to vector<9x1xf32>
    %21 = vector.broadcast %20 : vector<9x1xf32> to vector<9x9xf32>
    %22 = arith.subf %18, %21 : vector<9x9xf32>
    %23 = math.exp %22 : vector<9x9xf32>
    %cst_12 = arith.constant dense<0.000000e+00> : vector<9xf32>
    %24 = vector.multi_reduction <add>, %23, %cst_12 [1] : vector<9x9xf32> to vector<9xf32>
    %25 = vector.shape_cast %24 : vector<9xf32> to vector<9x1xf32>
    %26 = tpu.reciprocal %25 {approx = true} : vector<9x1xf32> -> vector<9x1xf32>
    %27 = vector.broadcast %26 : vector<9x1xf32> to vector<9x9xf32>
    %28 = arith.mulf %23, %27 : vector<9x9xf32>
    %cst_13 = arith.constant dense<0.000000e+00> : vector<9x8xf32>
    %29 = tpu.matmul %28, %17, %cst_13 {dimension_numbers = #tpu.dot_dimension_numbers<[1], [0], [0], [1], [0, 0, 1, 1], [], []>} : vector<9x9xf32>, vector<9x8xf32>, vector<9x8xf32> -> vector<9x8xf32>
    %30 = vector.extract_strided_slice %11 {offsets = [0, 0], sizes = [8, 64], strides = [1, 1]} : vector<64x64xf32> to vector<8x64xf32>
    %cst_14 = arith.constant dense<0.000000e+00> : vector<9x64xf32>
    %31 = tpu.matmul %29, %30, %cst_14 {dimension_numbers = #tpu.dot_dimension_numbers<[1], [0], [0], [1], [0, 0, 1, 1], [], []>} : vector<9x8xf32>, vector<8x64xf32>, vector<9x64xf32> -> vector<9x64xf32>
    %32 = arith.addf %12, %31 : vector<9x64xf32>
    %33 = vector.extract_strided_slice %8 {offsets = [0, 8], sizes = [9, 8], strides = [1, 1]} : vector<9x64xf32> to vector<9x8xf32>
    %cst_15 = arith.constant 0.353553385 : f32
    %34 = vector.broadcast %cst_15 : f32 to vector<9x8xf32>
    %35 = arith.mulf %33, %34 : vector<9x8xf32>
    %36 = vector.extract_strided_slice %9 {offsets = [0, 8], sizes = [9, 8], strides = [1, 1]} : vector<9x64xf32> to vector<9x8xf32>
    %37 = vector.extract_strided_slice %10 {offsets = [0, 8], sizes = [9, 8], strides = [1, 1]} : vector<9x64xf32> to vector<9x8xf32>
    %cst_16 = arith.constant dense<0.000000e+00> : vector<9x9xf32>
    %38 = tpu.matmul %35, %36, %cst_16 {dimension_numbers = #tpu.dot_dimension_numbers<[1], [1], [0], [0], [0, 0, 1, 0], [], []>} : vector<9x8xf32>, vector<9x8xf32>, vector<9x9xf32> -> vector<9x9xf32>
    %cst_17 = arith.constant dense<0xFF800000> : vector<9xf32>
    %39 = vector.multi_reduction <maximumf>, %38, %cst_17 [1] : vector<9x9xf32> to vector<9xf32>
    %40 = vector.shape_cast %39 : vector<9xf32> to vector<9x1xf32>
    %41 = vector.broadcast %40 : vector<9x1xf32> to vector<9x9xf32>
    %42 = arith.subf %38, %41 : vector<9x9xf32>
    %43 = math.exp %42 : vector<9x9xf32>
    %cst_18 = arith.constant dense<0.000000e+00> : vector<9xf32>
    %44 = vector.multi_reduction <add>, %43, %cst_18 [1] : vector<9x9xf32> to vector<9xf32>
    %45 = vector.shape_cast %44 : vector<9xf32> to vector<9x1xf32>
    %46 = tpu.reciprocal %45 {approx = true} : vector<9x1xf32> -> vector<9x1xf32>
    %47 = vector.broadcast %46 : vector<9x1xf32> to vector<9x9xf32>
    %48 = arith.mulf %43, %47 : vector<9x9xf32>
    %cst_19 = arith.constant dense<0.000000e+00> : vector<9x8xf32>
    %49 = tpu.matmul %48, %37, %cst_19 {dimension_numbers = #tpu.dot_dimension_numbers<[1], [0], [0], [1], [0, 0, 1, 1], [], []>} : vector<9x9xf32>, vector<9x8xf32>, vector<9x8xf32> -> vector<9x8xf32>
    %50 = vector.extract_strided_slice %11 {offsets = [8, 0], sizes = [8, 64], strides = [1, 1]} : vector<64x64xf32> to vector<8x64xf32>
    %cst_20 = arith.constant dense<0.000000e+00> : vector<9x64xf32>
    %51 = tpu.matmul %49, %50, %cst_20 {dimension_numbers = #tpu.dot_dimension_numbers<[1], [0], [0], [1], [0, 0, 1, 1], [], []>} : vector<9x8xf32>, vector<8x64xf32>, vector<9x64xf32> -> vector<9x64xf32>
    %52 = arith.addf %32, %51 : vector<9x64xf32>
    %53 = vector.extract_strided_slice %8 {offsets = [0, 16], sizes = [9, 8], strides = [1, 1]} : vector<9x64xf32> to vector<9x8xf32>
    %cst_21 = arith.constant 0.353553385 : f32
    %54 = vector.broadcast %cst_21 : f32 to vector<9x8xf32>
    %55 = arith.mulf %53, %54 : vector<9x8xf32>
    %56 = vector.extract_strided_slice %9 {offsets = [0, 16], sizes = [9, 8], strides = [1, 1]} : vector<9x64xf32> to vector<9x8xf32>
    %57 = vector.extract_strided_slice %10 {offsets = [0, 16], sizes = [9, 8], strides = [1, 1]} : vector<9x64xf32> to vector<9x8xf32>
    %cst_22 = arith.constant dense<0.000000e+00> : vector<9x9xf32>
    %58 = tpu.matmul %55, %56, %cst_22 {dimension_numbers = #tpu.dot_dimension_numbers<[1], [1], [0], [0], [0, 0, 1, 0], [], []>} : vector<9x8xf32>, vector<9x8xf32>, vector<9x9xf32> -> vector<9x9xf32>
    %cst_23 = arith.constant dense<0xFF800000> : vector<9xf32>
    %59 = vector.multi_reduction <maximumf>, %58, %cst_23 [1] : vector<9x9xf32> to vector<9xf32>
    %60 = vector.shape_cast %59 : vector<9xf32> to vector<9x1xf32>
    %61 = vector.broadcast %60 : vector<9x1xf32> to vector<9x9xf32>
    %62 = arith.subf %58, %61 : vector<9x9xf32>
    %63 = math.exp %62 : vector<9x9xf32>
    %cst_24 = arith.constant dense<0.000000e+00> : vector<9xf32>
    %64 = vector.multi_reduction <add>, %63, %cst_24 [1] : vector<9x9xf32> to vector<9xf32>
    %65 = vector.shape_cast %64 : vector<9xf32> to vector<9x1xf32>
    %66 = tpu.reciprocal %65 {approx = true} : vector<9x1xf32> -> vector<9x1xf32>
    %67 = vector.broadcast %66 : vector<9x1xf32> to vector<9x9xf32>
    %68 = arith.mulf %63, %67 : vector<9x9xf32>
    %cst_25 = arith.constant dense<0.000000e+00> : vector<9x8xf32>
    %69 = tpu.matmul %68, %57, %cst_25 {dimension_numbers = #tpu.dot_dimension_numbers<[1], [0], [0], [1], [0, 0, 1, 1], [], []>} : vector<9x9xf32>, vector<9x8xf32>, vector<9x8xf32> -> vector<9x8xf32>
    %70 = vector.extract_strided_slice %11 {offsets = [16, 0], sizes = [8, 64], strides = [1, 1]} : vector<64x64xf32> to vector<8x64xf32>
    %cst_26 = arith.constant dense<0.000000e+00> : vector<9x64xf32>
    %71 = tpu.matmul %69, %70, %cst_26 {dimension_numbers = #tpu.dot_dimension_numbers<[1], [0], [0], [1], [0, 0, 1, 1], [], []>} : vector<9x8xf32>, vector<8x64xf32>, vector<9x64xf32> -> vector<9x64xf32>
    %72 = arith.addf %52, %71 : vector<9x64xf32>
    %73 = vector.extract_strided_slice %8 {offsets = [0, 24], sizes = [9, 8], strides = [1, 1]} : vector<9x64xf32> to vector<9x8xf32>
    %cst_27 = arith.constant 0.353553385 : f32
    %74 = vector.broadcast %cst_27 : f32 to vector<9x8xf32>
    %75 = arith.mulf %73, %74 : vector<9x8xf32>
    %76 = vector.extract_strided_slice %9 {offsets = [0, 24], sizes = [9, 8], strides = [1, 1]} : vector<9x64xf32> to vector<9x8xf32>
    %77 = vector.extract_strided_slice %10 {offsets = [0, 24], sizes = [9, 8], strides = [1, 1]} : vector<9x64xf32> to vector<9x8xf32>
    %cst_28 = arith.constant dense<0.000000e+00> : vector<9x9xf32>
    %78 = tpu.matmul %75, %76, %cst_28 {dimension_numbers = #tpu.dot_dimension_numbers<[1], [1], [0], [0], [0, 0, 1, 0], [], []>} : vector<9x8xf32>, vector<9x8xf32>, vector<9x9xf32> -> vector<9x9xf32>
    %cst_29 = arith.constant dense<0xFF800000> : vector<9xf32>
    %79 = vector.multi_reduction <maximumf>, %78, %cst_29 [1] : vector<9x9xf32> to vector<9xf32>
    %80 = vector.shape_cast %79 : vector<9xf32> to vector<9x1xf32>
    %81 = vector.broadcast %80 : vector<9x1xf32> to vector<9x9xf32>
    %82 = arith.subf %78, %81 : vector<9x9xf32>
    %83 = math.exp %82 : vector<9x9xf32>
    %cst_30 = arith.constant dense<0.000000e+00> : vector<9xf32>
    %84 = vector.multi_reduction <add>, %83, %cst_30 [1] : vector<9x9xf32> to vector<9xf32>
    %85 = vector.shape_cast %84 : vector<9xf32> to vector<9x1xf32>
    %86 = tpu.reciprocal %85 {approx = true} : vector<9x1xf32> -> vector<9x1xf32>
    %87 = vector.broadcast %86 : vector<9x1xf32> to vector<9x9xf32>
    %88 = arith.mulf %83, %87 : vector<9x9xf32>
    %cst_31 = arith.constant dense<0.000000e+00> : vector<9x8xf32>
    %89 = tpu.matmul %88, %77, %cst_31 {dimension_numbers = #tpu.dot_dimension_numbers<[1], [0], [0], [1], [0, 0, 1, 1], [], []>} : vector<9x9xf32>, vector<9x8xf32>, vector<9x8xf32> -> vector<9x8xf32>
    %90 = vector.extract_strided_slice %11 {offsets = [24, 0], sizes = [8, 64], strides = [1, 1]} : vector<64x64xf32> to vector<8x64xf32>
    %cst_32 = arith.constant dense<0.000000e+00> : vector<9x64xf32>
    %91 = tpu.matmul %89, %90, %cst_32 {dimension_numbers = #tpu.dot_dimension_numbers<[1], [0], [0], [1], [0, 0, 1, 1], [], []>} : vector<9x8xf32>, vector<8x64xf32>, vector<9x64xf32> -> vector<9x64xf32>
    %92 = arith.addf %72, %91 : vector<9x64xf32>
    %93 = vector.extract_strided_slice %8 {offsets = [0, 32], sizes = [9, 8], strides = [1, 1]} : vector<9x64xf32> to vector<9x8xf32>
    %cst_33 = arith.constant 0.353553385 : f32
    %94 = vector.broadcast %cst_33 : f32 to vector<9x8xf32>
    %95 = arith.mulf %93, %94 : vector<9x8xf32>
    %96 = vector.extract_strided_slice %9 {offsets = [0, 32], sizes = [9, 8], strides = [1, 1]} : vector<9x64xf32> to vector<9x8xf32>
    %97 = vector.extract_strided_slice %10 {offsets = [0, 32], sizes = [9, 8], strides = [1, 1]} : vector<9x64xf32> to vector<9x8xf32>
    %cst_34 = arith.constant dense<0.000000e+00> : vector<9x9xf32>
    %98 = tpu.matmul %95, %96, %cst_34 {dimension_numbers = #tpu.dot_dimension_numbers<[1], [1], [0], [0], [0, 0, 1, 0], [], []>} : vector<9x8xf32>, vector<9x8xf32>, vector<9x9xf32> -> vector<9x9xf32>
    %cst_35 = arith.constant dense<0xFF800000> : vector<9xf32>
    %99 = vector.multi_reduction <maximumf>, %98, %cst_35 [1] : vector<9x9xf32> to vector<9xf32>
    %100 = vector.shape_cast %99 : vector<9xf32> to vector<9x1xf32>
    %101 = vector.broadcast %100 : vector<9x1xf32> to vector<9x9xf32>
    %102 = arith.subf %98, %101 : vector<9x9xf32>
    %103 = math.exp %102 : vector<9x9xf32>
    %cst_36 = arith.constant dense<0.000000e+00> : vector<9xf32>
    %104 = vector.multi_reduction <add>, %103, %cst_36 [1] : vector<9x9xf32> to vector<9xf32>
    %105 = vector.shape_cast %104 : vector<9xf32> to vector<9x1xf32>
    %106 = tpu.reciprocal %105 {approx = true} : vector<9x1xf32> -> vector<9x1xf32>
    %107 = vector.broadcast %106 : vector<9x1xf32> to vector<9x9xf32>
    %108 = arith.mulf %103, %107 : vector<9x9xf32>
    %cst_37 = arith.constant dense<0.000000e+00> : vector<9x8xf32>
    %109 = tpu.matmul %108, %97, %cst_37 {dimension_numbers = #tpu.dot_dimension_numbers<[1], [0], [0], [1], [0, 0, 1, 1], [], []>} : vector<9x9xf32>, vector<9x8xf32>, vector<9x8xf32> -> vector<9x8xf32>
    %110 = vector.extract_strided_slice %11 {offsets = [32, 0], sizes = [8, 64], strides = [1, 1]} : vector<64x64xf32> to vector<8x64xf32>
    %cst_38 = arith.constant dense<0.000000e+00> : vector<9x64xf32>
    %111 = tpu.matmul %109, %110, %cst_38 {dimension_numbers = #tpu.dot_dimension_numbers<[1], [0], [0], [1], [0, 0, 1, 1], [], []>} : vector<9x8xf32>, vector<8x64xf32>, vector<9x64xf32> -> vector<9x64xf32>
    %112 = arith.addf %92, %111 : vector<9x64xf32>
    %113 = vector.extract_strided_slice %8 {offsets = [0, 40], sizes = [9, 8], strides = [1, 1]} : vector<9x64xf32> to vector<9x8xf32>
    %cst_39 = arith.constant 0.353553385 : f32
    %114 = vector.broadcast %cst_39 : f32 to vector<9x8xf32>
    %115 = arith.mulf %113, %114 : vector<9x8xf32>
    %116 = vector.extract_strided_slice %9 {offsets = [0, 40], sizes = [9, 8], strides = [1, 1]} : vector<9x64xf32> to vector<9x8xf32>
    %117 = vector.extract_strided_slice %10 {offsets = [0, 40], sizes = [9, 8], strides = [1, 1]} : vector<9x64xf32> to vector<9x8xf32>
    %cst_40 = arith.constant dense<0.000000e+00> : vector<9x9xf32>
    %118 = tpu.matmul %115, %116, %cst_40 {dimension_numbers = #tpu.dot_dimension_numbers<[1], [1], [0], [0], [0, 0, 1, 0], [], []>} : vector<9x8xf32>, vector<9x8xf32>, vector<9x9xf32> -> vector<9x9xf32>
    %cst_41 = arith.constant dense<0xFF800000> : vector<9xf32>
    %119 = vector.multi_reduction <maximumf>, %118, %cst_41 [1] : vector<9x9xf32> to vector<9xf32>
    %120 = vector.shape_cast %119 : vector<9xf32> to vector<9x1xf32>
    %121 = vector.broadcast %120 : vector<9x1xf32> to vector<9x9xf32>
    %122 = arith.subf %118, %121 : vector<9x9xf32>
    %123 = math.exp %122 : vector<9x9xf32>
    %cst_42 = arith.constant dense<0.000000e+00> : vector<9xf32>
    %124 = vector.multi_reduction <add>, %123, %cst_42 [1] : vector<9x9xf32> to vector<9xf32>
    %125 = vector.shape_cast %124 : vector<9xf32> to vector<9x1xf32>
    %126 = tpu.reciprocal %125 {approx = true} : vector<9x1xf32> -> vector<9x1xf32>
    %127 = vector.broadcast %126 : vector<9x1xf32> to vector<9x9xf32>
    %128 = arith.mulf %123, %127 : vector<9x9xf32>
    %cst_43 = arith.constant dense<0.000000e+00> : vector<9x8xf32>
    %129 = tpu.matmul %128, %117, %cst_43 {dimension_numbers = #tpu.dot_dimension_numbers<[1], [0], [0], [1], [0, 0, 1, 1], [], []>} : vector<9x9xf32>, vector<9x8xf32>, vector<9x8xf32> -> vector<9x8xf32>
    %130 = vector.extract_strided_slice %11 {offsets = [40, 0], sizes = [8, 64], strides = [1, 1]} : vector<64x64xf32> to vector<8x64xf32>
    %cst_44 = arith.constant dense<0.000000e+00> : vector<9x64xf32>
    %131 = tpu.matmul %129, %130, %cst_44 {dimension_numbers = #tpu.dot_dimension_numbers<[1], [0], [0], [1], [0, 0, 1, 1], [], []>} : vector<9x8xf32>, vector<8x64xf32>, vector<9x64xf32> -> vector<9x64xf32>
    %132 = arith.addf %112, %131 : vector<9x64xf32>
    %133 = vector.extract_strided_slice %8 {offsets = [0, 48], sizes = [9, 8], strides = [1, 1]} : vector<9x64xf32> to vector<9x8xf32>
    %cst_45 = arith.constant 0.353553385 : f32
    %134 = vector.broadcast %cst_45 : f32 to vector<9x8xf32>
    %135 = arith.mulf %133, %134 : vector<9x8xf32>
    %136 = vector.extract_strided_slice %9 {offsets = [0, 48], sizes = [9, 8], strides = [1, 1]} : vector<9x64xf32> to vector<9x8xf32>
    %137 = vector.extract_strided_slice %10 {offsets = [0, 48], sizes = [9, 8], strides = [1, 1]} : vector<9x64xf32> to vector<9x8xf32>
    %cst_46 = arith.constant dense<0.000000e+00> : vector<9x9xf32>
    %138 = tpu.matmul %135, %136, %cst_46 {dimension_numbers = #tpu.dot_dimension_numbers<[1], [1], [0], [0], [0, 0, 1, 0], [], []>} : vector<9x8xf32>, vector<9x8xf32>, vector<9x9xf32> -> vector<9x9xf32>
    %cst_47 = arith.constant dense<0xFF800000> : vector<9xf32>
    %139 = vector.multi_reduction <maximumf>, %138, %cst_47 [1] : vector<9x9xf32> to vector<9xf32>
    %140 = vector.shape_cast %139 : vector<9xf32> to vector<9x1xf32>
    %141 = vector.broadcast %140 : vector<9x1xf32> to vector<9x9xf32>
    %142 = arith.subf %138, %141 : vector<9x9xf32>
    %143 = math.exp %142 : vector<9x9xf32>
    %cst_48 = arith.constant dense<0.000000e+00> : vector<9xf32>
    %144 = vector.multi_reduction <add>, %143, %cst_48 [1] : vector<9x9xf32> to vector<9xf32>
    %145 = vector.shape_cast %144 : vector<9xf32> to vector<9x1xf32>
    %146 = tpu.reciprocal %145 {approx = true} : vector<9x1xf32> -> vector<9x1xf32>
    %147 = vector.broadcast %146 : vector<9x1xf32> to vector<9x9xf32>
    %148 = arith.mulf %143, %147 : vector<9x9xf32>
    %cst_49 = arith.constant dense<0.000000e+00> : vector<9x8xf32>
    %149 = tpu.matmul %148, %137, %cst_49 {dimension_numbers = #tpu.dot_dimension_numbers<[1], [0], [0], [1], [0, 0, 1, 1], [], []>} : vector<9x9xf32>, vector<9x8xf32>, vector<9x8xf32> -> vector<9x8xf32>
    %150 = vector.extract_strided_slice %11 {offsets = [48, 0], sizes = [8, 64], strides = [1, 1]} : vector<64x64xf32> to vector<8x64xf32>
    %cst_50 = arith.constant dense<0.000000e+00> : vector<9x64xf32>
    %151 = tpu.matmul %149, %150, %cst_50 {dimension_numbers = #tpu.dot_dimension_numbers<[1], [0], [0], [1], [0, 0, 1, 1], [], []>} : vector<9x8xf32>, vector<8x64xf32>, vector<9x64xf32> -> vector<9x64xf32>
    %152 = arith.addf %132, %151 : vector<9x64xf32>
    %153 = vector.extract_strided_slice %8 {offsets = [0, 56], sizes = [9, 8], strides = [1, 1]} : vector<9x64xf32> to vector<9x8xf32>
    %cst_51 = arith.constant 0.353553385 : f32
    %154 = vector.broadcast %cst_51 : f32 to vector<9x8xf32>
    %155 = arith.mulf %153, %154 : vector<9x8xf32>
    %156 = vector.extract_strided_slice %9 {offsets = [0, 56], sizes = [9, 8], strides = [1, 1]} : vector<9x64xf32> to vector<9x8xf32>
    %157 = vector.extract_strided_slice %10 {offsets = [0, 56], sizes = [9, 8], strides = [1, 1]} : vector<9x64xf32> to vector<9x8xf32>
    %cst_52 = arith.constant dense<0.000000e+00> : vector<9x9xf32>
    %158 = tpu.matmul %155, %156, %cst_52 {dimension_numbers = #tpu.dot_dimension_numbers<[1], [1], [0], [0], [0, 0, 1, 0], [], []>} : vector<9x8xf32>, vector<9x8xf32>, vector<9x9xf32> -> vector<9x9xf32>
    %cst_53 = arith.constant dense<0xFF800000> : vector<9xf32>
    %159 = vector.multi_reduction <maximumf>, %158, %cst_53 [1] : vector<9x9xf32> to vector<9xf32>
    %160 = vector.shape_cast %159 : vector<9xf32> to vector<9x1xf32>
    %161 = vector.broadcast %160 : vector<9x1xf32> to vector<9x9xf32>
    %162 = arith.subf %158, %161 : vector<9x9xf32>
    %163 = math.exp %162 : vector<9x9xf32>
    %cst_54 = arith.constant dense<0.000000e+00> : vector<9xf32>
    %164 = vector.multi_reduction <add>, %163, %cst_54 [1] : vector<9x9xf32> to vector<9xf32>
    %165 = vector.shape_cast %164 : vector<9xf32> to vector<9x1xf32>
    %166 = tpu.reciprocal %165 {approx = true} : vector<9x1xf32> -> vector<9x1xf32>
    %167 = vector.broadcast %166 : vector<9x1xf32> to vector<9x9xf32>
    %168 = arith.mulf %163, %167 : vector<9x9xf32>
    %cst_55 = arith.constant dense<0.000000e+00> : vector<9x8xf32>
    %169 = tpu.matmul %168, %157, %cst_55 {dimension_numbers = #tpu.dot_dimension_numbers<[1], [0], [0], [1], [0, 0, 1, 1], [], []>} : vector<9x9xf32>, vector<9x8xf32>, vector<9x8xf32> -> vector<9x8xf32>
    %170 = vector.extract_strided_slice %11 {offsets = [56, 0], sizes = [8, 64], strides = [1, 1]} : vector<64x64xf32> to vector<8x64xf32>
    %cst_56 = arith.constant dense<0.000000e+00> : vector<9x64xf32>
    %171 = tpu.matmul %169, %170, %cst_56 {dimension_numbers = #tpu.dot_dimension_numbers<[1], [0], [0], [1], [0, 0, 1, 1], [], []>} : vector<9x8xf32>, vector<8x64xf32>, vector<9x64xf32> -> vector<9x64xf32>
    %172 = arith.addf %152, %171 : vector<9x64xf32>
    %c0_57 = arith.constant 0 : index
    %c0_58 = arith.constant 0 : index
    %173 = vector.load %arg5[%c0_57, %c0_58] : memref<1x64xf32, #tpu.memory_space<vmem>>, vector<1x64xf32>
    %174 = vector.broadcast %173 : vector<1x64xf32> to vector<9x64xf32>
    %175 = arith.addf %172, %174 : vector<9x64xf32>
    %176 = arith.addf %1, %175 : vector<9x64xf32>
    %c0_59 = arith.constant 0 : index
    %c0_60 = arith.constant 0 : index
    %177 = vector.load %arg6[%c0_59, %c0_60] : memref<1x64xf32, #tpu.memory_space<vmem>>, vector<1x64xf32>
    %c0_61 = arith.constant 0 : index
    %c0_62 = arith.constant 0 : index
    %178 = vector.load %arg7[%c0_61, %c0_62] : memref<1x64xf32, #tpu.memory_space<vmem>>, vector<1x64xf32>
    %cst_63 = arith.constant dense<0.000000e+00> : vector<9xf32>
    %179 = vector.multi_reduction <add>, %176, %cst_63 [1] : vector<9x64xf32> to vector<9xf32>
    %180 = vector.shape_cast %179 : vector<9xf32> to vector<9x1xf32>
    %cst_64 = arith.constant 6.400000e+01 : f32
    %181 = vector.broadcast %cst_64 : f32 to vector<9x1xf32>
    %182 = arith.divf %180, %181 : vector<9x1xf32>
    %183 = vector.broadcast %182 : vector<9x1xf32> to vector<9x64xf32>
    %184 = arith.subf %176, %183 : vector<9x64xf32>
    %185 = arith.mulf %184, %184 : vector<9x64xf32>
    %cst_65 = arith.constant dense<0.000000e+00> : vector<9xf32>
    %186 = vector.multi_reduction <add>, %185, %cst_65 [1] : vector<9x64xf32> to vector<9xf32>
    %187 = vector.shape_cast %186 : vector<9xf32> to vector<9x1xf32>
    %cst_66 = arith.constant 6.400000e+01 : f32
    %188 = vector.broadcast %cst_66 : f32 to vector<9x1xf32>
    %189 = arith.divf %187, %188 : vector<9x1xf32>
    %cst_67 = arith.constant 9.99999974E-6 : f32
    %190 = vector.broadcast %cst_67 : f32 to vector<9x1xf32>
    %191 = arith.addf %189, %190 : vector<9x1xf32>
    %192 = math.rsqrt %191 : vector<9x1xf32>
    %193 = vector.broadcast %192 : vector<9x1xf32> to vector<9x64xf32>
    %194 = arith.mulf %184, %193 : vector<9x64xf32>
    %195 = vector.broadcast %177 : vector<1x64xf32> to vector<9x64xf32>
    %196 = arith.mulf %194, %195 : vector<9x64xf32>
    %197 = vector.broadcast %178 : vector<1x64xf32> to vector<9x64xf32>
    %198 = arith.addf %196, %197 : vector<9x64xf32>
    %199 = arith.truncf %198 : vector<9x64xf32> to vector<9x64xbf16>
    %c0_68 = arith.constant 0 : index
    %c0_69 = arith.constant 0 : index
    %200 = vector.load %arg8[%c0_68, %c0_69] : memref<64x512xbf16, #tpu.memory_space<vmem>>, vector<64x512xbf16>
    %cst_70 = arith.constant dense<0.000000e+00> : vector<9x512xf32>
    %201 = tpu.matmul %199, %200, %cst_70 {dimension_numbers = #tpu.dot_dimension_numbers<[1], [0], [0], [1], [0, 0, 1, 1], [], []>} : vector<9x64xbf16>, vector<64x512xbf16>, vector<9x512xf32> -> vector<9x512xf32>
    %c0_71 = arith.constant 0 : index
    %c0_72 = arith.constant 0 : index
    %202 = vector.load %arg9[%c0_71, %c0_72] : memref<1x512xf32, #tpu.memory_space<vmem>>, vector<1x512xf32>
    %203 = vector.broadcast %202 : vector<1x512xf32> to vector<9x512xf32>
    %204 = arith.addf %201, %203 : vector<9x512xf32>
    %cst_73 = arith.constant 0.000000e+00 : f32
    %205 = vector.broadcast %cst_73 : f32 to vector<9x512xf32>
    %206 = arith.maximumf %204, %205 : vector<9x512xf32>
    %207 = arith.truncf %206 : vector<9x512xf32> to vector<9x512xbf16>
    %c0_74 = arith.constant 0 : index
    %c0_75 = arith.constant 0 : index
    %208 = vector.load %arg10[%c0_74, %c0_75] : memref<512x64xbf16, #tpu.memory_space<vmem>>, vector<512x64xbf16>
    %cst_76 = arith.constant dense<0.000000e+00> : vector<9x64xf32>
    %209 = tpu.matmul %207, %208, %cst_76 {dimension_numbers = #tpu.dot_dimension_numbers<[1], [0], [0], [1], [0, 0, 1, 1], [], []>} : vector<9x512xbf16>, vector<512x64xbf16>, vector<9x64xf32> -> vector<9x64xf32>
    %c0_77 = arith.constant 0 : index
    %c0_78 = arith.constant 0 : index
    %210 = vector.load %arg11[%c0_77, %c0_78] : memref<1x64xf32, #tpu.memory_space<vmem>>, vector<1x64xf32>
    %211 = vector.broadcast %210 : vector<1x64xf32> to vector<9x64xf32>
    %212 = arith.addf %209, %211 : vector<9x64xf32>
    %213 = arith.addf %198, %212 : vector<9x64xf32>
    %c0_79 = arith.constant 0 : index
    %c0_80 = arith.constant 0 : index
    %214 = vector.load %arg12[%c0_79, %c0_80] : memref<1x64xf32, #tpu.memory_space<vmem>>, vector<1x64xf32>
    %c0_81 = arith.constant 0 : index
    %c0_82 = arith.constant 0 : index
    %215 = vector.load %arg13[%c0_81, %c0_82] : memref<1x64xf32, #tpu.memory_space<vmem>>, vector<1x64xf32>
    %cst_83 = arith.constant dense<0.000000e+00> : vector<9xf32>
    %216 = vector.multi_reduction <add>, %213, %cst_83 [1] : vector<9x64xf32> to vector<9xf32>
    %217 = vector.shape_cast %216 : vector<9xf32> to vector<9x1xf32>
    %cst_84 = arith.constant 6.400000e+01 : f32
    %218 = vector.broadcast %cst_84 : f32 to vector<9x1xf32>
    %219 = arith.divf %217, %218 : vector<9x1xf32>
    %220 = vector.broadcast %219 : vector<9x1xf32> to vector<9x64xf32>
    %221 = arith.subf %213, %220 : vector<9x64xf32>
    %222 = arith.mulf %221, %221 : vector<9x64xf32>
    %cst_85 = arith.constant dense<0.000000e+00> : vector<9xf32>
    %223 = vector.multi_reduction <add>, %222, %cst_85 [1] : vector<9x64xf32> to vector<9xf32>
    %224 = vector.shape_cast %223 : vector<9xf32> to vector<9x1xf32>
    %cst_86 = arith.constant 6.400000e+01 : f32
    %225 = vector.broadcast %cst_86 : f32 to vector<9x1xf32>
    %226 = arith.divf %224, %225 : vector<9x1xf32>
    %cst_87 = arith.constant 9.99999974E-6 : f32
    %227 = vector.broadcast %cst_87 : f32 to vector<9x1xf32>
    %228 = arith.addf %226, %227 : vector<9x1xf32>
    %229 = math.rsqrt %228 : vector<9x1xf32>
    %230 = vector.broadcast %229 : vector<9x1xf32> to vector<9x64xf32>
    %231 = arith.mulf %221, %230 : vector<9x64xf32>
    %232 = vector.broadcast %214 : vector<1x64xf32> to vector<9x64xf32>
    %233 = arith.mulf %231, %232 : vector<9x64xf32>
    %234 = vector.broadcast %215 : vector<1x64xf32> to vector<9x64xf32>
    %235 = arith.addf %233, %234 : vector<9x64xf32>
    %c0_88 = arith.constant 0 : index
    %c0_89 = arith.constant 0 : index
    %c0_90 = arith.constant 0 : index
    %236 = vector.load %arg14[%c0_88, %c0_89, %c0_90] : memref<1x9x64xf32, #tpu.memory_space<vmem>>, vector<1x9x64xf32>
    %237 = vector.shape_cast %236 : vector<1x9x64xf32> to vector<9x64xf32>
    %238 = vector.shape_cast %235 : vector<9x64xf32> to vector<1x9x64xf32>
    tpu.vector_store %arg14[%c0_88, %c0_89, %c0_90], %238 {strides = array<i32>} : memref<1x9x64xf32, #tpu.memory_space<vmem>>, vector<1x9x64xf32>,
    return
  }
  func.func @transform_0(%arg0: i32) -> (i32, i32, i32) {
    %c0_i32 = arith.constant 0 : i32
    %c0_i32_0 = arith.constant 0 : i32
    %c0_i32_1 = arith.constant 0 : i32
    return %arg0, %c0_i32, %c0_i32_0 : i32, i32, i32
  }
  func.func @transform_1(%arg0: i32) -> (i32, i32) {
    %c0_i32 = arith.constant 0 : i32
    %c0_i32_0 = arith.constant 0 : i32
    %c0_i32_1 = arith.constant 0 : i32
    return %c0_i32, %c0_i32_0 : i32, i32
  }
  func.func @transform_2(%arg0: i32) -> (i32, i32) {
    %c0_i32 = arith.constant 0 : i32
    %c0_i32_0 = arith.constant 0 : i32
    %c0_i32_1 = arith.constant 0 : i32
    return %c0_i32, %c0_i32_0 : i32, i32
  }
  func.func @transform_3(%arg0: i32) -> (i32, i32) {
    %c0_i32 = arith.constant 0 : i32
    %c0_i32_0 = arith.constant 0 : i32
    %c0_i32_1 = arith.constant 0 : i32
    return %c0_i32, %c0_i32_0 : i32, i32
  }
  func.func @transform_4(%arg0: i32) -> (i32, i32) {
    %c0_i32 = arith.constant 0 : i32
    %c0_i32_0 = arith.constant 0 : i32
    %c0_i32_1 = arith.constant 0 : i32
    return %c0_i32, %c0_i32_0 : i32, i32
  }
  func.func @transform_5(%arg0: i32) -> (i32, i32) {
    %c0_i32 = arith.constant 0 : i32
    %c0_i32_0 = arith.constant 0 : i32
    %c0_i32_1 = arith.constant 0 : i32
    return %c0_i32, %c0_i32_0 : i32, i32
  }
  func.func @transform_6(%arg0: i32) -> (i32, i32) {
    %c0_i32 = arith.constant 0 : i32
    %c0_i32_0 = arith.constant 0 : i32
    %c0_i32_1 = arith.constant 0 : i32
    return %c0_i32, %c0_i32_0 : i32, i32
  }
  func.func @transform_7(%arg0: i32) -> (i32, i32) {
    %c0_i32 = arith.constant 0 : i32
    %c0_i32_0 = arith.constant 0 : i32
    %c0_i32_1 = arith.constant 0 : i32
    return %c0_i32, %c0_i32_0 : i32, i32
  }
  func.func @transform_8(%arg0: i32) -> (i32, i32) {
    %c0_i32 = arith.constant 0 : i32
    %c0_i32_0 = arith.constant 0 : i32
    %c0_i32_1 = arith.constant 0 : i32
    return %c0_i32, %c0_i32_0 : i32, i32
  }
  func.func @transform_9(%arg0: i32) -> (i32, i32) {
    %c0_i32 = arith.constant 0 : i32
    %c0_i32_0 = arith.constant 0 : i32
    %c0_i32_1 = arith.constant 0 : i32
    return %c0_i32, %c0_i32_0 : i32, i32
  }
  func.func @transform_10(%arg0: i32) -> (i32, i32) {
    %c0_i32 = arith.constant 0 : i32
    %c0_i32_0 = arith.constant 0 : i32
    %c0_i32_1 = arith.constant 0 : i32
    return %c0_i32, %c0_i32_0 : i32, i32
  }
  func.func @transform_11(%arg0: i32) -> (i32, i32) {
    %c0_i32 = arith.constant 0 : i32
    %c0_i32_0 = arith.constant 0 : i32
    %c0_i32_1 = arith.constant 0 : i32
    return %c0_i32, %c0_i32_0 : i32, i32
  }
  func.func @transform_12(%arg0: i32) -> (i32, i32) {
    %c0_i32 = arith.constant 0 : i32
    %c0_i32_0 = arith.constant 0 : i32
    %c0_i32_1 = arith.constant 0 : i32
    return %c0_i32, %c0_i32_0 : i32, i32
  }
  func.func @transform_13(%arg0: i32) -> (i32, i32, i32) {
    %c0_i32 = arith.constant 0 : i32
    %c0_i32_0 = arith.constant 0 : i32
    %c0_i32_1 = arith.constant 0 : i32
    return %arg0, %c0_i32, %c0_i32_0 : i32, i32, i32
  }
}

module attributes {stable_mosaic.version = 11 : i64} {
  func.func @_head_kernel(%arg0: i32, %arg1: memref<2x9x64xf32, #tpu.memory_space<vmem>>, %arg2: memref<64x32xf32, #tpu.memory_space<vmem>>, %arg3: memref<1x32xf32, #tpu.memory_space<vmem>>, %arg4: memref<32x16xf32, #tpu.memory_space<vmem>>, %arg5: memref<1x16xf32, #tpu.memory_space<vmem>>, %arg6: memref<16x2xf32, #tpu.memory_space<vmem>>, %arg7: memref<1x2xf32, #tpu.memory_space<vmem>>, %arg8: memref<2x2xf32, #tpu.memory_space<vmem>>) attributes {dimension_semantics = [#tpu.dimension_semantics<arbitrary>], iteration_bounds = array<i64: 1>, scalar_prefetch = 0 : i64, scratch_operands = 0 : i64, tpu.core_type = #tpu.core_type<tc>, window_params = [{pipeline_mode = #tpu.pipeline_mode<synchronous>, transform_indices = @transform_0, window_bounds = array<i64: 2, 9, 64>}, {pipeline_mode = #tpu.pipeline_mode<synchronous>, transform_indices = @transform_1, window_bounds = array<i64: 64, 32>}, {pipeline_mode = #tpu.pipeline_mode<synchronous>, transform_indices = @transform_2, window_bounds = array<i64: 1, 32>}, {pipeline_mode = #tpu.pipeline_mode<synchronous>, transform_indices = @transform_3, window_bounds = array<i64: 32, 16>}, {pipeline_mode = #tpu.pipeline_mode<synchronous>, transform_indices = @transform_4, window_bounds = array<i64: 1, 16>}, {pipeline_mode = #tpu.pipeline_mode<synchronous>, transform_indices = @transform_5, window_bounds = array<i64: 16, 2>}, {pipeline_mode = #tpu.pipeline_mode<synchronous>, transform_indices = @transform_6, window_bounds = array<i64: 1, 2>}, {pipeline_mode = #tpu.pipeline_mode<synchronous>, transform_indices = @transform_7, window_bounds = array<i64: 2, 2>}]} {
    %c0 = arith.constant 0 : index
    %c0_0 = arith.constant 0 : index
    %c0_1 = arith.constant 0 : index
    %0 = vector.load %arg1[%c0, %c0_0, %c0_1] : memref<2x9x64xf32, #tpu.memory_space<vmem>>, vector<2x9x64xf32>
    %1 = vector.extract_strided_slice %0 {offsets = [0, 0, 0], sizes = [2, 1, 64], strides = [1, 1, 1]} : vector<2x9x64xf32> to vector<2x1x64xf32>
    %2 = vector.shape_cast %1 : vector<2x1x64xf32> to vector<2x64xf32>
    %3 = vector.extract_strided_slice %0 {offsets = [0, 1, 0], sizes = [2, 1, 64], strides = [1, 1, 1]} : vector<2x9x64xf32> to vector<2x1x64xf32>
    %4 = vector.shape_cast %3 : vector<2x1x64xf32> to vector<2x64xf32>
    %5 = arith.addf %2, %4 : vector<2x64xf32>
    %6 = vector.extract_strided_slice %0 {offsets = [0, 2, 0], sizes = [2, 1, 64], strides = [1, 1, 1]} : vector<2x9x64xf32> to vector<2x1x64xf32>
    %7 = vector.shape_cast %6 : vector<2x1x64xf32> to vector<2x64xf32>
    %8 = arith.addf %5, %7 : vector<2x64xf32>
    %9 = vector.extract_strided_slice %0 {offsets = [0, 3, 0], sizes = [2, 1, 64], strides = [1, 1, 1]} : vector<2x9x64xf32> to vector<2x1x64xf32>
    %10 = vector.shape_cast %9 : vector<2x1x64xf32> to vector<2x64xf32>
    %11 = arith.addf %8, %10 : vector<2x64xf32>
    %12 = vector.extract_strided_slice %0 {offsets = [0, 4, 0], sizes = [2, 1, 64], strides = [1, 1, 1]} : vector<2x9x64xf32> to vector<2x1x64xf32>
    %13 = vector.shape_cast %12 : vector<2x1x64xf32> to vector<2x64xf32>
    %14 = arith.addf %11, %13 : vector<2x64xf32>
    %15 = vector.extract_strided_slice %0 {offsets = [0, 5, 0], sizes = [2, 1, 64], strides = [1, 1, 1]} : vector<2x9x64xf32> to vector<2x1x64xf32>
    %16 = vector.shape_cast %15 : vector<2x1x64xf32> to vector<2x64xf32>
    %17 = arith.addf %14, %16 : vector<2x64xf32>
    %18 = vector.extract_strided_slice %0 {offsets = [0, 6, 0], sizes = [2, 1, 64], strides = [1, 1, 1]} : vector<2x9x64xf32> to vector<2x1x64xf32>
    %19 = vector.shape_cast %18 : vector<2x1x64xf32> to vector<2x64xf32>
    %20 = arith.addf %17, %19 : vector<2x64xf32>
    %21 = vector.extract_strided_slice %0 {offsets = [0, 7, 0], sizes = [2, 1, 64], strides = [1, 1, 1]} : vector<2x9x64xf32> to vector<2x1x64xf32>
    %22 = vector.shape_cast %21 : vector<2x1x64xf32> to vector<2x64xf32>
    %23 = arith.addf %20, %22 : vector<2x64xf32>
    %24 = vector.extract_strided_slice %0 {offsets = [0, 8, 0], sizes = [2, 1, 64], strides = [1, 1, 1]} : vector<2x9x64xf32> to vector<2x1x64xf32>
    %25 = vector.shape_cast %24 : vector<2x1x64xf32> to vector<2x64xf32>
    %26 = arith.addf %23, %25 : vector<2x64xf32>
    %cst = arith.constant 0.111111112 : f32
    %27 = vector.broadcast %cst : f32 to vector<2x64xf32>
    %28 = arith.mulf %26, %27 : vector<2x64xf32>
    %c0_2 = arith.constant 0 : index
    %c0_3 = arith.constant 0 : index
    %29 = vector.load %arg2[%c0_2, %c0_3] : memref<64x32xf32, #tpu.memory_space<vmem>>, vector<64x32xf32>
    %cst_4 = arith.constant dense<0.000000e+00> : vector<2x32xf32>
    %30 = tpu.matmul %28, %29, %cst_4 {dimension_numbers = #tpu.dot_dimension_numbers<[1], [0], [0], [1], [0, 0, 1, 1], [], []>} : vector<2x64xf32>, vector<64x32xf32>, vector<2x32xf32> -> vector<2x32xf32>
    %c0_5 = arith.constant 0 : index
    %c0_6 = arith.constant 0 : index
    %31 = vector.load %arg3[%c0_5, %c0_6] : memref<1x32xf32, #tpu.memory_space<vmem>>, vector<1x32xf32>
    %32 = vector.broadcast %31 : vector<1x32xf32> to vector<2x32xf32>
    %33 = arith.addf %30, %32 : vector<2x32xf32>
    %cst_7 = arith.constant 0.000000e+00 : f32
    %34 = vector.broadcast %cst_7 : f32 to vector<2x32xf32>
    %35 = arith.maximumf %33, %34 : vector<2x32xf32>
    %c0_8 = arith.constant 0 : index
    %c0_9 = arith.constant 0 : index
    %36 = vector.load %arg4[%c0_8, %c0_9] : memref<32x16xf32, #tpu.memory_space<vmem>>, vector<32x16xf32>
    %cst_10 = arith.constant dense<0.000000e+00> : vector<2x16xf32>
    %37 = tpu.matmul %35, %36, %cst_10 {dimension_numbers = #tpu.dot_dimension_numbers<[1], [0], [0], [1], [0, 0, 1, 1], [], []>} : vector<2x32xf32>, vector<32x16xf32>, vector<2x16xf32> -> vector<2x16xf32>
    %c0_11 = arith.constant 0 : index
    %c0_12 = arith.constant 0 : index
    %38 = vector.load %arg5[%c0_11, %c0_12] : memref<1x16xf32, #tpu.memory_space<vmem>>, vector<1x16xf32>
    %39 = vector.broadcast %38 : vector<1x16xf32> to vector<2x16xf32>
    %40 = arith.addf %37, %39 : vector<2x16xf32>
    %cst_13 = arith.constant 0.000000e+00 : f32
    %41 = vector.broadcast %cst_13 : f32 to vector<2x16xf32>
    %42 = arith.maximumf %40, %41 : vector<2x16xf32>
    %c0_14 = arith.constant 0 : index
    %c0_15 = arith.constant 0 : index
    %43 = vector.load %arg6[%c0_14, %c0_15] : memref<16x2xf32, #tpu.memory_space<vmem>>, vector<16x2xf32>
    %cst_16 = arith.constant dense<0.000000e+00> : vector<2x2xf32>
    %44 = tpu.matmul %42, %43, %cst_16 {dimension_numbers = #tpu.dot_dimension_numbers<[1], [0], [0], [1], [0, 0, 1, 1], [], []>} : vector<2x16xf32>, vector<16x2xf32>, vector<2x2xf32> -> vector<2x2xf32>
    %c0_17 = arith.constant 0 : index
    %c0_18 = arith.constant 0 : index
    %45 = vector.load %arg7[%c0_17, %c0_18] : memref<1x2xf32, #tpu.memory_space<vmem>>, vector<1x2xf32>
    %46 = vector.broadcast %45 : vector<1x2xf32> to vector<2x2xf32>
    %47 = arith.addf %44, %46 : vector<2x2xf32>
    %48 = arith.negf %47 : vector<2x2xf32>
    %49 = math.exp %48 : vector<2x2xf32>
    %cst_19 = arith.constant 1.000000e+00 : f32
    %50 = vector.broadcast %cst_19 : f32 to vector<2x2xf32>
    %51 = arith.addf %50, %49 : vector<2x2xf32>
    %52 = arith.divf %50, %51 : vector<2x2xf32>
    %c0_20 = arith.constant 0 : index
    %c0_21 = arith.constant 0 : index
    %53 = vector.load %arg8[%c0_20, %c0_21] : memref<2x2xf32, #tpu.memory_space<vmem>>, vector<2x2xf32>
    tpu.vector_store %arg8[%c0_20, %c0_21], %52 {strides = array<i32>} : memref<2x2xf32, #tpu.memory_space<vmem>>, vector<2x2xf32>,
    return
  }
  func.func @transform_0(%arg0: i32) -> (i32, i32, i32) {
    %c0_i32 = arith.constant 0 : i32
    %c0_i32_0 = arith.constant 0 : i32
    %c0_i32_1 = arith.constant 0 : i32
    %c0_i32_2 = arith.constant 0 : i32
    return %c0_i32, %c0_i32_0, %c0_i32_1 : i32, i32, i32
  }
  func.func @transform_1(%arg0: i32) -> (i32, i32) {
    %c0_i32 = arith.constant 0 : i32
    %c0_i32_0 = arith.constant 0 : i32
    %c0_i32_1 = arith.constant 0 : i32
    return %c0_i32, %c0_i32_0 : i32, i32
  }
  func.func @transform_2(%arg0: i32) -> (i32, i32) {
    %c0_i32 = arith.constant 0 : i32
    %c0_i32_0 = arith.constant 0 : i32
    %c0_i32_1 = arith.constant 0 : i32
    return %c0_i32, %c0_i32_0 : i32, i32
  }
  func.func @transform_3(%arg0: i32) -> (i32, i32) {
    %c0_i32 = arith.constant 0 : i32
    %c0_i32_0 = arith.constant 0 : i32
    %c0_i32_1 = arith.constant 0 : i32
    return %c0_i32, %c0_i32_0 : i32, i32
  }
  func.func @transform_4(%arg0: i32) -> (i32, i32) {
    %c0_i32 = arith.constant 0 : i32
    %c0_i32_0 = arith.constant 0 : i32
    %c0_i32_1 = arith.constant 0 : i32
    return %c0_i32, %c0_i32_0 : i32, i32
  }
  func.func @transform_5(%arg0: i32) -> (i32, i32) {
    %c0_i32 = arith.constant 0 : i32
    %c0_i32_0 = arith.constant 0 : i32
    %c0_i32_1 = arith.constant 0 : i32
    return %c0_i32, %c0_i32_0 : i32, i32
  }
  func.func @transform_6(%arg0: i32) -> (i32, i32) {
    %c0_i32 = arith.constant 0 : i32
    %c0_i32_0 = arith.constant 0 : i32
    %c0_i32_1 = arith.constant 0 : i32
    return %c0_i32, %c0_i32_0 : i32, i32
  }
  func.func @transform_7(%arg0: i32) -> (i32, i32) {
    %c0_i32 = arith.constant 0 : i32
    %c0_i32_0 = arith.constant 0 : i32
    %c0_i32_1 = arith.constant 0 : i32
    return %c0_i32, %c0_i32_0 : i32, i32
  }
}

</mosaic_0001>

<bundles_post_ra>
// kernel: main_model_forward.9
= control target key start
LH: loop header
LB: loop body
LE: loop exit
PB: predicated region body
PF: predicated region fallthrough
CT: control target
= control target key end

     0   :  { %s3108_s12 = smov 0   ;;  %s3647_s0 = inlined_call_operand.vmem [shape: f32[2,18,10,8], index: 0, kind: input, shape index: {}]   ;;  %s3648_s1 = inlined_call_operand.vmem [shape: f32[9,8,8], index: 1, kind: input, shape index: {}]   ;;  %s3649_s2 = inlined_call_operand.vmem [shape: f32[1,8], index: 2, kind: input, shape index: {}]   ;;  %s3650_s3 = inlined_call_operand.vmem [shape: f32[2,128,8], index: 3, kind: output, shape index: {}]  }
   0x1 LB: > { %s2294_s13 = sadd.s32 4294967295, %s3086_s12   ;;  %p2298_p0 = scmp.ge.s32.totalorder %s3086_s12, 1  ;;  %s3086_s12 = sphi %s3108_s12, %s13_s12  }
   0x2   : > { %p137_p1 = scmp.lt.s32.totalorder %s3086_s12, 3 }
   0x4   : > { %p138_p2 = pnand %p2298_p0, %p137_p1 }
   0x5   : > { %v2302_v0 = vld [vmem:[%s3648_s1 + $0x8] sm:$0xff] (!%p138_p2)  ;;  %v3122_v1 = vld [vmem:[%s3648_s1 + $0x20] sm:$0xff] (!%p138_p2)  ;;  %p161_p3 = scmp.lt.s32.totalorder (!%p138_p2), %s2294_s13, 1  ;;  %vm206_vm0 = vcmask (!%p138_p2), 64512   ;;  %v2467_v8 = vld [vmem:[%s3648_s1 + $0x30] sm:$0xff] (!%p138_p2) }
   0x6   : > { %141 = sbr.rel (%p138_p2) target bundleno = 379 (0x17b), region = 32  ;;  %v187_v2 = vld [vmem:[%s3648_s1] sm:$0xff] (!%p138_p2)  ;;  %2707 = vmatprep.subr.mxu1 (!%p138_p2), %v2302_v0  ;;  %2811 = vmatprep.subr.mxu0 (!%p138_p2), %v3122_v1  ;;  %v2434_v3 = vld [vmem:[%s3648_s1 + $0x28] sm:$0xff] (!%p138_p2)  ;;  %v3159_v9 = vld [vmem:[%s3648_s1 + $0x10] sm:$0xff] (!%p138_p2) }
   0x7   : > { %2708 = vmatpush3.msra.mxu1 (!%p138_p2), %v2302_v0  ;;  %2812 = vmatpush3.msra.mxu0 (!%p138_p2), %v3122_v1  ;;  %v3223_v20 = vld [vmem:[%s3648_s1 + $0x38] sm:$0xff] (!%p138_p2)  ;;  %v2533_v51 = vld [vmem:[%s3648_s1 + $0x40] sm:$0xff] (!%p138_p2) }
   0x8   : > { %2733 = vmatprep.subr.mxu1 (!%p138_p2), %v187_v2  ;;  %2837 = vmatprep.subr.mxu0 (!%p138_p2), %v2434_v3  ;;  %v2368_v37 = vld [vmem:[%s3648_s1 + $0x18] sm:$0xff] (!%p138_p2) }
   0xd   : > { %s3652_s13 = smov (!%p161_p3, %s2294_s13), 1 }
   0xe   : > { %s3071_s22 = smul.u32 288, %s3652_s13  ;;  %s2553_s11 = sshll.u32 %s3652_s13, 7 }
   0xf   : > { %s3595_s16 = scalar_lea.vmem %s3650_s3, %s2553_s11 }
  0x10   : > { %s3138_s25 = scalar_lea.vmem %s3647_s0, %s3071_s22 }
  0x11   : > { %v188_v4 = vld [vmem:[%s3138_s25 + $0x1] sm:$0xff]  ;;  %v2385_v5 = vld [vmem:[%s3138_s25 + $0x11] sm:$0xff] }
  0x12   : > { %v3143_v6 = vld [vmem:[%s3138_s25 + $0x21] sm:$0xff]  ;;  %2709 = vmatprep.mubr.msk.f32.mxu1 %vm206_vm0, %v188_v4  ;;  %2813 = vmatprep.mubr.msk.f32.mxu0 %vm206_vm0, %v2385_v5  ;;  %v3148_v7 = vld [vmem:[%s3138_s25 + $0x31] sm:$0xff] }
  0x13   : > { %2710 = vmatmul.mubr.msk.f32.vlgmr.msra.gmra.mrb[0].mxu1 %vm206_vm0, %v2385_v5  ;;  %2814 = vmatmul.mubr.msk.f32.vlgmr.msra.gmra.mrb[0].mxu0 %vm206_vm0, %v3143_v6  ;;  %v3162_v10 = vld [vmem:[%s3138_s25 + $0x41] sm:$0xff]  ;;  %v3169_v11 = vld [vmem:[%s3138_s25 + $0x51] sm:$0xff] }
  0x14   : > { %2734 = vmatpush3.msra.mxu1 %v187_v2  ;;  %2838 = vmatpush3.msra.mxu0 %v2434_v3  ;;  %v3181_v12 = vld [vmem:[%s3138_s25 + $0x61] sm:$0xff]  ;;  %v3184_v13 = vld [vmem:[%s3138_s25 + $0x71] sm:$0xff] }
  0x15   : > { %2712 = vmatprep.mubr.msk.f32.mxu1 %vm206_vm0, %v3143_v6  ;;  %2816 = vmatprep.mubr.msk.f32.mxu0 %vm206_vm0, %v3148_v7  ;;  %v3195_v14 = vld [vmem:[%s3138_s25 + $0x81] sm:$0xff]  ;;  %v3198_v15 = vld [vmem:[%s3138_s25 + $0x12] sm:$0xff] }
  0x16   : > { %2863 = vmatprep.subr.mxu0 %v2467_v8  ;;  %2759 = vmatprep.subr.mxu1 %v3159_v9  ;;  %v3209_v16 = vld [vmem:[%s3138_s25 + $0x91] sm:$0xff]  ;;  %v3212_v17 = vld [vmem:[%s3138_s25 + $0x22] sm:$0xff] }
  0x17   : > { %2713 = vmatmul.mubr.msk.f32.gmra.mrb[2].mxu1 %vm206_vm0, %v3148_v7  ;;  %2817 = vmatmul.mubr.msk.f32.gmra.mrb[2].mxu0 %vm206_vm0, %v3162_v10  ;;  %v3215_v18 = vld [vmem:[%s3138_s25 + $0xa1] sm:$0xff]  ;;  %v3218_v19 = vld [vmem:[%s3138_s25 + $0x32] sm:$0xff] }
  0x18   : > { %2715 = vmatprep.mubr.msk.f32.mxu1 %vm206_vm0, %v3162_v10  ;;  %2819 = vmatprep.mubr.msk.f32.mxu0 %vm206_vm0, %v3169_v11  ;;  %v3232_v21 = vld [vmem:[%s3138_s25 + $0xb1] sm:$0xff]  ;;  %v3235_v22 = vld [vmem:[%s3138_s25 + $0x42] sm:$0xff] }
  0x19   : > { %v3240_v23 = vld [vmem:[%s3138_s25 + $0xc1] sm:$0xff]  ;;  %v3243_v24 = vld [vmem:[%s3138_s25 + $0x52] sm:$0xff] }
  0x1a   : > { %v3255_v25 = vld [vmem:[%s3138_s25 + $0xd1] sm:$0xff]  ;;  %v3258_v26 = vld [vmem:[%s3138_s25 + $0x62] sm:$0xff] }
  0x1b   : > { %2716 = vmatmul.mubr.msk.f32.gmra.mrb[4].mxu1 %vm206_vm0, %v3169_v11  ;;  %2820 = vmatmul.mubr.msk.f32.gmra.mrb[4].mxu0 %vm206_vm0, %v3181_v12  ;;  %v3261_v27 = vld [vmem:[%s3138_s25 + $0xe1] sm:$0xff]  ;;  %v3264_v28 = vld [vmem:[%s3138_s25 + $0x72] sm:$0xff] }
  0x1c   : > { %2718 = vmatprep.mubr.msk.f32.mxu1 %vm206_vm0, %v3181_v12  ;;  %2822 = vmatprep.mubr.msk.f32.mxu0 %vm206_vm0, %v3184_v13  ;;  %v3275_v29 = vld [vmem:[%s3138_s25 + $0xf1] sm:$0xff]  ;;  %v3278_v30 = vld [vmem:[%s3138_s25 + $0x82] sm:$0xff] }
  0x1d   : > { %v171_v31 = vld [vmem:[%s3138_s25] sm:$0xff]  ;;  %v3282_v32 = vld [vmem:[%s3138_s25 + $0x92] sm:$0xff] }
  0x1e   : > { %v3292_v33 = vld [vmem:[%s3138_s25 + $0x10] sm:$0xff]  ;;  %v3295_v34 = vld [vmem:[%s3138_s25 + $0xa2] sm:$0xff] }
  0x1f   : > { %2719 = vmatmul.mubr.msk.f32.gmra.mrb[6].mxu1 %vm206_vm0, %v3184_v13  ;;  %2823 = vmatmul.mubr.msk.f32.gmra.mrb[6].mxu0 %vm206_vm0, %v3195_v14  ;;  %v3298_v35 = vld [vmem:[%s3138_s25 + $0x20] sm:$0xff]  ;;  %v3301_v36 = vld [vmem:[%s3138_s25 + $0xb2] sm:$0xff] }
  0x20   : > { %2721 = vmatprep.mubr.msk.f32.mxu1 %vm206_vm0, %v3195_v14  ;;  %2839 = vmatprep.mubr.msk.f32.mxu0 %vm206_vm0, %v3198_v15  ;;  %v3314_v38 = vld [vmem:[%s3138_s25 + $0x30] sm:$0xff]  ;;  %v3317_v39 = vld [vmem:[%s3138_s25 + $0xc2] sm:$0xff] }
  0x21   : > { %v3322_v40 = vld [vmem:[%s3138_s25 + $0x40] sm:$0xff]  ;;  %v3325_v41 = vld [vmem:[%s3138_s25 + $0xd2] sm:$0xff] }
  0x22   : > { %v3336_v42 = vld [vmem:[%s3138_s25 + $0x50] sm:$0xff]  ;;  %v3339_v43 = vld [vmem:[%s3138_s25 + $0xe2] sm:$0xff] }
  0x23   : > { %2722 = vmatmul.mubr.msk.f32.gmra.mrb[8].mxu1 %vm206_vm0, %v3209_v16  ;;  %2840 = vmatmul.mubr.msk.f32.vlgmr.msra.gmra.mrb[0].mxu0 %vm206_vm0, %v3212_v17  ;;  %v3342_v44 = vld [vmem:[%s3138_s25 + $0x60] sm:$0xff]  ;;  %v3345_v45 = vld [vmem:[%s3138_s25 + $0xf2] sm:$0xff] }
  0x24   : > { %2864 = vmatpush3.msra.mxu0 %v2467_v8  ;;  %2724 = vmatprep.mubr.msk.f32.mxu1 %vm206_vm0, %v3215_v18  ;;  %v3356_v46 = vld [vmem:[%s3138_s25 + $0x70] sm:$0xff]  ;;  %v3359_v47 = vld [vmem:[%s3138_s25 + $0x102] sm:$0xff]  ;;  %v3588_v8 = vld [vmem:[%s3649_s2] ss:$0 sm:$0xff] }
  0x25   : > { %2842 = vmatprep.mubr.msk.f32.mxu0 %vm206_vm0, %v3218_v19  ;;  %2889 = vmatprep.subr.mxu0 %v3223_v20  ;;  %v3362_v48 = vld [vmem:[%s3138_s25 + $0x80] sm:$0xff]  ;;  %v3373_v49 = vld [vmem:[%s3138_s25 + $0x90] sm:$0xff] }
  0x26   : > { %v3376_v50 = vld [vmem:[%s3138_s25 + $0xa0] sm:$0xff]  ;;  %v3389_v52 = vld [vmem:[%s3138_s25 + $0xb0] sm:$0xff] }
  0x27   : > { %2725 = vmatmul.mubr.msk.f32.gmra.mrb[10].mxu1 %vm206_vm0, %v3232_v21  ;;  %2843 = vmatmul.mubr.msk.f32.gmra.mrb[2].mxu0 %vm206_vm0, %v3235_v22  ;;  %v3394_v53 = vld [vmem:[%s3138_s25 + $0xc0] sm:$0xff]  ;;  %v3405_v54 = vld [vmem:[%s3138_s25 + $0xd0] sm:$0xff] }
  0x28   : > { %2727 = vmatprep.mubr.msk.f32.mxu1 %vm206_vm0, %v3240_v23  ;;  %2845 = vmatprep.mubr.msk.f32.mxu0 %vm206_vm0, %v3243_v24  ;;  %v3408_v55 = vld [vmem:[%s3138_s25 + $0xe0] sm:$0xff]  ;;  %v3419_v56 = vld [vmem:[%s3138_s25 + $0xf0] sm:$0xff] }
  0x29   : > { %v593_v57 = vld [vmem:[%s3138_s25 + $0x2] sm:$0xff]  ;;  %v2466_v59 = vld [vmem:[%s3138_s25 + $0x110] sm:$0xff] }
  0x2a   : > { %v2465_v58 = vld [vmem:[%s3138_s25 + $0x100] sm:$0xff]  ;;  %v2499_v61 = vld [vmem:[%s3138_s25 + $0x111] sm:$0xff] }
  0x2b   : > { %2728 = vmatmul.mubr.msk.f32.gmra.mrb[12].mxu1 %vm206_vm0, %v3255_v25  ;;  %2846 = vmatmul.mubr.msk.f32.gmra.mrb[4].mxu0 %vm206_vm0, %v3258_v26  ;;  %v2498_v60 = vld [vmem:[%s3138_s25 + $0x101] sm:$0xff]  ;;  %v2532_v62 = vld [vmem:[%s3138_s25 + $0x112] sm:$0xff] }
  0x2c   : > { %2730 = vmatprep.mubr.msk.f32.mxu1 %vm206_vm0, %v3261_v27  ;;  %2848 = vmatprep.mubr.msk.f32.mxu0 %vm206_vm0, %v3264_v28 }
  0x2f   : > { %2731 = vmatmul.mubr.msk.f32.gmra.mrb[14].mxu1 %vm206_vm0, %v3275_v29  ;;  %2849 = vmatmul.mubr.msk.f32.gmra.mrb[6].mxu0 %vm206_vm0, %v3278_v30 }
  0x30   : > { %2735 = vmatprep.mubr.msk.f32.mxu1 %vm206_vm0, %v171_v31  ;;  %2851 = vmatprep.mubr.msk.f32.mxu0 %vm206_vm0, %v3282_v32 }
  0x33   : > { %2736 = vmatmul.mubr.msk.f32.vlgmr.msra.gmra.mrb[0].mxu1 %vm206_vm0, %v3292_v33  ;;  %2852 = vmatmul.mubr.msk.f32.gmra.mrb[8].mxu0 %vm206_vm0, %v3295_v34 }
  0x34   : > { %2760 = vmatpush3.msra.mxu1 %v3159_v9  ;;  %2738 = vmatprep.mubr.msk.f32.mxu1 %vm206_vm0, %v3298_v35 }
  0x35   : > { %2854 = vmatprep.mubr.msk.f32.mxu0 %vm206_vm0, %v3301_v36  ;;  %2785 = vmatprep.subr.mxu1 %v2368_v37 }
  0x37   : > { %2739 = vmatmul.mubr.msk.f32.gmra.mrb[2].mxu1 %vm206_vm0, %v3314_v38  ;;  %2855 = vmatmul.mubr.msk.f32.gmra.mrb[10].mxu0 %vm206_vm0, %v3317_v39 }
  0x38   : > { %2741 = vmatprep.mubr.msk.f32.mxu1 %vm206_vm0, %v3322_v40  ;;  %2857 = vmatprep.mubr.msk.f32.mxu0 %vm206_vm0, %v3325_v41 }
  0x3b   : > { %2742 = vmatmul.mubr.msk.f32.gmra.mrb[4].mxu1 %vm206_vm0, %v3336_v42  ;;  %2858 = vmatmul.mubr.msk.f32.gmra.mrb[12].mxu0 %vm206_vm0, %v3339_v43 }
  0x3c   : > { %2744 = vmatprep.mubr.msk.f32.mxu1 %vm206_vm0, %v3342_v44  ;;  %2860 = vmatprep.mubr.msk.f32.mxu0 %vm206_vm0, %v3345_v45 }
  0x3f   : > { %2745 = vmatmul.mubr.msk.f32.gmra.mrb[6].mxu1 %vm206_vm0, %v3356_v46  ;;  %2861 = vmatmul.mubr.msk.f32.gmra.mrb[14].mxu0 %vm206_vm0, %v3359_v47 }
  0x40   : > { %2747 = vmatprep.mubr.msk.f32.mxu1 %vm206_vm0, %v3362_v48  ;;  %2865 = vmatprep.mubr.msk.f32.mxu0 %vm206_vm0, %v3298_v35 }
  0x43   : > { %2748 = vmatmul.mubr.msk.f32.gmra.mrb[8].mxu1 %vm206_vm0, %v3373_v49  ;;  %2866 = vmatmul.mubr.msk.f32.vlgmr.msra.gmra.mrb[0].mxu0 %vm206_vm0, %v3314_v38 }
  0x44   : > { %2890 = vmatpush3.msra.mxu0 %v3223_v20  ;;  %2750 = vmatprep.mubr.msk.f32.mxu1 %vm206_vm0, %v3376_v50 }
  0x45   : > { %2868 = vmatprep.mubr.msk.f32.mxu0 %vm206_vm0, %v3322_v40  ;;  %2915 = vmatprep.subr.mxu0 %v2533_v51 }
  0x47   : > { %2751 = vmatmul.mubr.msk.f32.gmra.mrb[10].mxu1 %vm206_vm0, %v3389_v52  ;;  %2869 = vmatmul.mubr.msk.f32.gmra.mrb[2].mxu0 %vm206_vm0, %v3336_v42 }
  0x48   : > { %2753 = vmatprep.mubr.msk.f32.mxu1 %vm206_vm0, %v3394_v53  ;;  %2871 = vmatprep.mubr.msk.f32.mxu0 %vm206_vm0, %v3342_v44 }
  0x4b   : > { %2754 = vmatmul.mubr.msk.f32.gmra.mrb[12].mxu1 %vm206_vm0, %v3405_v54  ;;  %2872 = vmatmul.mubr.msk.f32.gmra.mrb[4].mxu0 %vm206_vm0, %v3356_v46 }
  0x4c   : > { %2756 = vmatprep.mubr.msk.f32.mxu1 %vm206_vm0, %v3408_v55  ;;  %2874 = vmatprep.mubr.msk.f32.mxu0 %vm206_vm0, %v3362_v48 }
  0x4f   : > { %2757 = vmatmul.mubr.msk.f32.gmra.mrb[14].mxu1 %vm206_vm0, %v3419_v56  ;;  %2875 = vmatmul.mubr.msk.f32.gmra.mrb[6].mxu0 %vm206_vm0, %v3373_v49 }
  0x50   : > { %2761 = vmatprep.mubr.msk.f32.mxu1 %vm206_vm0, %v593_v57  ;;  %2877 = vmatprep.mubr.msk.f32.mxu0 %vm206_vm0, %v3376_v50 }
  0x53   : > { %2762 = vmatmul.mubr.msk.f32.vlgmr.msra.gmra.mrb[0].mxu1 %vm206_vm0, %v3198_v15  ;;  %2878 = vmatmul.mubr.msk.f32.gmra.mrb[8].mxu0 %vm206_vm0, %v3389_v52 }
  0x54   : > { %2786 = vmatpush3.msra.mxu1 %v2368_v37  ;;  %2764 = vmatprep.mubr.msk.f32.mxu1 %vm206_vm0, %v3212_v17 }
  0x55   : > { %2880 = vmatprep.mubr.msk.f32.mxu0 %vm206_vm0, %v3394_v53  ;;  %2941 = vmatprep.subr.mxu1 %v3122_v1 }
  0x57   : > { %2765 = vmatmul.mubr.msk.f32.gmra.mrb[2].mxu1 %vm206_vm0, %v3218_v19  ;;  %2881 = vmatmul.mubr.msk.f32.gmra.mrb[10].mxu0 %vm206_vm0, %v3405_v54 }
  0x58   : > { %2767 = vmatprep.mubr.msk.f32.mxu1 %vm206_vm0, %v3235_v22  ;;  %2883 = vmatprep.mubr.msk.f32.mxu0 %vm206_vm0, %v3408_v55 }
  0x5b   : > { %2768 = vmatmul.mubr.msk.f32.gmra.mrb[4].mxu1 %vm206_vm0, %v3243_v24  ;;  %2884 = vmatmul.mubr.msk.f32.gmra.mrb[12].mxu0 %vm206_vm0, %v3419_v56 }
  0x5c   : > { %2770 = vmatprep.mubr.msk.f32.mxu1 %vm206_vm0, %v3258_v26  ;;  %2886 = vmatprep.mubr.msk.f32.mxu0 %vm206_vm0, %v2465_v58 }
  0x5f   : > { %2771 = vmatmul.mubr.msk.f32.gmra.mrb[6].mxu1 %vm206_vm0, %v3264_v28  ;;  %2887 = vmatmul.mubr.msk.f32.gmra.mrb[14].mxu0 %vm206_vm0, %v2466_v59 }
  0x60   : > { %2773 = vmatprep.mubr.msk.f32.mxu1 %vm206_vm0, %v3278_v30  ;;  %2891 = vmatprep.mubr.msk.f32.mxu0 %vm206_vm0, %v3143_v6 }
  0x63   : > { %2774 = vmatmul.mubr.msk.f32.gmra.mrb[8].mxu1 %vm206_vm0, %v3282_v32  ;;  %2892 = vmatmul.mubr.msk.f32.vlgmr.msra.gmra.mrb[0].mxu0 %vm206_vm0, %v3148_v7 }
  0x64   : > { %2916 = vmatpush3.msra.mxu0 %v2533_v51  ;;  %2776 = vmatprep.mubr.msk.f32.mxu1 %vm206_vm0, %v3295_v34 }
  0x65   : > { %2894 = vmatprep.mubr.msk.f32.mxu0 %vm206_vm0, %v3162_v10 }
  0x67   : > { %2777 = vmatmul.mubr.msk.f32.gmra.mrb[10].mxu1 %vm206_vm0, %v3301_v36  ;;  %2895 = vmatmul.mubr.msk.f32.gmra.mrb[2].mxu0 %vm206_vm0, %v3169_v11 }
  0x68   : > { %2779 = vmatprep.mubr.msk.f32.mxu1 %vm206_vm0, %v3317_v39  ;;  %2897 = vmatprep.mubr.msk.f32.mxu0 %vm206_vm0, %v3181_v12 }
  0x6b   : > { %2780 = vmatmul.mubr.msk.f32.gmra.mrb[12].mxu1 %vm206_vm0, %v3325_v41  ;;  %2898 = vmatmul.mubr.msk.f32.gmra.mrb[4].mxu0 %vm206_vm0, %v3184_v13 }
  0x6c   : > { %2782 = vmatprep.mubr.msk.f32.mxu1 %vm206_vm0, %v3339_v43  ;;  %2900 = vmatprep.mubr.msk.f32.mxu0 %vm206_vm0, %v3195_v14 }
  0x6f   : > { %2783 = vmatmul.mubr.msk.f32.gmra.mrb[14].mxu1 %vm206_vm0, %v3345_v45  ;;  %2901 = vmatmul.mubr.msk.f32.gmra.mrb[6].mxu0 %vm206_vm0, %v3209_v16 }
  0x70   : > { %2787 = vmatprep.mubr.msk.f32.mxu1 %vm206_vm0, %v3292_v33  ;;  %2903 = vmatprep.mubr.msk.f32.mxu0 %vm206_vm0, %v3215_v18 }
  0x73   : > { %2788 = vmatmul.mubr.msk.f32.vlgmr.msra.gmra.mrb[0].mxu1 %vm206_vm0, %v3298_v35  ;;  %2904 = vmatmul.mubr.msk.f32.gmra.mrb[8].mxu0 %vm206_vm0, %v3232_v21 }
  0x74   : > { %2942 = vmatpush3.msra.mxu1 %v3122_v1  ;;  %2790 = vmatprep.mubr.msk.f32.mxu1 %vm206_vm0, %v3314_v38 }
  0x75   : > { %2906 = vmatprep.mubr.msk.f32.mxu0 %vm206_vm0, %v3240_v23 }
  0x77   : > { %2791 = vmatmul.mubr.msk.f32.gmra.mrb[2].mxu1 %vm206_vm0, %v3322_v40  ;;  %2907 = vmatmul.mubr.msk.f32.gmra.mrb[10].mxu0 %vm206_vm0, %v3255_v25 }
  0x78   : > { %2793 = vmatprep.mubr.msk.f32.mxu1 %vm206_vm0, %v3336_v42  ;;  %2909 = vmatprep.mubr.msk.f32.mxu0 %vm206_vm0, %v3261_v27 }
  0x7b   : > { %2794 = vmatmul.mubr.msk.f32.gmra.mrb[4].mxu1 %vm206_vm0, %v3342_v44  ;;  %2910 = vmatmul.mubr.msk.f32.gmra.mrb[12].mxu0 %vm206_vm0, %v3275_v29 }
  0x7c   : > { %2796 = vmatprep.mubr.msk.f32.mxu1 %vm206_vm0, %v3356_v46  ;;  %2912 = vmatprep.mubr.msk.f32.mxu0 %vm206_vm0, %v2498_v60 }
  0x7f   : > { %2797 = vmatmul.mubr.msk.f32.gmra.mrb[6].mxu1 %vm206_vm0, %v3362_v48  ;;  %2913 = vmatmul.mubr.msk.f32.gmra.mrb[14].mxu0 %vm206_vm0, %v2499_v61 }
  0x80   : > { %2799 = vmatprep.mubr.msk.f32.mxu1 %vm206_vm0, %v3373_v49  ;;  %2917 = vmatprep.mubr.msk.f32.mxu0 %vm206_vm0, %v3212_v17 }
  0x83   : > { %2800 = vmatmul.mubr.msk.f32.gmra.mrb[8].mxu1 %vm206_vm0, %v3376_v50  ;;  %2918 = vmatmul.mubr.msk.f32.vlgmr.msra.gmra.mrb[0].mxu0 %vm206_vm0, %v3218_v19 }
  0x84   : > { %2802 = vmatprep.mubr.msk.f32.mxu1 %vm206_vm0, %v3389_v52  ;;  %2920 = vmatprep.mubr.msk.f32.mxu0 %vm206_vm0, %v3235_v22 }
  0x87   : > { %2803 = vmatmul.mubr.msk.f32.gmra.mrb[10].mxu1 %vm206_vm0, %v3394_v53  ;;  %2921 = vmatmul.mubr.msk.f32.gmra.mrb[2].mxu0 %vm206_vm0, %v3243_v24 }
  0x88   : > { %2805 = vmatprep.mubr.msk.f32.mxu1 %vm206_vm0, %v3405_v54  ;;  %2923 = vmatprep.mubr.msk.f32.mxu0 %vm206_vm0, %v3258_v26 }
  0x8b   : > { %2806 = vmatmul.mubr.msk.f32.gmra.mrb[12].mxu1 %vm206_vm0, %v3408_v55  ;;  %2924 = vmatmul.mubr.msk.f32.gmra.mrb[4].mxu0 %vm206_vm0, %v3264_v28 }
  0x8c   : > { %2808 = vmatprep.mubr.msk.f32.mxu1 %vm206_vm0, %v3419_v56  ;;  %2926 = vmatprep.mubr.msk.f32.mxu0 %vm206_vm0, %v3278_v30 }
  0x8f   : > { %2809 = vmatmul.mubr.msk.f32.gmra.mrb[14].mxu1 %vm206_vm0, %v2465_v58  ;;  %2927 = vmatmul.mubr.msk.f32.gmra.mrb[6].mxu0 %vm206_vm0, %v3282_v32 }
  0x90   : > { %2825 = vmatprep.mubr.msk.f32.mxu1 %vm206_vm0, %v3209_v16  ;;  %2929 = vmatprep.mubr.msk.f32.mxu0 %vm206_vm0, %v3295_v34 }
  0x93   : > { %2826 = vmatmul.mubr.msk.f32.vlgmr.msra.gmra.mrb[8].mxu1 %vm206_vm0, %v3215_v18  ;;  %2930 = vmatmul.mubr.msk.f32.gmra.mrb[8].mxu0 %vm206_vm0, %v3301_v36 }
  0x94   : > { %2828 = vmatprep.mubr.msk.f32.mxu1 %vm206_vm0, %v3232_v21  ;;  %2932 = vmatprep.mubr.msk.f32.mxu0 %vm206_vm0, %v3317_v39 }
  0x97   : > { %2829 = vmatmul.mubr.msk.f32.gmra.mrb[10].mxu1 %vm206_vm0, %v3240_v23  ;;  %2933 = vmatmul.mubr.msk.f32.gmra.mrb[10].mxu0 %vm206_vm0, %v3325_v41 }
  0x98   : > { %2831 = vmatprep.mubr.msk.f32.mxu1 %vm206_vm0, %v3255_v25  ;;  %2935 = vmatprep.mubr.msk.f32.mxu0 %vm206_vm0, %v3339_v43 }
  0x9b   : > { %2832 = vmatmul.mubr.msk.f32.gmra.mrb[12].mxu1 %vm206_vm0, %v3261_v27  ;;  %2936 = vmatmul.mubr.msk.f32.gmra.mrb[12].mxu0 %vm206_vm0, %v3345_v45 }
  0x9c   : > { %2834 = vmatprep.mubr.msk.f32.mxu1 %vm206_vm0, %v3275_v29  ;;  %2938 = vmatprep.mubr.msk.f32.mxu0 %vm206_vm0, %v3359_v47 }
  0x9f   : > { %2835 = vmatmul.mubr.msk.f32.gmra.mrb[14].mxu1 %vm206_vm0, %v2498_v60  ;;  %2939 = vmatmul.mubr.msk.f32.gmra.mrb[14].mxu0 %vm206_vm0, %v2532_v62 }
 0x146   : > { %v2789_v63 = vpop.f32.mrb[0].mxu1 }
 0x147   : > { %v953_v0 = vpop.f32.mrb[1].mxu1 }
 0x14a   : > { %v2792_v1 = vpop.f32.mrb[2].mxu1 }
 0x14b   : > { %v963_v2 = vpop.f32.mrb[3].mxu1 }
 0x14e   : > { %v2795_v3 = vpop.f32.mrb[4].mxu1 }
 0x14f   : > { %v973_v4 = vpop.f32.mrb[5].mxu1 }
 0x152   : > { %v2798_v5 = vpop.f32.mrb[6].mxu1 }
 0x153   : > { %v983_v6 = vpop.f32.mrb[7].mxu1 }
 0x156   : > { %v2919_v7 = vpop.f32.mrb[0].mxu0 }
 0x157   : > { %v2943_v9 = vadd.f32 %v2919_v7, %v2789_v63  ;;  %v2089_v10 = vpop.f32.mrb[1].mxu0 }
 0x158   : > { %v2944_v11 = vadd.f32 %v2089_v10, %v953_v0 }
 0x159   : > { %v2192_v12 = vadd.f32 %v2943_v9, %v3588_v8 }
 0x15a   : > { %v2191_v13 = vadd.f32 %v2944_v11, %v3588_v8  ;;  %v2922_v14 = vpop.f32.mrb[2].mxu0 }
 0x15b   : > { %v2208_v15 = vmax.f32 %v2192_v12, 0.0  ;;  %v2945_v16 = vadd.f32 %v2922_v14, %v2792_v1  ;;  %v2099_v17 = vpop.f32.mrb[3].mxu0 }
 0x15c   : > { %v2207_v18 = vmax.f32 %v2191_v13, 0.0  ;;  %v2946_v19 = vadd.f32 %v2099_v17, %v963_v2 }
 0x15d   : > { %2224 = vst.msk [vmem:[%s3595_s16 + $0x8] sm:$0xff] %vm206_vm0, %v2208_v15  ;;  %v2194_v20 = vadd.f32 %v2945_v16, %v3588_v8 }
 0x15e   : > { %2223 = vst.msk [vmem:[%s3595_s16] sm:$0xff] %vm206_vm0, %v2207_v18  ;;  %v2193_v21 = vadd.f32 %v2946_v19, %v3588_v8  ;;  %v2925_v22 = vpop.f32.mrb[4].mxu0 }
 0x15f   : > { %v2210_v23 = vmax.f32 %v2194_v20, 0.0  ;;  %v2947_v24 = vadd.f32 %v2925_v22, %v2795_v3  ;;  %v2109_v25 = vpop.f32.mrb[5].mxu0 }
 0x160   : > { %v2209_v26 = vmax.f32 %v2193_v21, 0.0  ;;  %v2948_v27 = vadd.f32 %v2109_v25, %v973_v4 }
 0x161   : > { %2226 = vst.msk [vmem:[%s3595_s16 + $0x18] sm:$0xff] %vm206_vm0, %v2210_v23  ;;  %v2196_v28 = vadd.f32 %v2947_v24, %v3588_v8 }
 0x162   : > { %2225 = vst.msk [vmem:[%s3595_s16 + $0x10] sm:$0xff] %vm206_vm0, %v2209_v26  ;;  %v2195_v29 = vadd.f32 %v2948_v27, %v3588_v8  ;;  %v2928_v30 = vpop.f32.mrb[6].mxu0 }
 0x163   : > { %v2212_v31 = vmax.f32 %v2196_v28, 0.0  ;;  %v2949_v32 = vadd.f32 %v2928_v30, %v2798_v5  ;;  %v2119_v33 = vpop.f32.mrb[7].mxu0 }
 0x164   : > { %v2211_v34 = vmax.f32 %v2195_v29, 0.0  ;;  %v2950_v35 = vadd.f32 %v2119_v33, %v983_v6 }
 0x165   : > { %2228 = vst.msk [vmem:[%s3595_s16 + $0x28] sm:$0xff] %vm206_vm0, %v2212_v31  ;;  %v2198_v36 = vadd.f32 %v2949_v32, %v3588_v8 }
 0x166   : > { %2227 = vst.msk [vmem:[%s3595_s16 + $0x20] sm:$0xff] %vm206_vm0, %v2211_v34  ;;  %v2197_v37 = vadd.f32 %v2950_v35, %v3588_v8  ;;  %v2827_v38 = vpop.f32.mrb[8].mxu1  ;;  %v2931_v39 = vpop.f32.mrb[8].mxu0 }
 0x167   : > { %v2214_v40 = vmax.f32 %v2198_v36, 0.0  ;;  %v2951_v41 = vadd.f32 %v2931_v39, %v2827_v38  ;;  %v1220_v42 = vpop.f32.mrb[9].mxu1  ;;  %v2129_v43 = vpop.f32.mrb[9].mxu0 }
 0x168   : > { %v2213_v44 = vmax.f32 %v2197_v37, 0.0  ;;  %v2952_v45 = vadd.f32 %v2129_v43, %v1220_v42 }
 0x169   : > { %2230 = vst.msk [vmem:[%s3595_s16 + $0x38] sm:$0xff] %vm206_vm0, %v2214_v40  ;;  %v2200_v46 = vadd.f32 %v2951_v41, %v3588_v8 }
 0x16a   : > { %2229 = vst.msk [vmem:[%s3595_s16 + $0x30] sm:$0xff] %vm206_vm0, %v2213_v44  ;;  %v2199_v47 = vadd.f32 %v2952_v45, %v3588_v8  ;;  %v2830_v48 = vpop.f32.mrb[10].mxu1  ;;  %v2934_v49 = vpop.f32.mrb[10].mxu0 }
 0x16b   : > { %v2216_v50 = vmax.f32 %v2200_v46, 0.0  ;;  %v2953_v51 = vadd.f32 %v2934_v49, %v2830_v48  ;;  %v1230_v52 = vpop.f32.mrb[11].mxu1  ;;  %v2139_v53 = vpop.f32.mrb[11].mxu0 }
 0x16c   : > { %v2215_v54 = vmax.f32 %v2199_v47, 0.0  ;;  %v2954_v55 = vadd.f32 %v2139_v53, %v1230_v52 }
 0x16d   : > { %2232 = vst.msk [vmem:[%s3595_s16 + $0x48] sm:$0xff] %vm206_vm0, %v2216_v50  ;;  %v2202_v56 = vadd.f32 %v2953_v51, %v3588_v8 }
 0x16e   : > { %2231 = vst.msk [vmem:[%s3595_s16 + $0x40] sm:$0xff] %vm206_vm0, %v2215_v54  ;;  %v2201_v57 = vadd.f32 %v2954_v55, %v3588_v8  ;;  %v2833_v58 = vpop.f32.mrb[12].mxu1  ;;  %v2937_v59 = vpop.f32.mrb[12].mxu0 }
 0x16f   : > { %v2218_v60 = vmax.f32 %v2202_v56, 0.0  ;;  %v2955_v61 = vadd.f32 %v2937_v59, %v2833_v58  ;;  %v1240_v62 = vpop.f32.mrb[13].mxu1  ;;  %v2149_v63 = vpop.f32.mrb[13].mxu0 }
 0x170   : > { %v2217_v0 = vmax.f32 %v2201_v57, 0.0  ;;  %v2956_v1 = vadd.f32 %v2149_v63, %v1240_v62 }
 0x171   : > { %2234 = vst.msk [vmem:[%s3595_s16 + $0x58] sm:$0xff] %vm206_vm0, %v2218_v60  ;;  %v2204_v2 = vadd.f32 %v2955_v61, %v3588_v8 }
 0x172   : > { %2233 = vst.msk [vmem:[%s3595_s16 + $0x50] sm:$0xff] %vm206_vm0, %v2217_v0  ;;  %v2203_v3 = vadd.f32 %v2956_v1, %v3588_v8  ;;  %v2836_v4 = vpop.f32.mrb[14].mxu1  ;;  %v2940_v5 = vpop.f32.mrb[14].mxu0 }
 0x173   : > { %v2220_v6 = vmax.f32 %v2204_v2, 0.0  ;;  %v2957_v7 = vadd.f32 %v2940_v5, %v2836_v4  ;;  %v1250_v9 = vpop.f32.mrb[15].mxu1  ;;  %v2159_v10 = vpop.f32.mrb[15].mxu0 }
 0x174   : > { %v2219_v11 = vmax.f32 %v2203_v3, 0.0  ;;  %v2958_v12 = vadd.f32 %v2159_v10, %v1250_v9 }
 0x175   : > { %2236 = vst.msk [vmem:[%s3595_s16 + $0x68] sm:$0xff] %vm206_vm0, %v2220_v6  ;;  %v2206_v13 = vadd.f32 %v2957_v7, %v3588_v8 }
 0x176   : > { %2235 = vst.msk [vmem:[%s3595_s16 + $0x60] sm:$0xff] %vm206_vm0, %v2219_v11  ;;  %v2205_v14 = vadd.f32 %v2958_v12, %v3588_v8 }
 0x177   : > { %v2222_v15 = vmax.f32 %v2206_v13, 0.0 }
 0x178   : > { %v2221_v16 = vmax.f32 %v2205_v14, 0.0 }
 0x179   : > { %2238 = vst.msk [vmem:[%s3595_s16 + $0x78] sm:$0xff] %vm206_vm0, %v2222_v15 }
 0x17a   : > { %2237 = vst.msk [vmem:[%s3595_s16 + $0x70] sm:$0xff] %vm206_vm0, %v2221_v16 }
 0x17b PF: > { %s13_s12 = sadd.s32 1, %s3086_s12  }
 0x17c   : > { %p10_p4 = scmp.ge.s32.totalorder %s13_s12, 4  }
 0x17e   :  { %12 = sbr.rel (!%p10_p4) target bundleno = 1 (0x1), region = 72 }

// kernel: tile.7
= control target key start
LH: loop header
LB: loop body
LE: loop exit
PB: predicated region body
PF: predicated region fallthrough
CT: control target
= control target key end

     0   :  { %vm3_vm0 = vcmask 523264   ;;  %s6_s6 = smov 3  ;;  %s48_s0 = inlined_call_operand.vmem [shape: f32[2,9,64], index: 0, kind: input, shape index: {}]   ;;  %s49_s1 = inlined_call_operand.vmem [shape: f32[18,64], index: 1, kind: output, shape index: {}]  }
   0x1   :  { %v2_v0 = vld [vmem:[%s48_s0] sm:$0xff]   ;;  %v18_v2 = vld [vmem:[%s48_s0 + $0x11] sm:$0xff]  }
   0x2   :  { %v16_v1 = vld [vmem:[%s48_s0 + $0x8] ss:$8 sm:%s6_s6]   ;;  %4 = vst.msk [vmem:[%s49_s1] sm:$0xff] %vm3_vm0, %v2_v0   ;;  %19 = vst.msk [vmem:[%s49_s1 + $0xa] sm:$0xff] %vm3_vm0, %v18_v2  }
   0x3   :  { %17 = vst.msk [vmem:[%s49_s1 + $0x8] sm:$0x3] %vm3_vm0, %v16_v1  }

// kernel: main_model_forward.8
= control target key start
LH: loop header
LB: loop body
LE: loop exit
PB: predicated region body
PF: predicated region fallthrough
CT: control target
= control target key end

     0   :  { %s5330_s12 = smov 0   ;;  %s6393_s0 = inlined_call_operand.vmem [shape: f32[2,18,18,4], index: 0, kind: input, shape index: {}]   ;;  %s6394_s1 = inlined_call_operand.vmem [shape: f32[9,4,8], index: 1, kind: input, shape index: {}]   ;;  %s6395_s2 = inlined_call_operand.vmem [shape: f32[1,8], index: 2, kind: input, shape index: {}]   ;;  %s6396_s3 = inlined_call_operand.vmem [shape: f32[2,256,8], index: 3, kind: output, shape index: {}]  }
   0x1 LB: > { %s3779_s13 = sadd.s32 4294967295, %s5308_s12   ;;  %p3783_p0 = scmp.ge.s32.totalorder %s5308_s12, 1  ;;  %s5308_s12 = sphi %s5330_s12, %s13_s12  }
   0x2   : > { %p137_p1 = scmp.lt.s32.totalorder %s5308_s12, 3 }
   0x4   : > { %p138_p2 = pnand %p3783_p0, %p137_p1 }
   0x6   : > { %141 = sbr.rel (%p138_p2) target bundleno = 525 (0x20d), region = 32 }
   0xd   : > { %v3787_v0 = vld [vmem:[%s6394_s1 + $0x4] sm:$0xf]  ;;  %vm335_vm0 = vcmask 1043456   ;;  %v5344_v1 = vld [vmem:[%s6394_s1 + $0x10] sm:$0xf]  ;;  %p161_p3 = scmp.lt.s32.totalorder %s3779_s13, 1 }
   0xe   : > { %4585 = vmatprep.subr.msk.mxu1 %vm335_vm0, %v3787_v0  ;;  %4785 = vmatprep.subr.msk.mxu0 %vm335_vm0, %v5344_v1  ;;  %v203_v2 = vld [vmem:[%s6394_s1] sm:$0xf]  ;;  %v4052_v3 = vld [vmem:[%s6394_s1 + $0x14] sm:$0xf]  ;;  %vm238_vm1 = vcmask 31744   ;;  %vm3691_vm2 = vcmask 64512  }
   0xf   : > { %4586 = vmatpush3.msk.msra.mxu1 %vm335_vm0, %v3787_v0  ;;  %4786 = vmatpush3.msk.msra.mxu0 %vm335_vm0, %v5344_v1  ;;  %s6507_s13 = smov (!%p161_p3, %s3779_s13), 1  ;;  %v4118_v9 = vld [vmem:[%s6394_s1 + $0x18] sm:$0xf]  ;;  %v5385_v10 = vld [vmem:[%s6394_s1 + $0x8] sm:$0xf] }
  0x10   : > { %4635 = vmatprep.subr.msk.mxu1 %vm335_vm0, %v203_v2  ;;  %4835 = vmatprep.subr.msk.mxu0 %vm335_vm0, %v4052_v3  ;;  %s5293_s22 = smul.u32 432, %s6507_s13  ;;  %v5504_v28 = vld [vmem:[%s6394_s1 + $0x1c] sm:$0xf]  ;;  %v5667_v61 = vld [vmem:[%s6394_s1 + $0xc] sm:$0xf]  ;;  %s4287_s11 = sshll.u32 %s6507_s13, 8 }
  0x11   : > { %s6289_s16 = scalar_lea.vmem %s6396_s3, %s4287_s11 }
  0x12   : > { %s5366_s25 = scalar_lea.vmem %s6393_s0, %s5293_s22 }
  0x13   : > { %v204_v4 = vld [vmem:[%s5366_s25 + $0x1] sm:$0xff]  ;;  %v3954_v5 = vld [vmem:[%s5366_s25 + $0x19] sm:$0xff]  ;;  %v205_v6 = vld [vmem:[%s5366_s25 + $0x9] sm:$0xff] }
  0x14   : > { %4587 = vmatprep.mubr.msk.f32.mxu1 %vm238_vm1, %v204_v4  ;;  %4787 = vmatprep.mubr.msk.f32.mxu0 %vm238_vm1, %v3954_v5  ;;  %v3955_v7 = vld [vmem:[%s5366_s25 + $0x21] sm:$0xff]  ;;  %v5375_v8 = vld [vmem:[%s5366_s25 + $0x31] sm:$0xff]  ;;  %v5390_v11 = vld [vmem:[%s5366_s25 + $0x39] sm:$0xff] }
  0x15   : > { %4588 = vmatmul.mubr.msk.f32.vlgmr.msra.gmra.mrb[0].mxu1 %vm238_vm1, %v205_v6  ;;  %4788 = vmatmul.mubr.msk.f32.vlgmr.msra.gmra.mrb[0].mxu0 %vm238_vm1, %v3955_v7  ;;  %v5396_v12 = vld [vmem:[%s5366_s25 + $0x49] sm:$0xff]  ;;  %v5409_v13 = vld [vmem:[%s5366_s25 + $0x51] sm:$0xff]  ;;  %v5412_v14 = vld [vmem:[%s5366_s25 + $0x61] sm:$0xff] }
  0x16   : > { %4636 = vmatpush3.msk.msra.mxu1 %vm335_vm0, %v203_v2  ;;  %4836 = vmatpush3.msk.msra.mxu0 %vm335_vm0, %v4052_v3  ;;  %v5423_v15 = vld [vmem:[%s5366_s25 + $0x69] sm:$0xff]  ;;  %v5426_v16 = vld [vmem:[%s5366_s25 + $0x79] sm:$0xff]  ;;  %v5437_v17 = vld [vmem:[%s5366_s25 + $0x81] sm:$0xff] }
  0x17   : > { %4590 = vmatprep.mubr.msk.f32.mxu1 %vm238_vm1, %v3954_v5  ;;  %4790 = vmatprep.mubr.msk.f32.mxu0 %vm238_vm1, %v5375_v8  ;;  %v5440_v18 = vld [vmem:[%s5366_s25 + $0x91] sm:$0xff]  ;;  %v5451_v19 = vld [vmem:[%s5366_s25 + $0x99] sm:$0xff]  ;;  %v5454_v20 = vld [vmem:[%s5366_s25 + $0xa9] sm:$0xff] }
  0x18   : > { %4885 = vmatprep.subr.msk.mxu0 %vm335_vm0, %v4118_v9  ;;  %4685 = vmatprep.subr.msk.mxu1 %vm335_vm0, %v5385_v10  ;;  %v5465_v21 = vld [vmem:[%s5366_s25 + $0xb1] sm:$0xff]  ;;  %v5468_v22 = vld [vmem:[%s5366_s25 + $0xc1] sm:$0xff]  ;;  %v5479_v23 = vld [vmem:[%s5366_s25 + $0xc9] sm:$0xff] }
  0x19   : > { %4591 = vmatmul.mubr.msk.f32.gmra.mrb[2].mxu1 %vm238_vm1, %v3955_v7  ;;  %4791 = vmatmul.mubr.msk.f32.gmra.mrb[2].mxu0 %vm238_vm1, %v5390_v11  ;;  %v5482_v24 = vld [vmem:[%s5366_s25 + $0x1a] sm:$0xff]  ;;  %v5493_v25 = vld [vmem:[%s5366_s25 + $0x22] sm:$0xff]  ;;  %v5499_v27 = vld [vmem:[%s5366_s25 + $0x32] sm:$0xff] }
  0x1a   : > { %4593 = vmatprep.mubr.msk.f32.mxu1 %vm238_vm1, %v5375_v8  ;;  %4793 = vmatprep.mubr.msk.f32.mxu0 %vm238_vm1, %v5396_v12  ;;  %v5496_v26 = vld [vmem:[%s5366_s25 + $0xd9] sm:$0xff]  ;;  %v5514_v29 = vld [vmem:[%s5366_s25 + $0xe1] sm:$0xff]  ;;  %v5522_v31 = vld [vmem:[%s5366_s25 + $0xf1] sm:$0xff] }
  0x1b   : > { %6442 = vst [vmem:[#allocation2_spill] sm:$0xff] %v5514_v29  ;;  %v5517_v30 = vld [vmem:[%s5366_s25 + $0x3a] sm:$0xff]  ;;  %6443 = vst [vmem:[#allocation3_spill] sm:$0xff] %v5522_v31  ;;  %v5525_v32 = vld [vmem:[%s5366_s25 + $0x4a] sm:$0xff] }
  0x1c   : > { %v5538_v33 = vld [vmem:[%s5366_s25 + $0xf9] sm:$0xff]  ;;  %v5544_v35 = vld [vmem:[%s5366_s25 + $0x109] sm:$0xff]  ;;  %v5558_v37 = vld [vmem:[%s5366_s25 + $0x111] sm:$0xff] }
  0x1d   : > { %4594 = vmatmul.mubr.msk.f32.gmra.mrb[4].mxu1 %vm238_vm1, %v5390_v11  ;;  %4794 = vmatmul.mubr.msk.f32.gmra.mrb[4].mxu0 %vm238_vm1, %v5409_v13  ;;  %6444 = vst [vmem:[#allocation4_spill] sm:$0xff] %v5538_v33  ;;  %v5541_v34 = vld [vmem:[%s5366_s25 + $0x52] sm:$0xff]  ;;  %6445 = vst [vmem:[#allocation5_spill] sm:$0xff] %v5544_v35  ;;  %v5547_v36 = vld [vmem:[%s5366_s25 + $0x62] sm:$0xff] }
  0x1e   : > { %4596 = vmatprep.mubr.msk.f32.mxu1 %vm238_vm1, %v5396_v12  ;;  %4796 = vmatprep.mubr.msk.f32.mxu0 %vm238_vm1, %v5412_v14  ;;  %6446 = vst [vmem:[#allocation6_spill] sm:$0xff] %v5558_v37  ;;  %v5561_v38 = vld [vmem:[%s5366_s25 + $0x6a] sm:$0xff]  ;;  %v5564_v39 = vld [vmem:[%s5366_s25 + $0x121] sm:$0xff]  ;;  %v5584_v43 = vld [vmem:[%s5366_s25 + $0x139] sm:$0xff] }
  0x1f   : > { %6447 = vst [vmem:[#allocation7_spill] sm:$0xff] %v5564_v39  ;;  %v5567_v40 = vld [vmem:[%s5366_s25 + $0x7a] sm:$0xff]  ;;  %v5578_v41 = vld [vmem:[%s5366_s25 + $0x129] sm:$0xff]  ;;  %6449 = vst [vmem:[#allocation9_spill] sm:$0xff] %v5584_v43 }
  0x20   : > { %6448 = vst [vmem:[#allocation8_spill] sm:$0xff] %v5578_v41  ;;  %v5581_v42 = vld [vmem:[%s5366_s25 + $0x82] sm:$0xff]  ;;  %v5587_v44 = vld [vmem:[%s5366_s25 + $0x92] sm:$0xff]  ;;  %v5601_v46 = vld [vmem:[%s5366_s25 + $0x9a] sm:$0xff] }
  0x21   : > { %4597 = vmatmul.mubr.msk.f32.gmra.mrb[6].mxu1 %vm238_vm1, %v5409_v13  ;;  %4797 = vmatmul.mubr.msk.f32.gmra.mrb[6].mxu0 %vm238_vm1, %v5423_v15  ;;  %v5598_v45 = vld [vmem:[%s5366_s25 + $0x141] sm:$0xff]  ;;  %v5604_v47 = vld [vmem:[%s5366_s25 + $0x151] sm:$0xff]  ;;  %v5618_v49 = vld [vmem:[%s5366_s25 + $0x159] sm:$0xff] }
  0x22   : > { %4599 = vmatprep.mubr.msk.f32.mxu1 %vm238_vm1, %v5412_v14  ;;  %4799 = vmatprep.mubr.msk.f32.mxu0 %vm238_vm1, %v5426_v16  ;;  %6450 = vst [vmem:[#allocation10_spill] sm:$0xff] %v5598_v45  ;;  %6451 = vst [vmem:[#allocation11_spill] sm:$0xff] %v5604_v47  ;;  %v5607_v48 = vld [vmem:[%s5366_s25 + $0xaa] sm:$0xff]  ;;  %v5621_v50 = vld [vmem:[%s5366_s25 + $0xb2] sm:$0xff] }
  0x23   : > { %6452 = vst [vmem:[#allocation12_spill] sm:$0xff] %v5618_v49  ;;  %v5624_v51 = vld [vmem:[%s5366_s25 + $0x169] sm:$0xff]  ;;  %v5638_v53 = vld [vmem:[%s5366_s25 + $0x171] sm:$0xff]  ;;  %v171_v55 = vld [vmem:[%s5366_s25] sm:$0xff] }
  0x24   : > { %6453 = vst [vmem:[#allocation13_spill] sm:$0xff] %v5624_v51  ;;  %v5627_v52 = vld [vmem:[%s5366_s25 + $0xc2] sm:$0xff]  ;;  %6454 = vst [vmem:[#allocation14_spill] sm:$0xff] %v5638_v53  ;;  %v5641_v54 = vld [vmem:[%s5366_s25 + $0xca] sm:$0xff] }
  0x25   : > { %4600 = vmatmul.mubr.msk.f32.gmra.mrb[8].mxu1 %vm238_vm1, %v5423_v15  ;;  %4800 = vmatmul.mubr.msk.f32.gmra.mrb[8].mxu0 %vm238_vm1, %v5437_v17  ;;  %v5645_v56 = vld [vmem:[%s5366_s25 + $0xda] sm:$0xff]  ;;  %v172_v57 = vld [vmem:[%s5366_s25 + $0x8] sm:$0xff]  ;;  %v5662_v60 = vld [vmem:[%s5366_s25 + $0xf2] sm:$0xff] }
  0x26   : > { %4602 = vmatprep.mubr.msk.f32.mxu1 %vm238_vm1, %v5426_v16  ;;  %4802 = vmatprep.mubr.msk.f32.mxu0 %vm238_vm1, %v5440_v18  ;;  %v5656_v58 = vld [vmem:[%s5366_s25 + $0xe2] sm:$0xff]  ;;  %v5659_v59 = vld [vmem:[%s5366_s25 + $0x18] sm:$0xff]  ;;  %v5685_v0 = vld [vmem:[%s5366_s25 + $0x30] sm:$0xff] }
  0x27   : > { %6455 = vst [vmem:[#allocation15_spill] sm:$0xff] %v5659_v59  ;;  %v5677_v62 = vld [vmem:[%s5366_s25 + $0x20] sm:$0xff]  ;;  %6457 = vst [vmem:[#allocation17_spill] sm:$0xff] %v5685_v0  ;;  %v5688_v2 = vld [vmem:[%s5366_s25 + $0x10a] sm:$0xff] }
  0x28   : > { %6456 = vst [vmem:[#allocation16_spill] sm:$0xff] %v5677_v62  ;;  %v5680_v63 = vld [vmem:[%s5366_s25 + $0xfa] sm:$0xff]  ;;  %v5704_v4 = vld [vmem:[%s5366_s25 + $0x112] sm:$0xff]  ;;  %v5707_v5 = vld [vmem:[%s5366_s25 + $0x48] sm:$0xff] }
  0x29   : > { %4603 = vmatmul.mubr.msk.f32.gmra.mrb[10].mxu1 %vm238_vm1, %v5437_v17  ;;  %4803 = vmatmul.mubr.msk.f32.gmra.mrb[10].mxu0 %vm238_vm1, %v5451_v19  ;;  %v5701_v3 = vld [vmem:[%s5366_s25 + $0x38] sm:$0xff]  ;;  %6459 = vst [vmem:[#allocation19_spill] sm:$0xff] %v5707_v5  ;;  %v5710_v6 = vld [vmem:[%s5366_s25 + $0x122] sm:$0xff]  ;;  %v5721_v7 = vld [vmem:[%s5366_s25 + $0x50] sm:$0xff] }
  0x2a   : > { %4605 = vmatprep.mubr.msk.f32.mxu1 %vm238_vm1, %v5440_v18  ;;  %4805 = vmatprep.mubr.msk.f32.mxu0 %vm238_vm1, %v5454_v20  ;;  %6458 = vst [vmem:[#allocation18_spill] sm:$0xff] %v5701_v3  ;;  %6460 = vst [vmem:[#allocation20_spill] sm:$0xff] %v5721_v7 }
  0x2d   : > { %4606 = vmatmul.mubr.msk.f32.gmra.mrb[12].mxu1 %vm238_vm1, %v5451_v19  ;;  %4806 = vmatmul.mubr.msk.f32.gmra.mrb[12].mxu0 %vm238_vm1, %v5465_v21 }
  0x2e   : > { %4608 = vmatprep.mubr.msk.f32.mxu1 %vm238_vm1, %v5454_v20  ;;  %4808 = vmatprep.mubr.msk.f32.mxu0 %vm238_vm1, %v5468_v22 }
  0x31   : > { %4609 = vmatmul.mubr.msk.f32.gmra.mrb[14].mxu1 %vm238_vm1, %v5465_v21  ;;  %4809 = vmatmul.mubr.msk.f32.gmra.mrb[14].mxu0 %vm238_vm1, %v5479_v23 }
  0x32   : > { %4611 = vmatprep.mubr.msk.f32.mxu1 %vm238_vm1, %v5468_v22  ;;  %4837 = vmatprep.mubr.msk.f32.mxu0 %vm238_vm1, %v5482_v24 }
  0x35   : > { %4612 = vmatmul.mubr.msk.f32.gmra.mrb[16].mxu1 %vm238_vm1, %v5479_v23  ;;  %4838 = vmatmul.mubr.msk.f32.vlgmr.msra.gmra.mrb[0].mxu0 %vm238_vm1, %v5493_v25 }
  0x36   : > { %4886 = vmatpush3.msk.msra.mxu0 %vm335_vm0, %v4118_v9  ;;  %4614 = vmatprep.mubr.msk.f32.mxu1 %vm238_vm1, %v5496_v26  ;;  %v5724_v9 = vld [vmem:[%s5366_s25 + $0x12a] sm:$0xff] }
  0x37   : > { %4840 = vmatprep.mubr.msk.f32.mxu0 %vm238_vm1, %v5499_v27  ;;  %4935 = vmatprep.subr.msk.mxu0 %vm335_vm0, %v5504_v28 }
  0x39   : > { %4615 = vmatmul.mubr.msk.f32.gmra.mrb[18].mxu1 %vm238_vm1, %v5514_v29  ;;  %4841 = vmatmul.mubr.msk.f32.gmra.mrb[2].mxu0 %vm238_vm1, %v5517_v30  ;;  %v5821_v29 = vld [vmem:[%s5366_s25 + $0xd8] sm:$0xff] }
  0x3a   : > { %4617 = vmatprep.mubr.msk.f32.mxu1 %vm238_vm1, %v5522_v31  ;;  %4843 = vmatprep.mubr.msk.f32.mxu0 %vm238_vm1, %v5525_v32  ;;  %v5804_v31 = vld [vmem:[%s5366_s25 + $0x18a] sm:$0xff] }
  0x3b   : > { %6471 = vst [vmem:[#allocation31_spill] sm:$0xff] %v5804_v31 }
  0x3d   : > { %4618 = vmatmul.mubr.msk.f32.gmra.mrb[20].mxu1 %vm238_vm1, %v5538_v33  ;;  %4844 = vmatmul.mubr.msk.f32.gmra.mrb[4].mxu0 %vm238_vm1, %v5541_v34  ;;  %v5790_v33 = vld [vmem:[%s5366_s25 + $0x182] sm:$0xff] }
  0x3e   : > { %4620 = vmatprep.mubr.msk.f32.mxu1 %vm238_vm1, %v5544_v35  ;;  %4846 = vmatprep.mubr.msk.f32.mxu0 %vm238_vm1, %v5547_v36  ;;  %v5787_v35 = vld [vmem:[%s5366_s25 + $0xa8] sm:$0xff]  ;;  %6469 = vst [vmem:[#allocation29_spill] sm:$0xff] %v5790_v33 }
  0x3f   : > { %6468 = vst [vmem:[#allocation28_spill] sm:$0xff] %v5787_v35 }
  0x41   : > { %4621 = vmatmul.mubr.msk.f32.gmra.mrb[22].mxu1 %vm238_vm1, %v5558_v37  ;;  %4847 = vmatmul.mubr.msk.f32.gmra.mrb[6].mxu0 %vm238_vm1, %v5561_v38  ;;  %v5784_v37 = vld [vmem:[%s5366_s25 + $0x172] sm:$0xff] }
  0x42   : > { %4623 = vmatprep.mubr.msk.f32.mxu1 %vm238_vm1, %v5564_v39  ;;  %4849 = vmatprep.mubr.msk.f32.mxu0 %vm238_vm1, %v5567_v40  ;;  %v5781_v39 = vld [vmem:[%s5366_s25 + $0x98] sm:$0xff]  ;;  %6467 = vst [vmem:[#allocation27_spill] sm:$0xff] %v5784_v37 }
  0x43   : > { %6466 = vst [vmem:[#allocation26_spill] sm:$0xff] %v5781_v39 }
  0x45   : > { %4624 = vmatmul.mubr.msk.f32.gmra.mrb[24].mxu1 %vm238_vm1, %v5578_v41  ;;  %4850 = vmatmul.mubr.msk.f32.gmra.mrb[8].mxu0 %vm238_vm1, %v5581_v42  ;;  %v5770_v41 = vld [vmem:[%s5366_s25 + $0x16a] sm:$0xff] }
  0x46   : > { %4626 = vmatprep.mubr.msk.f32.mxu1 %vm238_vm1, %v5584_v43  ;;  %4852 = vmatprep.mubr.msk.f32.mxu0 %vm238_vm1, %v5587_v44  ;;  %v5767_v43 = vld [vmem:[%s5366_s25 + $0x90] sm:$0xff] }
  0x47   : > { %6465 = vst [vmem:[#allocation25_spill] sm:$0xff] %v5767_v43 }
  0x49   : > { %4627 = vmatmul.mubr.msk.f32.gmra.mrb[26].mxu1 %vm238_vm1, %v5598_v45  ;;  %4853 = vmatmul.mubr.msk.f32.gmra.mrb[10].mxu0 %vm238_vm1, %v5601_v46  ;;  %v5764_v45 = vld [vmem:[%s5366_s25 + $0x15a] sm:$0xff] }
  0x4a   : > { %4629 = vmatprep.mubr.msk.f32.mxu1 %vm238_vm1, %v5604_v47  ;;  %4855 = vmatprep.mubr.msk.f32.mxu0 %vm238_vm1, %v5607_v48  ;;  %v5761_v47 = vld [vmem:[%s5366_s25 + $0x80] sm:$0xff] }
  0x4b   : > { %6464 = vst [vmem:[#allocation24_spill] sm:$0xff] %v5761_v47 }
  0x4d   : > { %4630 = vmatmul.mubr.msk.f32.gmra.mrb[28].mxu1 %vm238_vm1, %v5618_v49  ;;  %4856 = vmatmul.mubr.msk.f32.gmra.mrb[12].mxu0 %vm238_vm1, %v5621_v50  ;;  %v5750_v49 = vld [vmem:[%s5366_s25 + $0x152] sm:$0xff] }
  0x4e   : > { %4632 = vmatprep.mubr.msk.f32.mxu1 %vm238_vm1, %v5624_v51  ;;  %4858 = vmatprep.mubr.msk.f32.mxu0 %vm238_vm1, %v5627_v52  ;;  %v5747_v51 = vld [vmem:[%s5366_s25 + $0x78] sm:$0xff] }
  0x4f   : > { %6463 = vst [vmem:[#allocation23_spill] sm:$0xff] %v5747_v51 }
  0x51   : > { %4633 = vmatmul.mubr.msk.f32.gmra.mrb[30].mxu1 %vm238_vm1, %v5638_v53  ;;  %4859 = vmatmul.mubr.msk.f32.gmra.mrb[14].mxu0 %vm238_vm1, %v5641_v54  ;;  %v5744_v53 = vld [vmem:[%s5366_s25 + $0x142] sm:$0xff] }
  0x52   : > { %4637 = vmatprep.mubr.msk.f32.mxu1 %vm238_vm1, %v171_v55  ;;  %4861 = vmatprep.mubr.msk.f32.mxu0 %vm238_vm1, %v5645_v56  ;;  %v5730_v55 = vld [vmem:[%s5366_s25 + $0x13a] sm:$0xff] }
  0x55   : > { %4638 = vmatmul.mubr.msk.f32.vlgmr.msra.gmra.mrb[0].mxu1 %vm238_vm1, %v172_v57  ;;  %4862 = vmatmul.mubr.msk.f32.gmra.mrb[16].mxu0 %vm238_vm1, %v5656_v58  ;;  %v5741_v57 = vld [vmem:[%s5366_s25 + $0x68] sm:$0xff] }
  0x56   : > { %4686 = vmatpush3.msk.msra.mxu1 %vm335_vm0, %v5385_v10  ;;  %4640 = vmatprep.mubr.msk.f32.mxu1 %vm238_vm1, %v5659_v59  ;;  %v5727_v10 = vld [vmem:[%s5366_s25 + $0x60] sm:$0xff]  ;;  %6462 = vst [vmem:[#allocation22_spill] sm:$0xff] %v5741_v57 }
  0x57   : > { %4864 = vmatprep.mubr.msk.f32.mxu0 %vm238_vm1, %v5662_v60  ;;  %4735 = vmatprep.subr.msk.mxu1 %vm335_vm0, %v5667_v61  ;;  %6461 = vst [vmem:[#allocation21_spill] sm:$0xff] %v5727_v10  ;;  %v5807_v59 = vld [vmem:[%s5366_s25 + $0xc0] sm:$0xff] }
  0x59   : > { %4641 = vmatmul.mubr.msk.f32.gmra.mrb[2].mxu1 %vm238_vm1, %v5677_v62  ;;  %4865 = vmatmul.mubr.msk.f32.gmra.mrb[18].mxu0 %vm238_vm1, %v5680_v63  ;;  %v5801_v62 = vld [vmem:[%s5366_s25 + $0xb0] sm:$0xff] }
  0x5a   : > { %4643 = vmatprep.mubr.msk.f32.mxu1 %vm238_vm1, %v5685_v0  ;;  %4867 = vmatprep.mubr.msk.f32.mxu0 %vm238_vm1, %v5688_v2  ;;  %6470 = vst [vmem:[#allocation30_spill] sm:$0xff] %v5801_v62 }
  0x5d   : > { %4644 = vmatmul.mubr.msk.f32.gmra.mrb[4].mxu1 %vm238_vm1, %v5701_v3  ;;  %4868 = vmatmul.mubr.msk.f32.gmra.mrb[20].mxu0 %vm238_vm1, %v5704_v4 }
  0x5e   : > { %4646 = vmatprep.mubr.msk.f32.mxu1 %vm238_vm1, %v5707_v5  ;;  %4870 = vmatprep.mubr.msk.f32.mxu0 %vm238_vm1, %v5710_v6 }
  0x61   : > { %4647 = vmatmul.mubr.msk.f32.gmra.mrb[6].mxu1 %vm238_vm1, %v5721_v7  ;;  %4871 = vmatmul.mubr.msk.f32.gmra.mrb[22].mxu0 %vm238_vm1, %v5724_v9 }
  0x62   : > { %4649 = vmatprep.mubr.msk.f32.mxu1 %vm238_vm1, %v5727_v10  ;;  %4873 = vmatprep.mubr.msk.f32.mxu0 %vm238_vm1, %v5730_v55 }
  0x65   : > { %4650 = vmatmul.mubr.msk.f32.gmra.mrb[8].mxu1 %vm238_vm1, %v5741_v57  ;;  %4874 = vmatmul.mubr.msk.f32.gmra.mrb[24].mxu0 %vm238_vm1, %v5744_v53 }
  0x66   : > { %4652 = vmatprep.mubr.msk.f32.mxu1 %vm238_vm1, %v5747_v51  ;;  %4876 = vmatprep.mubr.msk.f32.mxu0 %vm238_vm1, %v5750_v49 }
  0x69   : > { %4653 = vmatmul.mubr.msk.f32.gmra.mrb[10].mxu1 %vm238_vm1, %v5761_v47  ;;  %4877 = vmatmul.mubr.msk.f32.gmra.mrb[26].mxu0 %vm238_vm1, %v5764_v45 }
  0x6a   : > { %4655 = vmatprep.mubr.msk.f32.mxu1 %vm238_vm1, %v5767_v43  ;;  %4879 = vmatprep.mubr.msk.f32.mxu0 %vm238_vm1, %v5770_v41 }
  0x6d   : > { %4656 = vmatmul.mubr.msk.f32.gmra.mrb[12].mxu1 %vm238_vm1, %v5781_v39  ;;  %4880 = vmatmul.mubr.msk.f32.gmra.mrb[28].mxu0 %vm238_vm1, %v5784_v37  ;;  %v5826_v37 = vld [vmem:[%s6394_s1 + $0x20] sm:$0xf] }
  0x6e   : > { %4658 = vmatprep.mubr.msk.f32.mxu1 %vm238_vm1, %v5787_v35  ;;  %4882 = vmatprep.mubr.msk.f32.mxu0 %vm238_vm1, %v5790_v33  ;;  %v5818_v33 = vld [vmem:[%s5366_s25 + $0xc8] sm:$0xff] }
  0x6f   : > { %6472 = vst [vmem:[#allocation32_spill] sm:$0xff] %v5818_v33 }
  0x71   : > { %4659 = vmatmul.mubr.msk.f32.gmra.mrb[14].mxu1 %vm238_vm1, %v5801_v62  ;;  %4883 = vmatmul.mubr.msk.f32.gmra.mrb[30].mxu0 %vm238_vm1, %v5804_v31  ;;  %v5837_v31 = vld [vmem:[%s5366_s25 + $0xe0] sm:$0xff] }
  0x72   : > { %4661 = vmatprep.mubr.msk.f32.mxu1 %vm238_vm1, %v5807_v59  ;;  %4887 = vmatprep.mubr.msk.f32.mxu0 %vm238_vm1, %v5685_v0  ;;  %v5842_v0 = vld [vmem:[%s5366_s25 + $0xf0] sm:$0xff] }
  0x75   : > { %4662 = vmatmul.mubr.msk.f32.gmra.mrb[16].mxu1 %vm238_vm1, %v5818_v33  ;;  %4888 = vmatmul.mubr.msk.f32.vlgmr.msra.gmra.mrb[0].mxu0 %vm238_vm1, %v5701_v3  ;;  %v888_v3 = vld [vmem:[%s5366_s25 + $0x2] sm:$0xff] }
  0x76   : > { %4936 = vmatpush3.msk.msra.mxu0 %vm335_vm0, %v5504_v28  ;;  %4664 = vmatprep.mubr.msk.f32.mxu1 %vm238_vm1, %v5821_v29  ;;  %v5855_v28 = vld [vmem:[%s5366_s25 + $0xf8] sm:$0xff] }
  0x77   : > { %4890 = vmatprep.mubr.msk.f32.mxu0 %vm238_vm1, %v5707_v5  ;;  %4985 = vmatprep.subr.msk.mxu0 %vm335_vm0, %v5826_v37  ;;  %v5858_v5 = vld [vmem:[%s5366_s25 + $0x108] sm:$0xff] }
  0x79   : > { %4665 = vmatmul.mubr.msk.f32.gmra.mrb[18].mxu1 %vm238_vm1, %v5837_v31  ;;  %4891 = vmatmul.mubr.msk.f32.gmra.mrb[2].mxu0 %vm238_vm1, %v5721_v7  ;;  %v5869_v7 = vld [vmem:[%s5366_s25 + $0x110] sm:$0xff] }
  0x7a   : > { %4667 = vmatprep.mubr.msk.f32.mxu1 %vm238_vm1, %v5842_v0  ;;  %4893 = vmatprep.mubr.msk.f32.mxu0 %vm238_vm1, %v5727_v10  ;;  %v5872_v10 = vld [vmem:[%s5366_s25 + $0x120] sm:$0xff] }
  0x7d   : > { %4668 = vmatmul.mubr.msk.f32.gmra.mrb[20].mxu1 %vm238_vm1, %v5855_v28  ;;  %4894 = vmatmul.mubr.msk.f32.gmra.mrb[4].mxu0 %vm238_vm1, %v5741_v57  ;;  %v5883_v57 = vld [vmem:[%s5366_s25 + $0x128] sm:$0xff] }
  0x7e   : > { %4670 = vmatprep.mubr.msk.f32.mxu1 %vm238_vm1, %v5858_v5  ;;  %4896 = vmatprep.mubr.msk.f32.mxu0 %vm238_vm1, %v5747_v51  ;;  %v5886_v51 = vld [vmem:[%s5366_s25 + $0x138] sm:$0xff] }
  0x81   : > { %4671 = vmatmul.mubr.msk.f32.gmra.mrb[22].mxu1 %vm238_vm1, %v5869_v7  ;;  %4897 = vmatmul.mubr.msk.f32.gmra.mrb[6].mxu0 %vm238_vm1, %v5761_v47  ;;  %v5897_v47 = vld [vmem:[%s5366_s25 + $0x140] sm:$0xff] }
  0x82   : > { %4673 = vmatprep.mubr.msk.f32.mxu1 %vm238_vm1, %v5872_v10  ;;  %4899 = vmatprep.mubr.msk.f32.mxu0 %vm238_vm1, %v5767_v43  ;;  %v5900_v43 = vld [vmem:[%s5366_s25 + $0x150] sm:$0xff] }
  0x85   : > { %4674 = vmatmul.mubr.msk.f32.gmra.mrb[24].mxu1 %vm238_vm1, %v5883_v57  ;;  %4900 = vmatmul.mubr.msk.f32.gmra.mrb[8].mxu0 %vm238_vm1, %v5781_v39  ;;  %v5911_v39 = vld [vmem:[%s5366_s25 + $0x158] sm:$0xff] }
  0x86   : > { %4676 = vmatprep.mubr.msk.f32.mxu1 %vm238_vm1, %v5886_v51  ;;  %4902 = vmatprep.mubr.msk.f32.mxu0 %vm238_vm1, %v5787_v35  ;;  %v5914_v35 = vld [vmem:[%s5366_s25 + $0x168] sm:$0xff] }
  0x89   : > { %4677 = vmatmul.mubr.msk.f32.gmra.mrb[26].mxu1 %vm238_vm1, %v5897_v47  ;;  %4903 = vmatmul.mubr.msk.f32.gmra.mrb[10].mxu0 %vm238_vm1, %v5801_v62  ;;  %v5925_v62 = vld [vmem:[%s5366_s25 + $0x170] sm:$0xff] }
  0x8a   : > { %4679 = vmatprep.mubr.msk.f32.mxu1 %vm238_vm1, %v5900_v43  ;;  %4905 = vmatprep.mubr.msk.f32.mxu0 %vm238_vm1, %v5807_v59 }
  0x8d   : > { %4680 = vmatmul.mubr.msk.f32.gmra.mrb[28].mxu1 %vm238_vm1, %v5911_v39  ;;  %4906 = vmatmul.mubr.msk.f32.gmra.mrb[12].mxu0 %vm238_vm1, %v5818_v33  ;;  %v889_v33 = vld [vmem:[%s5366_s25 + $0xa] sm:$0xff] }
  0x8e   : > { %4682 = vmatprep.mubr.msk.f32.mxu1 %vm238_vm1, %v5914_v35  ;;  %4908 = vmatprep.mubr.msk.f32.mxu0 %vm238_vm1, %v5821_v29 }
  0x91   : > { %4683 = vmatmul.mubr.msk.f32.gmra.mrb[30].mxu1 %vm238_vm1, %v5925_v62  ;;  %4909 = vmatmul.mubr.msk.f32.gmra.mrb[14].mxu0 %vm238_vm1, %v5837_v31 }
  0x92   : > { %4687 = vmatprep.mubr.msk.f32.mxu1 %vm238_vm1, %v888_v3  ;;  %4911 = vmatprep.mubr.msk.f32.mxu0 %vm238_vm1, %v5842_v0  ;;  %v6489_v3 = vld [vmem:[#allocation22_spill] sm:$0xff] }
  0x95   : > { %4688 = vmatmul.mubr.msk.f32.vlgmr.msra.gmra.mrb[0].mxu1 %vm238_vm1, %v889_v33  ;;  %4912 = vmatmul.mubr.msk.f32.gmra.mrb[16].mxu0 %vm238_vm1, %v5855_v28  ;;  %v4116_v33 = vld [vmem:[%s5366_s25 + $0x198] sm:$0xff] }
  0x96   : > { %4736 = vmatpush3.msk.msra.mxu1 %vm335_vm0, %v5667_v61  ;;  %4690 = vmatprep.mubr.msk.f32.mxu1 %vm238_vm1, %v5482_v24  ;;  %v5980_v24 = vld [vmem:[%s5366_s25 + $0x180] sm:$0xff] }
  0x97   : > { %4914 = vmatprep.mubr.msk.f32.mxu0 %vm238_vm1, %v5858_v5  ;;  %5035 = vmatprep.subr.msk.mxu1 %vm335_vm0, %v5344_v1  ;;  %v4117_v61 = vld [vmem:[%s5366_s25 + $0x1a0] sm:$0xff] }
  0x99   : > { %4691 = vmatmul.mubr.msk.f32.gmra.mrb[2].mxu1 %vm238_vm1, %v5493_v25  ;;  %4915 = vmatmul.mubr.msk.f32.gmra.mrb[18].mxu0 %vm238_vm1, %v5869_v7  ;;  %v5991_v25 = vld [vmem:[%s5366_s25 + $0x188] sm:$0xff] }
  0x9a   : > { %4693 = vmatprep.mubr.msk.f32.mxu1 %vm238_vm1, %v5499_v27  ;;  %4917 = vmatprep.mubr.msk.f32.mxu0 %vm238_vm1, %v5872_v10 }
  0x9d   : > { %4694 = vmatmul.mubr.msk.f32.gmra.mrb[4].mxu1 %vm238_vm1, %v5517_v30  ;;  %4918 = vmatmul.mubr.msk.f32.gmra.mrb[20].mxu0 %vm238_vm1, %v5883_v57 }
  0x9e   : > { %4696 = vmatprep.mubr.msk.f32.mxu1 %vm238_vm1, %v5525_v32  ;;  %4920 = vmatprep.mubr.msk.f32.mxu0 %vm238_vm1, %v5886_v51 }
  0xa1   : > { %4697 = vmatmul.mubr.msk.f32.gmra.mrb[6].mxu1 %vm238_vm1, %v5541_v34  ;;  %4921 = vmatmul.mubr.msk.f32.gmra.mrb[22].mxu0 %vm238_vm1, %v5897_v47 }
  0xa2   : > { %4699 = vmatprep.mubr.msk.f32.mxu1 %vm238_vm1, %v5547_v36  ;;  %4923 = vmatprep.mubr.msk.f32.mxu0 %vm238_vm1, %v5900_v43 }
  0xa5   : > { %4700 = vmatmul.mubr.msk.f32.gmra.mrb[8].mxu1 %vm238_vm1, %v5561_v38  ;;  %4924 = vmatmul.mubr.msk.f32.gmra.mrb[24].mxu0 %vm238_vm1, %v5911_v39 }
  0xa6   : > { %4702 = vmatprep.mubr.msk.f32.mxu1 %vm238_vm1, %v5567_v40  ;;  %4926 = vmatprep.mubr.msk.f32.mxu0 %vm238_vm1, %v5914_v35 }
  0xa9   : > { %4703 = vmatmul.mubr.msk.f32.gmra.mrb[10].mxu1 %vm238_vm1, %v5581_v42  ;;  %4927 = vmatmul.mubr.msk.f32.gmra.mrb[26].mxu0 %vm238_vm1, %v5925_v62 }
  0xaa   : > { %4705 = vmatprep.mubr.msk.f32.mxu1 %vm238_vm1, %v5587_v44  ;;  %4929 = vmatprep.mubr.msk.f32.mxu0 %vm238_vm1, %v5980_v24 }
  0xad   : > { %4706 = vmatmul.mubr.msk.f32.gmra.mrb[12].mxu1 %vm238_vm1, %v5601_v46  ;;  %4930 = vmatmul.mubr.msk.f32.gmra.mrb[28].mxu0 %vm238_vm1, %v5991_v25 }
  0xae   : > { %4708 = vmatprep.mubr.msk.f32.mxu1 %vm238_vm1, %v5607_v48  ;;  %4932 = vmatprep.mubr.msk.f32.mxu0 %vm238_vm1, %v4116_v33  ;;  %v6490_v33 = vld [vmem:[#allocation10_spill] sm:$0xff] }
  0xb1   : > { %4709 = vmatmul.mubr.msk.f32.gmra.mrb[14].mxu1 %vm238_vm1, %v5621_v50  ;;  %4933 = vmatmul.mubr.msk.f32.gmra.mrb[30].mxu0 %vm238_vm1, %v4117_v61  ;;  %v6491_v61 = vld [vmem:[#allocation23_spill] sm:$0xff] }
  0xb2   : > { %4711 = vmatprep.mubr.msk.f32.mxu1 %vm238_vm1, %v5627_v52  ;;  %4937 = vmatprep.mubr.msk.f32.mxu0 %vm238_vm1, %v5375_v8  ;;  %v6473_v8 = vld [vmem:[#allocation27_spill] sm:$0xff] }
  0xb5   : > { %4712 = vmatmul.mubr.msk.f32.gmra.mrb[16].mxu1 %vm238_vm1, %v5641_v54  ;;  %4938 = vmatmul.mubr.msk.f32.vlgmr.msra.gmra.mrb[0].mxu0 %vm238_vm1, %v5390_v11  ;;  %v6474_v11 = vld [vmem:[#allocation2_spill] sm:$0xff] }
  0xb6   : > { %4986 = vmatpush3.msk.msra.mxu0 %vm335_vm0, %v5826_v37  ;;  %4714 = vmatprep.mubr.msk.f32.mxu1 %vm238_vm1, %v5645_v56  ;;  %v6488_v37 = vld [vmem:[#allocation9_spill] sm:$0xff] }
  0xb7   : > { %4940 = vmatprep.mubr.msk.f32.mxu0 %vm238_vm1, %v5396_v12  ;;  %v6475_v12 = vld [vmem:[#allocation15_spill] sm:$0xff] }
  0xb9   : > { %4715 = vmatmul.mubr.msk.f32.gmra.mrb[18].mxu1 %vm238_vm1, %v5656_v58  ;;  %4941 = vmatmul.mubr.msk.f32.gmra.mrb[2].mxu0 %vm238_vm1, %v5409_v13  ;;  %v6476_v13 = vld [vmem:[#allocation3_spill] sm:$0xff] }
  0xba   : > { %4717 = vmatprep.mubr.msk.f32.mxu1 %vm238_vm1, %v5662_v60  ;;  %4943 = vmatprep.mubr.msk.f32.mxu0 %vm238_vm1, %v5412_v14  ;;  %v6477_v14 = vld [vmem:[#allocation16_spill] sm:$0xff] }
  0xbd   : > { %4718 = vmatmul.mubr.msk.f32.gmra.mrb[20].mxu1 %vm238_vm1, %v5680_v63  ;;  %4944 = vmatmul.mubr.msk.f32.gmra.mrb[4].mxu0 %vm238_vm1, %v5423_v15  ;;  %v6478_v15 = vld [vmem:[#allocation4_spill] sm:$0xff] }
  0xbe   : > { %4720 = vmatprep.mubr.msk.f32.mxu1 %vm238_vm1, %v5688_v2  ;;  %4946 = vmatprep.mubr.msk.f32.mxu0 %vm238_vm1, %v5426_v16  ;;  %v6479_v16 = vld [vmem:[#allocation17_spill] sm:$0xff] }
  0xc1   : > { %4721 = vmatmul.mubr.msk.f32.gmra.mrb[22].mxu1 %vm238_vm1, %v5704_v4  ;;  %4947 = vmatmul.mubr.msk.f32.gmra.mrb[6].mxu0 %vm238_vm1, %v5437_v17  ;;  %v6480_v17 = vld [vmem:[#allocation5_spill] sm:$0xff] }
  0xc2   : > { %4723 = vmatprep.mubr.msk.f32.mxu1 %vm238_vm1, %v5710_v6  ;;  %4949 = vmatprep.mubr.msk.f32.mxu0 %vm238_vm1, %v5440_v18  ;;  %v6481_v18 = vld [vmem:[#allocation18_spill] sm:$0xff] }
  0xc5   : > { %4724 = vmatmul.mubr.msk.f32.gmra.mrb[24].mxu1 %vm238_vm1, %v5724_v9  ;;  %4950 = vmatmul.mubr.msk.f32.gmra.mrb[8].mxu0 %vm238_vm1, %v5451_v19  ;;  %v6482_v19 = vld [vmem:[#allocation6_spill] sm:$0xff] }
  0xc6   : > { %4726 = vmatprep.mubr.msk.f32.mxu1 %vm238_vm1, %v5730_v55  ;;  %4952 = vmatprep.mubr.msk.f32.mxu0 %vm238_vm1, %v5454_v20  ;;  %v6483_v20 = vld [vmem:[#allocation19_spill] sm:$0xff] }
  0xc9   : > { %4727 = vmatmul.mubr.msk.f32.gmra.mrb[26].mxu1 %vm238_vm1, %v5744_v53  ;;  %4953 = vmatmul.mubr.msk.f32.gmra.mrb[10].mxu0 %vm238_vm1, %v5465_v21  ;;  %v6484_v21 = vld [vmem:[#allocation7_spill] sm:$0xff] }
  0xca   : > { %4729 = vmatprep.mubr.msk.f32.mxu1 %vm238_vm1, %v5750_v49  ;;  %4955 = vmatprep.mubr.msk.f32.mxu0 %vm238_vm1, %v5468_v22  ;;  %v6486_v22 = vld [vmem:[#allocation8_spill] sm:$0xff] }
  0xcd   : > { %4730 = vmatmul.mubr.msk.f32.gmra.mrb[28].mxu1 %vm238_vm1, %v5764_v45  ;;  %4956 = vmatmul.mubr.msk.f32.gmra.mrb[12].mxu0 %vm238_vm1, %v5479_v23  ;;  %v6487_v23 = vld [vmem:[#allocation21_spill] sm:$0xff] }
  0xce   : > { %4732 = vmatprep.mubr.msk.f32.mxu1 %vm238_vm1, %v5770_v41  ;;  %4958 = vmatprep.mubr.msk.f32.mxu0 %vm238_vm1, %v5496_v26 }
  0xd1   : > { %4733 = vmatmul.mubr.msk.f32.gmra.mrb[30].mxu1 %vm238_vm1, %v6473_v8  ;;  %4959 = vmatmul.mubr.msk.f32.gmra.mrb[14].mxu0 %vm238_vm1, %v6474_v11  ;;  %v6500_v8 = vld [vmem:[#allocation30_spill] sm:$0xff] }
  0xd2   : > { %4737 = vmatprep.mubr.msk.f32.mxu1 %vm238_vm1, %v6475_v12  ;;  %4961 = vmatprep.mubr.msk.f32.mxu0 %vm238_vm1, %v6476_v13  ;;  %v6492_v12 = vld [vmem:[#allocation11_spill] sm:$0xff] }
  0xd5   : > { %4738 = vmatmul.mubr.msk.f32.vlgmr.msra.gmra.mrb[0].mxu1 %vm238_vm1, %v6477_v14  ;;  %4962 = vmatmul.mubr.msk.f32.gmra.mrb[16].mxu0 %vm238_vm1, %v6478_v15  ;;  %v6493_v14 = vld [vmem:[#allocation24_spill] sm:$0xff] }
  0xd6   : > { %5036 = vmatpush3.msk.msra.mxu1 %vm335_vm0, %v5344_v1  ;;  %4740 = vmatprep.mubr.msk.f32.mxu1 %vm238_vm1, %v6479_v16  ;;  %v6485_v1 = vld [vmem:[#allocation20_spill] sm:$0xff] }
  0xd7   : > { %4964 = vmatprep.mubr.msk.f32.mxu0 %vm238_vm1, %v6480_v17  ;;  %v6494_v16 = vld [vmem:[#allocation12_spill] sm:$0xff] }
  0xd9   : > { %4741 = vmatmul.mubr.msk.f32.gmra.mrb[2].mxu1 %vm238_vm1, %v6481_v18  ;;  %4965 = vmatmul.mubr.msk.f32.gmra.mrb[18].mxu0 %vm238_vm1, %v6482_v19  ;;  %v6495_v18 = vld [vmem:[#allocation25_spill] sm:$0xff] }
  0xda   : > { %4743 = vmatprep.mubr.msk.f32.mxu1 %vm238_vm1, %v6483_v20  ;;  %4967 = vmatprep.mubr.msk.f32.mxu0 %vm238_vm1, %v6484_v21  ;;  %v6496_v20 = vld [vmem:[#allocation13_spill] sm:$0xff] }
  0xdd   : > { %4744 = vmatmul.mubr.msk.f32.gmra.mrb[4].mxu1 %vm238_vm1, %v6485_v1  ;;  %4968 = vmatmul.mubr.msk.f32.gmra.mrb[20].mxu0 %vm238_vm1, %v6486_v22  ;;  %v6118_v1 = vld [vmem:[%s5366_s25 + $0x181] sm:$0xff] }
  0xde   : > { %4746 = vmatprep.mubr.msk.f32.mxu1 %vm238_vm1, %v6487_v23  ;;  %4970 = vmatprep.mubr.msk.f32.mxu0 %vm238_vm1, %v6488_v37  ;;  %v6497_v23 = vld [vmem:[#allocation26_spill] sm:$0xff] }
  0xe1   : > { %4747 = vmatmul.mubr.msk.f32.gmra.mrb[6].mxu1 %vm238_vm1, %v6489_v3  ;;  %4971 = vmatmul.mubr.msk.f32.gmra.mrb[22].mxu0 %vm238_vm1, %v6490_v33  ;;  %v6498_v3 = vld [vmem:[#allocation14_spill] sm:$0xff] }
  0xe2   : > { %4749 = vmatprep.mubr.msk.f32.mxu1 %vm238_vm1, %v6491_v61  ;;  %4973 = vmatprep.mubr.msk.f32.mxu0 %vm238_vm1, %v6492_v12  ;;  %v6499_v61 = vld [vmem:[#allocation28_spill] sm:$0xff] }
  0xe5   : > { %4750 = vmatmul.mubr.msk.f32.gmra.mrb[8].mxu1 %vm238_vm1, %v6493_v14  ;;  %4974 = vmatmul.mubr.msk.f32.gmra.mrb[24].mxu0 %vm238_vm1, %v6494_v16  ;;  %v6129_v14 = vld [vmem:[%s5366_s25 + $0x189] sm:$0xff] }
  0xe6   : > { %4752 = vmatprep.mubr.msk.f32.mxu1 %vm238_vm1, %v6495_v18  ;;  %4976 = vmatprep.mubr.msk.f32.mxu0 %vm238_vm1, %v6496_v20  ;;  %v4182_v18 = vld [vmem:[%s5366_s25 + $0x199] sm:$0xff] }
  0xe9   : > { %4753 = vmatmul.mubr.msk.f32.gmra.mrb[10].mxu1 %vm238_vm1, %v6497_v23  ;;  %4977 = vmatmul.mubr.msk.f32.gmra.mrb[26].mxu0 %vm238_vm1, %v6498_v3  ;;  %v4183_v23 = vld [vmem:[%s5366_s25 + $0x1a1] sm:$0xff]  ;;  %v6501_v3 = vld [vmem:[#allocation32_spill] sm:$0xff] }
  0xea   : > { %4755 = vmatprep.mubr.msk.f32.mxu1 %vm238_vm1, %v6499_v61  ;;  %4979 = vmatprep.mubr.msk.f32.mxu0 %vm238_vm1, %v6118_v1 }
  0xed   : > { %4756 = vmatmul.mubr.msk.f32.gmra.mrb[12].mxu1 %vm238_vm1, %v6500_v8  ;;  %4980 = vmatmul.mubr.msk.f32.gmra.mrb[28].mxu0 %vm238_vm1, %v6129_v14 }
  0xee   : > { %4758 = vmatprep.mubr.msk.f32.mxu1 %vm238_vm1, %v5807_v59  ;;  %4982 = vmatprep.mubr.msk.f32.mxu0 %vm238_vm1, %v4182_v18 }
  0xf1   : > { %4759 = vmatmul.mubr.msk.f32.gmra.mrb[14].mxu1 %vm238_vm1, %v6501_v3  ;;  %4983 = vmatmul.mubr.msk.f32.gmra.mrb[30].mxu0 %vm238_vm1, %v4183_v23 }
  0xf2   : > { %4761 = vmatprep.mubr.msk.f32.mxu1 %vm238_vm1, %v5821_v29  ;;  %4987 = vmatprep.mubr.msk.f32.mxu0 %vm238_vm1, %v5499_v27  ;;  %v6503_v27 = vld [vmem:[#allocation29_spill] sm:$0xff] }
  0xf3   : > { %v4248_v29 = vld [vmem:[%s5366_s25 + $0x19a] sm:$0xff] }
  0xf5   : > { %4762 = vmatmul.mubr.msk.f32.gmra.mrb[16].mxu1 %vm238_vm1, %v5837_v31  ;;  %4988 = vmatmul.mubr.msk.f32.vlgmr.msra.gmra.mrb[0].mxu0 %vm238_vm1, %v5517_v30  ;;  %v6504_v30 = vld [vmem:[#allocation14_spill] sm:$0xff]  ;;  %v6505_v31 = vld [vmem:[#allocation31_spill] sm:$0xff] }
  0xf6   : > { %4764 = vmatprep.mubr.msk.f32.mxu1 %vm238_vm1, %v5842_v0  ;;  %4990 = vmatprep.mubr.msk.f32.mxu0 %vm238_vm1, %v5525_v32  ;;  %v4249_v32 = vld [vmem:[%s5366_s25 + $0x1a2] sm:$0xff] }
  0xf9   : > { %4765 = vmatmul.mubr.msk.f32.gmra.mrb[18].mxu1 %vm238_vm1, %v5855_v28  ;;  %4991 = vmatmul.mubr.msk.f32.gmra.mrb[2].mxu0 %vm238_vm1, %v5541_v34 }
  0xfa   : > { %4767 = vmatprep.mubr.msk.f32.mxu1 %vm238_vm1, %v5858_v5  ;;  %4993 = vmatprep.mubr.msk.f32.mxu0 %vm238_vm1, %v5547_v36 }
  0xfd   : > { %4768 = vmatmul.mubr.msk.f32.gmra.mrb[20].mxu1 %vm238_vm1, %v5869_v7  ;;  %4994 = vmatmul.mubr.msk.f32.gmra.mrb[4].mxu0 %vm238_vm1, %v5561_v38 }
  0xfe   : > { %4770 = vmatprep.mubr.msk.f32.mxu1 %vm238_vm1, %v5872_v10  ;;  %4996 = vmatprep.mubr.msk.f32.mxu0 %vm238_vm1, %v5567_v40 }
 0x101   : > { %4771 = vmatmul.mubr.msk.f32.gmra.mrb[22].mxu1 %vm238_vm1, %v5883_v57  ;;  %4997 = vmatmul.mubr.msk.f32.gmra.mrb[6].mxu0 %vm238_vm1, %v5581_v42 }
 0x102   : > { %4773 = vmatprep.mubr.msk.f32.mxu1 %vm238_vm1, %v5886_v51  ;;  %4999 = vmatprep.mubr.msk.f32.mxu0 %vm238_vm1, %v5587_v44 }
 0x105   : > { %4774 = vmatmul.mubr.msk.f32.gmra.mrb[24].mxu1 %vm238_vm1, %v5897_v47  ;;  %5000 = vmatmul.mubr.msk.f32.gmra.mrb[8].mxu0 %vm238_vm1, %v5601_v46 }
 0x106   : > { %4776 = vmatprep.mubr.msk.f32.mxu1 %vm238_vm1, %v5900_v43  ;;  %5002 = vmatprep.mubr.msk.f32.mxu0 %vm238_vm1, %v5607_v48 }
 0x109   : > { %4777 = vmatmul.mubr.msk.f32.gmra.mrb[26].mxu1 %vm238_vm1, %v5911_v39  ;;  %5003 = vmatmul.mubr.msk.f32.gmra.mrb[10].mxu0 %vm238_vm1, %v5621_v50 }
 0x10a   : > { %4779 = vmatprep.mubr.msk.f32.mxu1 %vm238_vm1, %v5914_v35  ;;  %5005 = vmatprep.mubr.msk.f32.mxu0 %vm238_vm1, %v5627_v52  ;;  %v6282_v52 = vld [vmem:[%s6395_s2] ss:$0 sm:$0xff] }
 0x10d   : > { %4780 = vmatmul.mubr.msk.f32.gmra.mrb[28].mxu1 %vm238_vm1, %v5925_v62  ;;  %5006 = vmatmul.mubr.msk.f32.gmra.mrb[12].mxu0 %vm238_vm1, %v5641_v54 }
 0x10e   : > { %4782 = vmatprep.mubr.msk.f32.mxu1 %vm238_vm1, %v5980_v24  ;;  %5008 = vmatprep.mubr.msk.f32.mxu0 %vm238_vm1, %v5645_v56 }
 0x111   : > { %4783 = vmatmul.mubr.msk.f32.gmra.mrb[30].mxu1 %vm238_vm1, %v5991_v25  ;;  %5009 = vmatmul.mubr.msk.f32.gmra.mrb[14].mxu0 %vm238_vm1, %v5656_v58 }
 0x112   : > { %4811 = vmatprep.mubr.msk.f32.mxu1 %vm238_vm1, %v5496_v26  ;;  %5011 = vmatprep.mubr.msk.f32.mxu0 %vm238_vm1, %v5662_v60  ;;  %v6502_v26 = vld [vmem:[#allocation27_spill] sm:$0xff] }
 0x115   : > { %4812 = vmatmul.mubr.msk.f32.vlgmr.msra.gmra.mrb[16].mxu1 %vm238_vm1, %v6474_v11  ;;  %5012 = vmatmul.mubr.msk.f32.gmra.mrb[16].mxu0 %vm238_vm1, %v5680_v63 }
 0x116   : > { %4814 = vmatprep.mubr.msk.f32.mxu1 %vm238_vm1, %v6476_v13  ;;  %5014 = vmatprep.mubr.msk.f32.mxu0 %vm238_vm1, %v5688_v2 }
 0x119   : > { %4815 = vmatmul.mubr.msk.f32.gmra.mrb[18].mxu1 %vm238_vm1, %v6478_v15  ;;  %5015 = vmatmul.mubr.msk.f32.gmra.mrb[18].mxu0 %vm238_vm1, %v5704_v4 }
 0x11a   : > { %4817 = vmatprep.mubr.msk.f32.mxu1 %vm238_vm1, %v6480_v17  ;;  %5017 = vmatprep.mubr.msk.f32.mxu0 %vm238_vm1, %v5710_v6 }
 0x11d   : > { %4818 = vmatmul.mubr.msk.f32.gmra.mrb[20].mxu1 %vm238_vm1, %v6482_v19  ;;  %5018 = vmatmul.mubr.msk.f32.gmra.mrb[20].mxu0 %vm238_vm1, %v5724_v9 }
 0x11e   : > { %4820 = vmatprep.mubr.msk.f32.mxu1 %vm238_vm1, %v6484_v21  ;;  %5020 = vmatprep.mubr.msk.f32.mxu0 %vm238_vm1, %v5730_v55 }
 0x121   : > { %4821 = vmatmul.mubr.msk.f32.gmra.mrb[22].mxu1 %vm238_vm1, %v6486_v22  ;;  %5021 = vmatmul.mubr.msk.f32.gmra.mrb[22].mxu0 %vm238_vm1, %v5744_v53 }
 0x122   : > { %4823 = vmatprep.mubr.msk.f32.mxu1 %vm238_vm1, %v6488_v37  ;;  %5023 = vmatprep.mubr.msk.f32.mxu0 %vm238_vm1, %v5750_v49 }
 0x125   : > { %4824 = vmatmul.mubr.msk.f32.gmra.mrb[24].mxu1 %vm238_vm1, %v6490_v33  ;;  %5024 = vmatmul.mubr.msk.f32.gmra.mrb[24].mxu0 %vm238_vm1, %v5764_v45 }
 0x126   : > { %4826 = vmatprep.mubr.msk.f32.mxu1 %vm238_vm1, %v6492_v12  ;;  %5026 = vmatprep.mubr.msk.f32.mxu0 %vm238_vm1, %v5770_v41 }
 0x129   : > { %4827 = vmatmul.mubr.msk.f32.gmra.mrb[26].mxu1 %vm238_vm1, %v6494_v16  ;;  %5027 = vmatmul.mubr.msk.f32.gmra.mrb[26].mxu0 %vm238_vm1, %v6502_v26 }
 0x12a   : > { %4829 = vmatprep.mubr.msk.f32.mxu1 %vm238_vm1, %v6496_v20  ;;  %5029 = vmatprep.mubr.msk.f32.mxu0 %vm238_vm1, %v6503_v27 }
 0x12d   : > { %4830 = vmatmul.mubr.msk.f32.gmra.mrb[28].mxu1 %vm238_vm1, %v6504_v30  ;;  %5030 = vmatmul.mubr.msk.f32.gmra.mrb[28].mxu0 %vm238_vm1, %v6505_v31 }
 0x12e   : > { %4832 = vmatprep.mubr.msk.f32.mxu1 %vm238_vm1, %v6118_v1  ;;  %5032 = vmatprep.mubr.msk.f32.mxu0 %vm238_vm1, %v4248_v29 }
 0x131   : > { %4833 = vmatmul.mubr.msk.f32.gmra.mrb[30].mxu1 %vm238_vm1, %v6129_v14  ;;  %5033 = vmatmul.mubr.msk.f32.gmra.mrb[30].mxu0 %vm238_vm1, %v4249_v32 }
 0x1a8   : > { %v4739_v34 = vpop.f32.mrb[0].mxu1 }
 0x1a9   : > { %v1478_v35 = vpop.f32.mrb[1].mxu1 }
 0x1ac   : > { %v4742_v36 = vpop.f32.mrb[2].mxu1 }
 0x1ad   : > { %v1488_v38 = vpop.f32.mrb[3].mxu1 }
 0x1b0   : > { %v4745_v39 = vpop.f32.mrb[4].mxu1 }
 0x1b1   : > { %v1498_v40 = vpop.f32.mrb[5].mxu1 }
 0x1b4   : > { %v4748_v41 = vpop.f32.mrb[6].mxu1 }
 0x1b5   : > { %v1508_v42 = vpop.f32.mrb[7].mxu1 }
 0x1b8   : > { %v4751_v43 = vpop.f32.mrb[8].mxu1 }
 0x1b9   : > { %v1518_v44 = vpop.f32.mrb[9].mxu1 }
 0x1bc   : > { %v4754_v45 = vpop.f32.mrb[10].mxu1 }
 0x1bd   : > { %v1528_v46 = vpop.f32.mrb[11].mxu1 }
 0x1c0   : > { %v6271_v47 = vpop.f32.mrb[12].mxu1 }
 0x1c1   : > { %v6273_v48 = vpop.f32.mrb[13].mxu1 }
 0x1c4   : > { %v6275_v49 = vpop.f32.mrb[14].mxu1 }
 0x1c5   : > { %v6277_v50 = vpop.f32.mrb[15].mxu1 }
 0x1c8   : > { %v4989_v51 = vpop.f32.mrb[0].mxu0 }
 0x1c9   : > { %v5037_v53 = vadd.f32 %v4989_v51, %v4739_v34  ;;  %v3429_v54 = vpop.f32.mrb[1].mxu0 }
 0x1ca   : > { %v5038_v56 = vadd.f32 %v3429_v54, %v1478_v35 }
 0x1cb   : > { %v3628_v58 = vadd.f32 %v5037_v53, %v6282_v52 }
 0x1cc   : > { %v3627_v59 = vadd.f32 %v5038_v56, %v6282_v52  ;;  %v4992_v60 = vpop.f32.mrb[2].mxu0 }
 0x1cd   : > { %v3660_v62 = vmax.f32 %v3628_v58, 0.0  ;;  %v5039_v63 = vadd.f32 %v4992_v60, %v4742_v36  ;;  %v3439_v0 = vpop.f32.mrb[3].mxu0 }
 0x1ce   : > { %v3659_v2 = vmax.f32 %v3627_v59, 0.0  ;;  %v5040_v4 = vadd.f32 %v3439_v0, %v1488_v38 }
 0x1cf   : > { %3693 = vst.msk [vmem:[%s6289_s16 + $0x8] sm:$0xff] %vm3691_vm2, %v3660_v62  ;;  %v3630_v5 = vadd.f32 %v5039_v63, %v6282_v52 }
 0x1d0   : > { %3692 = vst.msk [vmem:[%s6289_s16] sm:$0xff] %vm3691_vm2, %v3659_v2  ;;  %v3629_v6 = vadd.f32 %v5040_v4, %v6282_v52  ;;  %v4995_v7 = vpop.f32.mrb[4].mxu0 }
 0x1d1   : > { %v3662_v9 = vmax.f32 %v3630_v5, 0.0  ;;  %v5041_v10 = vadd.f32 %v4995_v7, %v4745_v39  ;;  %v3449_v55 = vpop.f32.mrb[5].mxu0 }
 0x1d2   : > { %v3661_v57 = vmax.f32 %v3629_v6, 0.0  ;;  %v5042_v28 = vadd.f32 %v3449_v55, %v1498_v40 }
 0x1d3   : > { %3695 = vst.msk [vmem:[%s6289_s16 + $0x18] sm:$0xff] %vm3691_vm2, %v3662_v9  ;;  %v3632_v24 = vadd.f32 %v5041_v10, %v6282_v52 }
 0x1d4   : > { %3694 = vst.msk [vmem:[%s6289_s16 + $0x10] sm:$0xff] %vm3691_vm2, %v3661_v57  ;;  %v3631_v25 = vadd.f32 %v5042_v28, %v6282_v52  ;;  %v4998_v8 = vpop.f32.mrb[6].mxu0 }
 0x1d5   : > { %v3664_v11 = vmax.f32 %v3632_v24, 0.0  ;;  %v5043_v13 = vadd.f32 %v4998_v8, %v4748_v41  ;;  %v3459_v15 = vpop.f32.mrb[7].mxu0 }
 0x1d6   : > { %v3663_v17 = vmax.f32 %v3631_v25, 0.0  ;;  %v5044_v19 = vadd.f32 %v3459_v15, %v1508_v42 }
 0x1d7   : > { %3697 = vst.msk [vmem:[%s6289_s16 + $0x28] sm:$0xff] %vm3691_vm2, %v3664_v11  ;;  %v3634_v21 = vadd.f32 %v5043_v13, %v6282_v52 }
 0x1d8   : > { %3696 = vst.msk [vmem:[%s6289_s16 + $0x20] sm:$0xff] %vm3691_vm2, %v3663_v17  ;;  %v3633_v22 = vadd.f32 %v5044_v19, %v6282_v52  ;;  %v5001_v37 = vpop.f32.mrb[8].mxu0 }
 0x1d9   : > { %v3666_v33 = vmax.f32 %v3634_v21, 0.0  ;;  %v5045_v12 = vadd.f32 %v5001_v37, %v4751_v43  ;;  %v3469_v16 = vpop.f32.mrb[9].mxu0 }
 0x1da   : > { %v3665_v20 = vmax.f32 %v3633_v22, 0.0  ;;  %v5046_v1 = vadd.f32 %v3469_v16, %v1518_v44 }
 0x1db   : > { %3699 = vst.msk [vmem:[%s6289_s16 + $0x38] sm:$0xff] %vm3691_vm2, %v3666_v33  ;;  %v3636_v3 = vadd.f32 %v5045_v12, %v6282_v52 }
 0x1dc   : > { %3698 = vst.msk [vmem:[%s6289_s16 + $0x30] sm:$0xff] %vm3691_vm2, %v3665_v20  ;;  %v3635_v61 = vadd.f32 %v5046_v1, %v6282_v52  ;;  %v5004_v14 = vpop.f32.mrb[10].mxu0 }
 0x1dd   : > { %v3668_v18 = vmax.f32 %v3636_v3, 0.0  ;;  %v5047_v23 = vadd.f32 %v5004_v14, %v4754_v45  ;;  %v3479_v26 = vpop.f32.mrb[11].mxu0 }
 0x1de   : > { %v3667_v27 = vmax.f32 %v3635_v61, 0.0  ;;  %v5048_v29 = vadd.f32 %v3479_v26, %v1528_v46 }
 0x1df   : > { %3701 = vst.msk [vmem:[%s6289_s16 + $0x48] sm:$0xff] %vm3691_vm2, %v3668_v18  ;;  %v3638_v30 = vadd.f32 %v5047_v23, %v6282_v52 }
 0x1e0   : > { %3700 = vst.msk [vmem:[%s6289_s16 + $0x40] sm:$0xff] %vm3691_vm2, %v3667_v27  ;;  %v3637_v31 = vadd.f32 %v5048_v29, %v6282_v52  ;;  %v5007_v32 = vpop.f32.mrb[12].mxu0 }
 0x1e1   : > { %v3670_v34 = vmax.f32 %v3638_v30, 0.0  ;;  %v5049_v35 = vadd.f32 %v5007_v32, %v6271_v47  ;;  %v3489_v36 = vpop.f32.mrb[13].mxu0 }
 0x1e2   : > { %v3669_v38 = vmax.f32 %v3637_v31, 0.0  ;;  %v5050_v39 = vadd.f32 %v3489_v36, %v6273_v48 }
 0x1e3   : > { %3703 = vst.msk [vmem:[%s6289_s16 + $0x58] sm:$0xff] %vm3691_vm2, %v3670_v34  ;;  %v3640_v40 = vadd.f32 %v5049_v35, %v6282_v52 }
 0x1e4   : > { %3702 = vst.msk [vmem:[%s6289_s16 + $0x50] sm:$0xff] %vm3691_vm2, %v3669_v38  ;;  %v3639_v41 = vadd.f32 %v5050_v39, %v6282_v52  ;;  %v5010_v42 = vpop.f32.mrb[14].mxu0 }
 0x1e5   : > { %v3672_v43 = vmax.f32 %v3640_v40, 0.0  ;;  %v5051_v44 = vadd.f32 %v5010_v42, %v6275_v49  ;;  %v3499_v45 = vpop.f32.mrb[15].mxu0 }
 0x1e6   : > { %v3671_v46 = vmax.f32 %v3639_v41, 0.0  ;;  %v5052_v47 = vadd.f32 %v3499_v45, %v6277_v50 }
 0x1e7   : > { %3705 = vst.msk [vmem:[%s6289_s16 + $0x68] sm:$0xff] %vm3691_vm2, %v3672_v43  ;;  %v3642_v48 = vadd.f32 %v5051_v44, %v6282_v52 }
 0x1e8   : > { %3704 = vst.msk [vmem:[%s6289_s16 + $0x60] sm:$0xff] %vm3691_vm2, %v3671_v46  ;;  %v3641_v51 = vadd.f32 %v5052_v47, %v6282_v52  ;;  %v4813_v53 = vpop.f32.mrb[16].mxu1  ;;  %v5013_v54 = vpop.f32.mrb[16].mxu0 }
 0x1e9   : > { %v3674_v56 = vmax.f32 %v3642_v48, 0.0  ;;  %v5053_v58 = vadd.f32 %v5013_v54, %v4813_v53  ;;  %v1948_v59 = vpop.f32.mrb[17].mxu1  ;;  %v3509_v49 = vpop.f32.mrb[17].mxu0 }
 0x1ea   : > { %v3673_v60 = vmax.f32 %v3641_v51, 0.0  ;;  %v5054_v62 = vadd.f32 %v3509_v49, %v1948_v59 }
 0x1eb   : > { %3707 = vst.msk [vmem:[%s6289_s16 + $0x78] sm:$0xff] %vm3691_vm2, %v3674_v56  ;;  %v3644_v50 = vadd.f32 %v5053_v58, %v6282_v52 }
 0x1ec   : > { %3706 = vst.msk [vmem:[%s6289_s16 + $0x70] sm:$0xff] %vm3691_vm2, %v3673_v60  ;;  %v3643_v63 = vadd.f32 %v5054_v62, %v6282_v52  ;;  %v4816_v0 = vpop.f32.mrb[18].mxu1  ;;  %v5016_v2 = vpop.f32.mrb[18].mxu0 }
 0x1ed   : > { %v3676_v4 = vmax.f32 %v3644_v50, 0.0  ;;  %v5055_v5 = vadd.f32 %v5016_v2, %v4816_v0  ;;  %v1958_v6 = vpop.f32.mrb[19].mxu1  ;;  %v3519_v7 = vpop.f32.mrb[19].mxu0 }
 0x1ee   : > { %v3675_v9 = vmax.f32 %v3643_v63, 0.0  ;;  %v5056_v10 = vadd.f32 %v3519_v7, %v1958_v6 }
 0x1ef   : > { %3709 = vst.msk [vmem:[%s6289_s16 + $0x88] sm:$0xff] %vm3691_vm2, %v3676_v4  ;;  %v3646_v55 = vadd.f32 %v5055_v5, %v6282_v52 }
 0x1f0   : > { %3708 = vst.msk [vmem:[%s6289_s16 + $0x80] sm:$0xff] %vm3691_vm2, %v3675_v9  ;;  %v3645_v57 = vadd.f32 %v5056_v10, %v6282_v52  ;;  %v4819_v28 = vpop.f32.mrb[20].mxu1  ;;  %v5019_v24 = vpop.f32.mrb[20].mxu0 }
 0x1f1   : > { %v3678_v25 = vmax.f32 %v3646_v55, 0.0  ;;  %v5057_v8 = vadd.f32 %v5019_v24, %v4819_v28  ;;  %v1968_v11 = vpop.f32.mrb[21].mxu1  ;;  %v3529_v13 = vpop.f32.mrb[21].mxu0 }
 0x1f2   : > { %v3677_v15 = vmax.f32 %v3645_v57, 0.0  ;;  %v5058_v17 = vadd.f32 %v3529_v13, %v1968_v11 }
 0x1f3   : > { %3711 = vst.msk [vmem:[%s6289_s16 + $0x98] sm:$0xff] %vm3691_vm2, %v3678_v25  ;;  %v3648_v19 = vadd.f32 %v5057_v8, %v6282_v52 }
 0x1f4   : > { %3710 = vst.msk [vmem:[%s6289_s16 + $0x90] sm:$0xff] %vm3691_vm2, %v3677_v15  ;;  %v3647_v21 = vadd.f32 %v5058_v17, %v6282_v52  ;;  %v4822_v22 = vpop.f32.mrb[22].mxu1  ;;  %v5022_v37 = vpop.f32.mrb[22].mxu0 }
 0x1f5   : > { %v3680_v33 = vmax.f32 %v3648_v19, 0.0  ;;  %v5059_v12 = vadd.f32 %v5022_v37, %v4822_v22  ;;  %v1978_v16 = vpop.f32.mrb[23].mxu1  ;;  %v3539_v20 = vpop.f32.mrb[23].mxu0 }
 0x1f6   : > { %v3679_v1 = vmax.f32 %v3647_v21, 0.0  ;;  %v5060_v3 = vadd.f32 %v3539_v20, %v1978_v16 }
 0x1f7   : > { %3713 = vst.msk [vmem:[%s6289_s16 + $0xa8] sm:$0xff] %vm3691_vm2, %v3680_v33  ;;  %v3650_v61 = vadd.f32 %v5059_v12, %v6282_v52 }
 0x1f8   : > { %3712 = vst.msk [vmem:[%s6289_s16 + $0xa0] sm:$0xff] %vm3691_vm2, %v3679_v1  ;;  %v3649_v14 = vadd.f32 %v5060_v3, %v6282_v52  ;;  %v4825_v18 = vpop.f32.mrb[24].mxu1  ;;  %v5025_v23 = vpop.f32.mrb[24].mxu0 }
 0x1f9   : > { %v3682_v26 = vmax.f32 %v3650_v61, 0.0  ;;  %v5061_v27 = vadd.f32 %v5025_v23, %v4825_v18  ;;  %v1988_v29 = vpop.f32.mrb[25].mxu1  ;;  %v3549_v30 = vpop.f32.mrb[25].mxu0 }
 0x1fa   : > { %v3681_v31 = vmax.f32 %v3649_v14, 0.0  ;;  %v5062_v32 = vadd.f32 %v3549_v30, %v1988_v29 }
 0x1fb   : > { %3715 = vst.msk [vmem:[%s6289_s16 + $0xb8] sm:$0xff] %vm3691_vm2, %v3682_v26  ;;  %v3652_v34 = vadd.f32 %v5061_v27, %v6282_v52 }
 0x1fc   : > { %3714 = vst.msk [vmem:[%s6289_s16 + $0xb0] sm:$0xff] %vm3691_vm2, %v3681_v31  ;;  %v3651_v35 = vadd.f32 %v5062_v32, %v6282_v52  ;;  %v4828_v36 = vpop.f32.mrb[26].mxu1  ;;  %v5028_v38 = vpop.f32.mrb[26].mxu0 }
 0x1fd   : > { %v3684_v39 = vmax.f32 %v3652_v34, 0.0  ;;  %v5063_v40 = vadd.f32 %v5028_v38, %v4828_v36  ;;  %v1998_v41 = vpop.f32.mrb[27].mxu1  ;;  %v3559_v42 = vpop.f32.mrb[27].mxu0 }
 0x1fe   : > { %v3683_v43 = vmax.f32 %v3651_v35, 0.0  ;;  %v5064_v44 = vadd.f32 %v3559_v42, %v1998_v41 }
 0x1ff   : > { %3717 = vst.msk [vmem:[%s6289_s16 + $0xc8] sm:$0xff] %vm3691_vm2, %v3684_v39  ;;  %v3654_v45 = vadd.f32 %v5063_v40, %v6282_v52 }
 0x200   : > { %3716 = vst.msk [vmem:[%s6289_s16 + $0xc0] sm:$0xff] %vm3691_vm2, %v3683_v43  ;;  %v3653_v46 = vadd.f32 %v5064_v44, %v6282_v52  ;;  %v4831_v47 = vpop.f32.mrb[28].mxu1  ;;  %v5031_v48 = vpop.f32.mrb[28].mxu0 }
 0x201   : > { %v3686_v51 = vmax.f32 %v3654_v45, 0.0  ;;  %v5065_v53 = vadd.f32 %v5031_v48, %v4831_v47  ;;  %v2008_v54 = vpop.f32.mrb[29].mxu1  ;;  %v3569_v56 = vpop.f32.mrb[29].mxu0 }
 0x202   : > { %v3685_v58 = vmax.f32 %v3653_v46, 0.0  ;;  %v5066_v59 = vadd.f32 %v3569_v56, %v2008_v54 }
 0x203   : > { %3719 = vst.msk [vmem:[%s6289_s16 + $0xd8] sm:$0xff] %vm3691_vm2, %v3686_v51  ;;  %v3656_v49 = vadd.f32 %v5065_v53, %v6282_v52 }
 0x204   : > { %3718 = vst.msk [vmem:[%s6289_s16 + $0xd0] sm:$0xff] %vm3691_vm2, %v3685_v58  ;;  %v3655_v60 = vadd.f32 %v5066_v59, %v6282_v52  ;;  %v4834_v62 = vpop.f32.mrb[30].mxu1  ;;  %v5034_v50 = vpop.f32.mrb[30].mxu0 }
 0x205   : > { %v3688_v63 = vmax.f32 %v3656_v49, 0.0  ;;  %v5067_v0 = vadd.f32 %v5034_v50, %v4834_v62  ;;  %v2018_v2 = vpop.f32.mrb[31].mxu1  ;;  %v3579_v4 = vpop.f32.mrb[31].mxu0 }
 0x206   : > { %v3687_v5 = vmax.f32 %v3655_v60, 0.0  ;;  %v5068_v6 = vadd.f32 %v3579_v4, %v2018_v2 }
 0x207   : > { %3721 = vst.msk [vmem:[%s6289_s16 + $0xe8] sm:$0xff] %vm3691_vm2, %v3688_v63  ;;  %v3658_v7 = vadd.f32 %v5067_v0, %v6282_v52 }
 0x208   : > { %3720 = vst.msk [vmem:[%s6289_s16 + $0xe0] sm:$0xff] %vm3691_vm2, %v3687_v5  ;;  %v3657_v9 = vadd.f32 %v5068_v6, %v6282_v52 }
 0x209   : > { %v3690_v10 = vmax.f32 %v3658_v7, 0.0 }
 0x20a   : > { %v3689_v55 = vmax.f32 %v3657_v9, 0.0 }
 0x20b   : > { %3723 = vst.msk [vmem:[%s6289_s16 + $0xf8] sm:$0xff] %vm3691_vm2, %v3690_v10 }
 0x20c   : > { %3722 = vst.msk [vmem:[%s6289_s16 + $0xf0] sm:$0xff] %vm3691_vm2, %v3689_v55 }
 0x20d PF: > { %s13_s12 = sadd.s32 1, %s5308_s12  }
 0x20e   : > { %p10_p4 = scmp.ge.s32.totalorder %s13_s12, 4  }
 0x210   :  { %12 = sbr.rel (!%p10_p4) target bundleno = 1 (0x1), region = 72 }

// kernel: main_model_forward.10
= control target key start
LH: loop header
LB: loop body
LE: loop exit
PB: predicated region body
PF: predicated region fallthrough
CT: control target
= control target key end

     0   :  { %vm151_vm0 = vcmask 517120   ;;  %vm148_vm1 = vcmask 523264   ;;  %s283_s1 = inlined_call_operand.vmem [shape: bf16[128,64], index: 1, kind: input, shape index: {}]   ;;  %s284_s0 = inlined_call_operand.vmem [shape: f32[18,128], index: 0, kind: input, shape index: {}]   ;;  %s285_s2 = inlined_call_operand.vmem [shape: f32[1,64], index: 2, kind: input, shape index: {}]   ;;  %s286_s3 = inlined_call_operand.vmem [shape: f32[18,64], index: 3, kind: input, shape index: {}]   ;;  %s287_s4 = inlined_call_operand.vmem [shape: f32[18,64], index: 4, kind: output, shape index: {}]  }
   0x1   :  { %v196_v0 = vld [vmem:[%s283_s1] sm:$0xff]   ;;  %v197_v1 = vld [vmem:[%s283_s1 + $0x8] sm:$0xff]   ;;  %v198_v2 = vld [vmem:[%s283_s1 + $0x10] sm:$0xff]  }
   0x2   :  { %176 = vmatprep.subr.bf16.mxu0 %v196_v0  ;;  %v199_v3 = vld [vmem:[%s283_s1 + $0x18] sm:$0xff]   ;;  %v18_v4 = vld [vmem:[%s284_s0] sm:$0xff]  ;;  %v19_v5 = vld [vmem:[%s284_s0 + $0x8] sm:$0xff] }
   0x3   :  { %177 = vmatpush3.bf16.msra.mxu0 %v196_v0  ;;  %v21_v6 = vpack.c.bf16 %v19_v5, %v18_v4  ;;  %v200_v7 = vld [vmem:[%s283_s1 + $0x20] sm:$0xff]   ;;  %v201_v8 = vld [vmem:[%s283_s1 + $0x28] sm:$0xff]   ;;  %v202_v9 = vld [vmem:[%s283_s1 + $0x30] sm:$0xff]  }
   0x4   :  { %178 = vmatprep.subr.bf16.mxu0 %v197_v1  ;;  %v203_v10 = vld [vmem:[%s283_s1 + $0x38] sm:$0xff]   ;;  %v20_v11 = vld [vmem:[%s284_s0 + $0x10] sm:$0x3]  ;;  %v157_v13 = vld [vmem:[%s285_s2] ss:$0 sm:$0xff] }
   0x5   :  { %192 = vmatprep.mubr.bf16.mxu0 %v21_v6  ;;  %v22_v12 = vpack.c.bf16 %v20_v11, %v20_v11  ;;  %v144_v15 = vld [vmem:[%s286_s3 + $0x10] sm:$0x3]  ;;  %v142_v18 = vld [vmem:[%s286_s3] sm:$0xff]  ;;  %v143_v23 = vld [vmem:[%s286_s3 + $0x8] sm:$0xff] }
   0x7   :  { %179 = vmatpush3.bf16.msra.mxu0 %v197_v1 }
   0x8   :  { %180 = vmatprep.subr.bf16.mxu0 %v198_v2 }
   0xb   :  { %181 = vmatpush3.bf16.msra.mxu0 %v198_v2 }
   0xc   :  { %182 = vmatprep.subr.bf16.mxu0 %v199_v3 }
   0xf   :  { %183 = vmatpush3.bf16.msra.mxu0 %v199_v3 }
  0x10   :  { %184 = vmatprep.subr.bf16.mxu0 %v200_v7 }
  0x13   :  { %185 = vmatpush3.bf16.msra.mxu0 %v200_v7 }
  0x14   :  { %186 = vmatprep.subr.bf16.mxu0 %v201_v8 }
  0x17   :  { %187 = vmatpush3.bf16.msra.mxu0 %v201_v8 }
  0x18   :  { %188 = vmatprep.subr.bf16.mxu0 %v202_v9 }
  0x1b   :  { %189 = vmatpush3.bf16.msra.mxu0 %v202_v9 }
  0x1c   :  { %190 = vmatprep.subr.bf16.mxu0 %v203_v10 }
  0x1f   :  { %191 = vmatpush3.bf16.msra.mxu0 %v203_v10 }
  0x22   :  { %193 = vmatmul.mubr.bf16.vlgmr.msra.gmra.mrb[0].mxu0 %v22_v12 }
  0xf5   :  { %v194_v14 = vpop.f32.mrb[0].mxu0 }
  0xf6   :  { %v137_v16 = vadd.f32 %v194_v14, %v157_v13  ;;  %v128_v17 = vpop.f32.mrb[1].mxu0 }
  0xf7   :  { %v129_v19 = vadd.f32 %v157_v13, %v128_v17  ;;  %v195_v20 = vpop.f32.mrb[2].mxu0 }
  0xf8   :  { %v147_v21 = vadd.f32 %v144_v15, %v137_v16  ;;  %v131_v22 = vpop.f32.mrb[3].mxu0 }
  0xf9   :  { %v145_v24 = vadd.f32 %v142_v18, %v129_v19  ;;  %v132_v25 = vadd.f32 %v157_v13, %v131_v22 }
  0xfa   :  { %152 = vst.msk [vmem:[%s287_s4 + $0x10] sm:$0x3] %vm151_vm0, %v147_v21 }
  0xfb   :  { %149 = vst.msk [vmem:[%s287_s4] sm:$0xff] %vm148_vm1, %v145_v24  ;;  %v146_v26 = vadd.f32 %v143_v23, %v132_v25 }
  0xfd   :  { %150 = vst.msk [vmem:[%s287_s4 + $0x8] sm:$0xff] %vm148_vm1, %v146_v26 }

// kernel: main_model_forward.13
= control target key start
LH: loop header
LB: loop body
LE: loop exit
PB: predicated region body
PF: predicated region fallthrough
CT: control target
= control target key end

     0   :  { %s1106_s24 = smov 0   ;;  %s1288_s0 = inlined_call_operand.vmem [shape: f32[2,13,64], index: 0, kind: input, shape index: {}]   ;;  %s1289_s1 = inlined_call_operand.vmem [shape: f32[6,64], index: 1, kind: input, shape index: {}]   ;;  %s1290_s2 = inlined_call_operand.vmem [shape: bf16[2,64,64], index: 2, kind: input, shape index: {}]   ;;  %s1291_s3 = inlined_call_operand.vmem [shape: bf16[64,256], index: 3, kind: input, shape index: {}]   ;;  %s1292_s4 = inlined_call_operand.vmem [shape: f32[1,256], index: 4, kind: input, shape index: {}]   ;;  %s1293_s5 = inlined_call_operand.vmem [shape: bf16[256,64], index: 5, kind: input, shape index: {}]   ;;  %s1294_s6 = inlined_call_operand.vmem [shape: f32[1,64], index: 6, kind: input, shape index: {}]   ;;  %s1295_s7 = inlined_call_operand.vmem [shape: f32[2,9,64], index: 7, kind: output, shape index: {}]  }
   0x1 LB: > { %s877_s25 = sadd.s32 4294967295, %s1061_s24   ;;  %p881_p0 = scmp.ge.s32.totalorder %s1061_s24, 1  ;;  %s1061_s24 = sphi %s1106_s24, %s17_s24  }
   0x2   : > { %p237_p1 = scmp.lt.s32.totalorder %s1061_s24, 3 }
   0x4   : > { %p238_p2 = pnand %p881_p0, %p237_p1 }
   0x5   : > { %v1011_v0 = vld [vmem:[%s1290_s2 + $0x20] sm:$0xff] (!%p238_p2)   ;;  %v1063_v1 = vmov (!%p238_p2), 0.0   ;;  %v1012_v2 = vld [vmem:[%s1290_s2 + $0x28] sm:$0xff] (!%p238_p2)   ;;  %vm1064_vm0 = vmmov (!%p238_p2), 0   ;;  %p269_p3 = scmp.lt.s32.totalorder (!%p238_p2), %s877_s25, 1  ;;  %v1013_v5 = vld [vmem:[%s1290_s2 + $0x30] sm:$0xff] (!%p238_p2)  }
   0x6   : > { %241 = sbr.rel (%p238_p2) target bundleno = 727 (0x2d7), region = 48  ;;  %972 = vmatprep.subr.bf16.mxu0 (!%p238_p2), %v1063_v1  ;;  %980 = vmatprep.mubr.msk.bf16.mxu0 (!%p238_p2), %vm1064_vm0, %v1063_v1  ;;  %v889_v3 = vld [vmem:[%s1289_s1 + $0x3] ss:$0 sm:$0xff] (!%p238_p2)  ;;  %v890_v4 = vld [vmem:[%s1289_s1 + $0x4] ss:$0 sm:$0xff] (!%p238_p2)  ;;  %v1014_v16 = vld [vmem:[%s1290_s2 + $0x38] sm:$0xff] (!%p238_p2)  }
   0x7   : > { %973 = vmatpush3.bf16.msra.mxu0 (!%p238_p2), %v1011_v0  ;;  %v891_v6 = vld [vmem:[%s1289_s1 + $0x5] ss:$0 sm:$0xff] (!%p238_p2)  ;;  %v886_v26 = vld [vmem:[%s1289_s1] ss:$0 sm:$0xff] (!%p238_p2)  ;;  %vm383_vm1 = vcmask (!%p238_p2), 523264   ;;  %v1016_v34 = vld [vmem:[%s1290_s2 + $0x8] sm:$0xff] (!%p238_p2)  }
   0x8   : > { %974 = vmatprep.subr.bf16.mxu0 (!%p238_p2), %v1063_v1  ;;  %v1015_v24 = vld [vmem:[%s1290_s2] sm:$0xff] (!%p238_p2)   ;;  %v1022_v31 = vld [vmem:[%s1291_s3 + $0x14] ss:$8 sps:$4 sm:$0xff] (!%p238_p2)   ;;  %v1024_v33 = vld [vmem:[%s1291_s3 + $0x10] ss:$8 sps:$4 sm:$0xff] (!%p238_p2)   ;;  %v1065_v55 = vmov (!%p238_p2), 0  }
   0x9   : > { %v1019_v28 = vld [vmem:[%s1291_s3 + $0x4] ss:$8 sps:$4 sm:$0xff] (!%p238_p2)   ;;  %v1021_v29 = vld [vmem:[%s1291_s3] ss:$8 sps:$4 sm:$0xff] (!%p238_p2)   ;;  %v1017_v44 = vld [vmem:[%s1290_s2 + $0x10] sm:$0xff] (!%p238_p2)   ;;  %592 = vmatprep.mubr.bf16.mxu1 (!%p238_p2), %v1065_v55  ;;  %vm820_vm2 = vcmask (!%p238_p2), 516096  }
   0xa   : > { %v887_v30 = vld [vmem:[%s1289_s1 + $0x1] ss:$0 sm:$0xff] (!%p238_p2)  ;;  %560 = vmatprep.subr.bf16.mxu1 (!%p238_p2), %v1019_v28  ;;  %v888_v37 = vld [vmem:[%s1289_s1 + $0x2] ss:$0 sm:$0xff] (!%p238_p2)  ;;  %v1025_v39 = vld [vmem:[%s1291_s3 + $0x24] ss:$8 sps:$4 sm:$0xff] (!%p238_p2)  }
   0xb   : > { %975 = vmatpush3.bf16.msra.mxu0 (!%p238_p2), %v1012_v2  ;;  %561 = vmatpush1.bf16.msra.mxu1 (!%p238_p2), %v1021_v29  ;;  %v1027_v43 = vld [vmem:[%s1291_s3 + $0x20] ss:$8 sps:$4 sm:$0xff] (!%p238_p2)   ;;  %v1018_v49 = vld [vmem:[%s1290_s2 + $0x18] sm:$0xff] (!%p238_p2)   ;;  %v1036_v2 = vld [vmem:[%s1293_s5 + $0x10] sm:$0xff] (!%p238_p2)  }
   0xc   : > { %976 = vmatprep.subr.bf16.mxu0 (!%p238_p2), %v1063_v1  ;;  %562 = vmatprep.subr.bf16.mxu1 (!%p238_p2), %v1022_v31  ;;  %v1028_v53 = vld [vmem:[%s1291_s3 + $0x34] ss:$8 sps:$4 sm:$0xff] (!%p238_p2)   ;;  %v1030_v54 = vld [vmem:[%s1291_s3 + $0x30] ss:$8 sps:$4 sm:$0xff] (!%p238_p2)   ;;  %v1031_v61 = vld [vmem:[%s1293_s5 + $0x40] sm:$0xff] (!%p238_p2)  }
   0xd   : > { %s1297_s25 = smov (!%p269_p3, %s877_s25), 1  ;;  %v1032_v62 = vld [vmem:[%s1293_s5] sm:$0xff]   ;;  %v1033_v63 = vld [vmem:[%s1293_s5 + $0x48] sm:$0xff]  }
   0xe   : > { %s938_s13 = sshll.u32 %s1297_s25, 4  ;;  %v1034_v0 = vld [vmem:[%s1293_s5 + $0x8] sm:$0xff]  }
   0xf   : > { %s1142_s16 = scalar_lea.vmem %s1288_s0, %s938_s13  ;;  %977 = vmatpush3.bf16.msra.mxu0 %v1013_v5  ;;  %563 = vmatpush1.bf16.msra.mxu1 %v1024_v33  ;;  %v1039_v5 = vld [vmem:[%s1293_s5 + $0x60] sm:$0xff]   ;;  %s278_s8 = scalar_lea.vmem %s1295_s7, %s938_s13 }
  0x10   : > { %v1148_v7 = vld [vmem:[%s1142_s16 + $0x2] sm:$0xff]  ;;  %v1151_v8 = vld [vmem:[%s1142_s16 + $0xa] sm:$0x1]  ;;  %v323_v12 = vld [vmem:[%s1142_s16 + $0xc] sm:$0x1]  ;;  %978 = vmatprep.subr.bf16.mxu0 %v1063_v1  ;;  %564 = vmatprep.subr.bf16.mxu1 %v1025_v39 }
  0x11   : > { %v320_v9 = vld [vmem:[%s1142_s16] sm:$0xff]  ;;  %v321_v10 = vld [vmem:[%s1142_s16 + $0x8] sm:$0x1]  ;;  %v337_v14 = vmul.f32 %v890_v4, %v1148_v7  ;;  %v338_v15 = vmul.f32 %v890_v4, %v1151_v8  ;;  %v346_v19 = vmul.f32 %v891_v6, %v323_v12  ;;  %v283_v25 = vld [vmem:[%s1142_s16 + $0x9] sm:$0x1]  ;;  %v299_v41 = vmul.f32 %v887_v30, %v1148_v7 }
  0x12   : > { %v322_v11 = vld [vmem:[%s1142_s16 + $0x4] sm:$0xff]  ;;  %v331_v13 = vmul.f32 %v889_v3, %v320_v9  ;;  %v332_v17 = vmul.f32 %v889_v3, %v321_v10  ;;  %v294_v40 = vmul.f32 %v886_v26, %v283_v25  ;;  %v300_v42 = vmul.f32 %v887_v30, %v1151_v8  ;;  %v1037_v3 = vld [vmem:[%s1293_s5 + $0x58] sm:$0xff]   ;;  %v1044_v12 = vld [vmem:[%s1293_s5 + $0x30] sm:$0xff]  }
  0x13   : > { %v345_v18 = vmul.f32 %v891_v6, %v322_v11  ;;  %v282_v22 = vld [vmem:[%s1142_s16 + $0x1] sm:$0xff]  ;;  %979 = vmatpush3.bf16.msra.mxu0 %v1014_v16  ;;  %v285_v36 = vld [vmem:[%s1142_s16 + $0xb] sm:$0x1]  ;;  %565 = vmatpush1.bf16.msra.mxu1 %v1027_v43  ;;  %v1038_v4 = vld [vmem:[%s1293_s5 + $0x18] sm:$0xff]  }
  0x14   : > { %v339_v20 = vadd.f32 %v337_v14, %v331_v13  ;;  %v340_v21 = vadd.f32 %v338_v15, %v332_v17  ;;  %984 = vmatprep.subr.bf16.mxu0 %v1063_v1  ;;  %v284_v35 = vld [vmem:[%s1142_s16 + $0x3] sm:$0xff]  ;;  %v293_v38 = vmul.f32 %v886_v26, %v282_v22  ;;  %v302_v46 = vadd.f32 %v300_v42, %v294_v40  ;;  %v1043_v11 = vld [vmem:[%s1293_s5 + $0x70] sm:$0xff]   ;;  %v1045_v13 = vld [vmem:[%s1293_s5 + $0x78] sm:$0xff]  }
  0x15   : > { %v307_v47 = vmul.f32 %v888_v37, %v284_v35  ;;  %v308_v48 = vmul.f32 %v888_v37, %v285_v36  ;;  %566 = vmatprep.subr.bf16.mxu1 %v1028_v53  ;;  %v1040_v6 = vld [vmem:[%s1293_s5 + $0x20] sm:$0xff]   ;;  %v1041_v9 = vld [vmem:[%s1293_s5 + $0x68] sm:$0xff]   ;;  %v1046_v14 = vld [vmem:[%s1293_s5 + $0x38] sm:$0xff]   ;;  %v507_v15 = vlaneseq }
  0x16   : > { %v347_v23 = vadd.f32 %v345_v18, %v339_v20  ;;  %v348_v27 = vadd.f32 %v346_v19, %v340_v21  ;;  %v301_v45 = vadd.f32 %v299_v41, %v293_v38  ;;  %v1042_v10 = vld [vmem:[%s1293_s5 + $0x28] sm:$0xff]   ;;  %v505_v18 = vld [vmem:[%s1292_s4] sm:$0x3] }
  0x17   : > { %v310_v51 = vadd.f32 %v308_v48, %v302_v46  ;;  %567 = vmatpush1.bf16.msra.mxu1 %v1030_v54  ;;  %v508_v16 = vshrl.u32 %v507_v15, 7 }
  0x18   : > { %v349_v32 = vpack.c.bf16 %v348_v27, %v347_v23  ;;  %v309_v50 = vadd.f32 %v307_v47, %v301_v45  ;;  %950 = vmatprep.subr.bf16.mxu1 %v1031_v61 }
  0x19   : > { %v509_v17 = vsub.s32 0, %v508_v16  ;;  %v513_v19 = vsub.s32 1, %v508_v16 }
  0x1a   : > { %981 = vmatmul.mubr.msk.bf16.vlgmr.msra.gmra.mrb[0].mxu0 %vm383_vm1, %v349_v32  ;;  %v311_v52 = vpack.c.bf16 %v310_v51, %v309_v50 }
  0x1b   : > { %985 = vmatpush3.bf16.msra.mxu0 %v1015_v24  ;;  %992 = vmatprep.mubr.msk.bf16.mxu0 %vm1064_vm0, %v1063_v1  ;;  %v510_v20 = vrot.slane %v505_v18, %v509_v17  ;;  %v514_v21 = vrot.slane %v505_v18, %v513_v19 }
  0x1c   : > { %986 = vmatprep.subr.bf16.mxu0 %v1063_v1 }
  0x1f   : > { %987 = vmatpush3.bf16.msra.mxu0 %v1016_v34 }
  0x20   : > { %988 = vmatprep.subr.bf16.mxu0 %v1063_v1 }
  0x23   : > { %989 = vmatpush3.bf16.msra.mxu0 %v1017_v44 }
  0x24   : > { %990 = vmatprep.subr.bf16.mxu0 %v1063_v1  ;;  %v1035_v1 = vld [vmem:[%s1293_s5 + $0x50] sm:$0xff]  }
  0x27   : > { %991 = vmatpush3.bf16.msra.mxu0 %v1018_v49 }
  0x2a   : > { %993 = vmatmul.mubr.msk.bf16.vlgmr.msra.gmra.mrb[0].mxu0 %vm383_vm1, %v311_v52 }
  0xfd   : > { %v489_v56 = vpop.f32.mrb[0].mxu0 }
  0xfe   : > { %v994_v57 = vpop.f32.mrb[1].mxu0 }
  0xff   : > { %v492_v58 = vpop.f32.mrb[2].mxu0 }
 0x100   : > { %v496_v59 = vpack.c.bf16 %v492_v58, %v489_v56  ;;  %v995_v60 = vpop.f32.mrb[3].mxu0 }
 0x102   : > { %918 = vmatmul.mubr.msk.bf16.vlgmr.msra.gmra.mrb[0].mxu1 %vm383_vm1, %v496_v59 }
 0x103   : > { %951 = vmatpush3.bf16.msra.mxu1 %v1032_v62 }
 0x104   : > { %952 = vmatprep.subr.bf16.mxu1 %v1033_v63 }
 0x107   : > { %953 = vmatpush3.bf16.msra.mxu1 %v1034_v0 }
 0x108   : > { %954 = vmatprep.subr.bf16.mxu1 %v1035_v1 }
 0x10b   : > { %955 = vmatpush3.bf16.msra.mxu1 %v1036_v2 }
 0x10c   : > { %956 = vmatprep.subr.bf16.mxu1 %v1037_v3 }
 0x10f   : > { %957 = vmatpush3.bf16.msra.mxu1 %v1038_v4 }
 0x110   : > { %958 = vmatprep.subr.bf16.mxu1 %v1039_v5  ;;  %v919_v5 = vld [vmem:[%s1294_s6] ss:$0 sm:$0xff] }
 0x113   : > { %959 = vmatpush3.bf16.msra.mxu1 %v1040_v6 }
 0x114   : > { %960 = vmatprep.subr.bf16.mxu1 %v1041_v9 }
 0x117   : > { %961 = vmatpush3.bf16.msra.mxu1 %v1042_v10 }
 0x118   : > { %962 = vmatprep.subr.bf16.mxu1 %v1043_v11 }
 0x11b   : > { %963 = vmatpush3.bf16.msra.mxu1 %v1044_v12 }
 0x11c   : > { %964 = vmatprep.subr.bf16.mxu1 %v1045_v13 }
 0x11f   : > { %965 = vmatpush3.bf16.msra.mxu1 %v1046_v14 }
 0x1d5   : > { %v594_v22 = vpop.f32.mrb[0].mxu1 }
 0x1d6   : > { %v595_v23 = vadd.f32 %v594_v22, %v510_v20  ;;  %v596_v24 = vpop.f32.mrb[1].mxu1 }
 0x1d7   : > { %v597_v25 = vadd.f32 %v596_v24, %v514_v21  ;;  %v598_v26 = vpop.f32.mrb[2].mxu1 }
 0x1d8   : > { %v603_v27 = vmul.f32 %v595_v23, %v595_v23  ;;  %v599_v28 = vadd.f32 %v598_v26, %v510_v20  ;;  %v600_v29 = vpop.f32.mrb[3].mxu1 }
 0x1d9   : > { %v604_v30 = vmul.f32 %v597_v25, %v597_v25  ;;  %v601_v31 = vadd.f32 %v600_v29, %v514_v21 }
 0x1da   : > { %v607_v32 = vmul.f32 %v603_v27, %v595_v23  ;;  %v605_v33 = vmul.f32 %v599_v28, %v599_v28 }
 0x1db   : > { %v608_v34 = vmul.f32 %v604_v30, %v597_v25  ;;  %v606_v35 = vmul.f32 %v601_v31, %v601_v31 }
 0x1dc   : > { %v611_v36 = vmul.f32 0.044715, %v607_v32  ;;  %v609_v37 = vmul.f32 %v605_v33, %v599_v28 }
 0x1dd   : > { %v612_v38 = vmul.f32 0.044715, %v608_v34  ;;  %v610_v39 = vmul.f32 %v606_v35, %v601_v31 }
 0x1de   : > { %v615_v40 = vadd.f32 %v611_v36, %v595_v23  ;;  %v613_v41 = vmul.f32 0.044715, %v609_v37 }
 0x1df   : > { %v616_v42 = vadd.f32 %v612_v38, %v597_v25  ;;  %v614_v43 = vmul.f32 0.044715, %v610_v39 }
 0x1e0   : > { %v619_v44 = vmul.f32 0.7978846, %v615_v40  ;;  %v617_v45 = vadd.f32 %v613_v41, %v599_v28 }
 0x1e1   : > { %v620_v46 = vmul.f32 0.7978846, %v616_v42  ;;  %v618_v47 = vadd.f32 %v614_v43, %v601_v31 }
 0x1e2   : > { %1047 = vtanh.f32 %v619_v44  ;;  %v621_v48 = vmul.f32 0.7978846, %v617_v45 }
 0x1e3   : > { %1049 = vtanh.f32 %v620_v46  ;;  %v622_v49 = vmul.f32 0.7978846, %v618_v47 }
 0x1e4   : > { %1051 = vtanh.f32 %v621_v48 }
 0x1e5   : > { %1053 = vtanh.f32 %v622_v49 }
 0x1ec   : > { %v1048_v50 = vpop.eup %1047 }
 0x1ed   : > { %v1050_v51 = vpop.eup %1049  ;;  %v627_v52 = vadd.f32 1.0, %v1048_v50 }
 0x1ee   : > { %v1052_v53 = vpop.eup %1051  ;;  %v628_v54 = vadd.f32 1.0, %v1050_v51 }
 0x1ef   : > { %v1054_v55 = vpop.eup %1053  ;;  %v631_v56 = vmul.f32 0.5, %v627_v52  ;;  %v629_v57 = vadd.f32 1.0, %v1052_v53 }
 0x1f0   : > { %v630_v58 = vadd.f32 1.0, %v1054_v55  ;;  %v632_v59 = vmul.f32 0.5, %v628_v54 }
 0x1f1   : > { %v633_v60 = vmul.f32 0.5, %v629_v57  ;;  %v635_v62 = vmul.f32 %v631_v56, %v595_v23 }
 0x1f2   : > { %v634_v61 = vmul.f32 0.5, %v630_v58  ;;  %v636_v0 = vmul.f32 %v632_v59, %v597_v25 }
 0x1f3   : > { %v637_v63 = vmul.f32 %v633_v60, %v599_v28 }
 0x1f4   : > { %v638_v1 = vmul.f32 %v634_v61, %v601_v31 }
 0x1f5   : > { %v639_v2 = vpack.c.bf16 %v637_v63, %v635_v62 }
 0x1f6   : > { %v640_v3 = vpack.c.bf16 %v638_v1, %v636_v0 }
 0x1f8   : > { %808 = vmatprep.mubr.bf16.mxu1 %v640_v3 }
 0x1f9   : > { %809 = vmatmul.mubr.bf16.vlgmr.msra.gmra.mrb[4].mxu1 %v639_v2 }
 0x2cc   : > { %v966_v4 = vpop.f32.mrb[4].mxu1 }
 0x2cd   : > { %v967_v6 = vpop.f32.mrb[5].mxu1 }
 0x2ce   : > { %v968_v9 = vadd.f32 %v967_v6, %v966_v4  ;;  %v969_v10 = vpop.f32.mrb[6].mxu1 }
 0x2cf   : > { %v970_v11 = vpop.f32.mrb[7].mxu1 }
 0x2d0   : > { %v811_v12 = vadd.f32 %v968_v9, %v919_v5  ;;  %v971_v13 = vadd.f32 %v970_v11, %v969_v10 }
 0x2d2   : > { %v817_v14 = vadd.f32 %v811_v12, %v1148_v7  ;;  %v814_v15 = vadd.f32 %v971_v13, %v919_v5 }
 0x2d4   : > { %819 = vst.msk [vmem:[%s278_s8] sm:$0xff] %vm383_vm1, %v817_v14  ;;  %v818_v16 = vadd.f32 %v814_v15, %v1151_v8 }
 0x2d6   : > { %821 = vst.msk [vmem:[%s278_s8 + $0x8] sm:$0x1] %vm820_vm2, %v818_v16 }
 0x2d7 PF: > { %s17_s24 = sadd.s32 1, %s1061_s24  }
 0x2d8   : > { %p14_p4 = scmp.ge.s32.totalorder %s17_s24, 4  }
 0x2da   :  { %16 = sbr.rel (!%p14_p4) target bundleno = 1 (0x1), region = 79 }

// kernel: main_model_forward.14
= control target key start
LH: loop header
LB: loop body
LE: loop exit
PB: predicated region body
PF: predicated region fallthrough
CT: control target
= control target key end

     0   :  { %s1105_s24 = smov 0   ;;  %s1284_s0 = inlined_call_operand.vmem [shape: f32[2,17,64], index: 0, kind: input, shape index: {}]   ;;  %s1285_s1 = inlined_call_operand.vmem [shape: f32[6,64], index: 1, kind: input, shape index: {}]   ;;  %s1286_s2 = inlined_call_operand.vmem [shape: bf16[2,64,64], index: 2, kind: input, shape index: {}]   ;;  %s1287_s3 = inlined_call_operand.vmem [shape: bf16[64,256], index: 3, kind: input, shape index: {}]   ;;  %s1288_s4 = inlined_call_operand.vmem [shape: f32[1,256], index: 4, kind: input, shape index: {}]   ;;  %s1289_s5 = inlined_call_operand.vmem [shape: bf16[256,64], index: 5, kind: input, shape index: {}]   ;;  %s1290_s6 = inlined_call_operand.vmem [shape: f32[1,64], index: 6, kind: input, shape index: {}]   ;;  %s1291_s7 = inlined_call_operand.vmem [shape: f32[2,9,64], index: 7, kind: output, shape index: {}]  }
   0x1 LB: > { %s877_s25 = sadd.s32 4294967295, %s1060_s24   ;;  %p881_p0 = scmp.ge.s32.totalorder %s1060_s24, 1  ;;  %s1060_s24 = sphi %s1105_s24, %s17_s24  }
   0x2   : > { %p237_p1 = scmp.lt.s32.totalorder %s1060_s24, 3 }
   0x4   : > { %p238_p2 = pnand %p881_p0, %p237_p1 }
   0x5   : > { %v1010_v0 = vld [vmem:[%s1286_s2 + $0x20] sm:$0xff] (!%p238_p2)   ;;  %v1062_v1 = vmov (!%p238_p2), 0.0   ;;  %v1011_v2 = vld [vmem:[%s1286_s2 + $0x28] sm:$0xff] (!%p238_p2)   ;;  %vm1063_vm0 = vmmov (!%p238_p2), 0   ;;  %p269_p3 = scmp.lt.s32.totalorder (!%p238_p2), %s877_s25, 1  ;;  %v1012_v4 = vld [vmem:[%s1286_s2 + $0x30] sm:$0xff] (!%p238_p2)  }
   0x6   : > { %241 = sbr.rel (%p238_p2) target bundleno = 728 (0x2d8), region = 48  ;;  %970 = vmatprep.subr.bf16.mxu0 (!%p238_p2), %v1062_v1  ;;  %978 = vmatprep.mubr.msk.bf16.mxu0 (!%p238_p2), %vm1063_vm0, %v1062_v1  ;;  %v888_v3 = vld [vmem:[%s1285_s1 + $0x3] ss:$0 sm:$0xff] (!%p238_p2)  ;;  %v889_v5 = vld [vmem:[%s1285_s1 + $0x4] ss:$0 sm:$0xff] (!%p238_p2)  ;;  %v1013_v6 = vld [vmem:[%s1286_s2 + $0x38] sm:$0xff] (!%p238_p2)  }
   0x7   : > { %971 = vmatpush3.bf16.msra.mxu0 (!%p238_p2), %v1010_v0  ;;  %v890_v7 = vld [vmem:[%s1285_s1 + $0x5] ss:$0 sm:$0xff] (!%p238_p2)  ;;  %v885_v26 = vld [vmem:[%s1285_s1] ss:$0 sm:$0xff] (!%p238_p2)  ;;  %v886_v30 = vld [vmem:[%s1285_s1 + $0x1] ss:$0 sm:$0xff] (!%p238_p2) }
   0x8   : > { %972 = vmatprep.subr.bf16.mxu0 (!%p238_p2), %v1062_v1  ;;  %v1014_v23 = vld [vmem:[%s1286_s2] sm:$0xff] (!%p238_p2)   ;;  %v1021_v31 = vld [vmem:[%s1287_s3 + $0x14] ss:$8 sps:$4 sm:$0xff] (!%p238_p2)   ;;  %vm383_vm1 = vcmask (!%p238_p2), 523264   ;;  %v1023_v32 = vld [vmem:[%s1287_s3 + $0x10] ss:$8 sps:$4 sm:$0xff] (!%p238_p2)  }
   0x9   : > { %v1018_v27 = vld [vmem:[%s1287_s3 + $0x4] ss:$8 sps:$4 sm:$0xff] (!%p238_p2)   ;;  %v1020_v28 = vld [vmem:[%s1287_s3] ss:$8 sps:$4 sm:$0xff] (!%p238_p2)   ;;  %v1016_v44 = vld [vmem:[%s1286_s2 + $0x10] sm:$0xff] (!%p238_p2)   ;;  %v1064_v55 = vmov (!%p238_p2), 0  }
   0xa   : > { %560 = vmatprep.subr.bf16.mxu1 (!%p238_p2), %v1018_v27  ;;  %v1024_v34 = vld [vmem:[%s1287_s3 + $0x24] ss:$8 sps:$4 sm:$0xff] (!%p238_p2)   ;;  %v887_v38 = vld [vmem:[%s1285_s1 + $0x2] ss:$0 sm:$0xff] (!%p238_p2)  ;;  %v1017_v51 = vld [vmem:[%s1286_s2 + $0x18] sm:$0xff] (!%p238_p2)   ;;  %592 = vmatprep.mubr.bf16.mxu1 (!%p238_p2), %v1064_v55  ;;  %vm820_vm2 = vcmask (!%p238_p2), 516096  }
   0xb   : > { %973 = vmatpush3.bf16.msra.mxu0 (!%p238_p2), %v1011_v2  ;;  %561 = vmatpush1.bf16.msra.mxu1 (!%p238_p2), %v1020_v28  ;;  %v1015_v35 = vld [vmem:[%s1286_s2 + $0x8] sm:$0xff] (!%p238_p2)   ;;  %v1027_v53 = vld [vmem:[%s1287_s3 + $0x34] ss:$8 sps:$4 sm:$0xff] (!%p238_p2)   ;;  %v1029_v54 = vld [vmem:[%s1287_s3 + $0x30] ss:$8 sps:$4 sm:$0xff] (!%p238_p2)  }
   0xc   : > { %974 = vmatprep.subr.bf16.mxu0 (!%p238_p2), %v1062_v1  ;;  %562 = vmatprep.subr.bf16.mxu1 (!%p238_p2), %v1021_v31  ;;  %v1026_v43 = vld [vmem:[%s1287_s3 + $0x20] ss:$8 sps:$4 sm:$0xff] (!%p238_p2)   ;;  %v1035_v2 = vld [vmem:[%s1289_s5 + $0x10] sm:$0xff] (!%p238_p2)  }
   0xd   : > { %s1293_s25 = smov (!%p269_p3, %s877_s25), 1  ;;  %v1030_v61 = vld [vmem:[%s1289_s5 + $0x40] sm:$0xff]   ;;  %v1032_v63 = vld [vmem:[%s1289_s5 + $0x48] sm:$0xff]  }
   0xe   : > { %s998_s11 = smul.u32 24, %s1293_s25  ;;  %v1031_v62 = vld [vmem:[%s1289_s5] sm:$0xff]   ;;  %v1033_v0 = vld [vmem:[%s1289_s5 + $0x8] sm:$0xff]   ;;  %s937_s26 = sshll.u32 %s1293_s25, 4 }
   0xf   : > { %975 = vmatpush3.bf16.msra.mxu0 %v1012_v4  ;;  %563 = vmatpush1.bf16.msra.mxu1 %v1023_v32  ;;  %v1037_v4 = vld [vmem:[%s1289_s5 + $0x18] sm:$0xff]   ;;  %s278_s29 = scalar_lea.vmem %s1291_s7, %s937_s26 }
  0x10   : > { %s1142_s18 = scalar_lea.vmem %s1284_s0, %s998_s11  ;;  %976 = vmatprep.subr.bf16.mxu0 %v1062_v1  ;;  %564 = vmatprep.subr.bf16.mxu1 %v1024_v34 }
  0x11   : > { %v1148_v8 = vld [vmem:[%s1142_s18 + $0x4] sm:$0xff]  ;;  %v1151_v9 = vld [vmem:[%s1142_s18 + $0xc] sm:$0x1]  ;;  %v323_v13 = vld [vmem:[%s1142_s18 + $0x10] sm:$0x1] }
  0x12   : > { %v320_v10 = vld [vmem:[%s1142_s18] sm:$0xff]  ;;  %v321_v11 = vld [vmem:[%s1142_s18 + $0x8] sm:$0x1]  ;;  %v337_v15 = vmul.f32 %v889_v5, %v1148_v8  ;;  %v338_v16 = vmul.f32 %v889_v5, %v1151_v9  ;;  %v346_v19 = vmul.f32 %v890_v7, %v323_v13  ;;  %v283_v25 = vld [vmem:[%s1142_s18 + $0xa] sm:$0x1]  ;;  %v299_v41 = vmul.f32 %v886_v30, %v1148_v8 }
  0x13   : > { %v322_v12 = vld [vmem:[%s1142_s18 + $0x8] sm:$0xff]  ;;  %v331_v14 = vmul.f32 %v888_v3, %v320_v10  ;;  %v332_v17 = vmul.f32 %v888_v3, %v321_v11  ;;  %977 = vmatpush3.bf16.msra.mxu0 %v1013_v6  ;;  %v294_v40 = vmul.f32 %v885_v26, %v283_v25  ;;  %v300_v42 = vmul.f32 %v886_v30, %v1151_v9  ;;  %v1036_v3 = vld [vmem:[%s1289_s5 + $0x58] sm:$0xff]   ;;  %v1038_v5 = vld [vmem:[%s1289_s5 + $0x60] sm:$0xff]  }
  0x14   : > { %v345_v18 = vmul.f32 %v890_v7, %v322_v12  ;;  %v282_v24 = vld [vmem:[%s1142_s18 + $0x2] sm:$0xff]  ;;  %982 = vmatprep.subr.bf16.mxu0 %v1062_v1  ;;  %v285_v37 = vld [vmem:[%s1142_s18 + $0xe] sm:$0x1]  ;;  %565 = vmatpush1.bf16.msra.mxu1 %v1026_v43  ;;  %v1042_v11 = vld [vmem:[%s1289_s5 + $0x70] sm:$0xff]  }
  0x15   : > { %v339_v20 = vadd.f32 %v337_v15, %v331_v14  ;;  %v340_v21 = vadd.f32 %v338_v16, %v332_v17  ;;  %v284_v36 = vld [vmem:[%s1142_s18 + $0x6] sm:$0xff]  ;;  %v293_v39 = vmul.f32 %v885_v26, %v282_v24  ;;  %v302_v46 = vadd.f32 %v300_v42, %v294_v40  ;;  %566 = vmatprep.subr.bf16.mxu1 %v1027_v53  ;;  %v1043_v12 = vld [vmem:[%s1289_s5 + $0x30] sm:$0xff]   ;;  %v1044_v13 = vld [vmem:[%s1289_s5 + $0x78] sm:$0xff]  }
  0x16   : > { %v307_v47 = vmul.f32 %v887_v38, %v284_v36  ;;  %v308_v48 = vmul.f32 %v887_v38, %v285_v37  ;;  %v1039_v6 = vld [vmem:[%s1289_s5 + $0x20] sm:$0xff]   ;;  %v1040_v7 = vld [vmem:[%s1289_s5 + $0x68] sm:$0xff]   ;;  %v1045_v14 = vld [vmem:[%s1289_s5 + $0x38] sm:$0xff]   ;;  %v507_v15 = vlaneseq }
  0x17   : > { %v347_v22 = vadd.f32 %v345_v18, %v339_v20  ;;  %v348_v29 = vadd.f32 %v346_v19, %v340_v21  ;;  %v301_v45 = vadd.f32 %v299_v41, %v293_v39  ;;  %v1041_v10 = vld [vmem:[%s1289_s5 + $0x28] sm:$0xff]   ;;  %v505_v18 = vld [vmem:[%s1288_s4] sm:$0x3] }
  0x18   : > { %v310_v50 = vadd.f32 %v308_v48, %v302_v46  ;;  %567 = vmatpush1.bf16.msra.mxu1 %v1029_v54  ;;  %v508_v16 = vshrl.u32 %v507_v15, 7 }
  0x19   : > { %v349_v33 = vpack.c.bf16 %v348_v29, %v347_v22  ;;  %v309_v49 = vadd.f32 %v307_v47, %v301_v45  ;;  %948 = vmatprep.subr.bf16.mxu1 %v1030_v61 }
  0x1a   : > { %v509_v17 = vsub.s32 0, %v508_v16  ;;  %v513_v19 = vsub.s32 1, %v508_v16 }
  0x1b   : > { %979 = vmatmul.mubr.msk.bf16.vlgmr.msra.gmra.mrb[0].mxu0 %vm383_vm1, %v349_v33  ;;  %v311_v52 = vpack.c.bf16 %v310_v50, %v309_v49 }
  0x1c   : > { %983 = vmatpush3.bf16.msra.mxu0 %v1014_v23  ;;  %990 = vmatprep.mubr.msk.bf16.mxu0 %vm1063_vm0, %v1062_v1  ;;  %v510_v20 = vrot.slane %v505_v18, %v509_v17  ;;  %v514_v21 = vrot.slane %v505_v18, %v513_v19 }
  0x1d   : > { %984 = vmatprep.subr.bf16.mxu0 %v1062_v1 }
  0x20   : > { %985 = vmatpush3.bf16.msra.mxu0 %v1015_v35 }
  0x21   : > { %986 = vmatprep.subr.bf16.mxu0 %v1062_v1 }
  0x24   : > { %987 = vmatpush3.bf16.msra.mxu0 %v1016_v44 }
  0x25   : > { %988 = vmatprep.subr.bf16.mxu0 %v1062_v1  ;;  %v1034_v1 = vld [vmem:[%s1289_s5 + $0x50] sm:$0xff]  }
  0x28   : > { %989 = vmatpush3.bf16.msra.mxu0 %v1017_v51 }
  0x2b   : > { %991 = vmatmul.mubr.msk.bf16.vlgmr.msra.gmra.mrb[0].mxu0 %vm383_vm1, %v311_v52 }
  0xfe   : > { %v489_v56 = vpop.f32.mrb[0].mxu0 }
  0xff   : > { %v992_v57 = vpop.f32.mrb[1].mxu0 }
 0x100   : > { %v492_v58 = vpop.f32.mrb[2].mxu0 }
 0x101   : > { %v496_v59 = vpack.c.bf16 %v492_v58, %v489_v56  ;;  %v993_v60 = vpop.f32.mrb[3].mxu0 }
 0x103   : > { %917 = vmatmul.mubr.msk.bf16.vlgmr.msra.gmra.mrb[0].mxu1 %vm383_vm1, %v496_v59 }
 0x104   : > { %949 = vmatpush3.bf16.msra.mxu1 %v1031_v62 }
 0x105   : > { %950 = vmatprep.subr.bf16.mxu1 %v1032_v63 }
 0x108   : > { %951 = vmatpush3.bf16.msra.mxu1 %v1033_v0 }
 0x109   : > { %952 = vmatprep.subr.bf16.mxu1 %v1034_v1 }
 0x10c   : > { %953 = vmatpush3.bf16.msra.mxu1 %v1035_v2 }
 0x10d   : > { %954 = vmatprep.subr.bf16.mxu1 %v1036_v3 }
 0x110   : > { %955 = vmatpush3.bf16.msra.mxu1 %v1037_v4 }
 0x111   : > { %956 = vmatprep.subr.bf16.mxu1 %v1038_v5  ;;  %v918_v5 = vld [vmem:[%s1290_s6] ss:$0 sm:$0xff] }
 0x114   : > { %957 = vmatpush3.bf16.msra.mxu1 %v1039_v6 }
 0x115   : > { %958 = vmatprep.subr.bf16.mxu1 %v1040_v7 }
 0x118   : > { %959 = vmatpush3.bf16.msra.mxu1 %v1041_v10 }
 0x119   : > { %960 = vmatprep.subr.bf16.mxu1 %v1042_v11 }
 0x11c   : > { %961 = vmatpush3.bf16.msra.mxu1 %v1043_v12 }
 0x11d   : > { %962 = vmatprep.subr.bf16.mxu1 %v1044_v13 }
 0x120   : > { %963 = vmatpush3.bf16.msra.mxu1 %v1045_v14 }
 0x1d6   : > { %v594_v22 = vpop.f32.mrb[0].mxu1 }
 0x1d7   : > { %v595_v23 = vadd.f32 %v594_v22, %v510_v20  ;;  %v596_v24 = vpop.f32.mrb[1].mxu1 }
 0x1d8   : > { %v597_v25 = vadd.f32 %v596_v24, %v514_v21  ;;  %v598_v26 = vpop.f32.mrb[2].mxu1 }
 0x1d9   : > { %v603_v27 = vmul.f32 %v595_v23, %v595_v23  ;;  %v599_v28 = vadd.f32 %v598_v26, %v510_v20  ;;  %v600_v29 = vpop.f32.mrb[3].mxu1 }
 0x1da   : > { %v604_v30 = vmul.f32 %v597_v25, %v597_v25  ;;  %v601_v31 = vadd.f32 %v600_v29, %v514_v21 }
 0x1db   : > { %v607_v32 = vmul.f32 %v603_v27, %v595_v23  ;;  %v605_v33 = vmul.f32 %v599_v28, %v599_v28 }
 0x1dc   : > { %v608_v34 = vmul.f32 %v604_v30, %v597_v25  ;;  %v606_v35 = vmul.f32 %v601_v31, %v601_v31 }
 0x1dd   : > { %v611_v36 = vmul.f32 0.044715, %v607_v32  ;;  %v609_v37 = vmul.f32 %v605_v33, %v599_v28 }
 0x1de   : > { %v612_v38 = vmul.f32 0.044715, %v608_v34  ;;  %v610_v39 = vmul.f32 %v606_v35, %v601_v31 }
 0x1df   : > { %v615_v40 = vadd.f32 %v611_v36, %v595_v23  ;;  %v613_v41 = vmul.f32 0.044715, %v609_v37 }
 0x1e0   : > { %v616_v42 = vadd.f32 %v612_v38, %v597_v25  ;;  %v614_v43 = vmul.f32 0.044715, %v610_v39 }
 0x1e1   : > { %v619_v44 = vmul.f32 0.7978846, %v615_v40  ;;  %v617_v45 = vadd.f32 %v613_v41, %v599_v28 }
 0x1e2   : > { %v620_v46 = vmul.f32 0.7978846, %v616_v42  ;;  %v618_v47 = vadd.f32 %v614_v43, %v601_v31 }
 0x1e3   : > { %1046 = vtanh.f32 %v619_v44  ;;  %v621_v48 = vmul.f32 0.7978846, %v617_v45 }
 0x1e4   : > { %1048 = vtanh.f32 %v620_v46  ;;  %v622_v49 = vmul.f32 0.7978846, %v618_v47 }
 0x1e5   : > { %1050 = vtanh.f32 %v621_v48 }
 0x1e6   : > { %1052 = vtanh.f32 %v622_v49 }
 0x1ed   : > { %v1047_v50 = vpop.eup %1046 }
 0x1ee   : > { %v1049_v51 = vpop.eup %1048  ;;  %v627_v52 = vadd.f32 1.0, %v1047_v50 }
 0x1ef   : > { %v1051_v53 = vpop.eup %1050  ;;  %v628_v54 = vadd.f32 1.0, %v1049_v51 }
 0x1f0   : > { %v1053_v55 = vpop.eup %1052  ;;  %v631_v56 = vmul.f32 0.5, %v627_v52  ;;  %v629_v57 = vadd.f32 1.0, %v1051_v53 }
 0x1f1   : > { %v630_v58 = vadd.f32 1.0, %v1053_v55  ;;  %v632_v59 = vmul.f32 0.5, %v628_v54 }
 0x1f2   : > { %v633_v60 = vmul.f32 0.5, %v629_v57  ;;  %v635_v62 = vmul.f32 %v631_v56, %v595_v23 }
 0x1f3   : > { %v634_v61 = vmul.f32 0.5, %v630_v58  ;;  %v636_v0 = vmul.f32 %v632_v59, %v597_v25 }
 0x1f4   : > { %v637_v63 = vmul.f32 %v633_v60, %v599_v28 }
 0x1f5   : > { %v638_v1 = vmul.f32 %v634_v61, %v601_v31 }
 0x1f6   : > { %v639_v2 = vpack.c.bf16 %v637_v63, %v635_v62 }
 0x1f7   : > { %v640_v3 = vpack.c.bf16 %v638_v1, %v636_v0 }
 0x1f9   : > { %808 = vmatprep.mubr.bf16.mxu1 %v640_v3 }
 0x1fa   : > { %809 = vmatmul.mubr.bf16.vlgmr.msra.gmra.mrb[4].mxu1 %v639_v2 }
 0x2cd   : > { %v964_v4 = vpop.f32.mrb[4].mxu1 }
 0x2ce   : > { %v965_v6 = vpop.f32.mrb[5].mxu1 }
 0x2cf   : > { %v966_v7 = vadd.f32 %v965_v6, %v964_v4  ;;  %v967_v10 = vpop.f32.mrb[6].mxu1 }
 0x2d0   : > { %v968_v11 = vpop.f32.mrb[7].mxu1 }
 0x2d1   : > { %v811_v12 = vadd.f32 %v966_v7, %v918_v5  ;;  %v969_v13 = vadd.f32 %v968_v11, %v967_v10 }
 0x2d3   : > { %v817_v14 = vadd.f32 %v811_v12, %v1148_v8  ;;  %v814_v15 = vadd.f32 %v969_v13, %v918_v5 }
 0x2d5   : > { %819 = vst.msk [vmem:[%s278_s29] sm:$0xff] %vm383_vm1, %v817_v14  ;;  %v818_v16 = vadd.f32 %v814_v15, %v1151_v9 }
 0x2d7   : > { %821 = vst.msk [vmem:[%s278_s29 + $0x8] sm:$0x1] %vm820_vm2, %v818_v16 }
 0x2d8 PF: > { %s17_s24 = sadd.s32 1, %s1060_s24  }
 0x2d9   : > { %p14_p4 = scmp.ge.s32.totalorder %s17_s24, 4  }
 0x2db   :  { %16 = sbr.rel (!%p14_p4) target bundleno = 1 (0x1), region = 79 }

// kernel: main_model_forward.15
= control target key start
LH: loop header
LB: loop body
LE: loop exit
PB: predicated region body
PF: predicated region fallthrough
CT: control target
= control target key end

     0   :  { %v478_v3 = vmov 0.0|0.0   ;;  %vm479_vm0 = vmmov 0   ;;  %v480_v6 = vmov 0.0   ;;  %s610_s0 = inlined_call_operand.vmem [shape: f32[2,9,64], index: 0, kind: input, shape index: {}]   ;;  %s611_s1 = inlined_call_operand.vmem [shape: f32[64,32], index: 1, kind: input, shape index: {}]   ;;  %s612_s2 = inlined_call_operand.vmem [shape: f32[1,32], index: 2, kind: input, shape index: {}]   ;;  %s613_s3 = inlined_call_operand.vmem [shape: f32[32,16], index: 3, kind: input, shape index: {}]   ;;  %s614_s4 = inlined_call_operand.vmem [shape: f32[1,16], index: 4, kind: input, shape index: {}]   ;;  %s615_s5 = inlined_call_operand.vmem [shape: f32[16,2], index: 5, kind: input, shape index: {}]   ;;  %s616_s6 = inlined_call_operand.vmem [shape: f32[1,2], index: 6, kind: input, shape index: {}]   ;;  %s617_s7 = inlined_call_operand.hbm [shape: f32[2,2], index: 7, kind: output, shape index: {}]  }
   0x1   :  { %v79_v0 = vld [vmem:[%s611_s1] sm:$0xff]  ;;  %v80_v1 = vld [vmem:[%s611_s1 + $0x8] sm:$0xff]  ;;  %v81_v2 = vld [vmem:[%s611_s1 + $0x10] sm:$0xff]  ;;  %425 = vmatprep.subr.bf16.mxu0 %v478_v3  ;;  %404 = vmatprep.mubr.msk.f32.mxu0 %vm479_vm0, %v480_v6 }
   0x2   :  { %v426_v4 = vpack.c.bf16 %v80_v1, %v79_v0  ;;  %v82_v5 = vld [vmem:[%s611_s1 + $0x18] sm:$0xff]  ;;  %v27_v7 = vld [vmem:[%s610_s0] sm:$0xff]  ;;  %437 = vmatprep.subr.bf16.mxu1 %v478_v3  ;;  %415 = vmatprep.mubr.msk.f32.mxu1 %vm479_vm0, %v480_v6  ;;  %v29_v9 = vld [vmem:[%s610_s0 + $0x10] sm:$0xff] }
   0x3   :  { %v429_v8 = vpack.c.bf16 %v82_v5, %v81_v2  ;;  %v33_v10 = vrot.slane %v27_v7, 1  ;;  %v83_v11 = vld [vmem:[%s611_s1 + $0x20] sm:$0xff]  ;;  %v84_v12 = vld [vmem:[%s611_s1 + $0x28] sm:$0xff]  ;;  %v34_v13 = vrot.slane %v29_v9, 1  ;;  %v39_v14 = vrot.slane %v27_v7, 2 }
   0x4   :  { %427 = vmatpush3.bf16.msra.mxu0 %v426_v4  ;;  %v40_v15 = vrot.slane %v29_v9, 2  ;;  %v45_v17 = vrot.slane %v27_v7, 3  ;;  %v173_v18 = vld [vmem:[%s613_s3] sm:$0xff]  ;;  %v174_v19 = vld [vmem:[%s613_s3 + $0x8] sm:$0xff]  ;;  %v46_v21 = vrot.slane %v29_v9, 3 }
   0x5   :  { %428 = vmatprep.subr.bf16.mxu0 %v478_v3  ;;  %v37_v16 = vadd.f32 %v33_v10, %v27_v7  ;;  %v38_v20 = vadd.f32 %v34_v13, %v29_v9 }
   0x6   :  { %12 = vsyncpa [#allocation3], 0  ;;  %v432_v22 = vpack.c.bf16 %v84_v12, %v83_v11  ;;  %v51_v24 = vrot.slane %v27_v7, 4  ;;  %v85_v25 = vld [vmem:[%s611_s1 + $0x30] sm:$0xff]  ;;  %v86_v26 = vld [vmem:[%s611_s1 + $0x38] sm:$0xff]  ;;  %v52_v28 = vrot.slane %v29_v9, 4  ;;  %v438_v29 = vpack.c.bf16 %v174_v19, %v173_v18 }
   0x7   :  { %v43_v23 = vadd.f32 %v39_v14, %v37_v16  ;;  %v44_v27 = vadd.f32 %v40_v15, %v38_v20  ;;  %v57_v31 = vrot.slane %v27_v7, 5  ;;  %v58_v33 = vrot.slane %v29_v9, 5  ;;  %v28_v44 = vld [vmem:[%s610_s0 + $0x8] sm:$0x1]  ;;  %v30_v46 = vld [vmem:[%s610_s0 + $0x18] sm:$0x1] }
   0x8   :  { %430 = vmatpush3.bf16.msra.mxu0 %v429_v8  ;;  %439 = vmatpush3.bf16.msra.mxu1 %v438_v29  ;;  %v435_v34 = vpack.c.bf16 %v86_v26, %v85_v25  ;;  %v63_v36 = vrot.slane %v27_v7, 6  ;;  %v64_v38 = vrot.slane %v29_v9, 6  ;;  %v69_v40 = vrot.slane %v27_v7, 7  ;;  %v175_v55 = vld [vmem:[%s613_s3 + $0x10] sm:$0xff]  ;;  %v176_v56 = vld [vmem:[%s613_s3 + $0x18] sm:$0xff]  ;;  %v259_v63 = vld [vmem:[%s615_s5] sm:$0xff] }
   0x9   :  { %431 = vmatprep.subr.bf16.mxu0 %v478_v3  ;;  %v49_v30 = vadd.f32 %v45_v17, %v43_v23  ;;  %v50_v32 = vadd.f32 %v46_v21, %v44_v27  ;;  %440 = vmatprep.subr.bf16.mxu1 %v478_v3  ;;  %v70_v42 = vrot.slane %v29_v9, 7  ;;  %vm97_vm1 = vcmask 1041409   ;;  %v364_v58 = vld [vmem:[%s612_s2] ss:$0 sm:$0xff]  ;;  %v260_v0 = vld [vmem:[%s615_s5 + $0x8] sm:$0xff]  ;;  %s481_s5 = smov [#allocation2]  }
   0xa   :  { %vm99_vm2 = vcmask 523264   ;;  %v441_v57 = vpack.c.bf16 %v176_v56, %v175_v55  ;;  %vm184_vm3 = vcmask 261120   ;;  %v444_v1 = vpack.c.bf16 %v260_v0, %v259_v63  ;;  %v366_v2 = vld [vmem:[%s614_s4] ss:$0 sm:$0xff]  ;;  %s356_s4 = sshll.u32 %s481_s5, 4  ;;  %s357_s4 = int_to_ptr.vmem [resolvable:$true] %s356_s4 }
   0xb   :  { %v55_v35 = vadd.f32 %v51_v24, %v49_v30  ;;  %v56_v37 = vadd.f32 %v52_v28, %v50_v32  ;;  %vm268_vm4 = vcmask 130048   ;;  %vm348_vm5 = vcmask 9216   ;;  %s454_s16 = scalar_lea.vmem %s357_s4, 32  ;;  %p459_p1 = scmp.lt.s32.totalorder %s357_s4, %s357_s4 }
   0xc   :  { %433 = vmatpush3.bf16.msra.mxu0 %v432_v22  ;;  %442 = vmatpush3.bf16.msra.mxu1 %v441_v57  ;;  %p455_p0 = scmp.ne.s32.totalorder %s357_s4, %s454_s16  ;;  %p460_p2 = scmp.lt.s32.totalorder %s454_s16, %s454_s16 }
   0xd   :  { %434 = vmatprep.subr.bf16.mxu0 %v478_v3  ;;  %v61_v39 = vadd.f32 %v57_v31, %v55_v35  ;;  %v62_v41 = vadd.f32 %v58_v33, %v56_v37  ;;  %443 = vmatprep.subr.bf16.mxu1 %v478_v3 }
   0xe   :  { %p461_p3 = por %p460_p2, %p459_p1 }
   0xf   :  { %v67_v43 = vadd.f32 %v63_v36, %v61_v39  ;;  %v68_v45 = vadd.f32 %v64_v38, %v62_v41 }
  0x10   :  { %436 = vmatpush3.bf16.msra.mxu0 %v435_v34  ;;  %p462_p4 = pnand %p461_p3, %p455_p0 }
  0x11   :  { %v73_v47 = vadd.f32 %v69_v40, %v67_v43  ;;  %v74_v48 = vadd.f32 %v70_v42, %v68_v45 }
  0x13   :  { %v75_v49 = vadd.f32 %v73_v47, %v28_v44  ;;  %v76_v50 = vadd.f32 %v74_v48, %v30_v46 }
  0x15   :  { %v77_v51 = vmul.f32 0.11111111, %v75_v49  ;;  %v78_v52 = vmul.f32 0.11111111, %v76_v50 }
  0x17   :  { %v96_v53 = vrot.slane %v78_v52, 7 }
  0x19   :  { %v98_v54 = vsel %vm97_vm1, %v96_v53, %v77_v51 }
  0x1a   :  { %405 = vmatmul.mubr.msk.f32.vlgmr.msra.gmra.mrb[0].mxu0 %vm99_vm2, %v98_v54 }
  0xed   :  { %v168_v59 = vpop.f32.mrb[0].mxu0 }
  0xee   :  { %v169_v60 = vadd.f32 %v364_v58, %v168_v59  ;;  %v406_v61 = vpop.f32.mrb[1].mxu0 }
  0xf0   :  { %v172_v62 = vmax.f32 %v169_v60, 0.0 }
  0xf2   :  { %416 = vmatmul.mubr.msk.f32.vlgmr.msra.gmra.mrb[0].mxu1 %vm184_vm3, %v172_v62 }
  0xf3   :  { %422 = vmatprep.mubr.msk.f32.mxu1 %vm479_vm0, %v480_v6  ;;  %445 = vmatpush3.bf16.msra.mxu1 %v444_v1  ;;  %v368_v6 = vld [vmem:[%s616_s6] ss:$0 sm:$0xff] }
 0x1c5   :  { %v254_v3 = vpop.f32.mrb[0].mxu1 }
 0x1c6   :  { %v255_v4 = vadd.f32 %v366_v2, %v254_v3  ;;  %v417_v5 = vpop.f32.mrb[1].mxu1 }
 0x1c8   :  { %v258_v7 = vmax.f32 %v255_v4, 0.0 }
 0x1ca   :  { %423 = vmatmul.mubr.msk.f32.vlgmr.msra.gmra.mrb[2].mxu1 %vm268_vm4, %v258_v7 }
 0x29d   :  { %v338_v8 = vpop.f32.mrb[2].mxu1 }
 0x29e   :  { %v339_v9 = vadd.f32 %v368_v6, %v338_v8  ;;  %v424_v10 = vpop.f32.mrb[3].mxu1 }
 0x2a0   :  { %v370_v11 = vmul.f32 -1.442695, %v339_v9 }
 0x2a2   :  { %450 = vpow2.f32 %v370_v11 }
 0x2ac   :  { %v451_v12 = vpop.eup %450 }
 0x2ad   :  { %v345_v13 = vadd.f32 1.0, %v451_v12 }
 0x2af   :  { %452 = vrcp.f32 %v345_v13 }
 0x2b9   :  { %v453_v14 = vpop.eup %452 }
 0x2ba   :  { %349 = vst.msk [vmem:[#allocation2] sm:$0x3] %vm348_vm5, %v453_v14 }
 0x2bb   :  { %465 = shalt.err (!%p462_p4)
}
 0x2bc   :  { %s466_s18 = scalar_lea.hbm %s617_s7, 32 }
 0x2bd   :  { %p467_p5 = scmp.ne.s32.totalorder %s617_s7, %s466_s18  ;;  %p470_p6 = scmp.lt.u32.totalorder %s466_s18, %s617_s7 }
 0x2bf   :  { %p472_p7 = pnand %p470_p6, %p467_p5 }
 0x2c1   :  { %475 = shalt.err (!%p472_p7)
}
 0x2c2   :  { %359 = dma.vmem_to_hbm [thread:$0]  %s357_s4, 32, %s617_s7, [#allocation3]  }
 0x2c3   :  { %476 = dma.done.wait [#allocation3], 32  }
 0x2c4   :  { %477 = vsyncadd [#allocation3], 4294967264 }
 0x2c5   :  { %363 = vsyncpa [#allocation3], 1 }

// kernel: main_model_forward.11
= control target key start
LH: loop header
LB: loop body
LE: loop exit
PB: predicated region body
PF: predicated region fallthrough
CT: control target
= control target key end

     0   :  { %s4437_s25 = smov 0   ;;  %s4949_s0 = inlined_call_operand.vmem [shape: f32[2,9,64], index: 0, kind: input, shape index: {}]   ;;  %s4950_s1 = inlined_call_operand.vmem [shape: bf16[64,192], index: 1, kind: input, shape index: {}]   ;;  %s4951_s2 = inlined_call_operand.vmem [shape: f32[1,192], index: 2, kind: input, shape index: {}]   ;;  %s4952_s3 = inlined_call_operand.vmem [shape: f32[64,64], index: 3, kind: input, shape index: {}]   ;;  %s4953_s4 = inlined_call_operand.vmem [shape: f32[1,64], index: 4, kind: input, shape index: {}]   ;;  %s4954_s5 = inlined_call_operand.vmem [shape: f32[1,64], index: 5, kind: input, shape index: {}]   ;;  %s4955_s6 = inlined_call_operand.vmem [shape: f32[1,64], index: 6, kind: input, shape index: {}]   ;;  %s4956_s7 = inlined_call_operand.vmem [shape: bf16[64,512], index: 7, kind: input, shape index: {}]   ;;  %s4957_s8 = inlined_call_operand.vmem [shape: f32[1,512], index: 8, kind: input, shape index: {}]   ;;  %s4958_s9 = inlined_call_operand.vmem [shape: bf16[512,64], index: 9, kind: input, shape index: {}]   ;;  %s4959_s10 = inlined_call_operand.vmem [shape: f32[1,64], index: 10, kind: input, shape index: {}]   ;;  %s4960_s11 = inlined_call_operand.vmem [shape: f32[1,64], index: 11, kind: input, shape index: {}]   ;;  %s4961_s12 = inlined_call_operand.vmem [shape: f32[1,64], index: 12, kind: input, shape index: {}]   ;;  %s4962_s13 = inlined_call_operand.vmem [shape: f32[2,9,64], index: 13, kind: output, shape index: {}]  }
   0x1 LB: > { %s3556_s26 = sadd.s32 4294967295, %s4348_s25   ;;  %p3560_p0 = scmp.ge.s32.totalorder %s4348_s25, 1  ;;  %s4348_s25 = sphi %s4437_s25, %s23_s25  }
   0x2   : > { %p387_p1 = scmp.lt.s32.totalorder %s4348_s25, 3 }
   0x4   : > { %p388_p2 = pnand %p3560_p0, %p387_p1 }
   0x5   : > { %v4200_v0 = vld [vmem:[%s4950_s1 + $0x4] ss:$8 sps:$4 sm:$0xff] (!%p388_p2)   ;;  %p431_p3 = scmp.lt.s32.totalorder (!%p388_p2), %s3556_s26, 1  ;;  %v4202_v1 = vld [vmem:[%s4950_s1] ss:$8 sps:$4 sm:$0xff] (!%p388_p2)   ;;  %v4350_v2 = vmov (!%p388_p2), 0   ;;  %v455_v12 = vlaneseq (!%p388_p2) }
   0x6   : > { %391 = sbr.rel (%p388_p2) target bundleno = 4773 (0x12a5), region = 72  ;;  %541 = vmatprep.mubr.bf16.mxu0 (!%p388_p2), %v4350_v2  ;;  %509 = vmatprep.subr.bf16.mxu0 (!%p388_p2), %v4200_v0  ;;  %v4203_v3 = vld [vmem:[%s4950_s1 + $0x14] ss:$8 sps:$4 sm:$0xff] (!%p388_p2)   ;;  %v4205_v4 = vld [vmem:[%s4950_s1 + $0x10] ss:$8 sps:$4 sm:$0xff] (!%p388_p2)   ;;  %vm505_vm0 = vcmask (!%p388_p2), 523264  }
   0x7   : > { %510 = vmatpush1.bf16.msra.mxu0 (!%p388_p2), %v4202_v1  ;;  %v4206_v5 = vld [vmem:[%s4950_s1 + $0x24] ss:$8 sps:$4 sm:$0xff] (!%p388_p2)   ;;  %v4208_v6 = vld [vmem:[%s4950_s1 + $0x20] ss:$8 sps:$4 sm:$0xff] (!%p388_p2)   ;;  %v4209_v7 = vld [vmem:[%s4950_s1 + $0x34] ss:$8 sps:$4 sm:$0xff] (!%p388_p2)  }
   0x8   : > { %511 = vmatprep.subr.bf16.mxu0 (!%p388_p2), %v4203_v3  ;;  %v4211_v8 = vld [vmem:[%s4950_s1 + $0x30] ss:$8 sps:$4 sm:$0xff] (!%p388_p2)   ;;  %v4483_v13 = vshrl.u32 (!%p388_p2), %v455_v12, 7  ;;  %v453_v15 = vld [vmem:[%s4951_s2] sm:$0x3] (!%p388_p2)  ;;  %vm568_vm1 = vcmask (!%p388_p2), 64512  }
   0x9   : > { %s4351_s17 = smov (!%p388_p2), 64   ;;  %vm684_vm2 = vcmask (!%p388_p2), 1040384   ;;  %vm4505_vm3 = vmpackc.low (!%p388_p2), %vm568_vm1, %vm568_vm1  ;;  %vm4352_vm4 = vmmov (!%p388_p2), 1   ;;  %vm658_vm6 = vcmask (!%p388_p2), 65536   ;;  %vm654_vm7 = vcmask (!%p388_p2), 72704   ;;  %s4353_s18 = smov (!%p388_p2), 56  }
   0xa   : > { %v457_v14 = vsub.s32 (!%p388_p2), 0, %v4483_v13  ;;  %v461_v16 = vsub.s32 (!%p388_p2), 1, %v4483_v13  ;;  %vm4509_vm5 = vmpackc.low (!%p388_p2), %vm684_vm2, %vm4352_vm4  ;;  %s4354_s19 = smov (!%p388_p2), 120   ;;  %s4355_s21 = smov (!%p388_p2), 112   ;;  %v3646_v36 = vld [vmem:[%s4953_s4] ss:$0 sm:$0xff] (!%p388_p2) }
   0xb   : > { %512 = vmatpush1.bf16.msra.mxu0 (!%p388_p2), %v4205_v4  ;;  %s4356_s22 = smov (!%p388_p2), 48   ;;  %s4357_s23 = smov (!%p388_p2), 40   ;;  %vm2847_vm8 = vcmask (!%p388_p2), 516096  }
   0xc   : > { %513 = vmatprep.subr.bf16.mxu0 (!%p388_p2), %v4206_v5  ;;  %v458_v17 = vrot.slane (!%p388_p2), %v453_v15, %v457_v14  ;;  %v462_v19 = vrot.slane (!%p388_p2), %v453_v15, %v461_v16  ;;  %s4358_s24 = smov (!%p388_p2), 104   ;;  %s4359_s15 = smov (!%p388_p2), 96  }
   0xd   : > { %s4968_s26 = smov (!%p431_p3, %s3556_s26), 1  ;;  %s4360_s16 = smov 88  }
   0xe   : > { %s3704_s20 = sshll.u32 %s4968_s26, 4  ;;  %s4364_s27 = smov 16  }
   0xf   : > { %s4475_s29 = scalar_lea.vmem %s4949_s0, %s3704_s20  ;;  %514 = vmatpush1.bf16.msra.mxu0 %v4208_v6  ;;  %s4365_s14 = smov 72  }
  0x10   : > { %v442_v9 = vld [vmem:[%s4475_s29] sm:$0xff]  ;;  %v443_v10 = vld [vmem:[%s4475_s29 + $0x8] sm:$0x1]  ;;  %515 = vmatprep.subr.bf16.mxu0 %v4209_v7 }
  0x11   : > { %v444_v11 = vpack.c.bf16 %v443_v10, %v442_v9 }
  0x13   : > { %516 = vmatpush1.bf16.msra.mxu0 %v4211_v8 }
  0x16   : > { %3573 = vmatmul.mubr.msk.bf16.vlgmr.msra.gmra.mrb[0].mxu0 %vm505_vm0, %v444_v11 }
  0xe9   : > { %v543_v18 = vpop.f32.mrb[0].mxu0 }
  0xea   : > { %v544_v20 = vadd.f32 %v543_v18, %v458_v17  ;;  %v545_v21 = vpop.f32.mrb[1].mxu0 }
  0xeb   : > { %v547_v22 = vpop.f32.mrb[2].mxu0  ;;  %v546_v26 = vadd.f32 %v545_v21, %v462_v19 }
  0xec   : > { %v548_v23 = vadd.f32 %v547_v22, %v458_v17  ;;  %v549_v24 = vpop.f32.mrb[3].mxu0  ;;  %v4494_v25 = vmul.f32 0.35355338, %v544_v20 }
  0xed   : > { %v550_v27 = vadd.f32 %v549_v24, %v462_v19 }
  0xee   : > { %3842 = vmatprep.mubr.msk.f32.mxu1 %vm568_vm1, %v4494_v25  ;;  %v4498_v28 = vpack.i.bf16 %v548_v23, %v544_v20  ;;  %v4519_v37 = vmul.f32 0.35355338, %v548_v23 }
  0xef   : > { %v3996_v29 = vpack.c.bf16 %v550_v27, %v546_v26  ;;  %v4500_v30 = vpack.i.bf16 %v550_v27, %v546_v26 }
  0xf0   : > { %4126 = vrot.lane.b32.xlu0 %v4498_v28, %s4351_s17  ;;  %s4361_s17 = smov 32  }
 0x162   : > { %v4127_v31 = vpop.permute.xlu0 %4126 }
 0x163   : > { %v4129_v32 = vunpack.i.h.bf16 %v4127_v31  ;;  %v4128_v33 = vunpack.i.l.bf16 %v4127_v31 }
 0x165   : > { %v3990_v35 = vpack.c.bf16 %v4129_v32, %v4128_v33 }
 0x167   : > { %3992 = vmatprep.subr.msk.bf16.mxu1 %vm4505_vm3, %v3990_v35 }
 0x168   : > { %3995 = vmatpush3.bf16.xpose.msk.msra.mxu1 %vm4505_vm3, %v3990_v35 }
 0x169   : > { %3998 = vmatprep.subr.msk.bf16.mxu1 %vm4509_vm5, %v3996_v29 }
 0x16f   : > { %3843 = vmatmul.mubr.msk.f32.vlgmr.msra.gmra.mrb[0].mxu1 %vm568_vm1, %v4519_v37 }
 0x170   : > { %4001 = vmatpush3.bf16.msk.msra.mxu1 %vm4509_vm5, %v3996_v29 }
 0x242   : > { %v3844_v38 = vpop.f32.mrb[0].mxu1 }
 0x243   : > { %v645_v39 = vpop.f32.mrb[1].mxu1  ;;  %v659_v40 = vsel %vm658_vm6, %v3844_v38, -inf }
 0x244   : > { %660 = vmax.xlane.f32.xlu1 %v659_v40  ;;  %v655_v41 = vsel %vm654_vm7, %v645_v39, -inf }
 0x245   : > { %656 = vmax.xlane.f32.xlu0 %v655_v41 }
 0x255   : > { %4131 = vrot.lane.b32.xlu1 %v4498_v28, %s4353_s18 }
 0x259   : > { %763 = vrot.lane.b32.xlu1 %v4494_v25, %s4354_s19 }
 0x2d1   : > { %v661_v42 = vpop.xlane.xlu1 %660 }
 0x2d2   : > { %v663_v43 = vsub.f32 %v3844_v38, %v661_v42  ;;  %v657_v44 = vpop.xlane.xlu0 %656 }
 0x2d3   : > { %v662_v45 = vsub.f32 %v645_v39, %v657_v44 }
 0x2d4   : > { %v666_v46 = vmul.f32 1.442695, %v663_v43 }
 0x2d5   : > { %v664_v47 = vmul.f32 1.442695, %v662_v45  ;;  %v4132_v48 = vpop.permute.xlu1 %4131 }
 0x2d6   : > { %4268 = vpow2.f32 %v666_v46  ;;  %v4134_v49 = vunpack.i.h.bf16 %v4132_v48  ;;  %v4133_v50 = vunpack.i.l.bf16 %v4132_v48  ;;  %v553_v48 = vld [vmem:[%s4952_s3 + $0x8] sm:$0xff] }
 0x2d7   : > { %4270 = vpow2.f32 %v664_v47 }
 0x2d8   : > { %v4002_v51 = vpack.c.bf16 %v4134_v49, %v4133_v50  ;;  %v552_v49 = vld [vmem:[%s4952_s3] sm:$0xff] }
 0x2d9   : > { %v764_v56 = vpop.permute.xlu1 %763 }
 0x2da   : > { %4004 = vmatprep.subr.msk.bf16.mxu1 %vm4505_vm3, %v4002_v51 }
 0x2e0   : > { %v4269_v52 = vpop.eup %4268 }
 0x2e1   : > { %v671_v53 = vsel %vm658_vm6, %v4269_v52, 0.0  ;;  %v4271_v54 = vpop.eup %4270 }
 0x2e2   : > { %672 = vadd.xlane.f32.xlu1 %v671_v53  ;;  %v668_v55 = vsel %vm654_vm7, %v4271_v54, 0.0 }
 0x2e6   : > { %669 = vadd.xlane.f32.xlu1 %v668_v55 }
 0x2f7   : > { %765 = vrot.lane.b32.xlu1 %v4519_v37, %s4354_s19 }
 0x36f   : > { %v673_v57 = vpop.xlane.xlu1 %672 }
 0x370   : > { %4272 = vrcp.f32 %v673_v57 }
 0x373   : > { %v670_v58 = vpop.xlane.xlu1 %669 }
 0x374   : > { %4274 = vrcp.f32 %v670_v58 }
 0x377   : > { %v766_v63 = vpop.permute.xlu1 %765 }
 0x37a   : > { %v4273_v59 = vpop.eup %4272 }
 0x37b   : > { %v677_v62 = vmul.f32 %v4273_v59, %v4269_v52 }
 0x37e   : > { %v4275_v60 = vpop.eup %4274 }
 0x37f   : > { %v676_v61 = vmul.f32 %v4275_v60, %v4271_v54 }
 0x381   : > { %3849 = vmatprep.mubr.msk.f32.mxu1 %vm654_vm7, %v676_v61 }
 0x382   : > { %3850 = vmatmul.mubr.msk.f32.vlgmr.msra.gmra.mrb[2].mxu1 %vm654_vm7, %v677_v62 }
 0x383   : > { %4007 = vmatpush3.bf16.xpose.msk.msra.mxu1 %vm4505_vm3, %v4002_v51  ;;  %3856 = vmatprep.mubr.msk.f32.mxu1 %vm568_vm1, %v764_v56 }
 0x384   : > { %3866 = vmatprep.subr.mxu1 %v553_v48 }
 0x38a   : > { %3857 = vmatmul.mubr.msk.f32.vlgmr.msra.gmra.mrb[4].mxu1 %vm568_vm1, %v766_v63 }
 0x38b   : > { %3867 = vmatpush3.msra.mxu1 %v553_v48 }
 0x38c   : > { %3871 = vmatprep.subr.mxu1 %v552_v49 }
 0x455   : > { %v4542_v0 = vpop.f32.mrb[2].mxu1 }
 0x456   : > { %v4544_v1 = vpop.f32.mrb[3].mxu1 }
 0x45d   : > { %v3858_v3 = vpop.f32.mrb[4].mxu1 }
 0x45e   : > { %v845_v4 = vpop.f32.mrb[5].mxu1  ;;  %v857_v5 = vsel %vm658_vm6, %v3858_v3, -inf }
 0x45f   : > { %858 = vmax.xlane.f32.xlu1 %v857_v5  ;;  %v854_v6 = vsel %vm654_vm7, %v845_v4, -inf }
 0x460   : > { %855 = vmax.xlane.f32.xlu0 %v854_v6 }
 0x470   : > { %1129 = vrot.lane.b32.xlu1 %v4519_v37, %s4355_s21 }
 0x476   : > { %4136 = vrot.lane.b32.xlu0 %v4500_v30, %s4354_s19 }
 0x4ec   : > { %v859_v7 = vpop.xlane.xlu1 %858 }
 0x4ed   : > { %v861_v8 = vsub.f32 %v3858_v3, %v859_v7  ;;  %v856_v9 = vpop.xlane.xlu0 %855 }
 0x4ee   : > { %v860_v10 = vsub.f32 %v845_v4, %v856_v9 }
 0x4ef   : > { %v864_v11 = vmul.f32 1.442695, %v861_v8 }
 0x4f0   : > { %v862_v12 = vmul.f32 1.442695, %v860_v10  ;;  %v1130_v45 = vpop.permute.xlu1 %1129 }
 0x4f1   : > { %4276 = vpow2.f32 %v864_v11  ;;  %v4137_v15 = vpop.permute.xlu0 %4136  ;;  %v554_v11 = vld [vmem:[%s4952_s3 + $0x10] sm:$0xff] }
 0x4f2   : > { %v4139_v17 = vunpack.i.h.bf16 %v4137_v15  ;;  %v4138_v18 = vunpack.i.l.bf16 %v4137_v15  ;;  %4278 = vpow2.f32 %v862_v12 }
 0x4f4   : > { %v4008_v19 = vpack.c.bf16 %v4139_v17, %v4138_v18 }
 0x4f6   : > { %4010 = vmatprep.subr.msk.bf16.mxu0 %vm4509_vm5, %v4008_v19 }
 0x4f7   : > { %4013 = vmatpush3.bf16.msk.msra.mxu0 %vm4509_vm5, %v4008_v19 }
 0x4fb   : > { %v4277_v20 = vpop.eup %4276 }
 0x4fc   : > { %v869_v21 = vsel %vm658_vm6, %v4277_v20, 0.0  ;;  %v4279_v22 = vpop.eup %4278 }
 0x4fd   : > { %870 = vadd.xlane.f32.xlu0 %v869_v21  ;;  %v866_v23 = vsel %vm654_vm7, %v4279_v22, 0.0 }
 0x501   : > { %867 = vadd.xlane.f32.xlu0 %v866_v23 }
 0x517   : > { %4141 = vrot.lane.b32.xlu0 %v4498_v28, %s4356_s22 }
 0x51b   : > { %1127 = vrot.lane.b32.xlu0 %v4494_v25, %s4355_s21 }
 0x51f   : > { %4146 = vrot.lane.b32.xlu0 %v4498_v28, %s4357_s23  ;;  %s440_s23 = scalar_lea.vmem %s4962_s13, %s3704_s20 }
 0x523   : > { %1411 = vrot.lane.b32.xlu0 %v4494_v25, %s4358_s24 }
 0x527   : > { %1413 = vrot.lane.b32.xlu0 %v4519_v37, %s4358_s24 }
 0x58a   : > { %v871_v24 = vpop.xlane.xlu0 %870 }
 0x58b   : > { %4280 = vrcp.f32 %v871_v24 }
 0x58e   : > { %v868_v26 = vpop.xlane.xlu0 %867 }
 0x58f   : > { %4282 = vrcp.f32 %v868_v26 }
 0x592   : > { %v4142_v27 = vpop.permute.xlu0 %4141 }
 0x593   : > { %v4144_v29 = vunpack.i.h.bf16 %v4142_v27  ;;  %v4143_v31 = vunpack.i.l.bf16 %v4142_v27 }
 0x595   : > { %v4014_v32 = vpack.c.bf16 %v4144_v29, %v4143_v31  ;;  %v4281_v35 = vpop.eup %4280 }
 0x596   : > { %v1128_v33 = vpop.permute.xlu0 %1127  ;;  %v875_v41 = vmul.f32 %v4281_v35, %v4277_v20 }
 0x597   : > { %4016 = vmatprep.subr.msk.bf16.mxu0 %vm4505_vm3, %v4014_v32 }
 0x599   : > { %v4283_v38 = vpop.eup %4282 }
 0x59a   : > { %v4147_v39 = vpop.permute.xlu0 %4146  ;;  %v874_v40 = vmul.f32 %v4283_v38, %v4279_v22 }
 0x59b   : > { %v4149_v42 = vunpack.i.h.bf16 %v4147_v39  ;;  %v4148_v43 = vunpack.i.l.bf16 %v4147_v39 }
 0x59c   : > { %3863 = vmatprep.mubr.msk.f32.mxu0 %vm654_vm7, %v874_v40 }
 0x59d   : > { %v4026_v44 = vpack.c.bf16 %v4149_v42, %v4148_v43  ;;  %3864 = vmatmul.mubr.msk.f32.vlgmr.msra.gmra.mrb[4].mxu0 %vm654_vm7, %v875_v41 }
 0x59e   : > { %4019 = vmatpush3.bf16.xpose.msk.msra.mxu0 %vm4505_vm3, %v4014_v32  ;;  %3880 = vmatprep.mubr.msk.f32.mxu0 %vm568_vm1, %v1128_v33  ;;  %v1412_v46 = vpop.permute.xlu0 %1411 }
 0x59f   : > { %4028 = vmatprep.subr.msk.bf16.mxu0 %vm4505_vm3, %v4026_v44 }
 0x5a2   : > { %v1414_v47 = vpop.permute.xlu0 %1413 }
 0x5a5   : > { %3881 = vmatmul.mubr.msk.f32.vlgmr.msra.gmra.mrb[6].mxu0 %vm568_vm1, %v1130_v45 }
 0x5a6   : > { %4031 = vmatpush3.bf16.xpose.msk.msra.mxu0 %vm4505_vm3, %v4026_v44  ;;  %3899 = vmatprep.mubr.msk.f32.mxu0 %vm568_vm1, %v1412_v46 }
 0x5ad   : > { %3900 = vmatmul.mubr.msk.f32.vlgmr.msra.gmra.mrb[8].mxu0 %vm568_vm1, %v1414_v47 }
 0x670   : > { %v3865_v50 = vpop.f32.mrb[4].mxu0 }
 0x671   : > { %v956_v51 = vpop.f32.mrb[5].mxu0 }
 0x672   : > { %3868 = vmatprep.mubr.msk.f32.mxu1 %vm568_vm1, %v956_v51 }
 0x673   : > { %3869 = vmatmul.mubr.msk.f32.vlgmr.msra.gmra.mrb[6].mxu1 %vm568_vm1, %v3865_v50 }
 0x674   : > { %3873 = vmatprep.mubr.msk.f32.mxu1 %vm568_vm1, %v4544_v1  ;;  %3872 = vmatpush3.msra.mxu1 %v552_v49 }
 0x678   : > { %v3882_v52 = vpop.f32.mrb[6].mxu0 }
 0x679   : > { %v1209_v53 = vpop.f32.mrb[7].mxu0  ;;  %v1221_v54 = vsel %vm658_vm6, %v3882_v52, -inf }
 0x67a   : > { %1222 = vmax.xlane.f32.xlu1 %v1221_v54  ;;  %v1218_v55 = vsel %vm654_vm7, %v1209_v53, -inf }
 0x67b   : > { %1219 = vmax.xlane.f32.xlu0 %v1218_v55  ;;  %3874 = vmatmul.mubr.msk.f32.vlgmr.msra.gmra.mrb[6].mxu1 %vm568_vm1, %v4542_v0 }
 0x680   : > { %v4594_v56 = vpop.f32.mrb[8].mxu0 }
 0x681   : > { %v4596_v57 = vpop.f32.mrb[9].mxu0  ;;  %v1505_v58 = vsel %vm658_vm6, %v4594_v56, -inf }
 0x682   : > { %v1502_v12 = vsel %vm654_vm7, %v4596_v57, -inf }
 0x68b   : > { %4151 = vrot.lane.b32.xlu1 %v4500_v30, %s4355_s21  ;;  %s4362_s21 = smov 24  }
 0x68f   : > { %1695 = vrot.lane.b32.xlu1 %v4494_v25, %s4359_s15 }
 0x693   : > { %1697 = vrot.lane.b32.xlu1 %v4519_v37, %s4359_s15 }
 0x6b7   : > { %1506 = vmax.xlane.f32.xlu1 %v1505_v58 }
 0x6c8   : > { %4161 = vrot.lane.b32.xlu1 %v4500_v30, %s4358_s24  ;;  %s4363_s24 = smov 80  }
 0x6cc   : > { %1979 = vrot.lane.b32.xlu1 %v4494_v25, %s4360_s16 }
 0x6d0   : > { %1981 = vrot.lane.b32.xlu1 %v4519_v37, %s4360_s16 }
 0x707   : > { %v1223_v59 = vpop.xlane.xlu1 %1222 }
 0x708   : > { %v1225_v60 = vsub.f32 %v3882_v52, %v1223_v59  ;;  %v1220_v61 = vpop.xlane.xlu0 %1219 }
 0x709   : > { %v1224_v62 = vsub.f32 %v1209_v53, %v1220_v61 }
 0x70a   : > { %v1228_v63 = vmul.f32 1.442695, %v1225_v60 }
 0x70b   : > { %v1226_v0 = vmul.f32 1.442695, %v1224_v62  ;;  %v4152_v1 = vpop.permute.xlu1 %4151 }
 0x70c   : > { %v4154_v3 = vunpack.i.h.bf16 %v4152_v1  ;;  %v4153_v4 = vunpack.i.l.bf16 %v4152_v1  ;;  %v555_v1 = vld [vmem:[%s4952_s3 + $0x18] sm:$0xff] }
 0x70d   : > { %4284 = vpow2.f32 %v1226_v0 }
 0x70e   : > { %v4020_v5 = vpack.c.bf16 %v4154_v3, %v4153_v4  ;;  %4286 = vpow2.f32 %v1228_v63 }
 0x70f   : > { %v1696_v6 = vpop.permute.xlu1 %1695 }
 0x710   : > { %4022 = vmatprep.subr.msk.bf16.mxu1 %vm4509_vm5, %v4020_v5  ;;  %3918 = vmatprep.mubr.msk.f32.mxu0 %vm568_vm1, %v1696_v6 }
 0x711   : > { %4025 = vmatpush3.bf16.msk.msra.mxu1 %vm4509_vm5, %v4020_v5 }
 0x712   : > { %3890 = vmatprep.subr.mxu1 %v554_v11 }
 0x713   : > { %v1698_v17 = vpop.permute.xlu1 %1697 }
 0x717   : > { %v4285_v7 = vpop.eup %4284 }
 0x718   : > { %v1230_v8 = vsel %vm654_vm7, %v4285_v7, 0.0  ;;  %v4287_v9 = vpop.eup %4286 }
 0x719   : > { %1231 = vadd.xlane.f32.xlu0 %v1230_v8  ;;  %v1233_v10 = vsel %vm658_vm6, %v4287_v9, 0.0 }
 0x71d   : > { %1234 = vadd.xlane.f32.xlu0 %v1233_v10 }
 0x733   : > { %4156 = vrot.lane.b32.xlu0 %v4498_v28, %s4361_s17 }
 0x744   : > { %v1507_v19 = vpop.xlane.xlu1 %1506 }
 0x745   : > { %v1509_v39 = vsub.f32 %v4594_v56, %v1507_v19 }
 0x747   : > { %v1512_v42 = vmul.f32 1.442695, %v1509_v39 }
 0x748   : > { %v4162_v24 = vpop.permute.xlu1 %4161 }
 0x749   : > { %v4164_v29 = vunpack.i.h.bf16 %v4162_v24  ;;  %v4163_v31 = vunpack.i.l.bf16 %v4162_v24 }
 0x74b   : > { %v4032_v35 = vpack.c.bf16 %v4164_v29, %v4163_v31  ;;  %v556_v29 = vld [vmem:[%s4952_s3 + $0x20] sm:$0xff] }
 0x74c   : > { %v1980_v38 = vpop.permute.xlu1 %1979 }
 0x750   : > { %v1982_v0 = vpop.permute.xlu1 %1981 }
 0x752   : > { %1503 = vmax.xlane.f32.xlu0 %v1502_v12 }
 0x7a6   : > { %v1232_v15 = vpop.xlane.xlu0 %1231 }
 0x7a7   : > { %4288 = vrcp.f32 %v1232_v15 }
 0x7aa   : > { %v1235_v18 = vpop.xlane.xlu0 %1234 }
 0x7ab   : > { %4290 = vrcp.f32 %v1235_v18 }
 0x7ae   : > { %v4157_v20 = vpop.permute.xlu0 %4156 }
 0x7af   : > { %v4159_v21 = vunpack.i.h.bf16 %v4157_v20  ;;  %v4158_v22 = vunpack.i.l.bf16 %v4157_v20 }
 0x7b1   : > { %v4289_v23 = vpop.eup %4288  ;;  %v4038_v26 = vpack.c.bf16 %v4159_v21, %v4158_v22 }
 0x7b2   : > { %v1238_v27 = vmul.f32 %v4289_v23, %v4285_v7 }
 0x7b3   : > { %4040 = vmatprep.subr.msk.bf16.mxu0 %vm4505_vm3, %v4038_v26 }
 0x7b4   : > { %3887 = vmatprep.mubr.msk.f32.mxu1 %vm654_vm7, %v1238_v27  ;;  %4043 = vmatpush3.bf16.xpose.msk.msra.mxu0 %vm4505_vm3, %v4038_v26 }
 0x7b5   : > { %v4291_v32 = vpop.eup %4290 }
 0x7b6   : > { %v1239_v33 = vmul.f32 %v4291_v32, %v4287_v9 }
 0x7b8   : > { %3888 = vmatmul.mubr.msk.f32.vlgmr.msra.gmra.mrb[8].mxu1 %vm654_vm7, %v1239_v33 }
 0x7b9   : > { %3891 = vmatpush3.msra.mxu1 %v554_v11 }
 0x7ba   : > { %4034 = vmatprep.subr.msk.bf16.mxu1 %vm4509_vm5, %v4032_v35 }
 0x7bb   : > { %3919 = vmatmul.mubr.msk.f32.vlgmr.msra.gmra.mrb[10].mxu0 %vm568_vm1, %v1698_v17 }
 0x7bc   : > { %3937 = vmatprep.mubr.msk.f32.mxu0 %vm568_vm1, %v1980_v38 }
 0x7df   : > { %v1504_v40 = vpop.xlane.xlu0 %1503 }
 0x7e0   : > { %v1508_v41 = vsub.f32 %v4596_v57, %v1504_v40 }
 0x7e2   : > { %v1510_v43 = vmul.f32 1.442695, %v1508_v41 }
 0x7e4   : > { %4292 = vpow2.f32 %v1510_v43 }
 0x7e5   : > { %4294 = vpow2.f32 %v1512_v42 }
 0x7ee   : > { %v4293_v44 = vpop.eup %4292 }
 0x7ef   : > { %v1514_v45 = vsel %vm654_vm7, %v4293_v44, 0.0  ;;  %v4295_v46 = vpop.eup %4294 }
 0x7f0   : > { %1515 = vadd.xlane.f32.xlu0 %v1514_v45  ;;  %v1517_v47 = vsel %vm658_vm6, %v4295_v46, 0.0 }
 0x7f4   : > { %1518 = vadd.xlane.f32.xlu0 %v1517_v47 }
 0x80a   : > { %4166 = vrot.lane.b32.xlu0 %v4498_v28, %s4362_s21 }
 0x87d   : > { %v1516_v48 = vpop.xlane.xlu0 %1515 }
 0x87e   : > { %4296 = vrcp.f32 %v1516_v48 }
 0x881   : > { %v1519_v49 = vpop.xlane.xlu0 %1518 }
 0x882   : > { %4298 = vrcp.f32 %v1519_v49 }
 0x885   : > { %v4167_v50 = vpop.permute.xlu0 %4166 }
 0x886   : > { %v4169_v51 = vunpack.i.h.bf16 %v4167_v50  ;;  %v4168_v52 = vunpack.i.l.bf16 %v4167_v50 }
 0x888   : > { %v4050_v53 = vpack.c.bf16 %v4169_v51, %v4168_v52  ;;  %v4297_v54 = vpop.eup %4296 }
 0x889   : > { %v1522_v58 = vmul.f32 %v4297_v54, %v4293_v44 }
 0x88a   : > { %4052 = vmatprep.subr.msk.bf16.mxu0 %vm4505_vm3, %v4050_v53 }
 0x88b   : > { %v3889_v55 = vpop.f32.mrb[8].mxu1  ;;  %4055 = vmatpush3.bf16.xpose.msk.msra.mxu0 %vm4505_vm3, %v4050_v53 }
 0x88c   : > { %v1319_v56 = vpop.f32.mrb[9].mxu1  ;;  %v4299_v57 = vpop.eup %4298 }
 0x88d   : > { %3892 = vmatprep.mubr.msk.f32.mxu1 %vm568_vm1, %v1319_v56  ;;  %v1523_v62 = vmul.f32 %v4299_v57, %v4295_v46 }
 0x88e   : > { %3893 = vmatmul.mubr.msk.f32.vlgmr.msra.gmra.mrb[6].mxu1 %vm568_vm1, %v3889_v55  ;;  %v3920_v59 = vpop.f32.mrb[10].mxu0 }
 0x88f   : > { %4037 = vmatpush3.bf16.msk.msra.mxu1 %vm4509_vm5, %v4032_v35  ;;  %3906 = vmatprep.mubr.msk.f32.mxu1 %vm654_vm7, %v1522_v58  ;;  %v1777_v60 = vpop.f32.mrb[11].mxu0  ;;  %v1789_v61 = vsel %vm658_vm6, %v3920_v59, -inf }
 0x890   : > { %1790 = vmax.xlane.f32.xlu1 %v1789_v61  ;;  %v1786_v63 = vsel %vm654_vm7, %v1777_v60, -inf  ;;  %3909 = vmatprep.subr.mxu1 %v555_v1 }
 0x891   : > { %1787 = vmax.xlane.f32.xlu0 %v1786_v63 }
 0x892   : > { %3907 = vmatmul.mubr.msk.f32.vlgmr.msra.gmra.mrb[10].mxu1 %vm654_vm7, %v1523_v62  ;;  %3938 = vmatmul.mubr.msk.f32.vlgmr.msra.gmra.mrb[12].mxu0 %vm568_vm1, %v1982_v0 }
 0x893   : > { %3910 = vmatpush3.msra.mxu1 %v555_v1 }
 0x8a1   : > { %4171 = vrot.lane.b32.xlu1 %v4500_v30, %s4359_s15  ;;  %s4366_s15 = smov 8  }
 0x8a5   : > { %2263 = vrot.lane.b32.xlu1 %v4494_v25, %s4363_s24 }
 0x8a9   : > { %2265 = vrot.lane.b32.xlu1 %v4519_v37, %s4363_s24 }
 0x91d   : > { %v1791_v3 = vpop.xlane.xlu1 %1790 }
 0x91e   : > { %v1793_v4 = vsub.f32 %v3920_v59, %v1791_v3  ;;  %v1788_v5 = vpop.xlane.xlu0 %1787 }
 0x91f   : > { %v1792_v6 = vsub.f32 %v1777_v60, %v1788_v5 }
 0x920   : > { %v1796_v7 = vmul.f32 1.442695, %v1793_v4 }
 0x921   : > { %v1794_v8 = vmul.f32 1.442695, %v1792_v6  ;;  %v4172_v9 = vpop.permute.xlu1 %4171 }
 0x922   : > { %v4174_v10 = vunpack.i.h.bf16 %v4172_v9  ;;  %v4173_v11 = vunpack.i.l.bf16 %v4172_v9 }
 0x923   : > { %4300 = vpow2.f32 %v1794_v8 }
 0x924   : > { %v4044_v12 = vpack.c.bf16 %v4174_v10, %v4173_v11  ;;  %4302 = vpow2.f32 %v1796_v7  ;;  %v557_v10 = vld [vmem:[%s4952_s3 + $0x28] sm:$0xff] }
 0x925   : > { %v2264_v15 = vpop.permute.xlu1 %2263 }
 0x926   : > { %4046 = vmatprep.subr.msk.bf16.mxu1 %vm4509_vm5, %v4044_v12  ;;  %3956 = vmatprep.mubr.msk.f32.mxu0 %vm568_vm1, %v2264_v15 }
 0x929   : > { %v2266_v42 = vpop.permute.xlu1 %2265 }
 0x92d   : > { %v4301_v17 = vpop.eup %4300 }
 0x92e   : > { %v1798_v18 = vsel %vm654_vm7, %v4301_v17, 0.0  ;;  %v4303_v19 = vpop.eup %4302 }
 0x92f   : > { %1799 = vadd.xlane.f32.xlu0 %v1798_v18  ;;  %v1801_v20 = vsel %vm658_vm6, %v4303_v19, 0.0 }
 0x933   : > { %1802 = vadd.xlane.f32.xlu0 %v1801_v20 }
 0x949   : > { %4176 = vrot.lane.b32.xlu0 %v4498_v28, %s4364_s27 }
 0x965   : > { %v3908_v21 = vpop.f32.mrb[10].mxu1  ;;  %v3939_v22 = vpop.f32.mrb[12].mxu0 }
 0x966   : > { %v1603_v23 = vpop.f32.mrb[11].mxu1  ;;  %v2061_v24 = vpop.f32.mrb[13].mxu0  ;;  %v2073_v26 = vsel %vm658_vm6, %v3939_v22, -inf }
 0x967   : > { %2074 = vmax.xlane.f32.xlu1 %v2073_v26  ;;  %3911 = vmatprep.mubr.msk.f32.mxu1 %vm568_vm1, %v1603_v23  ;;  %v2070_v27 = vsel %vm654_vm7, %v2061_v24, -inf }
 0x968   : > { %2071 = vmax.xlane.f32.xlu0 %v2070_v27  ;;  %3912 = vmatmul.mubr.msk.f32.vlgmr.msra.gmra.mrb[6].mxu1 %vm568_vm1, %v3908_v21 }
 0x969   : > { %4049 = vmatpush3.bf16.msk.msra.mxu1 %vm4509_vm5, %v4044_v12 }
 0x96a   : > { %3928 = vmatprep.subr.mxu1 %v556_v29 }
 0x978   : > { %4181 = vrot.lane.b32.xlu1 %v4500_v30, %s4360_s16 }
 0x97c   : > { %2547 = vrot.lane.b32.xlu1 %v4494_v25, %s4365_s14 }
 0x980   : > { %2549 = vrot.lane.b32.xlu1 %v4519_v37, %s4365_s14 }
 0x9bc   : > { %v1800_v31 = vpop.xlane.xlu0 %1799 }
 0x9bd   : > { %4304 = vrcp.f32 %v1800_v31 }
 0x9c0   : > { %v1803_v32 = vpop.xlane.xlu0 %1802 }
 0x9c1   : > { %4306 = vrcp.f32 %v1803_v32 }
 0x9c4   : > { %v4177_v33 = vpop.permute.xlu0 %4176 }
 0x9c5   : > { %v4179_v35 = vunpack.i.h.bf16 %v4177_v33  ;;  %v4178_v38 = vunpack.i.l.bf16 %v4177_v33 }
 0x9c7   : > { %v4305_v39 = vpop.eup %4304  ;;  %v4062_v40 = vpack.c.bf16 %v4179_v35, %v4178_v38  ;;  %v558_v38 = vld [vmem:[%s4952_s3 + $0x30] sm:$0xff] }
 0x9c8   : > { %v1806_v41 = vmul.f32 %v4305_v39, %v4301_v17 }
 0x9c9   : > { %4064 = vmatprep.subr.msk.bf16.mxu0 %vm4505_vm3, %v4062_v40 }
 0x9ca   : > { %3925 = vmatprep.mubr.msk.f32.mxu1 %vm654_vm7, %v1806_v41  ;;  %4067 = vmatpush3.bf16.xpose.msk.msra.mxu0 %vm4505_vm3, %v4062_v40 }
 0x9cb   : > { %v4307_v25 = vpop.eup %4306 }
 0x9cc   : > { %v1807_v37 = vmul.f32 %v4307_v25, %v4303_v19 }
 0x9ce   : > { %3926 = vmatmul.mubr.msk.f32.vlgmr.msra.gmra.mrb[12].mxu1 %vm654_vm7, %v1807_v37 }
 0x9cf   : > { %3929 = vmatpush3.msra.mxu1 %v556_v29 }
 0x9d1   : > { %3957 = vmatmul.mubr.msk.f32.vlgmr.msra.gmra.mrb[14].mxu0 %vm568_vm1, %v2266_v42 }
 0x9f4   : > { %v2075_v43 = vpop.xlane.xlu1 %2074 }
 0x9f5   : > { %v2077_v44 = vsub.f32 %v3939_v22, %v2075_v43  ;;  %v2072_v45 = vpop.xlane.xlu0 %2071 }
 0x9f6   : > { %v2076_v46 = vsub.f32 %v2061_v24, %v2072_v45 }
 0x9f7   : > { %v2080_v47 = vmul.f32 1.442695, %v2077_v44 }
 0x9f8   : > { %v2078_v48 = vmul.f32 1.442695, %v2076_v46  ;;  %v4182_v49 = vpop.permute.xlu1 %4181 }
 0x9f9   : > { %v4184_v50 = vunpack.i.h.bf16 %v4182_v49  ;;  %v4183_v51 = vunpack.i.l.bf16 %v4182_v49 }
 0x9fa   : > { %4308 = vpow2.f32 %v2078_v48 }
 0x9fb   : > { %v4056_v52 = vpack.c.bf16 %v4184_v50, %v4183_v51  ;;  %4310 = vpow2.f32 %v2080_v47 }
 0x9fc   : > { %v2548_v53 = vpop.permute.xlu1 %2547 }
 0x9fd   : > { %4058 = vmatprep.subr.msk.bf16.mxu1 %vm4509_vm5, %v4056_v52  ;;  %3975 = vmatprep.mubr.msk.f32.mxu0 %vm568_vm1, %v2548_v53 }
 0xa00   : > { %v2550_v9 = vpop.permute.xlu1 %2549 }
 0xa04   : > { %v4309_v54 = vpop.eup %4308 }
 0xa05   : > { %v2082_v55 = vsel %vm654_vm7, %v4309_v54, 0.0  ;;  %v4311_v56 = vpop.eup %4310 }
 0xa06   : > { %2083 = vadd.xlane.f32.xlu0 %v2082_v55  ;;  %v2085_v57 = vsel %vm658_vm6, %v4311_v56, 0.0 }
 0xa0a   : > { %2086 = vadd.xlane.f32.xlu0 %v2085_v57 }
 0xa20   : > { %4186 = vrot.lane.b32.xlu0 %v4498_v28, %s4366_s15 }
 0xa93   : > { %v2084_v58 = vpop.xlane.xlu0 %2083 }
 0xa94   : > { %4312 = vrcp.f32 %v2084_v58 }
 0xa97   : > { %v2087_v59 = vpop.xlane.xlu0 %2086 }
 0xa98   : > { %4314 = vrcp.f32 %v2087_v59 }
 0xa9b   : > { %v4187_v60 = vpop.permute.xlu0 %4186 }
 0xa9c   : > { %v4189_v61 = vunpack.i.h.bf16 %v4187_v60  ;;  %v4188_v62 = vunpack.i.l.bf16 %v4187_v60 }
 0xa9e   : > { %v4074_v63 = vpack.c.bf16 %v4189_v61, %v4188_v62  ;;  %v4313_v0 = vpop.eup %4312 }
 0xa9f   : > { %v2090_v28 = vmul.f32 %v4313_v0, %v4309_v54 }
 0xaa0   : > { %4076 = vmatprep.subr.msk.bf16.mxu0 %vm4505_vm3, %v4074_v63 }
 0xaa1   : > { %v3927_v1 = vpop.f32.mrb[12].mxu1  ;;  %4079 = vmatpush3.bf16.xpose.msk.msra.mxu0 %vm4505_vm3, %v4074_v63 }
 0xaa2   : > { %v1887_v3 = vpop.f32.mrb[13].mxu1  ;;  %v4315_v4 = vpop.eup %4314 }
 0xaa3   : > { %3930 = vmatprep.mubr.msk.f32.mxu1 %vm568_vm1, %v1887_v3  ;;  %v2091_v8 = vmul.f32 %v4315_v4, %v4311_v56 }
 0xaa4   : > { %3931 = vmatmul.mubr.msk.f32.vlgmr.msra.gmra.mrb[6].mxu1 %vm568_vm1, %v3927_v1  ;;  %v3958_v5 = vpop.f32.mrb[14].mxu0  ;;  %v559_v1 = vld [vmem:[%s4952_s3 + $0x38] sm:$0xff] }
 0xaa5   : > { %4061 = vmatpush3.bf16.msk.msra.mxu1 %vm4509_vm5, %v4056_v52  ;;  %3944 = vmatprep.mubr.msk.f32.mxu1 %vm654_vm7, %v2090_v28  ;;  %v2345_v6 = vpop.f32.mrb[15].mxu0  ;;  %v2357_v7 = vsel %vm658_vm6, %v3958_v5, -inf }
 0xaa6   : > { %2358 = vmax.xlane.f32.xlu1 %v2357_v7  ;;  %v2354_v34 = vsel %vm654_vm7, %v2345_v6, -inf  ;;  %3947 = vmatprep.subr.mxu1 %v557_v10 }
 0xaa7   : > { %2355 = vmax.xlane.f32.xlu0 %v2354_v34  ;;  %v4340_v34 = vld [vmem:[%s4475_s29 + $0x8] sm:$0x1] }
 0xaa8   : > { %3945 = vmatmul.mubr.msk.f32.vlgmr.msra.gmra.mrb[14].mxu1 %vm654_vm7, %v2091_v8  ;;  %3976 = vmatmul.mubr.msk.f32.vlgmr.msra.gmra.mrb[16].mxu0 %vm568_vm1, %v2550_v9 }
 0xaa9   : > { %3042 = vmatprep.mubr.bf16.mxu0 %v4350_v2  ;;  %3948 = vmatpush3.msra.mxu1 %v557_v10  ;;  %v4341_v10 = vld [vmem:[%s4475_s29] sm:$0xff] }
 0xab7   : > { %4191 = vrot.lane.b32.xlu1 %v4500_v30, %s4363_s24 }
 0xabb   : > { %4196 = vrot.lane.b32.xlu1 %v4500_v30, %s4365_s14 }
 0xb33   : > { %v2359_v11 = vpop.xlane.xlu1 %2358 }
 0xb34   : > { %v2361_v12 = vsub.f32 %v3958_v5, %v2359_v11  ;;  %v2356_v15 = vpop.xlane.xlu0 %2355 }
 0xb35   : > { %v2360_v17 = vsub.f32 %v2345_v6, %v2356_v15 }
 0xb36   : > { %v2364_v18 = vmul.f32 1.442695, %v2361_v12 }
 0xb37   : > { %v2362_v19 = vmul.f32 1.442695, %v2360_v17  ;;  %v4192_v20 = vpop.permute.xlu1 %4191 }
 0xb38   : > { %v4194_v21 = vunpack.i.h.bf16 %v4192_v20  ;;  %v4193_v22 = vunpack.i.l.bf16 %v4192_v20 }
 0xb39   : > { %4316 = vpow2.f32 %v2362_v19 }
 0xb3a   : > { %v4068_v23 = vpack.c.bf16 %v4194_v21, %v4193_v22  ;;  %4318 = vpow2.f32 %v2364_v18 }
 0xb3b   : > { %v4197_v37 = vpop.permute.xlu1 %4196 }
 0xb3c   : > { %4070 = vmatprep.subr.msk.bf16.mxu1 %vm4509_vm5, %v4068_v23  ;;  %v4199_v43 = vunpack.i.h.bf16 %v4197_v37  ;;  %v4198_v44 = vunpack.i.l.bf16 %v4197_v37  ;;  %v4230_v37 = vld [vmem:[%s4956_s7 + $0x60] ss:$16 sps:$4 sm:$0xff]  }
 0xb3e   : > { %v4080_v47 = vpack.c.bf16 %v4199_v43, %v4198_v44  ;;  %v4233_v43 = vld [vmem:[%s4956_s7 + $0x68] ss:$16 sps:$4 sm:$0xff]   ;;  %v4235_v44 = vld [vmem:[%s4956_s7 + $0x6c] ss:$16 sps:$4 sm:$0xff]  }
 0xb43   : > { %v4317_v24 = vpop.eup %4316 }
 0xb44   : > { %v2366_v30 = vsel %vm654_vm7, %v4317_v24, 0.0  ;;  %v4319_v26 = vpop.eup %4318 }
 0xb45   : > { %2367 = vadd.xlane.f32.xlu0 %v2366_v30  ;;  %v2369_v27 = vsel %vm658_vm6, %v4319_v26, 0.0 }
 0xb49   : > { %2370 = vadd.xlane.f32.xlu0 %v2369_v27  ;;  %v4217_v27 = vld [vmem:[%s4956_s7 + $0xc] ss:$16 sps:$4 sm:$0xff]  }
 0xb7b   : > { %v3946_v29 = vpop.f32.mrb[14].mxu1  ;;  %v3977_v31 = vpop.f32.mrb[16].mxu0 }
 0xb7c   : > { %v2171_v32 = vpop.f32.mrb[15].mxu1  ;;  %v2629_v33 = vpop.f32.mrb[17].mxu0  ;;  %v2641_v39 = vsel %vm658_vm6, %v3977_v31, -inf }
 0xb7d   : > { %3949 = vmatprep.mubr.msk.f32.mxu1 %vm568_vm1, %v2171_v32  ;;  %v2638_v35 = vsel %vm654_vm7, %v2629_v33, -inf  ;;  %v4220_v32 = vld [vmem:[%s4956_s7 + $0x24] ss:$16 sps:$4 sm:$0xff]  }
 0xb7e   : > { %2639 = vmax.xlane.f32.xlu0 %v2638_v35  ;;  %3950 = vmatmul.mubr.msk.f32.vlgmr.msra.gmra.mrb[6].mxu1 %vm568_vm1, %v3946_v29  ;;  %v4212_v29 = vld [vmem:[%s4956_s7] ss:$16 sps:$4 sm:$0xff]  }
 0xb7f   : > { %4073 = vmatpush3.bf16.msk.msra.mxu1 %vm4509_vm5, %v4068_v23  ;;  %v4218_v35 = vld [vmem:[%s4956_s7 + $0x20] ss:$16 sps:$4 sm:$0xff]  }
 0xb80   : > { %3966 = vmatprep.subr.mxu1 %v558_v38 }
 0xb82   : > { %2642 = vmax.xlane.f32.xlu0 %v2641_v39  ;;  %v4226_v39 = vld [vmem:[%s4956_s7 + $0x44] ss:$16 sps:$4 sm:$0xff]  }
 0xbd2   : > { %v2368_v40 = vpop.xlane.xlu0 %2367 }
 0xbd3   : > { %4320 = vrcp.f32 %v2368_v40  ;;  %v4229_v40 = vld [vmem:[%s4956_s7 + $0x4c] ss:$16 sps:$4 sm:$0xff]  }
 0xbd6   : > { %v2371_v41 = vpop.xlane.xlu0 %2370 }
 0xbd7   : > { %4322 = vrcp.f32 %v2371_v41  ;;  %v4224_v41 = vld [vmem:[%s4956_s7 + $0x40] ss:$16 sps:$4 sm:$0xff]  }
 0xbdd   : > { %v4321_v25 = vpop.eup %4320 }
 0xbde   : > { %v2374_v42 = vmul.f32 %v4321_v25, %v4317_v24  ;;  %v4227_v25 = vld [vmem:[%s4956_s7 + $0x48] ss:$16 sps:$4 sm:$0xff]  }
 0xbe0   : > { %3963 = vmatprep.mubr.msk.f32.mxu1 %vm654_vm7, %v2374_v42  ;;  %v4232_v42 = vld [vmem:[%s4956_s7 + $0x64] ss:$16 sps:$4 sm:$0xff]  }
 0xbe1   : > { %v4323_v45 = vpop.eup %4322 }
 0xbe2   : > { %v2375_v46 = vmul.f32 %v4323_v45, %v4319_v26  ;;  %v4214_v26 = vld [vmem:[%s4956_s7 + $0x4] ss:$16 sps:$4 sm:$0xff]  }
 0xbe3   : > { %3010 = vmatprep.subr.bf16.mxu0 %v4214_v26  ;;  %v4236_v45 = vld [vmem:[%s4958_s9 + $0x40] sm:$0xff]   ;;  %v4264_v26 = vld [vmem:[%s4958_s9 + $0x78] sm:$0xff]  }
 0xbe4   : > { %3964 = vmatmul.mubr.msk.f32.vlgmr.msra.gmra.mrb[16].mxu1 %vm654_vm7, %v2375_v46  ;;  %3011 = vmatpush1.bf16.msra.mxu0 %v4212_v29  ;;  %v4237_v46 = vld [vmem:[%s4958_s9 + $0xc0] sm:$0xff]   ;;  %v4266_v29 = vld [vmem:[%s4958_s9 + $0x38] sm:$0xff]  }
 0xbe5   : > { %3967 = vmatpush3.msra.mxu1 %v558_v38  ;;  %v4221_v38 = vld [vmem:[%s4956_s7 + $0x28] ss:$16 sps:$4 sm:$0xff]   ;;  %3012 = vmatprep.subr.bf16.mxu0 %v4220_v32  ;;  %v2917_v32 = vsub.s32 2, %v4483_v13 }
 0xbe6   : > { %4082 = vmatprep.subr.msk.bf16.mxu1 %vm4509_vm5, %v4080_v47 }
 0xbe8   : > { %3013 = vmatpush1.bf16.msra.mxu0 %v4218_v35  ;;  %v2921_v35 = vsub.s32 3, %v4483_v13 }
 0xbe9   : > { %3014 = vmatprep.subr.bf16.mxu0 %v4226_v39 }
 0xbec   : > { %3015 = vmatpush1.bf16.msra.mxu0 %v4224_v41 }
 0xbed   : > { %3016 = vmatprep.subr.bf16.mxu0 %v4232_v42 }
 0xbf0   : > { %3017 = vmatpush1.bf16.msra.mxu0 %v4230_v37 }
 0xbf1   : > { %3794 = vmatprep.subr.bf16.mxu0 %v4236_v45 }
 0xc0b   : > { %v2640_v48 = vpop.xlane.xlu0 %2639 }
 0xc0c   : > { %v2644_v49 = vsub.f32 %v2629_v33, %v2640_v48  ;;  %v4223_v33 = vld [vmem:[%s4956_s7 + $0x2c] ss:$16 sps:$4 sm:$0xff]  }
 0xc0e   : > { %v2646_v50 = vmul.f32 1.442695, %v2644_v49 }
 0xc0f   : > { %v2643_v51 = vpop.xlane.xlu0 %2642 }
 0xc10   : > { %4324 = vpow2.f32 %v2646_v50  ;;  %v2645_v52 = vsub.f32 %v3977_v31, %v2643_v51  ;;  %v4215_v31 = vld [vmem:[%s4956_s7 + $0x8] ss:$16 sps:$4 sm:$0xff]  }
 0xc12   : > { %v2648_v53 = vmul.f32 1.442695, %v2645_v52 }
 0xc14   : > { %4326 = vpow2.f32 %v2648_v53 }
 0xc1a   : > { %v4325_v54 = vpop.eup %4324 }
 0xc1b   : > { %v2650_v55 = vsel %vm654_vm7, %v4325_v54, 0.0 }
 0xc1c   : > { %2651 = vadd.xlane.f32.xlu0 %v2650_v55  ;;  %v3647_v55 = vld [vmem:[%s4954_s5] ss:$0 sm:$0xff] }
 0xc1e   : > { %v4327_v56 = vpop.eup %4326 }
 0xc1f   : > { %v2653_v57 = vsel %vm658_vm6, %v4327_v56, 0.0 }
 0xc20   : > { %2654 = vadd.xlane.f32.xlu0 %v2653_v57 }
 0xca9   : > { %v2652_v58 = vpop.xlane.xlu0 %2651 }
 0xcaa   : > { %4328 = vrcp.f32 %v2652_v58 }
 0xcad   : > { %v2655_v59 = vpop.xlane.xlu0 %2654 }
 0xcae   : > { %4330 = vrcp.f32 %v2655_v59  ;;  %v3648_v59 = vld [vmem:[%s4955_s6] ss:$0 sm:$0xff] }
 0xcb4   : > { %v4329_v60 = vpop.eup %4328 }
 0xcb5   : > { %v2658_v0 = vmul.f32 %v4329_v60, %v4325_v54 }
 0xcb7   : > { %v3965_v61 = vpop.f32.mrb[16].mxu1 }
 0xcb8   : > { %v2455_v62 = vpop.f32.mrb[17].mxu1  ;;  %v4331_v63 = vpop.eup %4330 }
 0xcb9   : > { %3968 = vmatprep.mubr.msk.f32.mxu1 %vm568_vm1, %v2455_v62  ;;  %v2659_v3 = vmul.f32 %v4331_v63, %v4327_v56  ;;  %v4238_v63 = vld [vmem:[%s4958_s9] sm:$0xff]  }
 0xcba   : > { %3969 = vmatmul.mubr.msk.f32.vlgmr.msra.gmra.mrb[6].mxu1 %vm568_vm1, %v3965_v61 }
 0xcbb   : > { %4085 = vmatpush3.bf16.msk.msra.mxu1 %vm4509_vm5, %v4080_v47  ;;  %3982 = vmatprep.mubr.msk.f32.mxu1 %vm654_vm7, %v2658_v0  ;;  %v4239_v0 = vld [vmem:[%s4958_s9 + $0x80] sm:$0xff]  }
 0xcbc   : > { %3985 = vmatprep.subr.mxu1 %v559_v1 }
 0xcbe   : > { %3983 = vmatmul.mubr.msk.f32.vlgmr.msra.gmra.mrb[18].mxu1 %vm654_vm7, %v2659_v3  ;;  %v4240_v3 = vld [vmem:[%s4958_s9 + $0x48] sm:$0xff]  }
 0xcbf   : > { %3986 = vmatpush3.msra.mxu1 %v559_v1 }
 0xcc0   : > { %3053 = vmatprep.subr.bf16.mxu1 %v4217_v27  ;;  %v4265_v27 = vld [vmem:[%s4958_s9 + $0xf8] sm:$0xff]  }
 0xd91   : > { %v3984_v4 = vpop.f32.mrb[18].mxu1 }
 0xd92   : > { %v2739_v28 = vpop.f32.mrb[19].mxu1 }
 0xd93   : > { %3987 = vmatprep.mubr.msk.f32.mxu1 %vm568_vm1, %v2739_v28  ;;  %v4242_v28 = vld [vmem:[%s4958_s9 + $0x8] sm:$0xff]  }
 0xd94   : > { %3988 = vmatmul.mubr.msk.f32.vlgmr.msra.gmra.mrb[6].mxu1 %vm568_vm1, %v3984_v4  ;;  %v4241_v4 = vld [vmem:[%s4958_s9 + $0xc8] sm:$0xff]  }
 0xd95   : > { %3085 = vmatprep.mubr.bf16.mxu1 %v4350_v2  ;;  %3054 = vmatpush1.bf16.msra.mxu1 %v4215_v31  ;;  %v4267_v31 = vld [vmem:[%s4958_s9 + $0xb8] sm:$0xff]  }
 0xd96   : > { %3055 = vmatprep.subr.bf16.mxu1 %v4223_v33  ;;  %v2905_v33 = vld [vmem:[%s4957_s8] sm:$0xf] }
 0xd97   : > { %v2918_v39 = vrot.slane %v2905_v33, %v2917_v32  ;;  %v2922_v41 = vrot.slane %v2905_v33, %v2921_v35 }
 0xd99   : > { %3056 = vmatpush1.bf16.msra.mxu1 %v4221_v38  ;;  %v2910_v38 = vrot.slane %v2905_v33, %v457_v14 }
 0xd9a   : > { %3057 = vmatprep.subr.bf16.mxu1 %v4229_v40  ;;  %v2914_v40 = vrot.slane %v2905_v33, %v461_v16 }
 0xd9d   : > { %3058 = vmatpush1.bf16.msra.mxu1 %v4227_v25 }
 0xd9e   : > { %3059 = vmatprep.subr.bf16.mxu1 %v4235_v44 }
 0xda1   : > { %3060 = vmatpush1.bf16.msra.mxu1 %v4233_v43 }
 0xda2   : > { %3816 = vmatprep.subr.bf16.mxu1 %v4237_v46 }
 0xe67   : > { %v3989_v5 = vpop.f32.mrb[6].mxu1 }
 0xe68   : > { %v2839_v6 = vadd.f32 %v3989_v5, %v3646_v36  ;;  %v2820_v7 = vpop.f32.mrb[7].mxu1  ;;  %v4244_v5 = vld [vmem:[%s4958_s9 + $0x50] sm:$0xff]  }
 0xe69   : > { %v2838_v8 = vadd.f32 %v3646_v36, %v2820_v7  ;;  %v4243_v36 = vld [vmem:[%s4958_s9 + $0x88] sm:$0xff]   ;;  %v4246_v7 = vld [vmem:[%s4958_s9 + $0x10] sm:$0xff]  }
 0xe6a   : > { %v2841_v9 = vadd.f32 %v4340_v34, %v2839_v6  ;;  %v4245_v6 = vld [vmem:[%s4958_s9 + $0xd0] sm:$0xff]   ;;  %v4248_v34 = vld [vmem:[%s4958_s9 + $0x58] sm:$0xff]  }
 0xe6b   : > { %v2840_v11 = vadd.f32 %v4341_v10, %v2838_v8  ;;  %v4247_v8 = vld [vmem:[%s4958_s9 + $0x90] sm:$0xff]   ;;  %v4250_v10 = vld [vmem:[%s4958_s9 + $0x18] sm:$0xff]  }
 0xe6c   : > { %v2848_v12 = vsel %vm2847_vm8, %v2841_v9, 0.0 }
 0xe6d   : > { %2849 = vadd.xlane.f32.xlu1 %v2848_v12  ;;  %v2844_v15 = vsel %vm505_vm0, %v2840_v11, 0.0  ;;  %v4252_v12 = vld [vmem:[%s4958_s9 + $0x60] sm:$0xff]  }
 0xe6e   : > { %2845 = vadd.xlane.f32.xlu0 %v2844_v15  ;;  %v4253_v15 = vld [vmem:[%s4958_s9 + $0xe0] sm:$0xff]  }
 0xefa   : > { %v2850_v2 = vpop.xlane.xlu1 %2849 }
 0xefb   : > { %v2853_v17 = vmul.f32 0.015625, %v2850_v2  ;;  %v2846_v18 = vpop.xlane.xlu0 %2845  ;;  %v4254_v2 = vld [vmem:[%s4958_s9 + $0x20] sm:$0xff]  }
 0xefc   : > { %v2852_v19 = vmul.f32 0.015625, %v2846_v18  ;;  %v4256_v18 = vld [vmem:[%s4958_s9 + $0x68] sm:$0xff]  }
 0xefd   : > { %v2855_v20 = vsub.f32 %v2841_v9, %v2853_v17  ;;  %v4249_v9 = vld [vmem:[%s4958_s9 + $0xd8] sm:$0xff]   ;;  %v4255_v17 = vld [vmem:[%s4958_s9 + $0xa0] sm:$0xff]  }
 0xefe   : > { %v2854_v21 = vsub.f32 %v2840_v11, %v2852_v19  ;;  %v4251_v11 = vld [vmem:[%s4958_s9 + $0x98] sm:$0xff]   ;;  %v4257_v19 = vld [vmem:[%s4958_s9 + $0xe8] sm:$0xff]  }
 0xeff   : > { %v2857_v24 = vmul.f32 %v2855_v20, %v2855_v20 }
 0xf00   : > { %v2856_v22 = vmul.f32 %v2854_v21, %v2854_v21 }
 0xf01   : > { %v2861_v30 = vsel %vm2847_vm8, %v2857_v24, 0.0  ;;  %v4262_v24 = vld [vmem:[%s4958_s9 + $0x30] sm:$0xff]  }
 0xf02   : > { %v2858_v23 = vsel %vm505_vm0, %v2856_v22, 0.0  ;;  %v4260_v22 = vld [vmem:[%s4958_s9 + $0x70] sm:$0xff]  }
 0xf03   : > { %2859 = vadd.xlane.f32.xlu0 %v2858_v23  ;;  %v4261_v23 = vld [vmem:[%s4958_s9 + $0xf0] sm:$0xff]  }
 0xf07   : > { %2862 = vadd.xlane.f32.xlu0 %v2861_v30  ;;  %v4263_v30 = vld [vmem:[%s4958_s9 + $0xb0] sm:$0xff]  }
 0xf90   : > { %v2860_v47 = vpop.xlane.xlu0 %2859 }
 0xf91   : > { %v2864_v48 = vmul.f32 0.015625, %v2860_v47 }
 0xf93   : > { %v2866_v49 = vadd.f32 1e-05, %v2864_v48 }
 0xf94   : > { %v2863_v50 = vpop.xlane.xlu0 %2862 }
 0xf95   : > { %4332 = vrsqrt.f32 %v2866_v49  ;;  %v2865_v51 = vmul.f32 0.015625, %v2863_v50 }
 0xf97   : > { %v2867_v52 = vadd.f32 1e-05, %v2865_v51 }
 0xf99   : > { %4334 = vrsqrt.f32 %v2867_v52 }
 0xf9f   : > { %v4333_v53 = vpop.eup %4332 }
 0xfa0   : > { %v2870_v54 = vmul.f32 %v4333_v53, %v2854_v21  ;;  %v4259_v21 = vld [vmem:[%s4958_s9 + $0xa8] sm:$0xff]  }
 0xfa2   : > { %v2878_v57 = vmul.f32 %v3647_v55, %v2870_v54 }
 0xfa3   : > { %v4335_v56 = vpop.eup %4334 }
 0xfa4   : > { %v2871_v58 = vmul.f32 %v4335_v56, %v2855_v20  ;;  %v4817_v61 = vadd.f32 %v3648_v59, %v2878_v57  ;;  %v4258_v20 = vld [vmem:[%s4958_s9 + $0x28] sm:$0xff]  }
 0xfa6   : > { %v2879_v60 = vmul.f32 %v3647_v55, %v2871_v58 }
 0xfa8   : > { %v4819_v62 = vadd.f32 %v3648_v59, %v2879_v60 }
 0xfaa   : > { %v2888_v1 = vpack.c.bf16 %v4819_v62, %v4817_v61 }
 0xfac   : > { %3665 = vmatmul.mubr.msk.bf16.vlgmr.msra.gmra.mrb[20].mxu0 %vm505_vm0, %v2888_v1  ;;  %3666 = vmatmul.mubr.msk.bf16.vlgmr.msra.gmra.mrb[20].mxu1 %vm505_vm0, %v2888_v1 }
 0xfad   : > { %3795 = vmatpush3.bf16.msra.mxu0 %v4238_v63  ;;  %3817 = vmatpush3.bf16.msra.mxu1 %v4239_v0 }
 0xfae   : > { %3796 = vmatprep.subr.bf16.mxu0 %v4240_v3  ;;  %3818 = vmatprep.subr.bf16.mxu1 %v4241_v4 }
 0xfb1   : > { %3797 = vmatpush3.bf16.msra.mxu0 %v4242_v28  ;;  %3819 = vmatpush3.bf16.msra.mxu1 %v4243_v36  ;;  %v3667_v36 = vld [vmem:[%s4959_s10] ss:$0 sm:$0xff] }
 0xfb2   : > { %3798 = vmatprep.subr.bf16.mxu0 %v4244_v5  ;;  %3820 = vmatprep.subr.bf16.mxu1 %v4245_v6 }
 0xfb5   : > { %3799 = vmatpush3.bf16.msra.mxu0 %v4246_v7  ;;  %3821 = vmatpush3.bf16.msra.mxu1 %v4247_v8 }
 0xfb6   : > { %3800 = vmatprep.subr.bf16.mxu0 %v4248_v34  ;;  %3822 = vmatprep.subr.bf16.mxu1 %v4249_v9 }
 0xfb9   : > { %3801 = vmatpush3.bf16.msra.mxu0 %v4250_v10  ;;  %3823 = vmatpush3.bf16.msra.mxu1 %v4251_v11 }
 0xfba   : > { %3802 = vmatprep.subr.bf16.mxu0 %v4252_v12  ;;  %3824 = vmatprep.subr.bf16.mxu1 %v4253_v15 }
 0xfbd   : > { %3803 = vmatpush3.bf16.msra.mxu0 %v4254_v2  ;;  %3825 = vmatpush3.bf16.msra.mxu1 %v4255_v17 }
 0xfbe   : > { %3804 = vmatprep.subr.bf16.mxu0 %v4256_v18  ;;  %3826 = vmatprep.subr.bf16.mxu1 %v4257_v19 }
 0xfc1   : > { %3805 = vmatpush3.bf16.msra.mxu0 %v4258_v20  ;;  %3827 = vmatpush3.bf16.msra.mxu1 %v4259_v21 }
 0xfc2   : > { %3806 = vmatprep.subr.bf16.mxu0 %v4260_v22  ;;  %3828 = vmatprep.subr.bf16.mxu1 %v4261_v23 }
 0xfc5   : > { %3807 = vmatpush3.bf16.msra.mxu0 %v4262_v24  ;;  %3829 = vmatpush3.bf16.msra.mxu1 %v4263_v30 }
 0xfc6   : > { %3808 = vmatprep.subr.bf16.mxu0 %v4264_v26  ;;  %3830 = vmatprep.subr.bf16.mxu1 %v4265_v27 }
 0xfc9   : > { %3809 = vmatpush3.bf16.msra.mxu0 %v4266_v29  ;;  %3831 = vmatpush3.bf16.msra.mxu1 %v4267_v31 }
0x107f   : > { %v3044_v25 = vpop.f32.mrb[20].mxu0  ;;  %v3087_v37 = vpop.f32.mrb[20].mxu1 }
0x1080   : > { %v3045_v42 = vadd.f32 %v3044_v25, %v2910_v38  ;;  %v3088_v43 = vadd.f32 %v3087_v37, %v2918_v39  ;;  %v3046_v44 = vpop.f32.mrb[21].mxu0  ;;  %v3089_v45 = vpop.f32.mrb[21].mxu1 }
0x1081   : > { %v3047_v46 = vadd.f32 %v3046_v44, %v2914_v40  ;;  %v3090_v47 = vadd.f32 %v3089_v45, %v2922_v41  ;;  %v3048_v48 = vpop.f32.mrb[22].mxu0  ;;  %v3091_v49 = vpop.f32.mrb[22].mxu1  ;;  %v3701_v44 = vld [vmem:[%s4961_s12] ss:$0 sm:$0xff] }
0x1082   : > { %v3049_v50 = vadd.f32 %v3048_v48, %v2910_v38  ;;  %v3092_v51 = vadd.f32 %v3091_v49, %v2918_v39  ;;  %v3050_v52 = vpop.f32.mrb[23].mxu0  ;;  %v3093_v53 = vpop.f32.mrb[23].mxu1  ;;  %v3096_v55 = vmax.f32 %v3045_v42, 0.0  ;;  %v3098_v13 = vmax.f32 %v3088_v43, 0.0  ;;  %v3700_v42 = vld [vmem:[%s4960_s11] ss:$0 sm:$0xff] }
0x1083   : > { %v3051_v14 = vadd.f32 %v3050_v52, %v2914_v40  ;;  %v3094_v54 = vadd.f32 %v3093_v53, %v2922_v41  ;;  %v3097_v57 = vmax.f32 %v3047_v46, 0.0  ;;  %v3099_v58 = vmax.f32 %v3090_v47, 0.0 }
0x1084   : > { %v3100_v16 = vmax.f32 %v3049_v50, 0.0  ;;  %v3102_v56 = vmax.f32 %v3092_v51, 0.0 }
0x1085   : > { %v3101_v59 = vmax.f32 %v3051_v14, 0.0  ;;  %v3103_v60 = vmax.f32 %v3094_v54, 0.0 }
0x1086   : > { %v3104_v63 = vpack.c.bf16 %v3100_v16, %v3096_v55  ;;  %v3106_v0 = vpack.c.bf16 %v3102_v56, %v3098_v13 }
0x1087   : > { %v3105_v1 = vpack.c.bf16 %v3101_v59, %v3097_v57  ;;  %v3107_v3 = vpack.c.bf16 %v3103_v60, %v3099_v58 }
0x1089   : > { %3403 = vmatprep.mubr.bf16.mxu0 %v3105_v1  ;;  %3444 = vmatprep.mubr.bf16.mxu1 %v3107_v3 }
0x108a   : > { %3404 = vmatmul.mubr.bf16.vlgmr.msra.gmra.mrb[24].mxu0 %v3104_v63  ;;  %3445 = vmatmul.mubr.bf16.vlgmr.msra.gmra.mrb[24].mxu1 %v3106_v0 }
0x115d   : > { %v3810_v4 = vpop.f32.mrb[24].mxu0  ;;  %v3832_v28 = vpop.f32.mrb[24].mxu1 }
0x115e   : > { %v3811_v5 = vpop.f32.mrb[25].mxu0  ;;  %v3833_v6 = vpop.f32.mrb[25].mxu1 }
0x115f   : > { %v3812_v7 = vadd.f32 %v3811_v5, %v3810_v4  ;;  %v3834_v8 = vadd.f32 %v3833_v6, %v3832_v28  ;;  %v3813_v34 = vpop.f32.mrb[26].mxu0  ;;  %v3835_v9 = vpop.f32.mrb[26].mxu1 }
0x1160   : > { %v3814_v10 = vpop.f32.mrb[27].mxu0  ;;  %v3836_v11 = vpop.f32.mrb[27].mxu1 }
0x1161   : > { %v3406_v12 = vadd.f32 %v3812_v7, %v3667_v36  ;;  %v3815_v15 = vadd.f32 %v3814_v10, %v3813_v34  ;;  %v3837_v2 = vadd.f32 %v3836_v11, %v3835_v9 }
0x1163   : > { %v3447_v17 = vadd.f32 %v3834_v8, %v3406_v12  ;;  %v3409_v18 = vadd.f32 %v3815_v15, %v3667_v36 }
0x1165   : > { %v3450_v19 = vadd.f32 %v3837_v2, %v3409_v18  ;;  %v3453_v20 = vadd.f32 %v3447_v17, %v4817_v61 }
0x1167   : > { %v3457_v21 = vsel %vm505_vm0, %v3453_v20, 0.0  ;;  %v3454_v22 = vadd.f32 %v3450_v19, %v4819_v62 }
0x1168   : > { %3458 = vadd.xlane.f32.xlu0 %v3457_v21 }
0x1169   : > { %v3460_v23 = vsel %vm2847_vm8, %v3454_v22, 0.0 }
0x116c   : > { %3461 = vadd.xlane.f32.xlu0 %v3460_v23 }
0x11f5   : > { %v3459_v24 = vpop.xlane.xlu0 %3458 }
0x11f6   : > { %v3463_v30 = vmul.f32 0.015625, %v3459_v24 }
0x11f8   : > { %v3465_v26 = vsub.f32 %v3453_v20, %v3463_v30 }
0x11f9   : > { %v3462_v27 = vpop.xlane.xlu0 %3461 }
0x11fa   : > { %v3464_v29 = vmul.f32 0.015625, %v3462_v27  ;;  %v3467_v31 = vmul.f32 %v3465_v26, %v3465_v26 }
0x11fc   : > { %v3466_v32 = vsub.f32 %v3454_v22, %v3464_v29  ;;  %v3469_v33 = vsel %vm505_vm0, %v3467_v31, 0.0 }
0x11fd   : > { %3470 = vadd.xlane.f32.xlu0 %v3469_v33 }
0x11fe   : > { %v3468_v35 = vmul.f32 %v3466_v32, %v3466_v32 }
0x1200   : > { %v3472_v61 = vsel %vm2847_vm8, %v3468_v35, 0.0 }
0x1201   : > { %3473 = vadd.xlane.f32.xlu0 %v3472_v61 }
0x128a   : > { %v3471_v62 = vpop.xlane.xlu0 %3470 }
0x128b   : > { %v3475_v38 = vmul.f32 0.015625, %v3471_v62 }
0x128d   : > { %v3477_v39 = vadd.f32 1e-05, %v3475_v38 }
0x128e   : > { %v3474_v40 = vpop.xlane.xlu0 %3473 }
0x128f   : > { %4336 = vrsqrt.f32 %v3477_v39  ;;  %v3476_v41 = vmul.f32 0.015625, %v3474_v40 }
0x1291   : > { %v3478_v25 = vadd.f32 1e-05, %v3476_v41 }
0x1293   : > { %4338 = vrsqrt.f32 %v3478_v25 }
0x1299   : > { %v4337_v37 = vpop.eup %4336 }
0x129a   : > { %v3481_v43 = vmul.f32 %v4337_v37, %v3465_v26 }
0x129c   : > { %v3489_v45 = vmul.f32 %v3700_v42, %v3481_v43 }
0x129d   : > { %v4339_v46 = vpop.eup %4338 }
0x129e   : > { %v3497_v47 = vadd.f32 %v3701_v44, %v3489_v45  ;;  %v3482_v48 = vmul.f32 %v4339_v46, %v3466_v32 }
0x12a0   : > { %3499 = vst.msk [vmem:[%s440_s23] sm:$0xff] %vm505_vm0, %v3497_v47  ;;  %v3490_v49 = vmul.f32 %v3700_v42, %v3482_v48 }
0x12a2   : > { %v3498_v50 = vadd.f32 %v3701_v44, %v3490_v49 }
0x12a4   : > { %3500 = vst.msk [vmem:[%s440_s23 + $0x8] sm:$0x1] %vm2847_vm8, %v3498_v50 }
0x12a5 PF: > { %s23_s25 = sadd.s32 1, %s4348_s25  }
0x12a6   : > { %p20_p4 = scmp.ge.s32.totalorder %s23_s25, 4  }
0x12a8   :  { %22 = sbr.rel (!%p20_p4) target bundleno = 1 (0x1), region = 102 }

</bundles_post_ra>
